<compile_context>
chip_gen: v6e
topology: v6e:2x2x1
jax: 0.10.0
libtpu: 0.0.40
codegen_flags: <defaults>
</compile_context>

<pallas_src>
import functools

import jax
import jax.numpy as jnp
from jax.experimental import pallas as pl
from jax.experimental.pallas import tpu as pltpu

Z_DIM = 10
NC = 1
ACT_DTYPE = jnp.bfloat16          # MXU operand dtype; epilogues stay f32
MAX_SINGLE_BLOCK_ROWS = 2048      # above this, tile the row dim


def _round_up(x, m):
    return ((x + m - 1) // m) * m


# ----------------------------------------------------------------------------
# Pallas kernels
# ----------------------------------------------------------------------------
def _matmul_bias_act_kernel(a_ref, w_ref, b_ref, o_ref, *, relu):
    acc = jnp.dot(a_ref[...], w_ref[...], preferred_element_type=jnp.float32)
    acc = acc + b_ref[...]                      # bias in f32
    if relu:
        acc = jnp.maximum(acc, 0.0)
    o_ref[...] = acc.astype(o_ref.dtype)


def _tail_kernel(h_ref, wmu_ref, bmu_ref, wlv_ref, blv_ref,
                 eps_ref, wd1_ref, bd1_ref,
                 mu_ref, lv_ref, h2_ref):
    """Fused: e5 linear (split into mu/logvar halves) -> reparametrize -> d1 linear+ReLU."""
    h = h_ref[...]
    mu = jnp.dot(h, wmu_ref[...], preferred_element_type=jnp.float32) + bmu_ref[...]
    lv = jnp.dot(h, wlv_ref[...], preferred_element_type=jnp.float32) + blv_ref[...]
    z = mu + jnp.exp(lv * 0.5) * eps_ref[...]
    h2 = jnp.dot(z, wd1_ref[...], preferred_element_type=jnp.float32) + bd1_ref[...]
    mu_ref[...] = mu
    lv_ref[...] = lv
    h2_ref[...] = jnp.maximum(h2, 0.0).astype(h2_ref.dtype)


# ----------------------------------------------------------------------------
# Pallas wrappers
# ----------------------------------------------------------------------------
def matmul_bias_act(a, w, b, relu=False, out_dtype=jnp.float32):
    """a: [M, K], w: [K, N] (bf16/f32, pre-laid-out), b: [1, N] f32 -> [M, N]."""
    M, K = a.shape
    Kw, N = w.shape
    assert K == Kw
    a = a.astype(w.dtype)
    kern = functools.partial(_matmul_bias_act_kernel, relu=relu)

    if M <= MAX_SINGLE_BLOCK_ROWS:
        # Single full-array block: legal regardless of (8,128) divisibility,
        # no padding copies, one grid step.
        return pl.pallas_call(
            kern,
            out_shape=jax.ShapeDtypeStruct((M, N), out_dtype),
            grid=(1,),
            in_specs=[
                pl.BlockSpec((M, K), lambda i: (0, 0)),
                pl.BlockSpec((K, N), lambda i: (0, 0)),
                pl.BlockSpec((1, N), lambda i: (0, 0)),
            ],
            out_specs=pl.BlockSpec((M, N), lambda i: (0, 0)),
        )(a, w, b)

    # Large-batch fallback: tile the row dimension.
    TM = 256
    Mp = _round_up(M, TM)
    if Mp != M:
        a = jnp.pad(a, ((0, Mp - M), (0, 0)))
    out = pl.pallas_call(
        kern,
        out_shape=jax.ShapeDtypeStruct((Mp, N), out_dtype),
        grid=(Mp // TM,),
        in_specs=[
            pl.BlockSpec((TM, K), lambda i: (i, 0)),
            pl.BlockSpec((K, N), lambda i: (0, 0)),
            pl.BlockSpec((1, N), lambda i: (0, 0)),
        ],
        out_specs=pl.BlockSpec((TM, N), lambda i: (i, 0)),
        compiler_params=pltpu.CompilerParams(dimension_semantics=("parallel",)),
    )(a, w, b)
    return out[:M]


def encode_tail(h, eps, q):
    """Fused e5-linear -> reparametrize -> d1-linear(+ReLU). h: [B,256] f32, eps: [B,z]."""
    B = h.shape[0]
    z = q["w_mu"].shape[1]
    d = q["w_d1"].shape[1]
    full = lambda shp: pl.BlockSpec(shp, lambda i: (0,) * len(shp))
    mu, lv, h2 = pl.pallas_call(
        _tail_kernel,
        out_shape=(jax.ShapeDtypeStruct((B, z), jnp.float32),
                   jax.ShapeDtypeStruct((B, z), jnp.float32),
                   jax.ShapeDtypeStruct((B, d), ACT_DTYPE)),
        grid=(1,),
        in_specs=[full((B, 256)),
                  full((256, z)), full((1, z)),
                  full((256, z)), full((1, z)),
                  full((B, z)),
                  full((z, d)), full((1, d))],
        out_specs=(full((B, z)), full((B, z)), full((B, d))),
    )(h, q["w_mu"], q["b_mu"], q["w_lv"], q["b_lv"], eps, q["w_d1"], q["b_d1"])
    return mu, lv, h2


# ----------------------------------------------------------------------------
# Plain-JAX glue: NHWC im2col / dilation (host-side layout plumbing only)
# ----------------------------------------------------------------------------
def _im2col_nhwc(x, k, stride, pad):
    """x: [B, H, W, C] -> ([B*Ho*Wo, k*k*C], Ho, Wo); row layout (di, dj, C)."""
    if pad > 0:
        x = jnp.pad(x, ((0, 0), (pad, pad), (pad, pad), (0, 0)))
    B, H, W, C = x.shape
    Ho = (H - k) // stride + 1
    Wo = (W - k) // stride + 1
    patches = []
    for di in range(k):
        for dj in range(k):
            patches.append(x[:, di:di + stride * Ho:stride, dj:dj + stride * Wo:stride, :])
    cols = jnp.stack(patches, axis=3)                     # [B, Ho, Wo, k*k, C]
    cols = cols.reshape(B * Ho * Wo, k * k * C)
    return cols, Ho, Wo


def _dilate_nhwc(x, s):
    if s == 1:
        return x
    B, H, W, C = x.shape
    out = jnp.zeros((B, (H - 1) * s + 1, (W - 1) * s + 1, C), x.dtype)
    return out.at[:, ::s, ::s, :].set(x)


def conv2d_nhwc(x, w_gemm, b, k, stride, pad, relu, out_dtype=ACT_DTYPE):
    """x: [B,H,W,Cin] NHWC, w_gemm: [k*k*Cin, Cout] (pre-laid-out), b: [1,Cout] f32."""
    B = x.shape[0]
    cols, Ho, Wo = _im2col_nhwc(x, k, stride, pad)
    Co = w_gemm.shape[1]
    out = matmul_bias_act(cols, w_gemm, b, relu=relu, out_dtype=out_dtype)
    return out.reshape(B, Ho, Wo, Co)                     # stays NHWC, no transpose


def conv_transpose2d_nhwc(x, w_gemm, b, k, stride, pad, relu, out_dtype=ACT_DTYPE):
    """ConvTranspose == dilate -> pad/crop -> stride-1 conv with pre-flipped kernel."""
    xd = _dilate_nhwc(x, stride)
    edge = k - 1 - pad
    if edge > 0:
        xp = jnp.pad(xd, ((0, 0), (edge, edge), (edge, edge), (0, 0)))
    elif edge < 0:
        c = -edge
        xp = xd[:, c:-c, c:-c, :]
    else:
        xp = xd
    return conv2d_nhwc(xp, w_gemm, b, k, stride=1, pad=0, relu=relu, out_dtype=out_dtype)


# ----------------------------------------------------------------------------
# Parameters: PyTorch-layout init, then a ONE-TIME conversion to kernel layout
# ----------------------------------------------------------------------------
def init_params(key, z_dim=Z_DIM, nc=NC):
    ks = jax.random.split(key, 11)

    def nrm(k, shape, fan_in):
        return jax.random.normal(k, shape, jnp.float32) * jnp.sqrt(2.0 / fan_in)

    p = {}
    # encoder convs: [Cout, Cin, k, k]
    p["e1_w"] = nrm(ks[0], (32, nc, 4, 4), nc * 16);    p["e1_b"] = jnp.zeros((32,), jnp.float32)
    p["e2_w"] = nrm(ks[1], (64, 32, 4, 4), 32 * 16);    p["e2_b"] = jnp.zeros((64,), jnp.float32)
    p["e3_w"] = nrm(ks[2], (64, 64, 4, 4), 64 * 16);    p["e3_b"] = jnp.zeros((64,), jnp.float32)
    p["e4_w"] = nrm(ks[3], (256, 64, 2, 2), 64 * 4);    p["e4_b"] = jnp.zeros((256,), jnp.float32)
    # encoder linear: [out, in] (PyTorch layout)
    p["e5_w"] = nrm(ks[4], (2 * z_dim, 256), 256);      p["e5_b"] = jnp.zeros((2 * z_dim,), jnp.float32)
    # decoder linear
    p["d1_w"] = nrm(ks[5], (256, z_dim), z_dim);        p["d1_b"] = jnp.zeros((256,), jnp.float32)
    # decoder conv-transposes: [Cin, Cout, k, k]
    p["d2_w"] = nrm(ks[6], (256, 64, 4, 4), 256 * 16);  p["d2_b"] = jnp.zeros((64,), jnp.float32)
    p["d3_w"] = nrm(ks[7], (64, 64, 4, 4), 64 * 16);    p["d3_b"] = jnp.zeros((64,), jnp.float32)
    p["d4_w"] = nrm(ks[8], (64, 32, 4, 4), 64 * 16);    p["d4_b"] = jnp.zeros((32,), jnp.float32)
    p["d5_w"] = nrm(ks[9], (32, nc, 2, 2), 32 * 4);     p["d5_b"] = jnp.zeros((nc,), jnp.float32)
    return p


def prepare_params(p, z_dim=Z_DIM):
    """One-time conversion: GEMM weight layout, pre-flipped deconvs, bf16 MXU operands."""
    def conv_gemm(w):                       # [Cout, Cin, kh, kw] -> [kh*kw*Cin, Cout]
        Co, Ci, kh, kw = w.shape
        return w.transpose(2, 3, 1, 0).reshape(kh * kw * Ci, Co).astype(ACT_DTYPE)

    def deconv_gemm(w):                     # [Cin, Cout, kh, kw] -> equivalent conv GEMM
        Ci, Co, kh, kw = w.shape
        return (jnp.flip(w, (2, 3)).transpose(2, 3, 0, 1)
                .reshape(kh * kw * Ci, Co).astype(ACT_DTYPE))

    def bias2d(b):
        return b.reshape(1, -1).astype(jnp.float32)

    q = {}
    for name in ("e1", "e2", "e3", "e4"):
        q[name + "_w"] = conv_gemm(p[name + "_w"]);   q[name + "_b"] = bias2d(p[name + "_b"])
    for name in ("d2", "d3", "d4", "d5"):
        q[name + "_w"] = deconv_gemm(p[name + "_w"]); q[name + "_b"] = bias2d(p[name + "_b"])
    # fused tail: split e5 into mu/logvar halves (avoids in-kernel lane slicing); f32
    q["w_mu"] = p["e5_w"][:z_dim].T.astype(jnp.float32)      # [256, z]
    q["b_mu"] = p["e5_b"][:z_dim].reshape(1, -1).astype(jnp.float32)
    q["w_lv"] = p["e5_w"][z_dim:].T.astype(jnp.float32)      # [256, z]
    q["b_lv"] = p["e5_b"][z_dim:].reshape(1, -1).astype(jnp.float32)
    q["w_d1"] = p["d1_w"].T.astype(jnp.float32)              # [z, 256]
    q["b_d1"] = p["d1_b"].reshape(1, -1).astype(jnp.float32)
    return q


# ----------------------------------------------------------------------------
# Forward pass (matches BetaVAE_M.forward)
# ----------------------------------------------------------------------------
def beta_vae_forward(q, x, eps):
    B = x.shape[0]
    h = x.transpose(0, 2, 3, 1).astype(ACT_DTYPE)                         # NCHW -> NHWC once
    # ---- encoder ----
    h = conv2d_nhwc(h, q["e1_w"], q["e1_b"], 4, 2, 1, relu=True)          # [B,14,14, 32]
    h = conv2d_nhwc(h, q["e2_w"], q["e2_b"], 4, 2, 0, relu=True)          # [B, 6, 6, 64]
    h = conv2d_nhwc(h, q["e3_w"], q["e3_b"], 4, 2, 0, relu=True)          # [B, 2, 2, 64]
    h = conv2d_nhwc(h, q["e4_w"], q["e4_b"], 2, 2, 0, relu=True,
                    out_dtype=jnp.float32)                                # [B, 1, 1,256]
    h = h.reshape(B, 256)                                                 # View((-1, 256))
    # ---- fused linear -> reparametrize -> linear+ReLU ----
    mu, logvar, h = encode_tail(h, eps, q)
    # ---- decoder ----
    h = h.reshape(B, 1, 1, 256)                                           # View((-1,256,1,1)), NHWC
    h = conv_transpose2d_nhwc(h, q["d2_w"], q["d2_b"], 4, 1, 0, relu=True)   # [B, 4, 4, 64]
    h = conv_transpose2d_nhwc(h, q["d3_w"], q["d3_b"], 4, 2, 1, relu=True)   # [B, 8, 8, 64]
    h = conv_transpose2d_nhwc(h, q["d4_w"], q["d4_b"], 4, 2, 1, relu=True)   # [B,16,16, 32]
    xr = conv_transpose2d_nhwc(h, q["d5_w"], q["d5_b"], 2, 2, 2, relu=False,
                               out_dtype=jnp.float32)                        # [B,28,28,  1]
    x_recon = xr.transpose(0, 3, 1, 2)                                    # NHWC -> NCHW once
    return x_recon, mu, logvar


if __name__ == "__main__":
    key = jax.random.PRNGKey(0)
    k_param, k_x, k_eps = jax.random.split(key, 3)

    params = init_params(k_param)
    prepped = prepare_params(params)          # one-time layout/dtype conversion

    # 28x28 single-channel input (the size this encoder/decoder pair implies)
    x = jax.random.normal(k_x, (2, NC, 28, 28), jnp.float32)
    eps = jax.random.normal(k_eps, (2, Z_DIM), jnp.float32)

    fwd = jax.jit(beta_vae_forward)
    x_recon, mu, logvar = fwd(prepped, x, eps)
    jax.block_until_ready((x_recon, mu, logvar))

    assert x_recon.shape == (2, NC, 28, 28), x_recon.shape
    assert mu.shape == (2, Z_DIM) and logvar.shape == (2, Z_DIM)
    print("KERNEL_OK")
</pallas_src>

<mosaic_0001>
module attributes {stable_mosaic.version = 11 : i64} {
  func.func @_matmul_bias_act_kernel(%arg0: i32, %arg1: memref<392x16xbf16, #tpu.memory_space<vmem>>, %arg2: memref<16x32xbf16, #tpu.memory_space<vmem>>, %arg3: memref<1x32xf32, #tpu.memory_space<vmem>>, %arg4: memref<392x32xbf16, #tpu.memory_space<vmem>>) attributes {dimension_semantics = [#tpu.dimension_semantics<arbitrary>], iteration_bounds = array<i64: 1>, scalar_prefetch = 0 : i64, scratch_operands = 0 : i64, tpu.core_type = #tpu.core_type<tc>, window_params = [{pipeline_mode = #tpu.pipeline_mode<synchronous>, transform_indices = @transform_0, window_bounds = array<i64: 392, 16>}, {pipeline_mode = #tpu.pipeline_mode<synchronous>, transform_indices = @transform_1, window_bounds = array<i64: 16, 32>}, {pipeline_mode = #tpu.pipeline_mode<synchronous>, transform_indices = @transform_2, window_bounds = array<i64: 1, 32>}, {pipeline_mode = #tpu.pipeline_mode<synchronous>, transform_indices = @transform_3, window_bounds = array<i64: 392, 32>}]} {
    %c0 = arith.constant 0 : index
    %c0_0 = arith.constant 0 : index
    %0 = vector.load %arg1[%c0, %c0_0] : memref<392x16xbf16, #tpu.memory_space<vmem>>, vector<392x16xbf16>
    %c0_1 = arith.constant 0 : index
    %c0_2 = arith.constant 0 : index
    %1 = vector.load %arg2[%c0_1, %c0_2] : memref<16x32xbf16, #tpu.memory_space<vmem>>, vector<16x32xbf16>
    %cst = arith.constant dense<0.000000e+00> : vector<392x32xf32>
    %2 = tpu.matmul %0, %1, %cst {dimension_numbers = #tpu.dot_dimension_numbers<[1], [0], [0], [1], [0, 0, 1, 1], [], []>} : vector<392x16xbf16>, vector<16x32xbf16>, vector<392x32xf32> -> vector<392x32xf32>
    %c0_3 = arith.constant 0 : index
    %c0_4 = arith.constant 0 : index
    %3 = vector.load %arg3[%c0_3, %c0_4] : memref<1x32xf32, #tpu.memory_space<vmem>>, vector<1x32xf32>
    %4 = vector.broadcast %3 : vector<1x32xf32> to vector<392x32xf32>
    %5 = arith.addf %2, %4 : vector<392x32xf32>
    %cst_5 = arith.constant 0.000000e+00 : f32
    %6 = vector.broadcast %cst_5 : f32 to vector<392x32xf32>
    %7 = arith.maximumf %5, %6 : vector<392x32xf32>
    %8 = arith.truncf %7 : vector<392x32xf32> to vector<392x32xbf16>
    %c0_6 = arith.constant 0 : index
    %c0_7 = arith.constant 0 : index
    %9 = vector.load %arg4[%c0_6, %c0_7] : memref<392x32xbf16, #tpu.memory_space<vmem>>, vector<392x32xbf16>
    tpu.vector_store %arg4[%c0_6, %c0_7], %8 {strides = array<i32>} : memref<392x32xbf16, #tpu.memory_space<vmem>>, vector<392x32xbf16>,
    return
  }
  func.func @transform_0(%arg0: i32) -> (i32, i32) {
    %c0_i32 = arith.constant 0 : i32
    %c0_i32_0 = arith.constant 0 : i32
    %c0_i32_1 = arith.constant 0 : i32
    return %c0_i32, %c0_i32_0 : i32, i32
  }
  func.func @transform_1(%arg0: i32) -> (i32, i32) {
    %c0_i32 = arith.constant 0 : i32
    %c0_i32_0 = arith.constant 0 : i32
    %c0_i32_1 = arith.constant 0 : i32
    return %c0_i32, %c0_i32_0 : i32, i32
  }
  func.func @transform_2(%arg0: i32) -> (i32, i32) {
    %c0_i32 = arith.constant 0 : i32
    %c0_i32_0 = arith.constant 0 : i32
    %c0_i32_1 = arith.constant 0 : i32
    return %c0_i32, %c0_i32_0 : i32, i32
  }
  func.func @transform_3(%arg0: i32) -> (i32, i32) {
    %c0_i32 = arith.constant 0 : i32
    %c0_i32_0 = arith.constant 0 : i32
    %c0_i32_1 = arith.constant 0 : i32
    return %c0_i32, %c0_i32_0 : i32, i32
  }
}

module attributes {stable_mosaic.version = 11 : i64} {
  func.func @_matmul_bias_act_kernel(%arg0: i32, %arg1: memref<72x512xbf16, #tpu.memory_space<vmem>>, %arg2: memref<512x64xbf16, #tpu.memory_space<vmem>>, %arg3: memref<1x64xf32, #tpu.memory_space<vmem>>, %arg4: memref<72x64xbf16, #tpu.memory_space<vmem>>) attributes {dimension_semantics = [#tpu.dimension_semantics<arbitrary>], iteration_bounds = array<i64: 1>, scalar_prefetch = 0 : i64, scratch_operands = 0 : i64, tpu.core_type = #tpu.core_type<tc>, window_params = [{pipeline_mode = #tpu.pipeline_mode<synchronous>, transform_indices = @transform_0, window_bounds = array<i64: 72, 512>}, {pipeline_mode = #tpu.pipeline_mode<synchronous>, transform_indices = @transform_1, window_bounds = array<i64: 512, 64>}, {pipeline_mode = #tpu.pipeline_mode<synchronous>, transform_indices = @transform_2, window_bounds = array<i64: 1, 64>}, {pipeline_mode = #tpu.pipeline_mode<synchronous>, transform_indices = @transform_3, window_bounds = array<i64: 72, 64>}]} {
    %c0 = arith.constant 0 : index
    %c0_0 = arith.constant 0 : index
    %0 = vector.load %arg1[%c0, %c0_0] : memref<72x512xbf16, #tpu.memory_space<vmem>>, vector<72x512xbf16>
    %c0_1 = arith.constant 0 : index
    %c0_2 = arith.constant 0 : index
    %1 = vector.load %arg2[%c0_1, %c0_2] : memref<512x64xbf16, #tpu.memory_space<vmem>>, vector<512x64xbf16>
    %cst = arith.constant dense<0.000000e+00> : vector<72x64xf32>
    %2 = tpu.matmul %0, %1, %cst {dimension_numbers = #tpu.dot_dimension_numbers<[1], [0], [0], [1], [0, 0, 1, 1], [], []>} : vector<72x512xbf16>, vector<512x64xbf16>, vector<72x64xf32> -> vector<72x64xf32>
    %c0_3 = arith.constant 0 : index
    %c0_4 = arith.constant 0 : index
    %3 = vector.load %arg3[%c0_3, %c0_4] : memref<1x64xf32, #tpu.memory_space<vmem>>, vector<1x64xf32>
    %4 = vector.broadcast %3 : vector<1x64xf32> to vector<72x64xf32>
    %5 = arith.addf %2, %4 : vector<72x64xf32>
    %cst_5 = arith.constant 0.000000e+00 : f32
    %6 = vector.broadcast %cst_5 : f32 to vector<72x64xf32>
    %7 = arith.maximumf %5, %6 : vector<72x64xf32>
    %8 = arith.truncf %7 : vector<72x64xf32> to vector<72x64xbf16>
    %c0_6 = arith.constant 0 : index
    %c0_7 = arith.constant 0 : index
    %9 = vector.load %arg4[%c0_6, %c0_7] : memref<72x64xbf16, #tpu.memory_space<vmem>>, vector<72x64xbf16>
    tpu.vector_store %arg4[%c0_6, %c0_7], %8 {strides = array<i32>} : memref<72x64xbf16, #tpu.memory_space<vmem>>, vector<72x64xbf16>,
    return
  }
  func.func @transform_0(%arg0: i32) -> (i32, i32) {
    %c0_i32 = arith.constant 0 : i32
    %c0_i32_0 = arith.constant 0 : i32
    %c0_i32_1 = arith.constant 0 : i32
    return %c0_i32, %c0_i32_0 : i32, i32
  }
  func.func @transform_1(%arg0: i32) -> (i32, i32) {
    %c0_i32 = arith.constant 0 : i32
    %c0_i32_0 = arith.constant 0 : i32
    %c0_i32_1 = arith.constant 0 : i32
    return %c0_i32, %c0_i32_0 : i32, i32
  }
  func.func @transform_2(%arg0: i32) -> (i32, i32) {
    %c0_i32 = arith.constant 0 : i32
    %c0_i32_0 = arith.constant 0 : i32
    %c0_i32_1 = arith.constant 0 : i32
    return %c0_i32, %c0_i32_0 : i32, i32
  }
  func.func @transform_3(%arg0: i32) -> (i32, i32) {
    %c0_i32 = arith.constant 0 : i32
    %c0_i32_0 = arith.constant 0 : i32
    %c0_i32_1 = arith.constant 0 : i32
    return %c0_i32, %c0_i32_0 : i32, i32
  }
}

module attributes {stable_mosaic.version = 11 : i64} {
  func.func @_matmul_bias_act_kernel(%arg0: i32, %arg1: memref<8x1024xbf16, #tpu.memory_space<vmem>>, %arg2: memref<1024x64xbf16, #tpu.memory_space<vmem>>, %arg3: memref<1x64xf32, #tpu.memory_space<vmem>>, %arg4: memref<8x64xbf16, #tpu.memory_space<vmem>>) attributes {dimension_semantics = [#tpu.dimension_semantics<arbitrary>], iteration_bounds = array<i64: 1>, scalar_prefetch = 0 : i64, scratch_operands = 0 : i64, tpu.core_type = #tpu.core_type<tc>, window_params = [{pipeline_mode = #tpu.pipeline_mode<synchronous>, transform_indices = @transform_0, window_bounds = array<i64: 8, 1024>}, {pipeline_mode = #tpu.pipeline_mode<synchronous>, transform_indices = @transform_1, window_bounds = array<i64: 1024, 64>}, {pipeline_mode = #tpu.pipeline_mode<synchronous>, transform_indices = @transform_2, window_bounds = array<i64: 1, 64>}, {pipeline_mode = #tpu.pipeline_mode<synchronous>, transform_indices = @transform_3, window_bounds = array<i64: 8, 64>}]} {
    %c0 = arith.constant 0 : index
    %c0_0 = arith.constant 0 : index
    %0 = vector.load %arg1[%c0, %c0_0] : memref<8x1024xbf16, #tpu.memory_space<vmem>>, vector<8x1024xbf16>
    %c0_1 = arith.constant 0 : index
    %c0_2 = arith.constant 0 : index
    %1 = vector.load %arg2[%c0_1, %c0_2] : memref<1024x64xbf16, #tpu.memory_space<vmem>>, vector<1024x64xbf16>
    %cst = arith.constant dense<0.000000e+00> : vector<8x64xf32>
    %2 = tpu.matmul %0, %1, %cst {dimension_numbers = #tpu.dot_dimension_numbers<[1], [0], [0], [1], [0, 0, 1, 1], [], []>} : vector<8x1024xbf16>, vector<1024x64xbf16>, vector<8x64xf32> -> vector<8x64xf32>
    %c0_3 = arith.constant 0 : index
    %c0_4 = arith.constant 0 : index
    %3 = vector.load %arg3[%c0_3, %c0_4] : memref<1x64xf32, #tpu.memory_space<vmem>>, vector<1x64xf32>
    %4 = vector.broadcast %3 : vector<1x64xf32> to vector<8x64xf32>
    %5 = arith.addf %2, %4 : vector<8x64xf32>
    %cst_5 = arith.constant 0.000000e+00 : f32
    %6 = vector.broadcast %cst_5 : f32 to vector<8x64xf32>
    %7 = arith.maximumf %5, %6 : vector<8x64xf32>
    %8 = arith.truncf %7 : vector<8x64xf32> to vector<8x64xbf16>
    %c0_6 = arith.constant 0 : index
    %c0_7 = arith.constant 0 : index
    %9 = vector.load %arg4[%c0_6, %c0_7] : memref<8x64xbf16, #tpu.memory_space<vmem>>, vector<8x64xbf16>
    tpu.vector_store %arg4[%c0_6, %c0_7], %8 {strides = array<i32>} : memref<8x64xbf16, #tpu.memory_space<vmem>>, vector<8x64xbf16>,
    return
  }
  func.func @transform_0(%arg0: i32) -> (i32, i32) {
    %c0_i32 = arith.constant 0 : i32
    %c0_i32_0 = arith.constant 0 : i32
    %c0_i32_1 = arith.constant 0 : i32
    return %c0_i32, %c0_i32_0 : i32, i32
  }
  func.func @transform_1(%arg0: i32) -> (i32, i32) {
    %c0_i32 = arith.constant 0 : i32
    %c0_i32_0 = arith.constant 0 : i32
    %c0_i32_1 = arith.constant 0 : i32
    return %c0_i32, %c0_i32_0 : i32, i32
  }
  func.func @transform_2(%arg0: i32) -> (i32, i32) {
    %c0_i32 = arith.constant 0 : i32
    %c0_i32_0 = arith.constant 0 : i32
    %c0_i32_1 = arith.constant 0 : i32
    return %c0_i32, %c0_i32_0 : i32, i32
  }
  func.func @transform_3(%arg0: i32) -> (i32, i32) {
    %c0_i32 = arith.constant 0 : i32
    %c0_i32_0 = arith.constant 0 : i32
    %c0_i32_1 = arith.constant 0 : i32
    return %c0_i32, %c0_i32_0 : i32, i32
  }
}

module attributes {stable_mosaic.version = 11 : i64} {
  func.func @_tail_kernel(%arg0: i32, %arg1: memref<2x256xf32, #tpu.memory_space<vmem>>, %arg2: memref<256x10xf32, #tpu.memory_space<vmem>>, %arg3: memref<1x10xf32, #tpu.memory_space<vmem>>, %arg4: memref<256x10xf32, #tpu.memory_space<vmem>>, %arg5: memref<1x10xf32, #tpu.memory_space<vmem>>, %arg6: memref<2x10xf32, #tpu.memory_space<vmem>>, %arg7: memref<10x256xf32, #tpu.memory_space<vmem>>, %arg8: memref<1x256xf32, #tpu.memory_space<vmem>>, %arg9: memref<2x10xf32, #tpu.memory_space<vmem>>, %arg10: memref<2x10xf32, #tpu.memory_space<vmem>>, %arg11: memref<2x256xbf16, #tpu.memory_space<vmem>>) attributes {dimension_semantics = [#tpu.dimension_semantics<arbitrary>], iteration_bounds = array<i64: 1>, scalar_prefetch = 0 : i64, scratch_operands = 0 : i64, tpu.core_type = #tpu.core_type<tc>, window_params = [{pipeline_mode = #tpu.pipeline_mode<synchronous>, transform_indices = @transform_0, window_bounds = array<i64: 2, 256>}, {pipeline_mode = #tpu.pipeline_mode<synchronous>, transform_indices = @transform_1, window_bounds = array<i64: 256, 10>}, {pipeline_mode = #tpu.pipeline_mode<synchronous>, transform_indices = @transform_2, window_bounds = array<i64: 1, 10>}, {pipeline_mode = #tpu.pipeline_mode<synchronous>, transform_indices = @transform_3, window_bounds = array<i64: 256, 10>}, {pipeline_mode = #tpu.pipeline_mode<synchronous>, transform_indices = @transform_4, window_bounds = array<i64: 1, 10>}, {pipeline_mode = #tpu.pipeline_mode<synchronous>, transform_indices = @transform_5, window_bounds = array<i64: 2, 10>}, {pipeline_mode = #tpu.pipeline_mode<synchronous>, transform_indices = @transform_6, window_bounds = array<i64: 10, 256>}, {pipeline_mode = #tpu.pipeline_mode<synchronous>, transform_indices = @transform_7, window_bounds = array<i64: 1, 256>}, {pipeline_mode = #tpu.pipeline_mode<synchronous>, transform_indices = @transform_8, window_bounds = array<i64: 2, 10>}, {pipeline_mode = #tpu.pipeline_mode<synchronous>, transform_indices = @transform_9, window_bounds = array<i64: 2, 10>}, {pipeline_mode = #tpu.pipeline_mode<synchronous>, transform_indices = @transform_10, window_bounds = array<i64: 2, 256>}]} {
    %c0 = arith.constant 0 : index
    %c0_0 = arith.constant 0 : index
    %0 = vector.load %arg1[%c0, %c0_0] : memref<2x256xf32, #tpu.memory_space<vmem>>, vector<2x256xf32>
    %c0_1 = arith.constant 0 : index
    %c0_2 = arith.constant 0 : index
    %1 = vector.load %arg2[%c0_1, %c0_2] : memref<256x10xf32, #tpu.memory_space<vmem>>, vector<256x10xf32>
    %cst = arith.constant dense<0.000000e+00> : vector<2x10xf32>
    %2 = tpu.matmul %0, %1, %cst {dimension_numbers = #tpu.dot_dimension_numbers<[1], [0], [0], [1], [0, 0, 1, 1], [], []>} : vector<2x256xf32>, vector<256x10xf32>, vector<2x10xf32> -> vector<2x10xf32>
    %c0_3 = arith.constant 0 : index
    %c0_4 = arith.constant 0 : index
    %3 = vector.load %arg3[%c0_3, %c0_4] : memref<1x10xf32, #tpu.memory_space<vmem>>, vector<1x10xf32>
    %4 = vector.broadcast %3 : vector<1x10xf32> to vector<2x10xf32>
    %5 = arith.addf %2, %4 : vector<2x10xf32>
    %c0_5 = arith.constant 0 : index
    %c0_6 = arith.constant 0 : index
    %6 = vector.load %arg4[%c0_5, %c0_6] : memref<256x10xf32, #tpu.memory_space<vmem>>, vector<256x10xf32>
    %cst_7 = arith.constant dense<0.000000e+00> : vector<2x10xf32>
    %7 = tpu.matmul %0, %6, %cst_7 {dimension_numbers = #tpu.dot_dimension_numbers<[1], [0], [0], [1], [0, 0, 1, 1], [], []>} : vector<2x256xf32>, vector<256x10xf32>, vector<2x10xf32> -> vector<2x10xf32>
    %c0_8 = arith.constant 0 : index
    %c0_9 = arith.constant 0 : index
    %8 = vector.load %arg5[%c0_8, %c0_9] : memref<1x10xf32, #tpu.memory_space<vmem>>, vector<1x10xf32>
    %9 = vector.broadcast %8 : vector<1x10xf32> to vector<2x10xf32>
    %10 = arith.addf %7, %9 : vector<2x10xf32>
    %cst_10 = arith.constant 5.000000e-01 : f32
    %11 = vector.broadcast %cst_10 : f32 to vector<2x10xf32>
    %12 = arith.mulf %10, %11 : vector<2x10xf32>
    %13 = math.exp %12 : vector<2x10xf32>
    %c0_11 = arith.constant 0 : index
    %c0_12 = arith.constant 0 : index
    %14 = vector.load %arg6[%c0_11, %c0_12] : memref<2x10xf32, #tpu.memory_space<vmem>>, vector<2x10xf32>
    %15 = arith.mulf %13, %14 : vector<2x10xf32>
    %16 = arith.addf %5, %15 : vector<2x10xf32>
    %c0_13 = arith.constant 0 : index
    %c0_14 = arith.constant 0 : index
    %17 = vector.load %arg7[%c0_13, %c0_14] : memref<10x256xf32, #tpu.memory_space<vmem>>, vector<10x256xf32>
    %cst_15 = arith.constant dense<0.000000e+00> : vector<2x256xf32>
    %18 = tpu.matmul %16, %17, %cst_15 {dimension_numbers = #tpu.dot_dimension_numbers<[1], [0], [0], [1], [0, 0, 1, 1], [], []>} : vector<2x10xf32>, vector<10x256xf32>, vector<2x256xf32> -> vector<2x256xf32>
    %c0_16 = arith.constant 0 : index
    %c0_17 = arith.constant 0 : index
    %19 = vector.load %arg8[%c0_16, %c0_17] : memref<1x256xf32, #tpu.memory_space<vmem>>, vector<1x256xf32>
    %20 = vector.broadcast %19 : vector<1x256xf32> to vector<2x256xf32>
    %21 = arith.addf %18, %20 : vector<2x256xf32>
    %c0_18 = arith.constant 0 : index
    %c0_19 = arith.constant 0 : index
    %22 = vector.load %arg9[%c0_18, %c0_19] : memref<2x10xf32, #tpu.memory_space<vmem>>, vector<2x10xf32>
    tpu.vector_store %arg9[%c0_18, %c0_19], %5 {strides = array<i32>} : memref<2x10xf32, #tpu.memory_space<vmem>>, vector<2x10xf32>,
    %c0_20 = arith.constant 0 : index
    %c0_21 = arith.constant 0 : index
    %23 = vector.load %arg10[%c0_20, %c0_21] : memref<2x10xf32, #tpu.memory_space<vmem>>, vector<2x10xf32>
    tpu.vector_store %arg10[%c0_20, %c0_21], %10 {strides = array<i32>} : memref<2x10xf32, #tpu.memory_space<vmem>>, vector<2x10xf32>,
    %cst_22 = arith.constant 0.000000e+00 : f32
    %24 = vector.broadcast %cst_22 : f32 to vector<2x256xf32>
    %25 = arith.maximumf %21, %24 : vector<2x256xf32>
    %26 = arith.truncf %25 : vector<2x256xf32> to vector<2x256xbf16>
    %c0_23 = arith.constant 0 : index
    %c0_24 = arith.constant 0 : index
    %27 = vector.load %arg11[%c0_23, %c0_24] : memref<2x256xbf16, #tpu.memory_space<vmem>>, vector<2x256xbf16>
    tpu.vector_store %arg11[%c0_23, %c0_24], %26 {strides = array<i32>} : memref<2x256xbf16, #tpu.memory_space<vmem>>, vector<2x256xbf16>,
    return
  }
  func.func @transform_0(%arg0: i32) -> (i32, i32) {
    %c0_i32 = arith.constant 0 : i32
    %c0_i32_0 = arith.constant 0 : i32
    %c0_i32_1 = arith.constant 0 : i32
    return %c0_i32, %c0_i32_0 : i32, i32
  }
  func.func @transform_1(%arg0: i32) -> (i32, i32) {
    %c0_i32 = arith.constant 0 : i32
    %c0_i32_0 = arith.constant 0 : i32
    %c0_i32_1 = arith.constant 0 : i32
    return %c0_i32, %c0_i32_0 : i32, i32
  }
  func.func @transform_2(%arg0: i32) -> (i32, i32) {
    %c0_i32 = arith.constant 0 : i32
    %c0_i32_0 = arith.constant 0 : i32
    %c0_i32_1 = arith.constant 0 : i32
    return %c0_i32, %c0_i32_0 : i32, i32
  }
  func.func @transform_3(%arg0: i32) -> (i32, i32) {
    %c0_i32 = arith.constant 0 : i32
    %c0_i32_0 = arith.constant 0 : i32
    %c0_i32_1 = arith.constant 0 : i32
    return %c0_i32, %c0_i32_0 : i32, i32
  }
  func.func @transform_4(%arg0: i32) -> (i32, i32) {
    %c0_i32 = arith.constant 0 : i32
    %c0_i32_0 = arith.constant 0 : i32
    %c0_i32_1 = arith.constant 0 : i32
    return %c0_i32, %c0_i32_0 : i32, i32
  }
  func.func @transform_5(%arg0: i32) -> (i32, i32) {
    %c0_i32 = arith.constant 0 : i32
    %c0_i32_0 = arith.constant 0 : i32
    %c0_i32_1 = arith.constant 0 : i32
    return %c0_i32, %c0_i32_0 : i32, i32
  }
  func.func @transform_6(%arg0: i32) -> (i32, i32) {
    %c0_i32 = arith.constant 0 : i32
    %c0_i32_0 = arith.constant 0 : i32
    %c0_i32_1 = arith.constant 0 : i32
    return %c0_i32, %c0_i32_0 : i32, i32
  }
  func.func @transform_7(%arg0: i32) -> (i32, i32) {
    %c0_i32 = arith.constant 0 : i32
    %c0_i32_0 = arith.constant 0 : i32
    %c0_i32_1 = arith.constant 0 : i32
    return %c0_i32, %c0_i32_0 : i32, i32
  }
  func.func @transform_8(%arg0: i32) -> (i32, i32) {
    %c0_i32 = arith.constant 0 : i32
    %c0_i32_0 = arith.constant 0 : i32
    %c0_i32_1 = arith.constant 0 : i32
    return %c0_i32, %c0_i32_0 : i32, i32
  }
  func.func @transform_9(%arg0: i32) -> (i32, i32) {
    %c0_i32 = arith.constant 0 : i32
    %c0_i32_0 = arith.constant 0 : i32
    %c0_i32_1 = arith.constant 0 : i32
    return %c0_i32, %c0_i32_0 : i32, i32
  }
  func.func @transform_10(%arg0: i32) -> (i32, i32) {
    %c0_i32 = arith.constant 0 : i32
    %c0_i32_0 = arith.constant 0 : i32
    %c0_i32_1 = arith.constant 0 : i32
    return %c0_i32, %c0_i32_0 : i32, i32
  }
}

module attributes {stable_mosaic.version = 11 : i64} {
  func.func @_matmul_bias_act_kernel(%arg0: i32, %arg1: memref<2x256xbf16, #tpu.memory_space<vmem>>, %arg2: memref<256x256xbf16, #tpu.memory_space<vmem>>, %arg3: memref<1x256xf32, #tpu.memory_space<vmem>>, %arg4: memref<2x256xf32, #tpu.memory_space<vmem>>) attributes {dimension_semantics = [#tpu.dimension_semantics<arbitrary>], iteration_bounds = array<i64: 1>, scalar_prefetch = 0 : i64, scratch_operands = 0 : i64, tpu.core_type = #tpu.core_type<tc>, window_params = [{pipeline_mode = #tpu.pipeline_mode<synchronous>, transform_indices = @transform_0, window_bounds = array<i64: 2, 256>}, {pipeline_mode = #tpu.pipeline_mode<synchronous>, transform_indices = @transform_1, window_bounds = array<i64: 256, 256>}, {pipeline_mode = #tpu.pipeline_mode<synchronous>, transform_indices = @transform_2, window_bounds = array<i64: 1, 256>}, {pipeline_mode = #tpu.pipeline_mode<synchronous>, transform_indices = @transform_3, window_bounds = array<i64: 2, 256>}]} {
    %c0 = arith.constant 0 : index
    %c0_0 = arith.constant 0 : index
    %0 = vector.load %arg1[%c0, %c0_0] : memref<2x256xbf16, #tpu.memory_space<vmem>>, vector<2x256xbf16>
    %c0_1 = arith.constant 0 : index
    %c0_2 = arith.constant 0 : index
    %1 = vector.load %arg2[%c0_1, %c0_2] : memref<256x256xbf16, #tpu.memory_space<vmem>>, vector<256x256xbf16>
    %cst = arith.constant dense<0.000000e+00> : vector<2x256xf32>
    %2 = tpu.matmul %0, %1, %cst {dimension_numbers = #tpu.dot_dimension_numbers<[1], [0], [0], [1], [0, 0, 1, 1], [], []>} : vector<2x256xbf16>, vector<256x256xbf16>, vector<2x256xf32> -> vector<2x256xf32>
    %c0_3 = arith.constant 0 : index
    %c0_4 = arith.constant 0 : index
    %3 = vector.load %arg3[%c0_3, %c0_4] : memref<1x256xf32, #tpu.memory_space<vmem>>, vector<1x256xf32>
    %4 = vector.broadcast %3 : vector<1x256xf32> to vector<2x256xf32>
    %5 = arith.addf %2, %4 : vector<2x256xf32>
    %cst_5 = arith.constant 0.000000e+00 : f32
    %6 = vector.broadcast %cst_5 : f32 to vector<2x256xf32>
    %7 = arith.maximumf %5, %6 : vector<2x256xf32>
    %c0_6 = arith.constant 0 : index
    %c0_7 = arith.constant 0 : index
    %8 = vector.load %arg4[%c0_6, %c0_7] : memref<2x256xf32, #tpu.memory_space<vmem>>, vector<2x256xf32>
    tpu.vector_store %arg4[%c0_6, %c0_7], %7 {strides = array<i32>} : memref<2x256xf32, #tpu.memory_space<vmem>>, vector<2x256xf32>,
    return
  }
  func.func @transform_0(%arg0: i32) -> (i32, i32) {
    %c0_i32 = arith.constant 0 : i32
    %c0_i32_0 = arith.constant 0 : i32
    %c0_i32_1 = arith.constant 0 : i32
    return %c0_i32, %c0_i32_0 : i32, i32
  }
  func.func @transform_1(%arg0: i32) -> (i32, i32) {
    %c0_i32 = arith.constant 0 : i32
    %c0_i32_0 = arith.constant 0 : i32
    %c0_i32_1 = arith.constant 0 : i32
    return %c0_i32, %c0_i32_0 : i32, i32
  }
  func.func @transform_2(%arg0: i32) -> (i32, i32) {
    %c0_i32 = arith.constant 0 : i32
    %c0_i32_0 = arith.constant 0 : i32
    %c0_i32_1 = arith.constant 0 : i32
    return %c0_i32, %c0_i32_0 : i32, i32
  }
  func.func @transform_3(%arg0: i32) -> (i32, i32) {
    %c0_i32 = arith.constant 0 : i32
    %c0_i32_0 = arith.constant 0 : i32
    %c0_i32_1 = arith.constant 0 : i32
    return %c0_i32, %c0_i32_0 : i32, i32
  }
}

module attributes {stable_mosaic.version = 11 : i64} {
  func.func @_matmul_bias_act_kernel(%arg0: i32, %arg1: memref<32x4096xbf16, #tpu.memory_space<vmem>>, %arg2: memref<4096x64xbf16, #tpu.memory_space<vmem>>, %arg3: memref<1x64xf32, #tpu.memory_space<vmem>>, %arg4: memref<32x64xbf16, #tpu.memory_space<vmem>>) attributes {dimension_semantics = [#tpu.dimension_semantics<arbitrary>], iteration_bounds = array<i64: 1>, scalar_prefetch = 0 : i64, scratch_operands = 0 : i64, tpu.core_type = #tpu.core_type<tc>, window_params = [{pipeline_mode = #tpu.pipeline_mode<synchronous>, transform_indices = @transform_0, window_bounds = array<i64: 32, 4096>}, {pipeline_mode = #tpu.pipeline_mode<synchronous>, transform_indices = @transform_1, window_bounds = array<i64: 4096, 64>}, {pipeline_mode = #tpu.pipeline_mode<synchronous>, transform_indices = @transform_2, window_bounds = array<i64: 1, 64>}, {pipeline_mode = #tpu.pipeline_mode<synchronous>, transform_indices = @transform_3, window_bounds = array<i64: 32, 64>}]} {
    %c0 = arith.constant 0 : index
    %c0_0 = arith.constant 0 : index
    %0 = vector.load %arg1[%c0, %c0_0] : memref<32x4096xbf16, #tpu.memory_space<vmem>>, vector<32x4096xbf16>
    %c0_1 = arith.constant 0 : index
    %c0_2 = arith.constant 0 : index
    %1 = vector.load %arg2[%c0_1, %c0_2] : memref<4096x64xbf16, #tpu.memory_space<vmem>>, vector<4096x64xbf16>
    %cst = arith.constant dense<0.000000e+00> : vector<32x64xf32>
    %2 = tpu.matmul %0, %1, %cst {dimension_numbers = #tpu.dot_dimension_numbers<[1], [0], [0], [1], [0, 0, 1, 1], [], []>} : vector<32x4096xbf16>, vector<4096x64xbf16>, vector<32x64xf32> -> vector<32x64xf32>
    %c0_3 = arith.constant 0 : index
    %c0_4 = arith.constant 0 : index
    %3 = vector.load %arg3[%c0_3, %c0_4] : memref<1x64xf32, #tpu.memory_space<vmem>>, vector<1x64xf32>
    %4 = vector.broadcast %3 : vector<1x64xf32> to vector<32x64xf32>
    %5 = arith.addf %2, %4 : vector<32x64xf32>
    %cst_5 = arith.constant 0.000000e+00 : f32
    %6 = vector.broadcast %cst_5 : f32 to vector<32x64xf32>
    %7 = arith.maximumf %5, %6 : vector<32x64xf32>
    %8 = arith.truncf %7 : vector<32x64xf32> to vector<32x64xbf16>
    %c0_6 = arith.constant 0 : index
    %c0_7 = arith.constant 0 : index
    %9 = vector.load %arg4[%c0_6, %c0_7] : memref<32x64xbf16, #tpu.memory_space<vmem>>, vector<32x64xbf16>
    tpu.vector_store %arg4[%c0_6, %c0_7], %8 {strides = array<i32>} : memref<32x64xbf16, #tpu.memory_space<vmem>>, vector<32x64xbf16>,
    return
  }
  func.func @transform_0(%arg0: i32) -> (i32, i32) {
    %c0_i32 = arith.constant 0 : i32
    %c0_i32_0 = arith.constant 0 : i32
    %c0_i32_1 = arith.constant 0 : i32
    return %c0_i32, %c0_i32_0 : i32, i32
  }
  func.func @transform_1(%arg0: i32) -> (i32, i32) {
    %c0_i32 = arith.constant 0 : i32
    %c0_i32_0 = arith.constant 0 : i32
    %c0_i32_1 = arith.constant 0 : i32
    return %c0_i32, %c0_i32_0 : i32, i32
  }
  func.func @transform_2(%arg0: i32) -> (i32, i32) {
    %c0_i32 = arith.constant 0 : i32
    %c0_i32_0 = arith.constant 0 : i32
    %c0_i32_1 = arith.constant 0 : i32
    return %c0_i32, %c0_i32_0 : i32, i32
  }
  func.func @transform_3(%arg0: i32) -> (i32, i32) {
    %c0_i32 = arith.constant 0 : i32
    %c0_i32_0 = arith.constant 0 : i32
    %c0_i32_1 = arith.constant 0 : i32
    return %c0_i32, %c0_i32_0 : i32, i32
  }
}

module attributes {stable_mosaic.version = 11 : i64} {
  func.func @_matmul_bias_act_kernel(%arg0: i32, %arg1: memref<128x1024xbf16, #tpu.memory_space<vmem>>, %arg2: memref<1024x64xbf16, #tpu.memory_space<vmem>>, %arg3: memref<1x64xf32, #tpu.memory_space<vmem>>, %arg4: memref<128x64xbf16, #tpu.memory_space<vmem>>) attributes {dimension_semantics = [#tpu.dimension_semantics<arbitrary>], iteration_bounds = array<i64: 1>, scalar_prefetch = 0 : i64, scratch_operands = 0 : i64, tpu.core_type = #tpu.core_type<tc>, window_params = [{pipeline_mode = #tpu.pipeline_mode<synchronous>, transform_indices = @transform_0, window_bounds = array<i64: 128, 1024>}, {pipeline_mode = #tpu.pipeline_mode<synchronous>, transform_indices = @transform_1, window_bounds = array<i64: 1024, 64>}, {pipeline_mode = #tpu.pipeline_mode<synchronous>, transform_indices = @transform_2, window_bounds = array<i64: 1, 64>}, {pipeline_mode = #tpu.pipeline_mode<synchronous>, transform_indices = @transform_3, window_bounds = array<i64: 128, 64>}]} {
    %c0 = arith.constant 0 : index
    %c0_0 = arith.constant 0 : index
    %0 = vector.load %arg1[%c0, %c0_0] : memref<128x1024xbf16, #tpu.memory_space<vmem>>, vector<128x1024xbf16>
    %c0_1 = arith.constant 0 : index
    %c0_2 = arith.constant 0 : index
    %1 = vector.load %arg2[%c0_1, %c0_2] : memref<1024x64xbf16, #tpu.memory_space<vmem>>, vector<1024x64xbf16>
    %cst = arith.constant dense<0.000000e+00> : vector<128x64xf32>
    %2 = tpu.matmul %0, %1, %cst {dimension_numbers = #tpu.dot_dimension_numbers<[1], [0], [0], [1], [0, 0, 1, 1], [], []>} : vector<128x1024xbf16>, vector<1024x64xbf16>, vector<128x64xf32> -> vector<128x64xf32>
    %c0_3 = arith.constant 0 : index
    %c0_4 = arith.constant 0 : index
    %3 = vector.load %arg3[%c0_3, %c0_4] : memref<1x64xf32, #tpu.memory_space<vmem>>, vector<1x64xf32>
    %4 = vector.broadcast %3 : vector<1x64xf32> to vector<128x64xf32>
    %5 = arith.addf %2, %4 : vector<128x64xf32>
    %cst_5 = arith.constant 0.000000e+00 : f32
    %6 = vector.broadcast %cst_5 : f32 to vector<128x64xf32>
    %7 = arith.maximumf %5, %6 : vector<128x64xf32>
    %8 = arith.truncf %7 : vector<128x64xf32> to vector<128x64xbf16>
    %c0_6 = arith.constant 0 : index
    %c0_7 = arith.constant 0 : index
    %9 = vector.load %arg4[%c0_6, %c0_7] : memref<128x64xbf16, #tpu.memory_space<vmem>>, vector<128x64xbf16>
    tpu.vector_store %arg4[%c0_6, %c0_7], %8 {strides = array<i32>} : memref<128x64xbf16, #tpu.memory_space<vmem>>, vector<128x64xbf16>,
    return
  }
  func.func @transform_0(%arg0: i32) -> (i32, i32) {
    %c0_i32 = arith.constant 0 : i32
    %c0_i32_0 = arith.constant 0 : i32
    %c0_i32_1 = arith.constant 0 : i32
    return %c0_i32, %c0_i32_0 : i32, i32
  }
  func.func @transform_1(%arg0: i32) -> (i32, i32) {
    %c0_i32 = arith.constant 0 : i32
    %c0_i32_0 = arith.constant 0 : i32
    %c0_i32_1 = arith.constant 0 : i32
    return %c0_i32, %c0_i32_0 : i32, i32
  }
  func.func @transform_2(%arg0: i32) -> (i32, i32) {
    %c0_i32 = arith.constant 0 : i32
    %c0_i32_0 = arith.constant 0 : i32
    %c0_i32_1 = arith.constant 0 : i32
    return %c0_i32, %c0_i32_0 : i32, i32
  }
  func.func @transform_3(%arg0: i32) -> (i32, i32) {
    %c0_i32 = arith.constant 0 : i32
    %c0_i32_0 = arith.constant 0 : i32
    %c0_i32_1 = arith.constant 0 : i32
    return %c0_i32, %c0_i32_0 : i32, i32
  }
}

module attributes {stable_mosaic.version = 11 : i64} {
  func.func @_matmul_bias_act_kernel(%arg0: i32, %arg1: memref<512x1024xbf16, #tpu.memory_space<vmem>>, %arg2: memref<1024x32xbf16, #tpu.memory_space<vmem>>, %arg3: memref<1x32xf32, #tpu.memory_space<vmem>>, %arg4: memref<512x32xbf16, #tpu.memory_space<vmem>>) attributes {dimension_semantics = [#tpu.dimension_semantics<arbitrary>], iteration_bounds = array<i64: 1>, scalar_prefetch = 0 : i64, scratch_operands = 0 : i64, tpu.core_type = #tpu.core_type<tc>, window_params = [{pipeline_mode = #tpu.pipeline_mode<synchronous>, transform_indices = @transform_0, window_bounds = array<i64: 512, 1024>}, {pipeline_mode = #tpu.pipeline_mode<synchronous>, transform_indices = @transform_1, window_bounds = array<i64: 1024, 32>}, {pipeline_mode = #tpu.pipeline_mode<synchronous>, transform_indices = @transform_2, window_bounds = array<i64: 1, 32>}, {pipeline_mode = #tpu.pipeline_mode<synchronous>, transform_indices = @transform_3, window_bounds = array<i64: 512, 32>}]} {
    %c0 = arith.constant 0 : index
    %c0_0 = arith.constant 0 : index
    %0 = vector.load %arg1[%c0, %c0_0] : memref<512x1024xbf16, #tpu.memory_space<vmem>>, vector<512x1024xbf16>
    %c0_1 = arith.constant 0 : index
    %c0_2 = arith.constant 0 : index
    %1 = vector.load %arg2[%c0_1, %c0_2] : memref<1024x32xbf16, #tpu.memory_space<vmem>>, vector<1024x32xbf16>
    %cst = arith.constant dense<0.000000e+00> : vector<512x32xf32>
    %2 = tpu.matmul %0, %1, %cst {dimension_numbers = #tpu.dot_dimension_numbers<[1], [0], [0], [1], [0, 0, 1, 1], [], []>} : vector<512x1024xbf16>, vector<1024x32xbf16>, vector<512x32xf32> -> vector<512x32xf32>
    %c0_3 = arith.constant 0 : index
    %c0_4 = arith.constant 0 : index
    %3 = vector.load %arg3[%c0_3, %c0_4] : memref<1x32xf32, #tpu.memory_space<vmem>>, vector<1x32xf32>
    %4 = vector.broadcast %3 : vector<1x32xf32> to vector<512x32xf32>
    %5 = arith.addf %2, %4 : vector<512x32xf32>
    %cst_5 = arith.constant 0.000000e+00 : f32
    %6 = vector.broadcast %cst_5 : f32 to vector<512x32xf32>
    %7 = arith.maximumf %5, %6 : vector<512x32xf32>
    %8 = arith.truncf %7 : vector<512x32xf32> to vector<512x32xbf16>
    %c0_6 = arith.constant 0 : index
    %c0_7 = arith.constant 0 : index
    %9 = vector.load %arg4[%c0_6, %c0_7] : memref<512x32xbf16, #tpu.memory_space<vmem>>, vector<512x32xbf16>
    tpu.vector_store %arg4[%c0_6, %c0_7], %8 {strides = array<i32>} : memref<512x32xbf16, #tpu.memory_space<vmem>>, vector<512x32xbf16>,
    return
  }
  func.func @transform_0(%arg0: i32) -> (i32, i32) {
    %c0_i32 = arith.constant 0 : i32
    %c0_i32_0 = arith.constant 0 : i32
    %c0_i32_1 = arith.constant 0 : i32
    return %c0_i32, %c0_i32_0 : i32, i32
  }
  func.func @transform_1(%arg0: i32) -> (i32, i32) {
    %c0_i32 = arith.constant 0 : i32
    %c0_i32_0 = arith.constant 0 : i32
    %c0_i32_1 = arith.constant 0 : i32
    return %c0_i32, %c0_i32_0 : i32, i32
  }
  func.func @transform_2(%arg0: i32) -> (i32, i32) {
    %c0_i32 = arith.constant 0 : i32
    %c0_i32_0 = arith.constant 0 : i32
    %c0_i32_1 = arith.constant 0 : i32
    return %c0_i32, %c0_i32_0 : i32, i32
  }
  func.func @transform_3(%arg0: i32) -> (i32, i32) {
    %c0_i32 = arith.constant 0 : i32
    %c0_i32_0 = arith.constant 0 : i32
    %c0_i32_1 = arith.constant 0 : i32
    return %c0_i32, %c0_i32_0 : i32, i32
  }
}

module attributes {stable_mosaic.version = 11 : i64} {
  func.func @_matmul_bias_act_kernel(%arg0: i32, %arg1: memref<1568x128xbf16, #tpu.memory_space<vmem>>, %arg2: memref<128x1xbf16, #tpu.memory_space<vmem>>, %arg3: memref<1x1xf32, #tpu.memory_space<vmem>>, %arg4: memref<1568x1xf32, #tpu.memory_space<vmem>>) attributes {dimension_semantics = [#tpu.dimension_semantics<arbitrary>], iteration_bounds = array<i64: 1>, scalar_prefetch = 0 : i64, scratch_operands = 0 : i64, tpu.core_type = #tpu.core_type<tc>, window_params = [{pipeline_mode = #tpu.pipeline_mode<synchronous>, transform_indices = @transform_0, window_bounds = array<i64: 1568, 128>}, {pipeline_mode = #tpu.pipeline_mode<synchronous>, transform_indices = @transform_1, window_bounds = array<i64: 128, 1>}, {pipeline_mode = #tpu.pipeline_mode<synchronous>, transform_indices = @transform_2, window_bounds = array<i64: 1, 1>}, {pipeline_mode = #tpu.pipeline_mode<synchronous>, transform_indices = @transform_3, window_bounds = array<i64: 1568, 1>}]} {
    %c0 = arith.constant 0 : index
    %c0_0 = arith.constant 0 : index
    %0 = vector.load %arg1[%c0, %c0_0] : memref<1568x128xbf16, #tpu.memory_space<vmem>>, vector<1568x128xbf16>
    %c0_1 = arith.constant 0 : index
    %c0_2 = arith.constant 0 : index
    %1 = vector.load %arg2[%c0_1, %c0_2] : memref<128x1xbf16, #tpu.memory_space<vmem>>, vector<128x1xbf16>
    %cst = arith.constant dense<0.000000e+00> : vector<1568x1xf32>
    %2 = tpu.matmul %0, %1, %cst {dimension_numbers = #tpu.dot_dimension_numbers<[1], [0], [0], [1], [0, 0, 1, 1], [], []>} : vector<1568x128xbf16>, vector<128x1xbf16>, vector<1568x1xf32> -> vector<1568x1xf32>
    %c0_3 = arith.constant 0 : index
    %c0_4 = arith.constant 0 : index
    %3 = vector.load %arg3[%c0_3, %c0_4] : memref<1x1xf32, #tpu.memory_space<vmem>>, vector<1x1xf32>
    %4 = vector.broadcast %3 : vector<1x1xf32> to vector<1568x1xf32>
    %5 = arith.addf %2, %4 : vector<1568x1xf32>
    %c0_5 = arith.constant 0 : index
    %c0_6 = arith.constant 0 : index
    %6 = vector.load %arg4[%c0_5, %c0_6] : memref<1568x1xf32, #tpu.memory_space<vmem>>, vector<1568x1xf32>
    tpu.vector_store %arg4[%c0_5, %c0_6], %5 {strides = array<i32>} : memref<1568x1xf32, #tpu.memory_space<vmem>>, vector<1568x1xf32>,
    return
  }
  func.func @transform_0(%arg0: i32) -> (i32, i32) {
    %c0_i32 = arith.constant 0 : i32
    %c0_i32_0 = arith.constant 0 : i32
    %c0_i32_1 = arith.constant 0 : i32
    return %c0_i32, %c0_i32_0 : i32, i32
  }
  func.func @transform_1(%arg0: i32) -> (i32, i32) {
    %c0_i32 = arith.constant 0 : i32
    %c0_i32_0 = arith.constant 0 : i32
    %c0_i32_1 = arith.constant 0 : i32
    return %c0_i32, %c0_i32_0 : i32, i32
  }
  func.func @transform_2(%arg0: i32) -> (i32, i32) {
    %c0_i32 = arith.constant 0 : i32
    %c0_i32_0 = arith.constant 0 : i32
    %c0_i32_1 = arith.constant 0 : i32
    return %c0_i32, %c0_i32_0 : i32, i32
  }
  func.func @transform_3(%arg0: i32) -> (i32, i32) {
    %c0_i32 = arith.constant 0 : i32
    %c0_i32_0 = arith.constant 0 : i32
    %c0_i32_1 = arith.constant 0 : i32
    return %c0_i32, %c0_i32_0 : i32, i32
  }
}

</mosaic_0001>

<bundles_post_ra>
// kernel: beta_vae_forward.9
= control target key start
LH: loop header
LB: loop body
LE: loop exit
PB: predicated region body
PF: predicated region fallthrough
CT: control target
= control target key end

     0   :  { %8 = vsyncpa [#allocation3], 0  ;;  %s1625_s0 = inlined_call_operand.vmem [shape: bf16[392,16], index: 0, kind: input, shape index: {}]   ;;  %s1626_s1 = inlined_call_operand.hbm [shape: bf16[16,32], index: 1, kind: input, shape index: {}]   ;;  %s1627_s2 = inlined_call_operand.hbm [shape: f32[1,32], index: 2, kind: input, shape index: {}]   ;;  %s1628_s3 = inlined_call_operand.vmem [shape: bf16[392,32], index: 3, kind: output, shape index: {}]  }
   0x1   :  { %9 = vsyncpa [#allocation5], 0  ;;  %s1194_s12 = smov [#allocation2]  }
   0x2   :  { %s17_s13 = sshll.u32 %s1194_s12, 4  ;;  %s18_s13 = int_to_ptr.vmem [resolvable:$true] %s17_s13 }
   0x3   :  { %s1158_s14 = scalar_lea.vmem %s18_s13, 128  ;;  %p1163_p1 = scmp.lt.s32.totalorder %s18_s13, %s18_s13 }
   0x4   :  { %p1159_p0 = scmp.ne.s32.totalorder %s18_s13, %s1158_s14  ;;  %p1164_p2 = scmp.lt.s32.totalorder %s1158_s14, %s1158_s14 }
   0x6   :  { %p1165_p3 = por %p1164_p2, %p1163_p1 }
   0x8   :  { %p1166_p4 = pnand %p1165_p3, %p1159_p0 }
   0xa   :  { %1169 = shalt.err (!%p1166_p4)
}
   0xb   :  { %s1195_s15 = smov 64   ;;  %s1196_s16 = smov 4  }
   0xc   :  { %23 = dma.hbm_to_vmem [thread:$0]  %s1626_s1, 128, %s18_s13, [#allocation3], %s1195_s15, %s1195_s15, %s1196_s16  }
   0xd   :  { %s1197_s19 = smov [#allocation4]  }
   0xe   :  { %s30_s20 = sshll.u32 %s1197_s19, 4  ;;  %s31_s20 = int_to_ptr.vmem [resolvable:$true] %s30_s20 }
   0xf   :  { %s1178_s21 = scalar_lea.vmem %s31_s20, 16  ;;  %s1182_s22 = scalar_lea.vmem %s31_s20, 32 }
  0x10   :  { %p1179_p5 = scmp.ne.s32.totalorder %s31_s20, %s1178_s21  ;;  %p1183_p6 = scmp.lt.s32.totalorder %s31_s20, %s31_s20 }
  0x11   :  { %p1184_p7 = scmp.lt.s32.totalorder %s1182_s22, %s1178_s21 }
  0x13   :  { %p1185_p8 = por %p1184_p7, %p1183_p6 }
  0x15   :  { %p1186_p9 = pnand %p1185_p8, %p1179_p5 }
  0x17   :  { %1189 = shalt.err (!%p1186_p9)
}
  0x18   :  { %33 = dma.hbm_to_vmem [thread:$0]  %s1627_s2, 16, %s31_s20, [#allocation5]  }
  0x19   :  { %1190 = dma.done.wait [#allocation3], 128  }
  0x1a   :  { %1191 = vsyncadd [#allocation3], 4294967168 }
  0x1b   :  { %1192 = dma.done.wait [#allocation5], 16  }
  0x1c   :  { %1193 = vsyncadd [#allocation5], 4294967280  ;;  %v1198_v0 = vmov 0.0   ;;  %vm1199_vm0 = vmmov 0   ;;  %v1124_v1 = vld [vmem:[#allocation2] sm:$0xff]   ;;  %vm228_vm1 = vcmask 130048  }
  0x1d   :  { %1014 = vmatprep.subr.bf16.mxu0 %v1198_v0  ;;  %1016 = vmatprep.mubr.msk.bf16.mxu0 %vm1199_vm0, %v1198_v0  ;;  %v1125_v2 = vld [vmem:[%s1625_s0] sm:$0xff]   ;;  %v1126_v3 = vld [vmem:[%s1625_s0 + $0x68] sm:$0xff]   ;;  %v1128_v5 = vld [vmem:[%s1625_s0 + $0x70] sm:$0xff]   ;;  %vm782_vm2 = vcmask 257024  }
  0x1e   :  { %1116 = vmatprep.subr.bf16.mxu1 %v1198_v0  ;;  %1068 = vmatprep.mubr.msk.bf16.mxu1 %vm1199_vm0, %v1198_v0  ;;  %v1127_v4 = vld [vmem:[%s1625_s0 + $0x8] sm:$0xff]   ;;  %v1129_v6 = vld [vmem:[%s1625_s0 + $0x10] sm:$0xff]   ;;  %v1130_v7 = vld [vmem:[%s1625_s0 + $0x78] sm:$0xff]  }
  0x1f   :  { %1015 = vmatpush3.bf16.msra.mxu0 %v1124_v1  ;;  %1117 = vmatpush3.bf16.msra.mxu1 %v1124_v1  ;;  %v1131_v8 = vld [vmem:[%s1625_s0 + $0x18] sm:$0xff]   ;;  %v1132_v9 = vld [vmem:[%s1625_s0 + $0x80] sm:$0xff]   ;;  %v1134_v11 = vld [vmem:[%s1625_s0 + $0x88] sm:$0xff]  }
  0x20   :  { %v1133_v10 = vld [vmem:[%s1625_s0 + $0x20] sm:$0xff]   ;;  %v1135_v12 = vld [vmem:[%s1625_s0 + $0x28] sm:$0xff]   ;;  %v1136_v13 = vld [vmem:[%s1625_s0 + $0x90] sm:$0xff]  }
  0x21   :  { %v1137_v14 = vld [vmem:[%s1625_s0 + $0x30] sm:$0xff]   ;;  %v1138_v15 = vld [vmem:[%s1625_s0 + $0x98] sm:$0xff]   ;;  %v1140_v17 = vld [vmem:[%s1625_s0 + $0xa0] sm:$0xff]  }
  0x22   :  { %1017 = vmatmul.mubr.msk.bf16.vlgmr.msra.gmra.mxu0 %vm228_vm1, %v1125_v2  ;;  %1069 = vmatmul.mubr.msk.bf16.vlgmr.msra.gmra.mxu1 %vm228_vm1, %v1126_v3  ;;  %v1139_v16 = vld [vmem:[%s1625_s0 + $0x38] sm:$0xff]   ;;  %v1141_v18 = vld [vmem:[%s1625_s0 + $0x40] sm:$0xff]   ;;  %v1142_v19 = vld [vmem:[%s1625_s0 + $0xa8] sm:$0xff]  }
  0x23   :  { %1020 = vmatprep.mubr.msk.bf16.mxu0 %vm1199_vm0, %v1198_v0  ;;  %1072 = vmatprep.mubr.msk.bf16.mxu1 %vm1199_vm0, %v1198_v0  ;;  %v1143_v20 = vld [vmem:[%s1625_s0 + $0x48] sm:$0xff]   ;;  %v1144_v21 = vld [vmem:[%s1625_s0 + $0xb0] sm:$0xff]   ;;  %v1146_v23 = vld [vmem:[%s1625_s0 + $0xb8] sm:$0xff]  }
  0x24   :  { %v1145_v22 = vld [vmem:[%s1625_s0 + $0x50] sm:$0xff]   ;;  %v1147_v24 = vld [vmem:[%s1625_s0 + $0x58] sm:$0xff]   ;;  %v1148_v25 = vld [vmem:[%s1625_s0 + $0xc0] ss:$0 sps:$4 sm:$0xff]  }
  0x25   :  { %v1149_v26 = vld [vmem:[%s1625_s0 + $0x60] sm:$0xff]   ;;  %v1378_v27 = vld [vmem:[#allocation4] ss:$0 sm:$0xff] }
  0x2a   :  { %1021 = vmatmul.mubr.msk.bf16.gmra.mxu0 %vm228_vm1, %v1127_v4  ;;  %1073 = vmatmul.mubr.msk.bf16.gmra.mxu1 %vm228_vm1, %v1128_v5 }
  0x2b   :  { %1024 = vmatprep.mubr.msk.bf16.mxu0 %vm1199_vm0, %v1198_v0  ;;  %1076 = vmatprep.mubr.msk.bf16.mxu1 %vm1199_vm0, %v1198_v0 }
  0x32   :  { %1025 = vmatmul.mubr.msk.bf16.gmra.mxu0 %vm228_vm1, %v1129_v6  ;;  %1077 = vmatmul.mubr.msk.bf16.gmra.mxu1 %vm228_vm1, %v1130_v7 }
  0x33   :  { %1028 = vmatprep.mubr.msk.bf16.mxu0 %vm1199_vm0, %v1198_v0  ;;  %1080 = vmatprep.mubr.msk.bf16.mxu1 %vm1199_vm0, %v1198_v0 }
  0x3a   :  { %1029 = vmatmul.mubr.msk.bf16.gmra.mxu0 %vm228_vm1, %v1131_v8  ;;  %1081 = vmatmul.mubr.msk.bf16.gmra.mxu1 %vm228_vm1, %v1132_v9 }
  0x3b   :  { %1032 = vmatprep.mubr.msk.bf16.mxu0 %vm1199_vm0, %v1198_v0  ;;  %1084 = vmatprep.mubr.msk.bf16.mxu1 %vm1199_vm0, %v1198_v0 }
  0x42   :  { %1033 = vmatmul.mubr.msk.bf16.gmra.mxu0 %vm228_vm1, %v1133_v10  ;;  %1085 = vmatmul.mubr.msk.bf16.gmra.mxu1 %vm228_vm1, %v1134_v11 }
  0x43   :  { %1036 = vmatprep.mubr.msk.bf16.mxu0 %vm1199_vm0, %v1198_v0  ;;  %1088 = vmatprep.mubr.msk.bf16.mxu1 %vm1199_vm0, %v1198_v0 }
  0x4a   :  { %1037 = vmatmul.mubr.msk.bf16.gmra.mxu0 %vm228_vm1, %v1135_v12  ;;  %1089 = vmatmul.mubr.msk.bf16.gmra.mxu1 %vm228_vm1, %v1136_v13 }
  0x4b   :  { %1040 = vmatprep.mubr.msk.bf16.mxu0 %vm1199_vm0, %v1198_v0  ;;  %1092 = vmatprep.mubr.msk.bf16.mxu1 %vm1199_vm0, %v1198_v0 }
  0x52   :  { %1041 = vmatmul.mubr.msk.bf16.gmra.mxu0 %vm228_vm1, %v1137_v14  ;;  %1093 = vmatmul.mubr.msk.bf16.gmra.mxu1 %vm228_vm1, %v1138_v15 }
  0x53   :  { %1044 = vmatprep.mubr.msk.bf16.mxu0 %vm1199_vm0, %v1198_v0  ;;  %1096 = vmatprep.mubr.msk.bf16.mxu1 %vm1199_vm0, %v1198_v0 }
  0x5a   :  { %1045 = vmatmul.mubr.msk.bf16.gmra.mxu0 %vm228_vm1, %v1139_v16  ;;  %1097 = vmatmul.mubr.msk.bf16.gmra.mxu1 %vm228_vm1, %v1140_v17 }
  0x5b   :  { %1048 = vmatprep.mubr.msk.bf16.mxu0 %vm1199_vm0, %v1198_v0  ;;  %1100 = vmatprep.mubr.msk.bf16.mxu1 %vm1199_vm0, %v1198_v0 }
  0x62   :  { %1049 = vmatmul.mubr.msk.bf16.gmra.mxu0 %vm228_vm1, %v1141_v18  ;;  %1101 = vmatmul.mubr.msk.bf16.gmra.mxu1 %vm228_vm1, %v1142_v19 }
  0x63   :  { %1052 = vmatprep.mubr.msk.bf16.mxu0 %vm1199_vm0, %v1198_v0  ;;  %1104 = vmatprep.mubr.msk.bf16.mxu1 %vm1199_vm0, %v1198_v0 }
  0x6a   :  { %1053 = vmatmul.mubr.msk.bf16.gmra.mxu0 %vm228_vm1, %v1143_v20  ;;  %1105 = vmatmul.mubr.msk.bf16.gmra.mxu1 %vm228_vm1, %v1144_v21 }
  0x6b   :  { %1056 = vmatprep.mubr.msk.bf16.mxu0 %vm1199_vm0, %v1198_v0  ;;  %1108 = vmatprep.mubr.msk.bf16.mxu1 %vm1199_vm0, %v1198_v0 }
  0x72   :  { %1057 = vmatmul.mubr.msk.bf16.gmra.mxu0 %vm228_vm1, %v1145_v22  ;;  %1109 = vmatmul.mubr.msk.bf16.gmra.mxu1 %vm228_vm1, %v1146_v23 }
  0x73   :  { %1060 = vmatprep.mubr.msk.bf16.mxu0 %vm1199_vm0, %v1198_v0  ;;  %1112 = vmatprep.mubr.msk.bf16.mxu1 %vm1199_vm0, %v1198_v0 }
  0x7a   :  { %1061 = vmatmul.mubr.msk.bf16.gmra.mxu0 %vm228_vm1, %v1147_v24  ;;  %1113 = vmatmul.mubr.msk.bf16.gmra.mxu1 %vm228_vm1, %v1148_v25 }
  0x7b   :  { %1064 = vmatprep.mubr.msk.bf16.mxu0 %vm1199_vm0, %v1198_v0 }
  0x82   :  { %1065 = vmatmul.mubr.msk.bf16.gmra.mxu0 %vm228_vm1, %v1149_v26 }
  0xe2   :  { %v338_v28 = vpop.f32.mrf.mxu0  ;;  %v442_v29 = vpop.f32.mrf.mxu1 }
  0xe3   :  { %v339_v30 = vadd.f32 %v1378_v27, %v338_v28  ;;  %v443_v31 = vadd.f32 %v1378_v27, %v442_v29 }
  0xe4   :  { %v1018_v32 = vpop.f32.mrf.mxu0  ;;  %v1070_v33 = vpop.f32.mrf.mxu1 }
  0xe5   :  { %v536_v34 = vmax.f32 %v339_v30, 0.0  ;;  %v562_v35 = vmax.f32 %v443_v31, 0.0 }
  0xe6   :  { %v341_v36 = vpop.f32.mrf.mxu0  ;;  %v445_v37 = vpop.f32.mrf.mxu1 }
  0xe7   :  { %v939_v38 = vpack.c.bf16 %v536_v34, %v536_v34  ;;  %v342_v39 = vadd.f32 %v1378_v27, %v341_v36  ;;  %v965_v40 = vpack.c.bf16 %v562_v35, %v562_v35  ;;  %v446_v41 = vadd.f32 %v1378_v27, %v445_v37 }
  0xe8   :  { %v1019_v42 = vpop.f32.mrf.mxu0  ;;  %v1071_v43 = vpop.f32.mrf.mxu1 }
  0xe9   :  { %783 = vst.msk [vmem:[%s1628_s3] sm:$0xf] %vm782_vm2, %v939_v38  ;;  %v537_v44 = vmax.f32 %v342_v39, 0.0  ;;  %809 = vst.msk [vmem:[%s1628_s3 + $0x68] sm:$0xf] %vm782_vm2, %v965_v40  ;;  %v563_v45 = vmax.f32 %v446_v41, 0.0 }
  0xea   :  { %v346_v46 = vpop.f32.mrf.mxu0  ;;  %v450_v47 = vpop.f32.mrf.mxu1 }
  0xeb   :  { %v940_v48 = vpack.c.bf16 %v537_v44, %v537_v44  ;;  %v347_v49 = vadd.f32 %v1378_v27, %v346_v46  ;;  %v966_v50 = vpack.c.bf16 %v563_v45, %v563_v45  ;;  %v451_v51 = vadd.f32 %v1378_v27, %v450_v47 }
  0xec   :  { %v1022_v52 = vpop.f32.mrf.mxu0  ;;  %v1074_v53 = vpop.f32.mrf.mxu1 }
  0xed   :  { %784 = vst.msk [vmem:[%s1628_s3 + $0x4] sm:$0xf] %vm782_vm2, %v940_v48  ;;  %v538_v54 = vmax.f32 %v347_v49, 0.0  ;;  %810 = vst.msk [vmem:[%s1628_s3 + $0x6c] sm:$0xf] %vm782_vm2, %v966_v50  ;;  %v564_v55 = vmax.f32 %v451_v51, 0.0 }
  0xee   :  { %v349_v56 = vpop.f32.mrf.mxu0  ;;  %v453_v57 = vpop.f32.mrf.mxu1 }
  0xef   :  { %v941_v58 = vpack.c.bf16 %v538_v54, %v538_v54  ;;  %v350_v59 = vadd.f32 %v1378_v27, %v349_v56  ;;  %v967_v60 = vpack.c.bf16 %v564_v55, %v564_v55  ;;  %v454_v61 = vadd.f32 %v1378_v27, %v453_v57 }
  0xf0   :  { %v1023_v62 = vpop.f32.mrf.mxu0  ;;  %v1075_v63 = vpop.f32.mrf.mxu1 }
  0xf1   :  { %785 = vst.msk [vmem:[%s1628_s3 + $0x8] sm:$0xf] %vm782_vm2, %v941_v58  ;;  %v539_v0 = vmax.f32 %v350_v59, 0.0  ;;  %811 = vst.msk [vmem:[%s1628_s3 + $0x70] sm:$0xf] %vm782_vm2, %v967_v60  ;;  %v565_v1 = vmax.f32 %v454_v61, 0.0 }
  0xf2   :  { %v354_v2 = vpop.f32.mrf.mxu0  ;;  %v458_v3 = vpop.f32.mrf.mxu1 }
  0xf3   :  { %v942_v4 = vpack.c.bf16 %v539_v0, %v539_v0  ;;  %v355_v5 = vadd.f32 %v1378_v27, %v354_v2  ;;  %v968_v6 = vpack.c.bf16 %v565_v1, %v565_v1  ;;  %v459_v7 = vadd.f32 %v1378_v27, %v458_v3 }
  0xf4   :  { %v1026_v8 = vpop.f32.mrf.mxu0  ;;  %v1078_v9 = vpop.f32.mrf.mxu1 }
  0xf5   :  { %786 = vst.msk [vmem:[%s1628_s3 + $0xc] sm:$0xf] %vm782_vm2, %v942_v4  ;;  %v540_v10 = vmax.f32 %v355_v5, 0.0  ;;  %812 = vst.msk [vmem:[%s1628_s3 + $0x74] sm:$0xf] %vm782_vm2, %v968_v6  ;;  %v566_v11 = vmax.f32 %v459_v7, 0.0 }
  0xf6   :  { %v357_v12 = vpop.f32.mrf.mxu0  ;;  %v461_v13 = vpop.f32.mrf.mxu1 }
  0xf7   :  { %v943_v14 = vpack.c.bf16 %v540_v10, %v540_v10  ;;  %v358_v15 = vadd.f32 %v1378_v27, %v357_v12  ;;  %v969_v16 = vpack.c.bf16 %v566_v11, %v566_v11  ;;  %v462_v17 = vadd.f32 %v1378_v27, %v461_v13 }
  0xf8   :  { %v1027_v18 = vpop.f32.mrf.mxu0  ;;  %v1079_v19 = vpop.f32.mrf.mxu1 }
  0xf9   :  { %787 = vst.msk [vmem:[%s1628_s3 + $0x10] sm:$0xf] %vm782_vm2, %v943_v14  ;;  %v541_v20 = vmax.f32 %v358_v15, 0.0  ;;  %813 = vst.msk [vmem:[%s1628_s3 + $0x78] sm:$0xf] %vm782_vm2, %v969_v16  ;;  %v567_v21 = vmax.f32 %v462_v17, 0.0 }
  0xfa   :  { %v362_v22 = vpop.f32.mrf.mxu0  ;;  %v466_v23 = vpop.f32.mrf.mxu1 }
  0xfb   :  { %v944_v24 = vpack.c.bf16 %v541_v20, %v541_v20  ;;  %v363_v25 = vadd.f32 %v1378_v27, %v362_v22  ;;  %v970_v26 = vpack.c.bf16 %v567_v21, %v567_v21  ;;  %v467_v28 = vadd.f32 %v1378_v27, %v466_v23 }
  0xfc   :  { %v1030_v29 = vpop.f32.mrf.mxu0  ;;  %v1082_v30 = vpop.f32.mrf.mxu1 }
  0xfd   :  { %788 = vst.msk [vmem:[%s1628_s3 + $0x14] sm:$0xf] %vm782_vm2, %v944_v24  ;;  %v542_v31 = vmax.f32 %v363_v25, 0.0  ;;  %814 = vst.msk [vmem:[%s1628_s3 + $0x7c] sm:$0xf] %vm782_vm2, %v970_v26  ;;  %v568_v32 = vmax.f32 %v467_v28, 0.0 }
  0xfe   :  { %v365_v33 = vpop.f32.mrf.mxu0  ;;  %v469_v34 = vpop.f32.mrf.mxu1 }
  0xff   :  { %v945_v35 = vpack.c.bf16 %v542_v31, %v542_v31  ;;  %v366_v36 = vadd.f32 %v1378_v27, %v365_v33  ;;  %v971_v37 = vpack.c.bf16 %v568_v32, %v568_v32  ;;  %v470_v38 = vadd.f32 %v1378_v27, %v469_v34 }
 0x100   :  { %v1031_v39 = vpop.f32.mrf.mxu0  ;;  %v1083_v40 = vpop.f32.mrf.mxu1 }
 0x101   :  { %789 = vst.msk [vmem:[%s1628_s3 + $0x18] sm:$0xf] %vm782_vm2, %v945_v35  ;;  %v543_v41 = vmax.f32 %v366_v36, 0.0  ;;  %815 = vst.msk [vmem:[%s1628_s3 + $0x80] sm:$0xf] %vm782_vm2, %v971_v37  ;;  %v569_v42 = vmax.f32 %v470_v38, 0.0 }
 0x102   :  { %v370_v43 = vpop.f32.mrf.mxu0  ;;  %v474_v44 = vpop.f32.mrf.mxu1 }
 0x103   :  { %v946_v45 = vpack.c.bf16 %v543_v41, %v543_v41  ;;  %v371_v46 = vadd.f32 %v1378_v27, %v370_v43  ;;  %v972_v47 = vpack.c.bf16 %v569_v42, %v569_v42  ;;  %v475_v48 = vadd.f32 %v1378_v27, %v474_v44 }
 0x104   :  { %v1034_v49 = vpop.f32.mrf.mxu0  ;;  %v1086_v50 = vpop.f32.mrf.mxu1 }
 0x105   :  { %790 = vst.msk [vmem:[%s1628_s3 + $0x1c] sm:$0xf] %vm782_vm2, %v946_v45  ;;  %v544_v51 = vmax.f32 %v371_v46, 0.0  ;;  %816 = vst.msk [vmem:[%s1628_s3 + $0x84] sm:$0xf] %vm782_vm2, %v972_v47  ;;  %v570_v52 = vmax.f32 %v475_v48, 0.0 }
 0x106   :  { %v373_v53 = vpop.f32.mrf.mxu0  ;;  %v477_v54 = vpop.f32.mrf.mxu1 }
 0x107   :  { %v947_v55 = vpack.c.bf16 %v544_v51, %v544_v51  ;;  %v374_v56 = vadd.f32 %v1378_v27, %v373_v53  ;;  %v973_v57 = vpack.c.bf16 %v570_v52, %v570_v52  ;;  %v478_v58 = vadd.f32 %v1378_v27, %v477_v54 }
 0x108   :  { %v1035_v59 = vpop.f32.mrf.mxu0  ;;  %v1087_v60 = vpop.f32.mrf.mxu1 }
 0x109   :  { %791 = vst.msk [vmem:[%s1628_s3 + $0x20] sm:$0xf] %vm782_vm2, %v947_v55  ;;  %v545_v61 = vmax.f32 %v374_v56, 0.0  ;;  %817 = vst.msk [vmem:[%s1628_s3 + $0x88] sm:$0xf] %vm782_vm2, %v973_v57  ;;  %v571_v62 = vmax.f32 %v478_v58, 0.0 }
 0x10a   :  { %v378_v63 = vpop.f32.mrf.mxu0  ;;  %v482_v0 = vpop.f32.mrf.mxu1 }
 0x10b   :  { %v948_v1 = vpack.c.bf16 %v545_v61, %v545_v61  ;;  %v379_v2 = vadd.f32 %v1378_v27, %v378_v63  ;;  %v974_v3 = vpack.c.bf16 %v571_v62, %v571_v62  ;;  %v483_v4 = vadd.f32 %v1378_v27, %v482_v0 }
 0x10c   :  { %v1038_v5 = vpop.f32.mrf.mxu0  ;;  %v1090_v6 = vpop.f32.mrf.mxu1 }
 0x10d   :  { %792 = vst.msk [vmem:[%s1628_s3 + $0x24] sm:$0xf] %vm782_vm2, %v948_v1  ;;  %v546_v7 = vmax.f32 %v379_v2, 0.0  ;;  %818 = vst.msk [vmem:[%s1628_s3 + $0x8c] sm:$0xf] %vm782_vm2, %v974_v3  ;;  %v572_v8 = vmax.f32 %v483_v4, 0.0 }
 0x10e   :  { %v381_v9 = vpop.f32.mrf.mxu0  ;;  %v485_v10 = vpop.f32.mrf.mxu1 }
 0x10f   :  { %v949_v11 = vpack.c.bf16 %v546_v7, %v546_v7  ;;  %v382_v12 = vadd.f32 %v1378_v27, %v381_v9  ;;  %v975_v13 = vpack.c.bf16 %v572_v8, %v572_v8  ;;  %v486_v14 = vadd.f32 %v1378_v27, %v485_v10 }
 0x110   :  { %v1039_v15 = vpop.f32.mrf.mxu0  ;;  %v1091_v16 = vpop.f32.mrf.mxu1 }
 0x111   :  { %793 = vst.msk [vmem:[%s1628_s3 + $0x28] sm:$0xf] %vm782_vm2, %v949_v11  ;;  %v547_v17 = vmax.f32 %v382_v12, 0.0  ;;  %819 = vst.msk [vmem:[%s1628_s3 + $0x90] sm:$0xf] %vm782_vm2, %v975_v13  ;;  %v573_v18 = vmax.f32 %v486_v14, 0.0 }
 0x112   :  { %v386_v19 = vpop.f32.mrf.mxu0  ;;  %v490_v20 = vpop.f32.mrf.mxu1 }
 0x113   :  { %v950_v21 = vpack.c.bf16 %v547_v17, %v547_v17  ;;  %v387_v22 = vadd.f32 %v1378_v27, %v386_v19  ;;  %v976_v23 = vpack.c.bf16 %v573_v18, %v573_v18  ;;  %v491_v24 = vadd.f32 %v1378_v27, %v490_v20 }
 0x114   :  { %v1042_v25 = vpop.f32.mrf.mxu0  ;;  %v1094_v26 = vpop.f32.mrf.mxu1 }
 0x115   :  { %794 = vst.msk [vmem:[%s1628_s3 + $0x2c] sm:$0xf] %vm782_vm2, %v950_v21  ;;  %v548_v28 = vmax.f32 %v387_v22, 0.0  ;;  %820 = vst.msk [vmem:[%s1628_s3 + $0x94] sm:$0xf] %vm782_vm2, %v976_v23  ;;  %v574_v29 = vmax.f32 %v491_v24, 0.0 }
 0x116   :  { %v389_v30 = vpop.f32.mrf.mxu0  ;;  %v493_v31 = vpop.f32.mrf.mxu1 }
 0x117   :  { %v951_v32 = vpack.c.bf16 %v548_v28, %v548_v28  ;;  %v390_v33 = vadd.f32 %v1378_v27, %v389_v30  ;;  %v977_v34 = vpack.c.bf16 %v574_v29, %v574_v29  ;;  %v494_v35 = vadd.f32 %v1378_v27, %v493_v31 }
 0x118   :  { %v1043_v36 = vpop.f32.mrf.mxu0  ;;  %v1095_v37 = vpop.f32.mrf.mxu1 }
 0x119   :  { %795 = vst.msk [vmem:[%s1628_s3 + $0x30] sm:$0xf] %vm782_vm2, %v951_v32  ;;  %v549_v38 = vmax.f32 %v390_v33, 0.0  ;;  %821 = vst.msk [vmem:[%s1628_s3 + $0x98] sm:$0xf] %vm782_vm2, %v977_v34  ;;  %v575_v39 = vmax.f32 %v494_v35, 0.0 }
 0x11a   :  { %v394_v40 = vpop.f32.mrf.mxu0  ;;  %v498_v41 = vpop.f32.mrf.mxu1 }
 0x11b   :  { %v952_v42 = vpack.c.bf16 %v549_v38, %v549_v38  ;;  %v395_v43 = vadd.f32 %v1378_v27, %v394_v40  ;;  %v978_v44 = vpack.c.bf16 %v575_v39, %v575_v39  ;;  %v499_v45 = vadd.f32 %v1378_v27, %v498_v41 }
 0x11c   :  { %v1046_v46 = vpop.f32.mrf.mxu0  ;;  %v1098_v47 = vpop.f32.mrf.mxu1 }
 0x11d   :  { %796 = vst.msk [vmem:[%s1628_s3 + $0x34] sm:$0xf] %vm782_vm2, %v952_v42  ;;  %v550_v48 = vmax.f32 %v395_v43, 0.0  ;;  %822 = vst.msk [vmem:[%s1628_s3 + $0x9c] sm:$0xf] %vm782_vm2, %v978_v44  ;;  %v576_v49 = vmax.f32 %v499_v45, 0.0 }
 0x11e   :  { %v397_v50 = vpop.f32.mrf.mxu0  ;;  %v501_v51 = vpop.f32.mrf.mxu1 }
 0x11f   :  { %v953_v52 = vpack.c.bf16 %v550_v48, %v550_v48  ;;  %v398_v53 = vadd.f32 %v1378_v27, %v397_v50  ;;  %v979_v54 = vpack.c.bf16 %v576_v49, %v576_v49  ;;  %v502_v55 = vadd.f32 %v1378_v27, %v501_v51 }
 0x120   :  { %v1047_v56 = vpop.f32.mrf.mxu0  ;;  %v1099_v57 = vpop.f32.mrf.mxu1 }
 0x121   :  { %797 = vst.msk [vmem:[%s1628_s3 + $0x38] sm:$0xf] %vm782_vm2, %v953_v52  ;;  %v551_v58 = vmax.f32 %v398_v53, 0.0  ;;  %823 = vst.msk [vmem:[%s1628_s3 + $0xa0] sm:$0xf] %vm782_vm2, %v979_v54  ;;  %v577_v59 = vmax.f32 %v502_v55, 0.0 }
 0x122   :  { %v402_v60 = vpop.f32.mrf.mxu0  ;;  %v506_v61 = vpop.f32.mrf.mxu1 }
 0x123   :  { %v954_v62 = vpack.c.bf16 %v551_v58, %v551_v58  ;;  %v403_v63 = vadd.f32 %v1378_v27, %v402_v60  ;;  %v980_v0 = vpack.c.bf16 %v577_v59, %v577_v59  ;;  %v507_v1 = vadd.f32 %v1378_v27, %v506_v61 }
 0x124   :  { %v1050_v2 = vpop.f32.mrf.mxu0  ;;  %v1102_v3 = vpop.f32.mrf.mxu1 }
 0x125   :  { %798 = vst.msk [vmem:[%s1628_s3 + $0x3c] sm:$0xf] %vm782_vm2, %v954_v62  ;;  %v552_v4 = vmax.f32 %v403_v63, 0.0  ;;  %824 = vst.msk [vmem:[%s1628_s3 + $0xa4] sm:$0xf] %vm782_vm2, %v980_v0  ;;  %v578_v5 = vmax.f32 %v507_v1, 0.0 }
 0x126   :  { %v405_v6 = vpop.f32.mrf.mxu0  ;;  %v509_v7 = vpop.f32.mrf.mxu1 }
 0x127   :  { %v955_v8 = vpack.c.bf16 %v552_v4, %v552_v4  ;;  %v406_v9 = vadd.f32 %v1378_v27, %v405_v6  ;;  %v981_v10 = vpack.c.bf16 %v578_v5, %v578_v5  ;;  %v510_v11 = vadd.f32 %v1378_v27, %v509_v7 }
 0x128   :  { %v1051_v12 = vpop.f32.mrf.mxu0  ;;  %v1103_v13 = vpop.f32.mrf.mxu1 }
 0x129   :  { %799 = vst.msk [vmem:[%s1628_s3 + $0x40] sm:$0xf] %vm782_vm2, %v955_v8  ;;  %v553_v14 = vmax.f32 %v406_v9, 0.0  ;;  %825 = vst.msk [vmem:[%s1628_s3 + $0xa8] sm:$0xf] %vm782_vm2, %v981_v10  ;;  %v579_v15 = vmax.f32 %v510_v11, 0.0 }
 0x12a   :  { %v410_v16 = vpop.f32.mrf.mxu0  ;;  %v514_v17 = vpop.f32.mrf.mxu1 }
 0x12b   :  { %v956_v18 = vpack.c.bf16 %v553_v14, %v553_v14  ;;  %v411_v19 = vadd.f32 %v1378_v27, %v410_v16  ;;  %v982_v20 = vpack.c.bf16 %v579_v15, %v579_v15  ;;  %v515_v21 = vadd.f32 %v1378_v27, %v514_v17 }
 0x12c   :  { %v1054_v22 = vpop.f32.mrf.mxu0  ;;  %v1106_v23 = vpop.f32.mrf.mxu1 }
 0x12d   :  { %800 = vst.msk [vmem:[%s1628_s3 + $0x44] sm:$0xf] %vm782_vm2, %v956_v18  ;;  %v554_v24 = vmax.f32 %v411_v19, 0.0  ;;  %826 = vst.msk [vmem:[%s1628_s3 + $0xac] sm:$0xf] %vm782_vm2, %v982_v20  ;;  %v580_v25 = vmax.f32 %v515_v21, 0.0 }
 0x12e   :  { %v413_v26 = vpop.f32.mrf.mxu0  ;;  %v517_v28 = vpop.f32.mrf.mxu1 }
 0x12f   :  { %v957_v29 = vpack.c.bf16 %v554_v24, %v554_v24  ;;  %v414_v30 = vadd.f32 %v1378_v27, %v413_v26  ;;  %v983_v31 = vpack.c.bf16 %v580_v25, %v580_v25  ;;  %v518_v32 = vadd.f32 %v1378_v27, %v517_v28 }
 0x130   :  { %v1055_v33 = vpop.f32.mrf.mxu0  ;;  %v1107_v34 = vpop.f32.mrf.mxu1 }
 0x131   :  { %801 = vst.msk [vmem:[%s1628_s3 + $0x48] sm:$0xf] %vm782_vm2, %v957_v29  ;;  %v555_v35 = vmax.f32 %v414_v30, 0.0  ;;  %827 = vst.msk [vmem:[%s1628_s3 + $0xb0] sm:$0xf] %vm782_vm2, %v983_v31  ;;  %v581_v36 = vmax.f32 %v518_v32, 0.0 }
 0x132   :  { %v418_v37 = vpop.f32.mrf.mxu0  ;;  %v522_v38 = vpop.f32.mrf.mxu1 }
 0x133   :  { %v958_v39 = vpack.c.bf16 %v555_v35, %v555_v35  ;;  %v419_v40 = vadd.f32 %v1378_v27, %v418_v37  ;;  %v984_v41 = vpack.c.bf16 %v581_v36, %v581_v36  ;;  %v523_v42 = vadd.f32 %v1378_v27, %v522_v38 }
 0x134   :  { %v1058_v43 = vpop.f32.mrf.mxu0  ;;  %v1110_v44 = vpop.f32.mrf.mxu1 }
 0x135   :  { %802 = vst.msk [vmem:[%s1628_s3 + $0x4c] sm:$0xf] %vm782_vm2, %v958_v39  ;;  %v556_v45 = vmax.f32 %v419_v40, 0.0  ;;  %828 = vst.msk [vmem:[%s1628_s3 + $0xb4] sm:$0xf] %vm782_vm2, %v984_v41  ;;  %v582_v46 = vmax.f32 %v523_v42, 0.0 }
 0x136   :  { %v421_v47 = vpop.f32.mrf.mxu0  ;;  %v525_v48 = vpop.f32.mrf.mxu1 }
 0x137   :  { %v959_v49 = vpack.c.bf16 %v556_v45, %v556_v45  ;;  %v422_v50 = vadd.f32 %v1378_v27, %v421_v47  ;;  %v985_v51 = vpack.c.bf16 %v582_v46, %v582_v46  ;;  %v526_v52 = vadd.f32 %v1378_v27, %v525_v48 }
 0x138   :  { %v1059_v53 = vpop.f32.mrf.mxu0  ;;  %v1111_v54 = vpop.f32.mrf.mxu1 }
 0x139   :  { %803 = vst.msk [vmem:[%s1628_s3 + $0x50] sm:$0xf] %vm782_vm2, %v959_v49  ;;  %v557_v55 = vmax.f32 %v422_v50, 0.0  ;;  %829 = vst.msk [vmem:[%s1628_s3 + $0xb8] sm:$0xf] %vm782_vm2, %v985_v51  ;;  %v583_v56 = vmax.f32 %v526_v52, 0.0 }
 0x13a   :  { %v426_v57 = vpop.f32.mrf.mxu0  ;;  %v530_v58 = vpop.f32.mrf.mxu1 }
 0x13b   :  { %v960_v59 = vpack.c.bf16 %v557_v55, %v557_v55  ;;  %v427_v60 = vadd.f32 %v1378_v27, %v426_v57  ;;  %v986_v61 = vpack.c.bf16 %v583_v56, %v583_v56  ;;  %v531_v62 = vadd.f32 %v1378_v27, %v530_v58 }
 0x13c   :  { %v1062_v63 = vpop.f32.mrf.mxu0  ;;  %v1114_v0 = vpop.f32.mrf.mxu1 }
 0x13d   :  { %804 = vst.msk [vmem:[%s1628_s3 + $0x54] sm:$0xf] %vm782_vm2, %v960_v59  ;;  %v558_v1 = vmax.f32 %v427_v60, 0.0  ;;  %830 = vst.msk [vmem:[%s1628_s3 + $0xbc] sm:$0xf] %vm782_vm2, %v986_v61  ;;  %v584_v2 = vmax.f32 %v531_v62, 0.0 }
 0x13e   :  { %v429_v3 = vpop.f32.mrf.mxu0  ;;  %v533_v4 = vpop.f32.mrf.mxu1 }
 0x13f   :  { %v961_v5 = vpack.c.bf16 %v558_v1, %v558_v1  ;;  %v430_v6 = vadd.f32 %v1378_v27, %v429_v3  ;;  %v987_v7 = vpack.c.bf16 %v584_v2, %v584_v2 }
 0x140   :  { %v1063_v8 = vpop.f32.mrf.mxu0  ;;  %v1115_v9 = vpop.f32.mrf.mxu1 }
 0x141   :  { %805 = vst.msk [vmem:[%s1628_s3 + $0x58] sm:$0xf] %vm782_vm2, %v961_v5  ;;  %v559_v10 = vmax.f32 %v430_v6, 0.0  ;;  %831 = vst.msk [vmem:[%s1628_s3 + $0xc0] sm:$0xf] %vm782_vm2, %v987_v7 }
 0x142   :  { %v434_v11 = vpop.f32.mrf.mxu0 }
 0x143   :  { %v962_v12 = vpack.c.bf16 %v559_v10, %v559_v10  ;;  %v435_v13 = vadd.f32 %v1378_v27, %v434_v11 }
 0x144   :  { %v1066_v14 = vpop.f32.mrf.mxu0 }
 0x145   :  { %806 = vst.msk [vmem:[%s1628_s3 + $0x5c] sm:$0xf] %vm782_vm2, %v962_v12  ;;  %v560_v15 = vmax.f32 %v435_v13, 0.0 }
 0x146   :  { %v437_v16 = vpop.f32.mrf.mxu0 }
 0x147   :  { %v963_v17 = vpack.c.bf16 %v560_v15, %v560_v15  ;;  %v438_v18 = vadd.f32 %v1378_v27, %v437_v16 }
 0x148   :  { %v1067_v19 = vpop.f32.mrf.mxu0 }
 0x149   :  { %807 = vst.msk [vmem:[%s1628_s3 + $0x60] sm:$0xf] %vm782_vm2, %v963_v17  ;;  %v561_v20 = vmax.f32 %v438_v18, 0.0 }
 0x14b   :  { %v964_v21 = vpack.c.bf16 %v561_v20, %v561_v20 }
 0x14d   :  { %808 = vst.msk [vmem:[%s1628_s3 + $0x64] sm:$0xf] %vm782_vm2, %v964_v21 }
 0x14e   :  { %836 = vsyncpa [#allocation3], 1 }
 0x14f   :  { %837 = vsyncpa [#allocation5], 1 }

// kernel: beta_vae_forward.10
= control target key start
LH: loop header
LB: loop body
LE: loop exit
PB: predicated region body
PF: predicated region fallthrough
CT: control target
= control target key end

     0   :  { %vm580_vm0 = vcmask 519168   ;;  %s1037_s1 = inlined_call_operand.vmem [shape: bf16[512,64], index: 1, kind: input, shape index: {}]   ;;  %s1038_s0 = inlined_call_operand.vmem [shape: bf16[72,512], index: 0, kind: input, shape index: {}]   ;;  %s1039_s2 = inlined_call_operand.vmem [shape: f32[1,64], index: 2, kind: input, shape index: {}]   ;;  %s1040_s3 = inlined_call_operand.vmem [shape: bf16[72,64], index: 3, kind: output, shape index: {}]  }
   0x1   :  { %v757_v0 = vld [vmem:[%s1037_s1 + $0x78] sm:$0xff]   ;;  %v761_v4 = vld [vmem:[%s1037_s1 + $0x70] sm:$0xff]   ;;  %v765_v8 = vld [vmem:[%s1037_s1 + $0x68] sm:$0xff]  }
   0x2   :  { %v758_v1 = vld [vmem:[%s1037_s1 + $0xf8] sm:$0xff]   ;;  %665 = vmatprep.subr.bf16.mxu0 %v757_v0  ;;  %v762_v5 = vld [vmem:[%s1037_s1 + $0xf0] sm:$0xff]   ;;  %v766_v9 = vld [vmem:[%s1037_s1 + $0xe8] sm:$0xff]  }
   0x3   :  { %v759_v2 = vld [vmem:[%s1037_s1 + $0x38] sm:$0xff]   ;;  %711 = vmatprep.subr.bf16.mxu1 %v758_v1  ;;  %v763_v6 = vld [vmem:[%s1037_s1 + $0x30] sm:$0xff]   ;;  %v767_v10 = vld [vmem:[%s1037_s1 + $0x28] sm:$0xff]  }
   0x4   :  { %v760_v3 = vld [vmem:[%s1037_s1 + $0xb8] sm:$0xff]   ;;  %666 = vmatpush3.bf16.msra.mxu0 %v759_v2  ;;  %v764_v7 = vld [vmem:[%s1037_s1 + $0xb0] sm:$0xff]   ;;  %v768_v11 = vld [vmem:[%s1037_s1 + $0xa8] sm:$0xff]  }
   0x5   :  { %712 = vmatpush3.bf16.msra.mxu1 %v760_v3  ;;  %667 = vmatprep.subr.bf16.mxu0 %v761_v4  ;;  %v769_v12 = vld [vmem:[%s1037_s1 + $0x60] sm:$0xff]   ;;  %v773_v16 = vld [vmem:[%s1037_s1 + $0x58] sm:$0xff]   ;;  %v777_v20 = vld [vmem:[%s1037_s1 + $0x50] sm:$0xff]  }
   0x6   :  { %713 = vmatprep.subr.bf16.mxu1 %v762_v5  ;;  %v770_v13 = vld [vmem:[%s1037_s1 + $0xe0] sm:$0xff]   ;;  %v774_v17 = vld [vmem:[%s1037_s1 + $0xd8] sm:$0xff]   ;;  %v778_v21 = vld [vmem:[%s1037_s1 + $0xd0] sm:$0xff]  }
   0x7   :  { %v771_v14 = vld [vmem:[%s1037_s1 + $0x20] sm:$0xff]   ;;  %v775_v18 = vld [vmem:[%s1037_s1 + $0x18] sm:$0xff]   ;;  %v779_v22 = vld [vmem:[%s1037_s1 + $0x10] sm:$0xff]  }
   0x8   :  { %668 = vmatpush3.bf16.msra.mxu0 %v763_v6  ;;  %v772_v15 = vld [vmem:[%s1037_s1 + $0xa0] sm:$0xff]   ;;  %v776_v19 = vld [vmem:[%s1037_s1 + $0x98] sm:$0xff]   ;;  %v780_v23 = vld [vmem:[%s1037_s1 + $0x90] sm:$0xff]  }
   0x9   :  { %714 = vmatpush3.bf16.msra.mxu1 %v764_v7  ;;  %669 = vmatprep.subr.bf16.mxu0 %v765_v8  ;;  %v781_v24 = vld [vmem:[%s1037_s1 + $0x48] sm:$0xff]   ;;  %v785_v28 = vld [vmem:[%s1037_s1 + $0x40] sm:$0xff]  }
   0xa   :  { %715 = vmatprep.subr.bf16.mxu1 %v766_v9  ;;  %v782_v25 = vld [vmem:[%s1037_s1 + $0xc8] sm:$0xff]   ;;  %v786_v29 = vld [vmem:[%s1037_s1 + $0xc0] sm:$0xff]  }
   0xb   :  { %v783_v26 = vld [vmem:[%s1037_s1 + $0x8] sm:$0xff]   ;;  %v787_v30 = vld [vmem:[%s1037_s1] sm:$0xff]  }
   0xc   :  { %670 = vmatpush3.bf16.msra.mxu0 %v767_v10  ;;  %v784_v27 = vld [vmem:[%s1037_s1 + $0x88] sm:$0xff]   ;;  %v788_v31 = vld [vmem:[%s1037_s1 + $0x80] sm:$0xff]  }
   0xd   :  { %716 = vmatpush3.bf16.msra.mxu1 %v768_v11  ;;  %671 = vmatprep.subr.bf16.mxu0 %v769_v12  ;;  %v789_v32 = vld [vmem:[%s1038_s0] ss:$16 sps:$4 sm:$0xff]   ;;  %v791_v33 = vld [vmem:[%s1038_s0 + $0x4] ss:$16 sps:$4 sm:$0xff]   ;;  %v792_v34 = vld [vmem:[%s1038_s0 + $0x8] ss:$16 sps:$4 sm:$0xff]  }
   0xe   :  { %717 = vmatprep.subr.bf16.mxu1 %v770_v13  ;;  %v794_v35 = vld [vmem:[%s1038_s0 + $0xc] ss:$16 sps:$4 sm:$0xff]   ;;  %422 = vmatprep.mubr.bf16.mxu0 %v791_v33  ;;  %v795_v36 = vld [vmem:[%s1038_s0 + $0x24] ss:$16 sps:$4 sm:$0xff]   ;;  %v799_v38 = vld [vmem:[%s1038_s0 + $0x20] ss:$16 sps:$4 sm:$0xff]  }
   0xf   :  { %494 = vmatprep.mubr.bf16.mxu1 %v794_v35  ;;  %v797_v37 = vld [vmem:[%s1038_s0 + $0x2c] ss:$16 sps:$4 sm:$0xff]   ;;  %v800_v39 = vld [vmem:[%s1038_s0 + $0x28] ss:$16 sps:$4 sm:$0xff]   ;;  %v801_v40 = vld [vmem:[%s1038_s0 + $0x44] ss:$16 sps:$4 sm:$0xff]  }
  0x10   :  { %672 = vmatpush3.bf16.msra.mxu0 %v771_v14  ;;  %v803_v41 = vld [vmem:[%s1038_s0 + $0x4c] ss:$16 sps:$4 sm:$0xff]   ;;  %v805_v42 = vld [vmem:[%s1038_s0 + $0x40] ss:$16 sps:$4 sm:$0xff]   ;;  %v806_v43 = vld [vmem:[%s1038_s0 + $0x48] ss:$16 sps:$4 sm:$0xff]  }
  0x11   :  { %718 = vmatpush3.bf16.msra.mxu1 %v772_v15  ;;  %673 = vmatprep.subr.bf16.mxu0 %v773_v16  ;;  %v807_v44 = vld [vmem:[%s1038_s0 + $0x64] ss:$16 sps:$4 sm:$0xff]   ;;  %v809_v45 = vld [vmem:[%s1038_s0 + $0x6c] ss:$16 sps:$4 sm:$0xff]   ;;  %v811_v48 = vld [vmem:[%s1038_s0 + $0x60] ss:$16 sps:$4 sm:$0xff]  }
  0x12   :  { %719 = vmatprep.subr.bf16.mxu1 %v774_v17  ;;  %v31_v46 = vld [vmem:[%s1038_s0 + $0x80] sm:$0xff]  ;;  %v32_v47 = vld [vmem:[%s1038_s0 + $0x88] sm:$0xff] }
  0x13   :  { %v812_v49 = vld [vmem:[%s1038_s0 + $0x68] ss:$16 sps:$4 sm:$0xff]   ;;  %v612_v50 = vcombine.high %v31_v46, %v31_v46  ;;  %v614_v51 = vcombine.high %v32_v47, %v32_v47  ;;  %v611_v52 = vcombine.low %v31_v46, %v31_v46  ;;  %v613_v53 = vcombine.low %v32_v47, %v32_v47  ;;  %v990_v56 = vld [vmem:[%s1039_s2] ss:$0 sm:$0xff] }
  0x14   :  { %674 = vmatpush3.bf16.msra.mxu0 %v775_v18 }
  0x15   :  { %720 = vmatpush3.bf16.msra.mxu1 %v776_v19  ;;  %675 = vmatprep.subr.bf16.mxu0 %v777_v20 }
  0x16   :  { %721 = vmatprep.subr.bf16.mxu1 %v778_v21 }
  0x18   :  { %676 = vmatpush3.bf16.msra.mxu0 %v779_v22 }
  0x19   :  { %722 = vmatpush3.bf16.msra.mxu1 %v780_v23  ;;  %677 = vmatprep.subr.bf16.mxu0 %v781_v24 }
  0x1a   :  { %723 = vmatprep.subr.bf16.mxu1 %v782_v25 }
  0x1c   :  { %678 = vmatpush3.bf16.msra.mxu0 %v783_v26 }
  0x1d   :  { %724 = vmatpush3.bf16.msra.mxu1 %v784_v27  ;;  %679 = vmatprep.subr.bf16.mxu0 %v785_v28 }
  0x1e   :  { %725 = vmatprep.subr.bf16.mxu1 %v786_v29 }
  0x20   :  { %680 = vmatpush3.bf16.msra.mxu0 %v787_v30 }
  0x21   :  { %726 = vmatpush3.bf16.msra.mxu1 %v788_v31 }
  0x23   :  { %423 = vmatmul.mubr.bf16.vlgmr.msra.gmra.mxu0 %v789_v32 }
  0x24   :  { %495 = vmatmul.mubr.bf16.vlgmr.msra.gmra.mxu1 %v792_v34  ;;  %430 = vmatprep.mubr.bf16.mxu0 %v795_v36 }
  0x25   :  { %502 = vmatprep.mubr.bf16.mxu1 %v797_v37 }
  0x2b   :  { %431 = vmatmul.mubr.bf16.gmra.mxu0 %v799_v38 }
  0x2c   :  { %503 = vmatmul.mubr.bf16.gmra.mxu1 %v800_v39  ;;  %438 = vmatprep.mubr.bf16.mxu0 %v801_v40 }
  0x2d   :  { %510 = vmatprep.mubr.bf16.mxu1 %v803_v41 }
  0x33   :  { %439 = vmatmul.mubr.bf16.gmra.mxu0 %v805_v42 }
  0x34   :  { %511 = vmatmul.mubr.bf16.gmra.mxu1 %v806_v43  ;;  %446 = vmatprep.mubr.bf16.mxu0 %v807_v44 }
  0x35   :  { %518 = vmatprep.mubr.bf16.mxu1 %v809_v45 }
  0x3b   :  { %447 = vmatmul.mubr.bf16.gmra.mxu0 %v811_v48 }
  0x3c   :  { %519 = vmatmul.mubr.bf16.gmra.mxu1 %v812_v49  ;;  %454 = vmatprep.mubr.bf16.mxu0 %v612_v50 }
  0x3d   :  { %526 = vmatprep.mubr.bf16.mxu1 %v614_v51 }
  0x43   :  { %455 = vmatmul.mubr.bf16.gmra.mxu0 %v611_v52 }
  0x44   :  { %527 = vmatmul.mubr.bf16.gmra.mxu1 %v613_v53 }
  0xe3   :  { %v681_v54 = vpop.f32.mrf.mxu0 }
  0xe4   :  { %v727_v55 = vpop.f32.mrf.mxu1 }
  0xe5   :  { %v682_v57 = vpop.f32.mrf.mxu0 }
  0xe6   :  { %v683_v58 = vadd.f32 %v682_v57, %v681_v54  ;;  %v728_v59 = vpop.f32.mrf.mxu1 }
  0xe7   :  { %v684_v60 = vpop.f32.mrf.mxu0  ;;  %v729_v62 = vadd.f32 %v728_v59, %v727_v55 }
  0xe8   :  { %v425_v61 = vadd.f32 %v683_v58, %v990_v56  ;;  %v730_v63 = vpop.f32.mrf.mxu1 }
  0xe9   :  { %v685_v0 = vpop.f32.mrf.mxu0 }
  0xea   :  { %v497_v1 = vadd.f32 %v729_v62, %v425_v61  ;;  %v686_v2 = vadd.f32 %v685_v0, %v684_v60  ;;  %v731_v3 = vpop.f32.mrf.mxu1 }
  0xeb   :  { %v687_v4 = vpop.f32.mrf.mxu0  ;;  %v732_v7 = vadd.f32 %v731_v3, %v730_v63 }
  0xec   :  { %v534_v5 = vmax.f32 %v497_v1, 0.0  ;;  %v428_v6 = vadd.f32 %v686_v2, %v990_v56  ;;  %v733_v8 = vpop.f32.mrf.mxu1 }
  0xed   :  { %v688_v9 = vpop.f32.mrf.mxu0 }
  0xee   :  { %v656_v10 = vpack.c.bf16 %v534_v5, %v534_v5  ;;  %v500_v11 = vadd.f32 %v732_v7, %v428_v6  ;;  %v689_v12 = vadd.f32 %v688_v9, %v687_v4  ;;  %v734_v13 = vpop.f32.mrf.mxu1 }
  0xef   :  { %v690_v14 = vpop.f32.mrf.mxu0  ;;  %v735_v17 = vadd.f32 %v734_v13, %v733_v8 }
  0xf0   :  { %581 = vst.msk [vmem:[%s1040_s3] sm:$0xf] %vm580_vm0, %v656_v10  ;;  %v535_v15 = vmax.f32 %v500_v11, 0.0  ;;  %v433_v16 = vadd.f32 %v689_v12, %v990_v56  ;;  %v736_v18 = vpop.f32.mrf.mxu1 }
  0xf1   :  { %v691_v19 = vpop.f32.mrf.mxu0 }
  0xf2   :  { %v657_v20 = vpack.c.bf16 %v535_v15, %v535_v15  ;;  %v505_v21 = vadd.f32 %v735_v17, %v433_v16  ;;  %v692_v22 = vadd.f32 %v691_v19, %v690_v14  ;;  %v737_v23 = vpop.f32.mrf.mxu1 }
  0xf3   :  { %v693_v24 = vpop.f32.mrf.mxu0  ;;  %v738_v27 = vadd.f32 %v737_v23, %v736_v18 }
  0xf4   :  { %582 = vst.msk [vmem:[%s1040_s3 + $0x4] sm:$0xf] %vm580_vm0, %v657_v20  ;;  %v536_v25 = vmax.f32 %v505_v21, 0.0  ;;  %v436_v26 = vadd.f32 %v692_v22, %v990_v56  ;;  %v739_v28 = vpop.f32.mrf.mxu1 }
  0xf5   :  { %v694_v29 = vpop.f32.mrf.mxu0 }
  0xf6   :  { %v658_v30 = vpack.c.bf16 %v536_v25, %v536_v25  ;;  %v508_v31 = vadd.f32 %v738_v27, %v436_v26  ;;  %v695_v32 = vadd.f32 %v694_v29, %v693_v24  ;;  %v740_v33 = vpop.f32.mrf.mxu1 }
  0xf7   :  { %v696_v34 = vpop.f32.mrf.mxu0  ;;  %v741_v37 = vadd.f32 %v740_v33, %v739_v28 }
  0xf8   :  { %583 = vst.msk [vmem:[%s1040_s3 + $0x8] sm:$0xf] %vm580_vm0, %v658_v30  ;;  %v537_v35 = vmax.f32 %v508_v31, 0.0  ;;  %v441_v36 = vadd.f32 %v695_v32, %v990_v56  ;;  %v742_v38 = vpop.f32.mrf.mxu1 }
  0xf9   :  { %v697_v39 = vpop.f32.mrf.mxu0 }
  0xfa   :  { %v659_v40 = vpack.c.bf16 %v537_v35, %v537_v35  ;;  %v513_v41 = vadd.f32 %v741_v37, %v441_v36  ;;  %v698_v42 = vadd.f32 %v697_v39, %v696_v34  ;;  %v743_v43 = vpop.f32.mrf.mxu1 }
  0xfb   :  { %v699_v44 = vpop.f32.mrf.mxu0  ;;  %v744_v47 = vadd.f32 %v743_v43, %v742_v38 }
  0xfc   :  { %584 = vst.msk [vmem:[%s1040_s3 + $0xc] sm:$0xf] %vm580_vm0, %v659_v40  ;;  %v538_v45 = vmax.f32 %v513_v41, 0.0  ;;  %v444_v46 = vadd.f32 %v698_v42, %v990_v56  ;;  %v745_v48 = vpop.f32.mrf.mxu1 }
  0xfd   :  { %v700_v49 = vpop.f32.mrf.mxu0 }
  0xfe   :  { %v660_v50 = vpack.c.bf16 %v538_v45, %v538_v45  ;;  %v516_v51 = vadd.f32 %v744_v47, %v444_v46  ;;  %v701_v52 = vadd.f32 %v700_v49, %v699_v44  ;;  %v746_v53 = vpop.f32.mrf.mxu1 }
  0xff   :  { %v702_v54 = vpop.f32.mrf.mxu0  ;;  %v747_v58 = vadd.f32 %v746_v53, %v745_v48 }
 0x100   :  { %585 = vst.msk [vmem:[%s1040_s3 + $0x10] sm:$0xf] %vm580_vm0, %v660_v50  ;;  %v539_v55 = vmax.f32 %v516_v51, 0.0  ;;  %v449_v57 = vadd.f32 %v701_v52, %v990_v56  ;;  %v748_v59 = vpop.f32.mrf.mxu1 }
 0x101   :  { %v703_v60 = vpop.f32.mrf.mxu0 }
 0x102   :  { %v661_v61 = vpack.c.bf16 %v539_v55, %v539_v55  ;;  %v521_v62 = vadd.f32 %v747_v58, %v449_v57  ;;  %v704_v63 = vadd.f32 %v703_v60, %v702_v54  ;;  %v749_v0 = vpop.f32.mrf.mxu1 }
 0x103   :  { %v705_v1 = vpop.f32.mrf.mxu0  ;;  %v750_v4 = vadd.f32 %v749_v0, %v748_v59 }
 0x104   :  { %586 = vst.msk [vmem:[%s1040_s3 + $0x14] sm:$0xf] %vm580_vm0, %v661_v61  ;;  %v540_v2 = vmax.f32 %v521_v62, 0.0  ;;  %v452_v3 = vadd.f32 %v704_v63, %v990_v56  ;;  %v751_v5 = vpop.f32.mrf.mxu1 }
 0x105   :  { %v706_v6 = vpop.f32.mrf.mxu0 }
 0x106   :  { %v662_v7 = vpack.c.bf16 %v540_v2, %v540_v2  ;;  %v524_v8 = vadd.f32 %v750_v4, %v452_v3  ;;  %v707_v9 = vadd.f32 %v706_v6, %v705_v1  ;;  %v752_v10 = vpop.f32.mrf.mxu1 }
 0x107   :  { %v708_v11 = vpop.f32.mrf.mxu0  ;;  %v753_v14 = vadd.f32 %v752_v10, %v751_v5 }
 0x108   :  { %587 = vst.msk [vmem:[%s1040_s3 + $0x18] sm:$0xf] %vm580_vm0, %v662_v7  ;;  %v541_v12 = vmax.f32 %v524_v8, 0.0  ;;  %v457_v13 = vadd.f32 %v707_v9, %v990_v56  ;;  %v754_v15 = vpop.f32.mrf.mxu1 }
 0x109   :  { %v709_v16 = vpop.f32.mrf.mxu0 }
 0x10a   :  { %v663_v17 = vpack.c.bf16 %v541_v12, %v541_v12  ;;  %v529_v18 = vadd.f32 %v753_v14, %v457_v13  ;;  %v755_v19 = vpop.f32.mrf.mxu1 }
 0x10c   :  { %588 = vst.msk [vmem:[%s1040_s3 + $0x1c] sm:$0xf] %vm580_vm0, %v663_v17  ;;  %v542_v20 = vmax.f32 %v529_v18, 0.0 }
 0x10e   :  { %v664_v21 = vpack.c.bf16 %v542_v20, %v542_v20 }
 0x110   :  { %589 = vst.msk [vmem:[%s1040_s3 + $0x20] sm:$0xf] %vm580_vm0, %v664_v21 }

// kernel: beta_vae_forward.11
= control target key start
LH: loop header
LB: loop body
LE: loop exit
PB: predicated region body
PF: predicated region fallthrough
CT: control target
= control target key end

     0   :  { %vm728_vm0 = vcmask 519168   ;;  %s1197_s1 = inlined_call_operand.vmem [shape: bf16[1024,64], index: 1, kind: input, shape index: {}]   ;;  %s1198_s0 = inlined_call_operand.vmem [shape: bf16[8,1024], index: 0, kind: input, shape index: {}]   ;;  %s1199_s2 = inlined_call_operand.vmem [shape: f32[1,64], index: 2, kind: input, shape index: {}]   ;;  %s1200_s3 = inlined_call_operand.vmem [shape: bf16[8,64], index: 3, kind: output, shape index: {}]  }
   0x1   :  { %v895_v0 = vld [vmem:[%s1197_s1 + $0x78] sm:$0xff]   ;;  %v899_v4 = vld [vmem:[%s1197_s1 + $0x70] sm:$0xff]   ;;  %v903_v8 = vld [vmem:[%s1197_s1 + $0x68] sm:$0xff]  }
   0x2   :  { %v896_v1 = vld [vmem:[%s1197_s1 + $0xf8] sm:$0xff]   ;;  %807 = vmatprep.subr.bf16.mxu0 %v895_v0  ;;  %v900_v5 = vld [vmem:[%s1197_s1 + $0xf0] sm:$0xff]   ;;  %v904_v9 = vld [vmem:[%s1197_s1 + $0xe8] sm:$0xff]  }
   0x3   :  { %v897_v2 = vld [vmem:[%s1197_s1 + $0x38] sm:$0xff]   ;;  %829 = vmatprep.subr.bf16.mxu1 %v896_v1  ;;  %v901_v6 = vld [vmem:[%s1197_s1 + $0x30] sm:$0xff]   ;;  %v905_v10 = vld [vmem:[%s1197_s1 + $0x28] sm:$0xff]  }
   0x4   :  { %v898_v3 = vld [vmem:[%s1197_s1 + $0xb8] sm:$0xff]   ;;  %808 = vmatpush3.bf16.msra.mxu0 %v897_v2  ;;  %v902_v7 = vld [vmem:[%s1197_s1 + $0xb0] sm:$0xff]   ;;  %v906_v11 = vld [vmem:[%s1197_s1 + $0xa8] sm:$0xff]  }
   0x5   :  { %830 = vmatpush3.bf16.msra.mxu1 %v898_v3  ;;  %809 = vmatprep.subr.bf16.mxu0 %v899_v4  ;;  %v907_v12 = vld [vmem:[%s1197_s1 + $0x60] sm:$0xff]   ;;  %v911_v16 = vld [vmem:[%s1197_s1 + $0x58] sm:$0xff]   ;;  %v915_v20 = vld [vmem:[%s1197_s1 + $0x50] sm:$0xff]  }
   0x6   :  { %831 = vmatprep.subr.bf16.mxu1 %v900_v5  ;;  %v908_v13 = vld [vmem:[%s1197_s1 + $0xe0] sm:$0xff]   ;;  %v912_v17 = vld [vmem:[%s1197_s1 + $0xd8] sm:$0xff]   ;;  %v916_v21 = vld [vmem:[%s1197_s1 + $0xd0] sm:$0xff]  }
   0x7   :  { %v909_v14 = vld [vmem:[%s1197_s1 + $0x20] sm:$0xff]   ;;  %v913_v18 = vld [vmem:[%s1197_s1 + $0x18] sm:$0xff]   ;;  %v917_v22 = vld [vmem:[%s1197_s1 + $0x10] sm:$0xff]  }
   0x8   :  { %810 = vmatpush3.bf16.msra.mxu0 %v901_v6  ;;  %v910_v15 = vld [vmem:[%s1197_s1 + $0xa0] sm:$0xff]   ;;  %v914_v19 = vld [vmem:[%s1197_s1 + $0x98] sm:$0xff]   ;;  %v918_v23 = vld [vmem:[%s1197_s1 + $0x90] sm:$0xff]  }
   0x9   :  { %832 = vmatpush3.bf16.msra.mxu1 %v902_v7  ;;  %811 = vmatprep.subr.bf16.mxu0 %v903_v8  ;;  %v919_v24 = vld [vmem:[%s1197_s1 + $0x48] sm:$0xff]   ;;  %v923_v28 = vld [vmem:[%s1197_s1 + $0x40] sm:$0xff]   ;;  %v931_v38 = vld [vmem:[%s1197_s1 + $0x178] sm:$0xff]  }
   0xa   :  { %833 = vmatprep.subr.bf16.mxu1 %v904_v9  ;;  %v920_v25 = vld [vmem:[%s1197_s1 + $0xc8] sm:$0xff]   ;;  %v924_v29 = vld [vmem:[%s1197_s1 + $0xc0] sm:$0xff]   ;;  %v932_v39 = vld [vmem:[%s1197_s1 + $0x1f8] sm:$0xff]  }
   0xb   :  { %v921_v26 = vld [vmem:[%s1197_s1 + $0x8] sm:$0xff]   ;;  %v925_v30 = vld [vmem:[%s1197_s1] sm:$0xff]   ;;  %v933_v40 = vld [vmem:[%s1197_s1 + $0x138] sm:$0xff]  }
   0xc   :  { %812 = vmatpush3.bf16.msra.mxu0 %v905_v10  ;;  %v922_v27 = vld [vmem:[%s1197_s1 + $0x88] sm:$0xff]   ;;  %v926_v31 = vld [vmem:[%s1197_s1 + $0x80] sm:$0xff]   ;;  %v934_v41 = vld [vmem:[%s1197_s1 + $0x1b8] sm:$0xff]  }
   0xd   :  { %834 = vmatpush3.bf16.msra.mxu1 %v906_v11  ;;  %813 = vmatprep.subr.bf16.mxu0 %v907_v12  ;;  %v15_v32 = vld [vmem:[%s1198_s0] sm:$0xff]  ;;  %v16_v33 = vld [vmem:[%s1198_s0 + $0x8] sm:$0xff]  ;;  %v935_v42 = vld [vmem:[%s1197_s1 + $0x170] sm:$0xff]  }
   0xe   :  { %835 = vmatprep.subr.bf16.mxu1 %v908_v13  ;;  %v735_v34 = vcombine.low %v15_v32, %v15_v32  ;;  %v736_v35 = vcombine.high %v15_v32, %v15_v32  ;;  %v737_v36 = vcombine.low %v16_v33, %v16_v33  ;;  %v738_v37 = vcombine.high %v16_v33, %v16_v33  ;;  %v936_v43 = vld [vmem:[%s1197_s1 + $0x1f0] sm:$0xff]   ;;  %v939_v46 = vld [vmem:[%s1197_s1 + $0x168] sm:$0xff]   ;;  %v943_v50 = vld [vmem:[%s1197_s1 + $0x160] sm:$0xff]  }
   0xf   :  { %v937_v44 = vld [vmem:[%s1197_s1 + $0x130] sm:$0xff]   ;;  %v940_v47 = vld [vmem:[%s1197_s1 + $0x1e8] sm:$0xff]   ;;  %v944_v51 = vld [vmem:[%s1197_s1 + $0x1e0] sm:$0xff]  }
  0x10   :  { %814 = vmatpush3.bf16.msra.mxu0 %v909_v14  ;;  %598 = vmatprep.mubr.bf16.mxu0 %v736_v35  ;;  %v938_v45 = vld [vmem:[%s1197_s1 + $0x1b0] sm:$0xff]   ;;  %v941_v48 = vld [vmem:[%s1197_s1 + $0x128] sm:$0xff]   ;;  %v945_v52 = vld [vmem:[%s1197_s1 + $0x120] sm:$0xff]  }
  0x11   :  { %836 = vmatpush3.bf16.msra.mxu1 %v910_v15  ;;  %815 = vmatprep.subr.bf16.mxu0 %v911_v16  ;;  %v942_v49 = vld [vmem:[%s1197_s1 + $0x1a8] sm:$0xff]   ;;  %v946_v53 = vld [vmem:[%s1197_s1 + $0x1a0] sm:$0xff]   ;;  %v947_v54 = vld [vmem:[%s1197_s1 + $0x158] sm:$0xff]  }
  0x12   :  { %837 = vmatprep.subr.bf16.mxu1 %v912_v17  ;;  %638 = vmatprep.mubr.bf16.mxu1 %v738_v37  ;;  %v948_v55 = vld [vmem:[%s1197_s1 + $0x1d8] sm:$0xff]   ;;  %v951_v58 = vld [vmem:[%s1197_s1 + $0x150] sm:$0xff]   ;;  %v955_v62 = vld [vmem:[%s1197_s1 + $0x148] sm:$0xff]  }
  0x13   :  { %v949_v56 = vld [vmem:[%s1197_s1 + $0x118] sm:$0xff]   ;;  %v952_v59 = vld [vmem:[%s1197_s1 + $0x1d0] sm:$0xff]   ;;  %v956_v63 = vld [vmem:[%s1197_s1 + $0x1c8] sm:$0xff]  }
  0x14   :  { %816 = vmatpush3.bf16.msra.mxu0 %v913_v18  ;;  %v950_v57 = vld [vmem:[%s1197_s1 + $0x198] sm:$0xff]   ;;  %v953_v60 = vld [vmem:[%s1197_s1 + $0x110] sm:$0xff]   ;;  %v957_v0 = vld [vmem:[%s1197_s1 + $0x108] sm:$0xff]  }
  0x15   :  { %838 = vmatpush3.bf16.msra.mxu1 %v914_v19  ;;  %817 = vmatprep.subr.bf16.mxu0 %v915_v20  ;;  %v954_v61 = vld [vmem:[%s1197_s1 + $0x190] sm:$0xff]   ;;  %v958_v1 = vld [vmem:[%s1197_s1 + $0x188] sm:$0xff]   ;;  %v959_v2 = vld [vmem:[%s1197_s1 + $0x140] sm:$0xff]  }
  0x16   :  { %839 = vmatprep.subr.bf16.mxu1 %v916_v21  ;;  %v960_v3 = vld [vmem:[%s1197_s1 + $0x1c0] sm:$0xff]   ;;  %v17_v6 = vld [vmem:[%s1198_s0 + $0x10] sm:$0xff]  ;;  %v18_v9 = vld [vmem:[%s1198_s0 + $0x18] sm:$0xff] }
  0x17   :  { %v961_v4 = vld [vmem:[%s1197_s1 + $0x100] sm:$0xff]   ;;  %v739_v7 = vcombine.low %v17_v6, %v17_v6  ;;  %v740_v8 = vcombine.high %v17_v6, %v17_v6  ;;  %v741_v10 = vcombine.low %v18_v9, %v18_v9  ;;  %v742_v11 = vcombine.high %v18_v9, %v18_v9 }
  0x18   :  { %818 = vmatpush3.bf16.msra.mxu0 %v917_v22  ;;  %v962_v5 = vld [vmem:[%s1197_s1 + $0x180] sm:$0xff]  }
  0x19   :  { %840 = vmatpush3.bf16.msra.mxu1 %v918_v23  ;;  %819 = vmatprep.subr.bf16.mxu0 %v919_v24  ;;  %v734_v21 = vld [vmem:[%s1199_s2] ss:$0 sm:$0xff] }
  0x1a   :  { %841 = vmatprep.subr.bf16.mxu1 %v920_v25 }
  0x1c   :  { %820 = vmatpush3.bf16.msra.mxu0 %v921_v26 }
  0x1d   :  { %842 = vmatpush3.bf16.msra.mxu1 %v922_v27  ;;  %821 = vmatprep.subr.bf16.mxu0 %v923_v28 }
  0x1e   :  { %843 = vmatprep.subr.bf16.mxu1 %v924_v29 }
  0x20   :  { %822 = vmatpush3.bf16.msra.mxu0 %v925_v30 }
  0x21   :  { %844 = vmatpush3.bf16.msra.mxu1 %v926_v31  ;;  %851 = vmatprep.subr.bf16.mxu0 %v931_v38 }
  0x22   :  { %873 = vmatprep.subr.bf16.mxu1 %v932_v39 }
  0x23   :  { %599 = vmatmul.mubr.bf16.vlgmr.msra.gmra.mxu0 %v735_v34 }
  0x24   :  { %639 = vmatmul.mubr.bf16.vlgmr.msra.gmra.mxu1 %v737_v36  ;;  %852 = vmatpush3.bf16.msra.mxu0 %v933_v40 }
  0x25   :  { %874 = vmatpush3.bf16.msra.mxu1 %v934_v41  ;;  %853 = vmatprep.subr.bf16.mxu0 %v935_v42 }
  0x26   :  { %875 = vmatprep.subr.bf16.mxu1 %v936_v43  ;;  %678 = vmatprep.mubr.bf16.mxu0 %v740_v8 }
  0x27   :  { %718 = vmatprep.mubr.bf16.mxu1 %v742_v11 }
  0x28   :  { %854 = vmatpush3.bf16.msra.mxu0 %v937_v44 }
  0x29   :  { %876 = vmatpush3.bf16.msra.mxu1 %v938_v45  ;;  %855 = vmatprep.subr.bf16.mxu0 %v939_v46 }
  0x2a   :  { %877 = vmatprep.subr.bf16.mxu1 %v940_v47 }
  0x2c   :  { %856 = vmatpush3.bf16.msra.mxu0 %v941_v48 }
  0x2d   :  { %878 = vmatpush3.bf16.msra.mxu1 %v942_v49  ;;  %857 = vmatprep.subr.bf16.mxu0 %v943_v50 }
  0x2e   :  { %879 = vmatprep.subr.bf16.mxu1 %v944_v51 }
  0x30   :  { %858 = vmatpush3.bf16.msra.mxu0 %v945_v52 }
  0x31   :  { %880 = vmatpush3.bf16.msra.mxu1 %v946_v53  ;;  %859 = vmatprep.subr.bf16.mxu0 %v947_v54 }
  0x32   :  { %881 = vmatprep.subr.bf16.mxu1 %v948_v55 }
  0x34   :  { %860 = vmatpush3.bf16.msra.mxu0 %v949_v56 }
  0x35   :  { %882 = vmatpush3.bf16.msra.mxu1 %v950_v57  ;;  %861 = vmatprep.subr.bf16.mxu0 %v951_v58 }
  0x36   :  { %883 = vmatprep.subr.bf16.mxu1 %v952_v59 }
  0x38   :  { %862 = vmatpush3.bf16.msra.mxu0 %v953_v60 }
  0x39   :  { %884 = vmatpush3.bf16.msra.mxu1 %v954_v61  ;;  %863 = vmatprep.subr.bf16.mxu0 %v955_v62 }
  0x3a   :  { %885 = vmatprep.subr.bf16.mxu1 %v956_v63 }
  0x3c   :  { %864 = vmatpush3.bf16.msra.mxu0 %v957_v0 }
  0x3d   :  { %886 = vmatpush3.bf16.msra.mxu1 %v958_v1  ;;  %865 = vmatprep.subr.bf16.mxu0 %v959_v2 }
  0x3e   :  { %887 = vmatprep.subr.bf16.mxu1 %v960_v3 }
  0x40   :  { %866 = vmatpush3.bf16.msra.mxu0 %v961_v4 }
  0x41   :  { %888 = vmatpush3.bf16.msra.mxu1 %v962_v5 }
  0x43   :  { %679 = vmatmul.mubr.bf16.vlgmr.msra.gmra.mxu0 %v739_v7 }
  0x44   :  { %719 = vmatmul.mubr.bf16.vlgmr.msra.gmra.mxu1 %v741_v10 }
  0xe3   :  { %v823_v12 = vpop.f32.mrf.mxu0 }
  0xe4   :  { %v845_v13 = vpop.f32.mrf.mxu1 }
  0xe5   :  { %v824_v14 = vpop.f32.mrf.mxu0 }
  0xe6   :  { %v846_v15 = vpop.f32.mrf.mxu1  ;;  %v825_v20 = vadd.f32 %v824_v14, %v823_v12 }
  0xe7   :  { %v826_v16 = vpop.f32.mrf.mxu0  ;;  %v847_v23 = vadd.f32 %v846_v15, %v845_v13 }
  0xe8   :  { %v848_v17 = vpop.f32.mrf.mxu1  ;;  %v601_v22 = vadd.f32 %v825_v20, %v734_v21 }
  0xe9   :  { %v827_v18 = vpop.f32.mrf.mxu0 }
  0xea   :  { %v849_v19 = vpop.f32.mrf.mxu1  ;;  %v641_v28 = vadd.f32 %v847_v23, %v601_v22 }
 0x103   :  { %v867_v24 = vpop.f32.mrf.mxu0 }
 0x104   :  { %v889_v25 = vpop.f32.mrf.mxu1 }
 0x105   :  { %v868_v26 = vpop.f32.mrf.mxu0 }
 0x106   :  { %v890_v27 = vpop.f32.mrf.mxu1  ;;  %v869_v29 = vadd.f32 %v868_v26, %v867_v24 }
 0x107   :  { %v870_v30 = vpop.f32.mrf.mxu0  ;;  %v891_v33 = vadd.f32 %v890_v27, %v889_v25 }
 0x108   :  { %v892_v31 = vpop.f32.mrf.mxu1  ;;  %v681_v32 = vadd.f32 %v869_v29, %v641_v28 }
 0x109   :  { %v871_v34 = vpop.f32.mrf.mxu0 }
 0x10a   :  { %v893_v35 = vpop.f32.mrf.mxu1  ;;  %v721_v36 = vadd.f32 %v891_v33, %v681_v32 }
 0x10c   :  { %v726_v37 = vmax.f32 %v721_v36, 0.0 }
 0x10e   :  { %v727_v38 = vpack.c.bf16 %v726_v37, %v726_v37 }
 0x110   :  { %729 = vst.msk [vmem:[%s1200_s3] sm:$0xf] %vm728_vm0, %v727_v38 }

// kernel: beta_vae_forward.12
= control target key start
LH: loop header
LB: loop body
LE: loop exit
PB: predicated region body
PF: predicated region fallthrough
CT: control target
= control target key end

     0   :  { %v49_v9 = vlaneseq  ;;  %v386_v10 = vmov 1966171168   ;;  %s512_s1 = inlined_call_operand.vmem [shape: bf16[256,256], index: 1, kind: input, shape index: {}]   ;;  %s513_s0 = inlined_call_operand.vmem [shape: bf16[2,256], index: 0, kind: input, shape index: {}]   ;;  %s514_s2 = inlined_call_operand.vmem [shape: f32[1,256], index: 2, kind: input, shape index: {}]   ;;  %s515_s3 = inlined_call_operand.vmem [shape: f32[2,256], index: 3, kind: output, shape index: {}]  }
   0x1   :  { %v338_v0 = vld [vmem:[%s512_s1 + $0x74] ss:$8 sps:$4 sm:$0xff]   ;;  %v340_v1 = vld [vmem:[%s512_s1 + $0x70] ss:$8 sps:$4 sm:$0xff]   ;;  %v341_v2 = vld [vmem:[%s512_s1 + $0x64] ss:$8 sps:$4 sm:$0xff]   ;;  %v69_v11 = vunpack.c.l.s4 %v386_v10 }
   0x2   :  { %244 = vmatprep.subr.bf16.mxu0 %v338_v0  ;;  %v343_v3 = vld [vmem:[%s512_s1 + $0x60] ss:$8 sps:$4 sm:$0xff]   ;;  %v344_v4 = vld [vmem:[%s512_s1 + $0x54] ss:$8 sps:$4 sm:$0xff]   ;;  %v346_v5 = vld [vmem:[%s512_s1 + $0x50] ss:$8 sps:$4 sm:$0xff]  }
   0x3   :  { %245 = vmatpush1.bf16.msra.mxu0 %v340_v1  ;;  %v347_v6 = vld [vmem:[%s512_s1 + $0x44] ss:$8 sps:$4 sm:$0xff]   ;;  %v349_v7 = vld [vmem:[%s512_s1 + $0x40] ss:$8 sps:$4 sm:$0xff]   ;;  %v350_v8 = vld [vmem:[%s512_s1 + $0x34] ss:$8 sps:$4 sm:$0xff]   ;;  %v70_v15 = vunpack.c.0.s8 %v69_v11 }
   0x4   :  { %246 = vmatprep.subr.bf16.mxu0 %v341_v2  ;;  %v352_v12 = vld [vmem:[%s512_s1 + $0x30] ss:$8 sps:$4 sm:$0xff]   ;;  %v353_v13 = vld [vmem:[%s512_s1 + $0x24] ss:$8 sps:$4 sm:$0xff]   ;;  %v50_v14 = vshrl.u32 %v49_v9, 7 }
   0x5   :  { %v355_v16 = vld [vmem:[%s512_s1 + $0x20] ss:$8 sps:$4 sm:$0xff]   ;;  %v356_v17 = vld [vmem:[%s512_s1 + $0x14] ss:$8 sps:$4 sm:$0xff]   ;;  %v358_v21 = vld [vmem:[%s512_s1 + $0x10] ss:$8 sps:$4 sm:$0xff]  }
   0x6   :  { %v73_v18 = vsub.s32 %v70_v15, %v50_v14  ;;  %v303_v19 = vld.sshfl [vmem:[%s513_s0] sm:$0x11 pattern:$0x75316420]  ;;  %v359_v22 = vld [vmem:[%s512_s1 + $0x4] ss:$8 sps:$4 sm:$0xff]  }
   0x7   :  { %247 = vmatpush1.bf16.msra.mxu0 %v343_v3  ;;  %v67_v20 = vcombine.high %v303_v19, %v303_v19  ;;  %v361_v24 = vld [vmem:[%s512_s1] ss:$8 sps:$4 sm:$0xff]   ;;  %v362_v25 = vld [vmem:[%s512_s1 + $0xf4] ss:$8 sps:$4 sm:$0xff]   ;;  %v364_v26 = vld [vmem:[%s512_s1 + $0xf0] ss:$8 sps:$4 sm:$0xff]  }
   0x8   :  { %248 = vmatprep.subr.bf16.mxu0 %v344_v4  ;;  %v365_v27 = vld [vmem:[%s512_s1 + $0xe4] ss:$8 sps:$4 sm:$0xff]   ;;  %v367_v28 = vld [vmem:[%s512_s1 + $0xe0] ss:$8 sps:$4 sm:$0xff]   ;;  %v368_v29 = vld [vmem:[%s512_s1 + $0xd4] ss:$8 sps:$4 sm:$0xff]   ;;  %v74_v41 = vrot.slane %v303_v19, %v73_v18 }
   0x9   :  { %v81_v23 = vrot.slane %v67_v20, %v73_v18  ;;  %v370_v30 = vld [vmem:[%s512_s1 + $0xd0] ss:$8 sps:$4 sm:$0xff]   ;;  %v371_v31 = vld [vmem:[%s512_s1 + $0xc4] ss:$8 sps:$4 sm:$0xff]   ;;  %v373_v32 = vld [vmem:[%s512_s1 + $0xc0] ss:$8 sps:$4 sm:$0xff]  }
   0xa   :  { %v374_v33 = vld [vmem:[%s512_s1 + $0xb4] ss:$8 sps:$4 sm:$0xff]   ;;  %v376_v34 = vld [vmem:[%s512_s1 + $0xb0] ss:$8 sps:$4 sm:$0xff]   ;;  %v377_v35 = vld [vmem:[%s512_s1 + $0xa4] ss:$8 sps:$4 sm:$0xff]  }
   0xb   :  { %249 = vmatpush1.bf16.msra.mxu0 %v346_v5  ;;  %276 = vmatprep.mubr.bf16.mxu0 %v81_v23  ;;  %v379_v36 = vld [vmem:[%s512_s1 + $0xa0] ss:$8 sps:$4 sm:$0xff]   ;;  %v380_v37 = vld [vmem:[%s512_s1 + $0x94] ss:$8 sps:$4 sm:$0xff]   ;;  %v382_v38 = vld [vmem:[%s512_s1 + $0x90] ss:$8 sps:$4 sm:$0xff]  }
   0xc   :  { %250 = vmatprep.subr.bf16.mxu0 %v347_v6  ;;  %v383_v39 = vld [vmem:[%s512_s1 + $0x84] ss:$8 sps:$4 sm:$0xff]   ;;  %v385_v40 = vld [vmem:[%s512_s1 + $0x80] ss:$8 sps:$4 sm:$0xff]   ;;  %v51_v42 = vsub.s32 0, %v50_v14  ;;  %v55_v44 = vsub.s32 1, %v50_v14 }
   0xd   :  { %v47_v43 = vld [vmem:[%s514_s2] sm:$0x3] }
   0xe   :  { %v52_v45 = vrot.slane %v47_v43, %v51_v42  ;;  %v56_v46 = vrot.slane %v47_v43, %v55_v44 }
   0xf   :  { %251 = vmatpush1.bf16.msra.mxu0 %v349_v7 }
  0x10   :  { %252 = vmatprep.subr.bf16.mxu0 %v350_v8 }
  0x13   :  { %253 = vmatpush1.bf16.msra.mxu0 %v352_v12 }
  0x14   :  { %254 = vmatprep.subr.bf16.mxu0 %v353_v13 }
  0x17   :  { %255 = vmatpush1.bf16.msra.mxu0 %v355_v16 }
  0x18   :  { %256 = vmatprep.subr.bf16.mxu0 %v356_v17 }
  0x1b   :  { %257 = vmatpush1.bf16.msra.mxu0 %v358_v21 }
  0x1c   :  { %258 = vmatprep.subr.bf16.mxu0 %v359_v22 }
  0x1f   :  { %259 = vmatpush1.bf16.msra.mxu0 %v361_v24 }
  0x20   :  { %260 = vmatprep.subr.bf16.mxu0 %v362_v25 }
  0x23   :  { %261 = vmatpush2.bf16.msra.mxu0 %v364_v26 }
  0x24   :  { %262 = vmatprep.subr.bf16.mxu0 %v365_v27 }
  0x27   :  { %263 = vmatpush2.bf16.msra.mxu0 %v367_v28 }
  0x28   :  { %264 = vmatprep.subr.bf16.mxu0 %v368_v29 }
  0x2b   :  { %265 = vmatpush2.bf16.msra.mxu0 %v370_v30 }
  0x2c   :  { %266 = vmatprep.subr.bf16.mxu0 %v371_v31 }
  0x2f   :  { %267 = vmatpush2.bf16.msra.mxu0 %v373_v32 }
  0x30   :  { %268 = vmatprep.subr.bf16.mxu0 %v374_v33 }
  0x33   :  { %269 = vmatpush2.bf16.msra.mxu0 %v376_v34 }
  0x34   :  { %270 = vmatprep.subr.bf16.mxu0 %v377_v35 }
  0x37   :  { %271 = vmatpush2.bf16.msra.mxu0 %v379_v36 }
  0x38   :  { %272 = vmatprep.subr.bf16.mxu0 %v380_v37 }
  0x3b   :  { %273 = vmatpush2.bf16.msra.mxu0 %v382_v38 }
  0x3c   :  { %274 = vmatprep.subr.bf16.mxu0 %v383_v39 }
  0x3f   :  { %275 = vmatpush2.bf16.msra.mxu0 %v385_v40 }
  0x42   :  { %277 = vmatmul.mubr.bf16.vlgmr.msra.gmra.mxu0 %v74_v41 }
 0x102   :  { %v278_v47 = vpop.f32.mrf.mxu0 }
 0x103   :  { %v279_v48 = vadd.f32 %v278_v47, %v52_v45 }
 0x104   :  { %v280_v49 = vpop.f32.mrf.mxu0 }
 0x105   :  { %v281_v50 = vadd.f32 %v280_v49, %v56_v46  ;;  %v285_v52 = vmax.f32 %v279_v48, 0.0 }
 0x106   :  { %v282_v51 = vpop.f32.mrf.mxu0 }
 0x107   :  { %v286_v53 = vmax.f32 %v281_v50, 0.0 }
 0x108   :  { %v283_v54 = vpop.f32.mrf.mxu0 }
 0x109   :  { %v289_v55 = vcombine.low %v285_v52, %v286_v53 }
 0x10b   :  { %336 = vst.sshfl [vmem:[%s515_s3] sm:$0x33 pattern:$0x76325410] %v289_v55 }

// kernel: beta_vae_forward.13
= control target key start
LH: loop header
LB: loop body
LE: loop exit
PB: predicated region body
PF: predicated region fallthrough
CT: control target
= control target key end

     0   :  { %16 = vsyncpa [#allocation3], 0  ;;  %s847_s0 = inlined_call_operand.vmem [shape: f32[2,256], index: 0, kind: input, shape index: {}]   ;;  %s848_s1 = inlined_call_operand.vmem [shape: f32[256,10], index: 1, kind: input, shape index: {}]   ;;  %s849_s2 = inlined_call_operand.vmem [shape: f32[1,10], index: 2, kind: input, shape index: {}]   ;;  %s850_s3 = inlined_call_operand.vmem [shape: f32[256,10], index: 3, kind: input, shape index: {}]   ;;  %s851_s4 = inlined_call_operand.vmem [shape: f32[1,10], index: 4, kind: input, shape index: {}]   ;;  %s852_s5 = inlined_call_operand.vmem [shape: f32[2,10], index: 5, kind: input, shape index: {}]   ;;  %s853_s6 = inlined_call_operand.vmem [shape: f32[10,256], index: 6, kind: input, shape index: {}]   ;;  %s854_s7 = inlined_call_operand.vmem [shape: f32[1,256], index: 7, kind: input, shape index: {}]   ;;  %s855_s8 = inlined_call_operand.hbm [shape: f32[2,10], index: 8, kind: output, shape index: {0}]   ;;  %s856_s9 = inlined_call_operand.hbm [shape: f32[2,10], index: 9, kind: output, shape index: {1}]   ;;  %s857_s10 = inlined_call_operand.vmem [shape: bf16[2,256], index: 10, kind: output, shape index: {2}]  }
   0x1   :  { %v186_v0 = vld [vmem:[%s850_s3 + $0xf8] sm:$0xff]  ;;  %v185_v2 = vld [vmem:[%s850_s3 + $0xf0] sm:$0xff]  ;;  %v184_v4 = vld [vmem:[%s850_s3 + $0xe8] sm:$0xff] }
   0x2   :  { %v170_v1 = vld [vmem:[%s850_s3 + $0x78] sm:$0xff]  ;;  %469 = vmatprep.subr.mxu1 %v186_v0  ;;  %v169_v3 = vld [vmem:[%s850_s3 + $0x70] sm:$0xff]  ;;  %v168_v5 = vld [vmem:[%s850_s3 + $0x68] sm:$0xff] }
   0x3   :  { %470 = vmatpush3.msra.mxu1 %v170_v1  ;;  %v183_v6 = vld [vmem:[%s850_s3 + $0xe0] sm:$0xff]  ;;  %v182_v8 = vld [vmem:[%s850_s3 + $0xd8] sm:$0xff]  ;;  %v65_v12 = vld [vmem:[%s848_s1 + $0xf0] sm:$0xff] }
   0x4   :  { %471 = vmatprep.subr.mxu1 %v185_v2  ;;  %v167_v7 = vld [vmem:[%s850_s3 + $0x60] sm:$0xff]  ;;  %v66_v9 = vld [vmem:[%s848_s1 + $0xf8] sm:$0xff]  ;;  %v181_v13 = vld [vmem:[%s850_s3 + $0xd0] sm:$0xff] }
   0x5   :  { %472 = vmatpush3.msra.mxu1 %v169_v3  ;;  %v50_v10 = vld [vmem:[%s848_s1 + $0x78] sm:$0xff]  ;;  %434 = vmatprep.subr.mxu0 %v66_v9  ;;  %v49_v14 = vld [vmem:[%s848_s1 + $0x70] sm:$0xff]  ;;  %v64_v15 = vld [vmem:[%s848_s1 + $0xe8] sm:$0xff] }
   0x6   :  { %473 = vmatprep.subr.mxu1 %v184_v4  ;;  %v166_v11 = vld [vmem:[%s850_s3 + $0x58] sm:$0xff]  ;;  %435 = vmatpush3.msra.mxu0 %v50_v10  ;;  %v165_v16 = vld [vmem:[%s850_s3 + $0x50] sm:$0xff]  ;;  %v48_v17 = vld [vmem:[%s848_s1 + $0x68] sm:$0xff] }
   0x7   :  { %474 = vmatpush3.msra.mxu1 %v168_v5  ;;  %436 = vmatprep.subr.mxu0 %v65_v12  ;;  %v180_v18 = vld [vmem:[%s850_s3 + $0xc8] sm:$0xff]  ;;  %v63_v19 = vld [vmem:[%s848_s1 + $0xe0] sm:$0xff]  ;;  %v62_v23 = vld [vmem:[%s848_s1 + $0xd8] sm:$0xff] }
   0x8   :  { %475 = vmatprep.subr.mxu1 %v183_v6  ;;  %437 = vmatpush3.msra.mxu0 %v49_v14  ;;  %v164_v20 = vld [vmem:[%s850_s3 + $0x48] sm:$0xff]  ;;  %v47_v21 = vld [vmem:[%s848_s1 + $0x60] sm:$0xff]  ;;  %v46_v25 = vld [vmem:[%s848_s1 + $0x58] sm:$0xff] }
   0x9   :  { %476 = vmatpush3.msra.mxu1 %v167_v7  ;;  %438 = vmatprep.subr.mxu0 %v64_v15  ;;  %v179_v22 = vld [vmem:[%s850_s3 + $0xc0] sm:$0xff]  ;;  %v178_v26 = vld [vmem:[%s850_s3 + $0xb8] sm:$0xff]  ;;  %v61_v27 = vld [vmem:[%s848_s1 + $0xd0] sm:$0xff] }
   0xa   :  { %477 = vmatprep.subr.mxu1 %v182_v8  ;;  %439 = vmatpush3.msra.mxu0 %v48_v17  ;;  %v163_v24 = vld [vmem:[%s850_s3 + $0x40] sm:$0xff]  ;;  %v162_v28 = vld [vmem:[%s850_s3 + $0x38] sm:$0xff]  ;;  %v45_v29 = vld [vmem:[%s848_s1 + $0x50] sm:$0xff] }
   0xb   :  { %478 = vmatpush3.msra.mxu1 %v166_v11  ;;  %440 = vmatprep.subr.mxu0 %v63_v19  ;;  %v706_v30 = vld.sshfl [vmem:[%s847_s0] sm:$0x33 pattern:$0x76325410]  ;;  %v177_v31 = vld [vmem:[%s850_s3 + $0xb0] sm:$0xff]  ;;  %v60_v32 = vld [vmem:[%s848_s1 + $0xc8] sm:$0xff] }
   0xc   :  { %479 = vmatprep.subr.mxu1 %v181_v13  ;;  %441 = vmatpush3.msra.mxu0 %v47_v21  ;;  %v161_v33 = vld [vmem:[%s850_s3 + $0x30] sm:$0xff]  ;;  %v44_v34 = vld [vmem:[%s848_s1 + $0x48] sm:$0xff]  ;;  %v82_v35 = vcombine.high %v706_v30, %v706_v30  ;;  %v59_v38 = vld [vmem:[%s848_s1 + $0xc0] sm:$0xff] }
   0xd   :  { %480 = vmatpush3.msra.mxu1 %v165_v16  ;;  %442 = vmatprep.subr.mxu0 %v62_v23  ;;  %v176_v36 = vld [vmem:[%s850_s3 + $0xa8] sm:$0xff]  ;;  %v175_v39 = vld [vmem:[%s850_s3 + $0xa0] sm:$0xff]  ;;  %v58_v42 = vld [vmem:[%s848_s1 + $0xb8] sm:$0xff] }
   0xe   :  { %481 = vmatprep.subr.mxu1 %v180_v18  ;;  %443 = vmatpush3.msra.mxu0 %v46_v25  ;;  %v160_v37 = vld [vmem:[%s850_s3 + $0x28] sm:$0xff]  ;;  %v43_v40 = vld [vmem:[%s848_s1 + $0x40] sm:$0xff] }
   0xf   :  { %482 = vmatpush3.msra.mxu1 %v164_v20  ;;  %444 = vmatprep.subr.mxu0 %v61_v27  ;;  %v159_v41 = vld [vmem:[%s850_s3 + $0x20] sm:$0xff] }
  0x10   :  { %483 = vmatprep.subr.mxu1 %v179_v22  ;;  %445 = vmatpush3.msra.mxu0 %v45_v29 }
  0x11   :  { %484 = vmatpush3.msra.mxu1 %v163_v24  ;;  %446 = vmatprep.subr.mxu0 %v60_v32 }
  0x12   :  { %485 = vmatprep.subr.mxu1 %v178_v26  ;;  %447 = vmatpush3.msra.mxu0 %v44_v34 }
  0x13   :  { %486 = vmatpush3.msra.mxu1 %v162_v28  ;;  %258 = vmatprep.mubr.f32.mxu1 %v82_v35 }
  0x14   :  { %487 = vmatprep.subr.mxu1 %v177_v31 }
  0x15   :  { %488 = vmatpush3.msra.mxu1 %v161_v33 }
  0x16   :  { %489 = vmatprep.subr.mxu1 %v176_v36 }
  0x17   :  { %17 = vsyncpa [#allocation5], 0  ;;  %490 = vmatpush3.msra.mxu1 %v160_v37  ;;  %v174_v43 = vld [vmem:[%s850_s3 + $0x98] sm:$0xff]  ;;  %448 = vmatprep.subr.mxu0 %v59_v38  ;;  %v57_v46 = vld [vmem:[%s848_s1 + $0xb0] sm:$0xff]  ;;  %vm290_vm0 = vcmask 1041408   ;;  %v554_v6 = vmov 0.0  }
  0x18   :  { %v42_v44 = vld [vmem:[%s848_s1 + $0x38] sm:$0xff]  ;;  %491 = vmatprep.subr.mxu1 %v175_v39  ;;  %449 = vmatpush3.msra.mxu0 %v43_v40  ;;  %v173_v47 = vld [vmem:[%s850_s3 + $0x90] sm:$0xff]  ;;  %v56_v50 = vld [vmem:[%s848_s1 + $0xa8] sm:$0xff]  ;;  %vm368_vm1 = vcmask 74752   ;;  %vm286_vm2 = vcmask 80896   ;;  %s556_s30 = smov [#allocation4]  }
  0x19   :  { %v158_v45 = vld [vmem:[%s850_s3 + $0x18] sm:$0xff]  ;;  %492 = vmatpush3.msra.mxu1 %v159_v41  ;;  %450 = vmatprep.subr.mxu0 %v58_v42  ;;  %v41_v48 = vld [vmem:[%s848_s1 + $0x30] sm:$0xff]  ;;  %v172_v51 = vld [vmem:[%s850_s3 + $0x88] sm:$0xff]  ;;  %s410_s11 = sshll.u32 %s556_s30, 4  ;;  %s411_s11 = int_to_ptr.vmem [resolvable:$true] %s410_s11 }
  0x1a   :  { %493 = vmatprep.subr.mxu1 %v174_v43  ;;  %v157_v49 = vld [vmem:[%s850_s3 + $0x10] sm:$0xff]  ;;  %451 = vmatpush3.msra.mxu0 %v42_v44  ;;  %v40_v52 = vld [vmem:[%s848_s1 + $0x28] sm:$0xff]  ;;  %v55_v54 = vld [vmem:[%s848_s1 + $0xa0] sm:$0xff] }
  0x1b   :  { %494 = vmatpush3.msra.mxu1 %v158_v45  ;;  %452 = vmatprep.subr.mxu0 %v57_v46  ;;  %v156_v53 = vld [vmem:[%s850_s3 + $0x8] sm:$0xff]  ;;  %v171_v55 = vld [vmem:[%s850_s3 + $0x80] sm:$0xff]  ;;  %v54_v58 = vld [vmem:[%s848_s1 + $0x98] sm:$0xff] }
  0x1c   :  { %495 = vmatprep.subr.mxu1 %v173_v47  ;;  %453 = vmatpush3.msra.mxu0 %v41_v48  ;;  %v39_v56 = vld [vmem:[%s848_s1 + $0x20] sm:$0xff]  ;;  %v38_v59 = vld [vmem:[%s848_s1 + $0x18] sm:$0xff]  ;;  %v53_v60 = vld [vmem:[%s848_s1 + $0x90] sm:$0xff] }
  0x1d   :  { %496 = vmatpush3.msra.mxu1 %v157_v49  ;;  %454 = vmatprep.subr.mxu0 %v56_v50  ;;  %v155_v57 = vld [vmem:[%s850_s3] sm:$0xff]  ;;  %v37_v61 = vld [vmem:[%s848_s1 + $0x10] sm:$0xff]  ;;  %v52_v62 = vld [vmem:[%s848_s1 + $0x88] sm:$0xff] }
  0x1e   :  { %497 = vmatprep.subr.mxu1 %v172_v51  ;;  %455 = vmatpush3.msra.mxu0 %v40_v52  ;;  %v36_v63 = vld [vmem:[%s848_s1 + $0x8] sm:$0xff]  ;;  %v51_v0 = vld [vmem:[%s848_s1 + $0x80] sm:$0xff]  ;;  %v273_v2 = vld [vmem:[%s853_s6 + $0x18] sm:$0x3] }
  0x1f   :  { %498 = vmatpush3.msra.mxu1 %v156_v53  ;;  %456 = vmatprep.subr.mxu0 %v55_v54  ;;  %v35_v1 = vld [vmem:[%s848_s1] sm:$0xff]  ;;  %v272_v3 = vld [vmem:[%s853_s6 + $0x10] sm:$0x3]  ;;  %v271_v4 = vld [vmem:[%s853_s6 + $0x8] sm:$0xff] }
  0x20   :  { %499 = vmatprep.subr.mxu1 %v171_v55  ;;  %457 = vmatpush3.msra.mxu0 %v39_v56  ;;  %v270_v5 = vld [vmem:[%s853_s6] sm:$0xff] }
  0x21   :  { %500 = vmatpush3.msra.mxu1 %v155_v57  ;;  %458 = vmatprep.subr.mxu0 %v54_v58  ;;  %v428_v8 = vld [vmem:[%s851_s4] ss:$0 sm:$0xff]  ;;  %s555_s4 = smov [#allocation2]  }
  0x22   :  { %259 = vmatmul.mubr.f32.vlgmr.msra.gmra.mxu1 %v706_v30  ;;  %459 = vmatpush3.msra.mxu0 %v38_v59  ;;  %v426_v15 = vld [vmem:[%s849_s2] ss:$0 sm:$0xff]  ;;  %s400_s3 = sshll.u32 %s555_s4, 4  ;;  %s401_s3 = int_to_ptr.vmem [resolvable:$true] %s400_s3 }
  0x23   :  { %460 = vmatprep.subr.mxu0 %v53_v60  ;;  %149 = vmatprep.mubr.f32.mxu0 %v82_v35  ;;  %v267_v19 = vld [vmem:[%s852_s5] sm:$0x3]  ;;  %s510_s2 = scalar_lea.vmem %s401_s3, 32  ;;  %p515_p1 = scmp.lt.s32.totalorder %s401_s3, %s401_s3 }
  0x24   :  { %461 = vmatpush3.msra.mxu0 %v37_v61  ;;  %p511_p0 = scmp.ne.s32.totalorder %s401_s3, %s510_s2  ;;  %p516_p2 = scmp.lt.s32.totalorder %s510_s2, %s510_s2 }
  0x25   :  { %462 = vmatprep.subr.mxu0 %v52_v62 }
  0x26   :  { %463 = vmatpush3.msra.mxu0 %v36_v63  ;;  %p517_p3 = por %p516_p2, %p515_p1 }
  0x27   :  { %464 = vmatprep.subr.mxu0 %v51_v0 }
  0x28   :  { %465 = vmatpush3.msra.mxu0 %v35_v1  ;;  %p518_p4 = pnand %p517_p3, %p511_p0 }
  0x29   :  { %150 = vmatmul.mubr.f32.vlgmr.msra.gmra.mxu0 %v706_v30  ;;  %429 = vmatprep.subr.msk.mxu0 %vm290_vm0, %v273_v2 }
  0x2a   :  { %430 = vmatpush1.msk.msra.mxu0 %vm290_vm0, %v272_v3  ;;  %361 = vmatprep.mubr.f32.mxu0 %v554_v6 }
  0x2b   :  { %327 = vmatprep.subr.mxu0 %v271_v4 }
  0x2c   :  { %328 = vmatpush1.msra.mxu0 %v270_v5 }
  0xe2   :  { %v501_v7 = vpop.f32.mrf.mxu1 }
  0xe4   :  { %v502_v9 = vpop.f32.mrf.mxu1 }
  0xe5   :  { %v503_v10 = vadd.f32 %v502_v9, %v501_v7 }
  0xe7   :  { %v261_v11 = vadd.f32 %v503_v10, %v428_v8 }
  0xe9   :  { %v264_v12 = vmul.f32 0.5, %v261_v11  ;;  %v466_v13 = vpop.f32.mrf.mxu0  ;;  %370 = vst.msk [vmem:[#allocation4] sm:$0x3] %vm368_vm1, %v261_v11 }
  0xeb   :  { %v265_v14 = vmul.f32 1.442695, %v264_v12  ;;  %v467_v16 = vpop.f32.mrf.mxu0 }
  0xec   :  { %v468_v17 = vadd.f32 %v467_v16, %v466_v13 }
  0xed   :  { %508 = vpow2.f32 %v265_v14 }
  0xee   :  { %v152_v18 = vadd.f32 %v468_v17, %v426_v15 }
  0xf0   :  { %369 = vst.msk [vmem:[#allocation2] sm:$0x3] %vm368_vm1, %v152_v18 }
  0xfa   :  { %v509_v20 = vpop.eup %508 }
  0xfb   :  { %v268_v21 = vmul.f32 %v509_v20, %v267_v19 }
  0xfd   :  { %v269_v22 = vadd.f32 %v268_v21, %v152_v18 }
  0xff   :  { %431 = vmatmul.mubr.msk.f32.vlgmr.msra.gmra.mxu0 %vm286_vm2, %v269_v22 }
 0x100   :  { %521 = shalt.err (!%p518_p4)
}
 0x101   :  { %403 = dma.vmem_to_hbm [thread:$0]  %s401_s3, 32, %s855_s8, [#allocation3]  }
 0x102   :  { %s530_s13 = scalar_lea.vmem %s411_s11, 32  ;;  %p535_p6 = scmp.lt.s32.totalorder %s411_s11, %s411_s11 }
 0x103   :  { %p531_p5 = scmp.ne.s32.totalorder %s411_s11, %s530_s13  ;;  %p536_p7 = scmp.lt.s32.totalorder %s530_s13, %s530_s13 }
 0x105   :  { %p537_p8 = por %p536_p7, %p535_p6 }
 0x107   :  { %p538_p9 = pnand %p537_p8, %p531_p5 }
 0x109   :  { %541 = shalt.err (!%p538_p9)
}
 0x10a   :  { %413 = dma.vmem_to_hbm [thread:$0]  %s411_s11, 32, %s856_s9, [#allocation5]   ;;  %v276_v23 = vlaneseq  ;;  %v274_v26 = vld [vmem:[%s854_s7] sm:$0x3]  ;;  %v557_v29 = vmov 1966171168  }
 0x10b   :  { %v379_v30 = vunpack.c.l.s4 %v557_v29 }
 0x10c   :  { %v277_v24 = vshrl.u32 %v276_v23, 7 }
 0x10d   :  { %v380_v34 = vunpack.c.0.s8 %v379_v30 }
 0x10e   :  { %v278_v25 = vsub.s32 0, %v277_v24  ;;  %v282_v27 = vsub.s32 1, %v277_v24 }
 0x10f   :  { %v383_v39 = vsub.s32 %v380_v34, %v277_v24 }
 0x110   :  { %v279_v28 = vrot.slane %v274_v26, %v278_v25  ;;  %v283_v31 = vrot.slane %v274_v26, %v282_v27 }
 0x1bf   :  { %v363_v32 = vpop.f32.mrf.mxu0 }
 0x1c0   :  { %v364_v33 = vadd.f32 %v363_v32, %v279_v28 }
 0x1c1   :  { %v365_v35 = vpop.f32.mrf.mxu0 }
 0x1c2   :  { %v366_v36 = vadd.f32 %v365_v35, %v283_v31  ;;  %v371_v37 = vmax.f32 %v364_v33, 0.0 }
 0x1c4   :  { %v372_v38 = vmax.f32 %v366_v36, 0.0 }
 0x1c6   :  { %v432_v40 = vpack.c.bf16 %v372_v38, %v371_v37 }
 0x1c8   :  { %v384_v41 = vrot.slane %v432_v40, %v383_v39 }
 0x1ca   :  { %433 = vst.sshfl [vmem:[%s857_s10] sm:$0x5 pattern:$0x73625140] %v384_v41 }
 0x1cb   :  { %550 = dma.done.wait [#allocation3], 32  }
 0x1cc   :  { %551 = vsyncadd [#allocation3], 4294967264 }
 0x1cd   :  { %552 = dma.done.wait [#allocation5], 32  }
 0x1ce   :  { %553 = vsyncadd [#allocation5], 4294967264 }
 0x1cf   :  { %424 = vsyncpa [#allocation3], 1 }
 0x1d0   :  { %425 = vsyncpa [#allocation5], 1 }

// kernel: beta_vae_forward.14
= control target key start
LH: loop header
LB: loop body
LE: loop exit
PB: predicated region body
PF: predicated region fallthrough
CT: control target
= control target key end

     0   :  { %vm3258_vm0 = vcmask 519168   ;;  %s5494_s1 = inlined_call_operand.vmem [shape: bf16[4096,64], index: 1, kind: input, shape index: {}]   ;;  %s5495_s0 = inlined_call_operand.vmem [shape: bf16[32,4096], index: 0, kind: input, shape index: {}]   ;;  %s5496_s2 = inlined_call_operand.vmem [shape: f32[1,64], index: 2, kind: input, shape index: {}]   ;;  %s5497_s3 = inlined_call_operand.vmem [shape: bf16[32,64], index: 3, kind: output, shape index: {}]  }
   0x1   :  { %v4044_v0 = vld [vmem:[%s5494_s1 + $0x78] sm:$0xff]   ;;  %v4048_v4 = vld [vmem:[%s5494_s1 + $0x70] sm:$0xff]   ;;  %v4052_v8 = vld [vmem:[%s5494_s1 + $0x68] sm:$0xff]  }
   0x2   :  { %v4045_v1 = vld [vmem:[%s5494_s1 + $0xf8] sm:$0xff]   ;;  %3596 = vmatprep.subr.bf16.mxu0 %v4044_v0  ;;  %v4049_v5 = vld [vmem:[%s5494_s1 + $0xf0] sm:$0xff]   ;;  %v4053_v9 = vld [vmem:[%s5494_s1 + $0xe8] sm:$0xff]  }
   0x3   :  { %v4046_v2 = vld [vmem:[%s5494_s1 + $0x38] sm:$0xff]   ;;  %3624 = vmatprep.subr.bf16.mxu1 %v4045_v1  ;;  %v4050_v6 = vld [vmem:[%s5494_s1 + $0x30] sm:$0xff]   ;;  %v4054_v10 = vld [vmem:[%s5494_s1 + $0x28] sm:$0xff]  }
   0x4   :  { %v4047_v3 = vld [vmem:[%s5494_s1 + $0xb8] sm:$0xff]   ;;  %3597 = vmatpush3.bf16.msra.mxu0 %v4046_v2  ;;  %v4051_v7 = vld [vmem:[%s5494_s1 + $0xb0] sm:$0xff]   ;;  %v4055_v11 = vld [vmem:[%s5494_s1 + $0xa8] sm:$0xff]  }
   0x5   :  { %3625 = vmatpush3.bf16.msra.mxu1 %v4047_v3  ;;  %3598 = vmatprep.subr.bf16.mxu0 %v4048_v4  ;;  %v4056_v12 = vld [vmem:[%s5494_s1 + $0x60] sm:$0xff]   ;;  %v4060_v16 = vld [vmem:[%s5494_s1 + $0x58] sm:$0xff]   ;;  %v4064_v20 = vld [vmem:[%s5494_s1 + $0x50] sm:$0xff]  }
   0x6   :  { %3626 = vmatprep.subr.bf16.mxu1 %v4049_v5  ;;  %v4057_v13 = vld [vmem:[%s5494_s1 + $0xe0] sm:$0xff]   ;;  %v4061_v17 = vld [vmem:[%s5494_s1 + $0xd8] sm:$0xff]   ;;  %v4065_v21 = vld [vmem:[%s5494_s1 + $0xd0] sm:$0xff]  }
   0x7   :  { %v4058_v14 = vld [vmem:[%s5494_s1 + $0x20] sm:$0xff]   ;;  %v4062_v18 = vld [vmem:[%s5494_s1 + $0x18] sm:$0xff]   ;;  %v4066_v22 = vld [vmem:[%s5494_s1 + $0x10] sm:$0xff]  }
   0x8   :  { %3599 = vmatpush3.bf16.msra.mxu0 %v4050_v6  ;;  %v4059_v15 = vld [vmem:[%s5494_s1 + $0xa0] sm:$0xff]   ;;  %v4063_v19 = vld [vmem:[%s5494_s1 + $0x98] sm:$0xff]   ;;  %v4067_v23 = vld [vmem:[%s5494_s1 + $0x90] sm:$0xff]  }
   0x9   :  { %3627 = vmatpush3.bf16.msra.mxu1 %v4051_v7  ;;  %3600 = vmatprep.subr.bf16.mxu0 %v4052_v8  ;;  %v4068_v24 = vld [vmem:[%s5494_s1 + $0x48] sm:$0xff]   ;;  %v4072_v28 = vld [vmem:[%s5494_s1 + $0x40] sm:$0xff]   ;;  %v4076_v40 = vld [vmem:[%s5494_s1 + $0x178] sm:$0xff]  }
   0xa   :  { %3628 = vmatprep.subr.bf16.mxu1 %v4053_v9  ;;  %v4069_v25 = vld [vmem:[%s5494_s1 + $0xc8] sm:$0xff]   ;;  %v4073_v29 = vld [vmem:[%s5494_s1 + $0xc0] sm:$0xff]   ;;  %v4077_v41 = vld [vmem:[%s5494_s1 + $0x1f8] sm:$0xff]  }
   0xb   :  { %v4070_v26 = vld [vmem:[%s5494_s1 + $0x8] sm:$0xff]   ;;  %v4074_v30 = vld [vmem:[%s5494_s1] sm:$0xff]   ;;  %v4078_v42 = vld [vmem:[%s5494_s1 + $0x138] sm:$0xff]  }
   0xc   :  { %3601 = vmatpush3.bf16.msra.mxu0 %v4054_v10  ;;  %v4071_v27 = vld [vmem:[%s5494_s1 + $0x88] sm:$0xff]   ;;  %v4075_v31 = vld [vmem:[%s5494_s1 + $0x80] sm:$0xff]   ;;  %v4079_v43 = vld [vmem:[%s5494_s1 + $0x1b8] sm:$0xff]  }
   0xd   :  { %3629 = vmatpush3.bf16.msra.mxu1 %v4055_v11  ;;  %3602 = vmatprep.subr.bf16.mxu0 %v4056_v12  ;;  %v15_v32 = vld [vmem:[%s5495_s0] sm:$0xff]  ;;  %v16_v34 = vld [vmem:[%s5495_s0 + $0x8] sm:$0xff]  ;;  %v4080_v44 = vld [vmem:[%s5494_s1 + $0x170] sm:$0xff]  }
   0xe   :  { %3630 = vmatprep.subr.bf16.mxu1 %v4057_v13  ;;  %v31_v33 = vld [vmem:[%s5495_s0 + $0x80] sm:$0xff]  ;;  %v32_v37 = vld [vmem:[%s5495_s0 + $0x88] sm:$0xff]  ;;  %v4081_v45 = vld [vmem:[%s5494_s1 + $0x1f0] sm:$0xff]  }
   0xf   :  { %v3268_v35 = vcombine.low %v15_v32, %v31_v33  ;;  %v3269_v36 = vcombine.high %v15_v32, %v31_v33  ;;  %v3270_v38 = vcombine.low %v16_v34, %v32_v37  ;;  %v3271_v39 = vcombine.high %v16_v34, %v32_v37  ;;  %v4082_v46 = vld [vmem:[%s5494_s1 + $0x130] sm:$0xff]   ;;  %v4084_v48 = vld [vmem:[%s5494_s1 + $0x168] sm:$0xff]   ;;  %v4088_v52 = vld [vmem:[%s5494_s1 + $0x160] sm:$0xff]  }
  0x10   :  { %3603 = vmatpush3.bf16.msra.mxu0 %v4058_v14  ;;  %v4083_v47 = vld [vmem:[%s5494_s1 + $0x1b0] sm:$0xff]   ;;  %v4085_v49 = vld [vmem:[%s5494_s1 + $0x1e8] sm:$0xff]   ;;  %v4089_v53 = vld [vmem:[%s5494_s1 + $0x1e0] sm:$0xff]  }
  0x11   :  { %3631 = vmatpush3.bf16.msra.mxu1 %v4059_v15  ;;  %3604 = vmatprep.subr.bf16.mxu0 %v4060_v16  ;;  %v4086_v50 = vld [vmem:[%s5494_s1 + $0x128] sm:$0xff]   ;;  %v4090_v54 = vld [vmem:[%s5494_s1 + $0x120] sm:$0xff]   ;;  %v4092_v56 = vld [vmem:[%s5494_s1 + $0x158] sm:$0xff]  }
  0x12   :  { %3632 = vmatprep.subr.bf16.mxu1 %v4061_v17  ;;  %2486 = vmatprep.mubr.bf16.mxu0 %v3269_v36  ;;  %v4087_v51 = vld [vmem:[%s5494_s1 + $0x1a8] sm:$0xff]   ;;  %v4091_v55 = vld [vmem:[%s5494_s1 + $0x1a0] sm:$0xff]   ;;  %v4093_v57 = vld [vmem:[%s5494_s1 + $0x1d8] sm:$0xff]  }
  0x13   :  { %2535 = vmatprep.mubr.bf16.mxu1 %v3271_v39  ;;  %v4094_v58 = vld [vmem:[%s5494_s1 + $0x118] sm:$0xff]   ;;  %v47_v60 = vld [vmem:[%s5495_s0 + $0x100] sm:$0xff]  ;;  %v48_v0 = vld [vmem:[%s5495_s0 + $0x108] sm:$0xff] }
  0x14   :  { %3605 = vmatpush3.bf16.msra.mxu0 %v4062_v18  ;;  %v4095_v59 = vld [vmem:[%s5494_s1 + $0x198] sm:$0xff]   ;;  %v63_v61 = vld [vmem:[%s5495_s0 + $0x180] sm:$0xff]  ;;  %v64_v1 = vld [vmem:[%s5495_s0 + $0x188] sm:$0xff] }
  0x15   :  { %3633 = vmatpush3.bf16.msra.mxu1 %v4063_v19  ;;  %3606 = vmatprep.subr.bf16.mxu0 %v4064_v20  ;;  %v3301_v62 = vcombine.high %v47_v60, %v63_v61  ;;  %v3300_v63 = vcombine.low %v47_v60, %v63_v61  ;;  %v3303_v2 = vcombine.high %v48_v0, %v64_v1  ;;  %v4096_v3 = vld [vmem:[%s5494_s1 + $0x150] sm:$0xff]   ;;  %v4100_v8 = vld [vmem:[%s5494_s1 + $0x148] sm:$0xff]   ;;  %v4104_v12 = vld [vmem:[%s5494_s1 + $0x140] sm:$0xff]  }
  0x16   :  { %3634 = vmatprep.subr.bf16.mxu1 %v4065_v21  ;;  %v3302_v4 = vcombine.low %v48_v0, %v64_v1  ;;  %v4097_v5 = vld [vmem:[%s5494_s1 + $0x1d0] sm:$0xff]   ;;  %v4101_v9 = vld [vmem:[%s5494_s1 + $0x1c8] sm:$0xff]   ;;  %v4105_v13 = vld [vmem:[%s5494_s1 + $0x1c0] sm:$0xff]  }
  0x17   :  { %v4098_v6 = vld [vmem:[%s5494_s1 + $0x110] sm:$0xff]   ;;  %v4102_v10 = vld [vmem:[%s5494_s1 + $0x108] sm:$0xff]   ;;  %v4106_v14 = vld [vmem:[%s5494_s1 + $0x100] sm:$0xff]  }
  0x18   :  { %3607 = vmatpush3.bf16.msra.mxu0 %v4066_v22  ;;  %v4099_v7 = vld [vmem:[%s5494_s1 + $0x190] sm:$0xff]   ;;  %v4103_v11 = vld [vmem:[%s5494_s1 + $0x188] sm:$0xff]   ;;  %v4107_v15 = vld [vmem:[%s5494_s1 + $0x180] sm:$0xff]  }
  0x19   :  { %3635 = vmatpush3.bf16.msra.mxu1 %v4067_v23  ;;  %3608 = vmatprep.subr.bf16.mxu0 %v4068_v24  ;;  %v17_v16 = vld [vmem:[%s5495_s0 + $0x10] sm:$0xff]  ;;  %v18_v18 = vld [vmem:[%s5495_s0 + $0x18] sm:$0xff]  ;;  %v4116_v36 = vld [vmem:[%s5494_s1 + $0x268] sm:$0xff]  }
  0x1a   :  { %3636 = vmatprep.subr.bf16.mxu1 %v4069_v25  ;;  %v33_v17 = vld [vmem:[%s5495_s0 + $0x90] sm:$0xff]  ;;  %v34_v19 = vld [vmem:[%s5495_s0 + $0x98] sm:$0xff]  ;;  %v4117_v37 = vld [vmem:[%s5494_s1 + $0x2e8] sm:$0xff]  }
  0x1b   :  { %v3272_v20 = vcombine.low %v17_v16, %v33_v17  ;;  %v3273_v21 = vcombine.high %v17_v16, %v33_v17  ;;  %v3274_v22 = vcombine.low %v18_v18, %v34_v19  ;;  %v3275_v23 = vcombine.high %v18_v18, %v34_v19  ;;  %v4108_v24 = vld [vmem:[%s5494_s1 + $0x278] sm:$0xff]   ;;  %v49_v32 = vld [vmem:[%s5495_s0 + $0x110] sm:$0xff]  ;;  %v4136_v60 = vld [vmem:[%s5494_s1 + $0x240] sm:$0xff]  }
  0x1c   :  { %3609 = vmatpush3.bf16.msra.mxu0 %v4070_v26  ;;  %v4109_v25 = vld [vmem:[%s5494_s1 + $0x2f8] sm:$0xff]   ;;  %v65_v33 = vld [vmem:[%s5495_s0 + $0x190] sm:$0xff]  ;;  %v4137_v61 = vld [vmem:[%s5494_s1 + $0x2c0] sm:$0xff]  }
  0x1d   :  { %3637 = vmatpush3.bf16.msra.mxu1 %v4071_v27  ;;  %3610 = vmatprep.subr.bf16.mxu0 %v4072_v28  ;;  %v4110_v26 = vld [vmem:[%s5494_s1 + $0x238] sm:$0xff]   ;;  %v4112_v28 = vld [vmem:[%s5494_s1 + $0x270] sm:$0xff]   ;;  %v3305_v34 = vcombine.high %v49_v32, %v65_v33  ;;  %v19_v0 = vld [vmem:[%s5495_s0 + $0x20] sm:$0xff] }
  0x1e   :  { %3638 = vmatprep.subr.bf16.mxu1 %v4073_v29  ;;  %v4111_v27 = vld [vmem:[%s5494_s1 + $0x2b8] sm:$0xff]   ;;  %v4113_v29 = vld [vmem:[%s5494_s1 + $0x2f0] sm:$0xff]   ;;  %v35_v1 = vld [vmem:[%s5495_s0 + $0xa0] sm:$0xff] }
  0x1f   :  { %v66_v39 = vld [vmem:[%s5495_s0 + $0x198] sm:$0xff]  ;;  %v51_v16 = vld [vmem:[%s5495_s0 + $0x120] sm:$0xff] }
  0x20   :  { %3611 = vmatpush3.bf16.msra.mxu0 %v4074_v30  ;;  %v4114_v30 = vld [vmem:[%s5494_s1 + $0x230] sm:$0xff]   ;;  %v67_v17 = vld [vmem:[%s5495_s0 + $0x1a0] sm:$0xff] }
  0x21   :  { %3639 = vmatpush3.bf16.msra.mxu1 %v4075_v31  ;;  %3652 = vmatprep.subr.bf16.mxu0 %v4076_v40  ;;  %v4115_v31 = vld [vmem:[%s5494_s1 + $0x2b0] sm:$0xff]   ;;  %v3309_v18 = vcombine.high %v51_v16, %v67_v17  ;;  %v3308_v19 = vcombine.low %v51_v16, %v67_v17  ;;  %v4188_v16 = vld [vmem:[%s5494_s1 + $0x458] sm:$0xff]  }
  0x22   :  { %3680 = vmatprep.subr.bf16.mxu1 %v4077_v41  ;;  %v4118_v41 = vld [vmem:[%s5494_s1 + $0x228] sm:$0xff]   ;;  %v4189_v17 = vld [vmem:[%s5494_s1 + $0x4d8] sm:$0xff]  }
  0x23   :  { %2487 = vmatmul.mubr.bf16.vlgmr.msra.gmra.mxu0 %v3268_v35  ;;  %v3304_v35 = vcombine.low %v49_v32, %v65_v33  ;;  %v4156_v32 = vld [vmem:[%s5494_s1 + $0x358] sm:$0xff]  }
  0x24   :  { %2536 = vmatmul.mubr.bf16.vlgmr.msra.gmra.mxu1 %v3270_v38  ;;  %3653 = vmatpush3.bf16.msra.mxu0 %v4078_v42  ;;  %v50_v38 = vld [vmem:[%s5495_s0 + $0x118] sm:$0xff] }
  0x25   :  { %3681 = vmatpush3.bf16.msra.mxu1 %v4079_v43  ;;  %3654 = vmatprep.subr.bf16.mxu0 %v4080_v44  ;;  %v3307_v40 = vcombine.high %v50_v38, %v66_v39  ;;  %v3306_v42 = vcombine.low %v50_v38, %v66_v39  ;;  %v4119_v43 = vld [vmem:[%s5494_s1 + $0x2a8] sm:$0xff]   ;;  %v4120_v44 = vld [vmem:[%s5494_s1 + $0x260] sm:$0xff]   ;;  %v4157_v33 = vld [vmem:[%s5494_s1 + $0x3d8] sm:$0xff]  }
  0x26   :  { %3682 = vmatprep.subr.bf16.mxu1 %v4081_v45  ;;  %2494 = vmatprep.mubr.bf16.mxu0 %v3301_v62  ;;  %v4121_v45 = vld [vmem:[%s5494_s1 + $0x2e0] sm:$0xff]   ;;  %v4162_v38 = vld [vmem:[%s5494_s1 + $0x310] sm:$0xff]  }
  0x27   :  { %2543 = vmatprep.mubr.bf16.mxu1 %v3303_v2  ;;  %v4138_v62 = vld [vmem:[%s5494_s1 + $0x200] sm:$0xff]   ;;  %v3276_v2 = vcombine.low %v19_v0, %v35_v1  ;;  %v4163_v39 = vld [vmem:[%s5494_s1 + $0x390] sm:$0xff]  }
  0x28   :  { %3655 = vmatpush3.bf16.msra.mxu0 %v4082_v46  ;;  %v4122_v46 = vld [vmem:[%s5494_s1 + $0x220] sm:$0xff]  }
  0x29   :  { %3683 = vmatpush3.bf16.msra.mxu1 %v4083_v47  ;;  %3656 = vmatprep.subr.bf16.mxu0 %v4084_v48  ;;  %v4123_v47 = vld [vmem:[%s5494_s1 + $0x2a0] sm:$0xff]   ;;  %v4124_v48 = vld [vmem:[%s5494_s1 + $0x258] sm:$0xff]  }
  0x2a   :  { %3684 = vmatprep.subr.bf16.mxu1 %v4085_v49  ;;  %v4125_v49 = vld [vmem:[%s5494_s1 + $0x2d8] sm:$0xff]  }
  0x2b   :  { %2495 = vmatmul.mubr.bf16.gmra.mxu0 %v3300_v63  ;;  %v4139_v63 = vld [vmem:[%s5494_s1 + $0x280] sm:$0xff]  }
  0x2c   :  { %3657 = vmatpush3.bf16.msra.mxu0 %v4086_v50  ;;  %2544 = vmatmul.mubr.bf16.gmra.mxu1 %v3302_v4  ;;  %v4126_v50 = vld [vmem:[%s5494_s1 + $0x218] sm:$0xff]   ;;  %v20_v4 = vld [vmem:[%s5495_s0 + $0x28] sm:$0xff] }
  0x2d   :  { %3685 = vmatpush3.bf16.msra.mxu1 %v4087_v51  ;;  %3658 = vmatprep.subr.bf16.mxu0 %v4088_v52  ;;  %v4127_v51 = vld [vmem:[%s5494_s1 + $0x298] sm:$0xff]   ;;  %v4128_v52 = vld [vmem:[%s5494_s1 + $0x250] sm:$0xff]  }
  0x2e   :  { %3686 = vmatprep.subr.bf16.mxu1 %v4089_v53  ;;  %2584 = vmatprep.mubr.bf16.mxu0 %v3273_v21  ;;  %v4129_v53 = vld [vmem:[%s5494_s1 + $0x2d0] sm:$0xff]   ;;  %v4149_v21 = vld [vmem:[%s5494_s1 + $0x3e8] sm:$0xff]  }
  0x2f   :  { %2633 = vmatprep.mubr.bf16.mxu1 %v3275_v23  ;;  %v68_v23 = vld [vmem:[%s5495_s0 + $0x1a8] sm:$0xff] }
  0x30   :  { %3659 = vmatpush3.bf16.msra.mxu0 %v4090_v54  ;;  %v4130_v54 = vld [vmem:[%s5494_s1 + $0x210] sm:$0xff]  }
  0x31   :  { %3687 = vmatpush3.bf16.msra.mxu1 %v4091_v55  ;;  %3660 = vmatprep.subr.bf16.mxu0 %v4092_v56  ;;  %v4131_v55 = vld [vmem:[%s5494_s1 + $0x290] sm:$0xff]   ;;  %v4132_v56 = vld [vmem:[%s5494_s1 + $0x248] sm:$0xff]  }
  0x32   :  { %3688 = vmatprep.subr.bf16.mxu1 %v4093_v57  ;;  %v4133_v57 = vld [vmem:[%s5494_s1 + $0x2c8] sm:$0xff]  }
  0x34   :  { %3661 = vmatpush3.bf16.msra.mxu0 %v4094_v58  ;;  %v4134_v58 = vld [vmem:[%s5494_s1 + $0x208] sm:$0xff]  }
  0x35   :  { %3689 = vmatpush3.bf16.msra.mxu1 %v4095_v59  ;;  %3662 = vmatprep.subr.bf16.mxu0 %v4096_v3  ;;  %v4135_v59 = vld [vmem:[%s5494_s1 + $0x288] sm:$0xff]   ;;  %v3277_v3 = vcombine.high %v19_v0, %v35_v1  ;;  %v53_v0 = vld [vmem:[%s5495_s0 + $0x130] sm:$0xff] }
  0x36   :  { %3690 = vmatprep.subr.bf16.mxu1 %v4097_v5  ;;  %v36_v5 = vld [vmem:[%s5495_s0 + $0xa8] sm:$0xff]  ;;  %v69_v1 = vld [vmem:[%s5495_s0 + $0x1b0] sm:$0xff] }
  0x38   :  { %3663 = vmatpush3.bf16.msra.mxu0 %v4098_v6  ;;  %v3278_v6 = vcombine.low %v20_v4, %v36_v5 }
  0x39   :  { %3691 = vmatpush3.bf16.msra.mxu1 %v4099_v7  ;;  %3664 = vmatprep.subr.bf16.mxu0 %v4100_v8  ;;  %v3279_v7 = vcombine.high %v20_v4, %v36_v5  ;;  %v4140_v8 = vld [vmem:[%s5494_s1 + $0x378] sm:$0xff]   ;;  %v4180_v4 = vld [vmem:[%s5494_s1 + $0x468] sm:$0xff]  }
  0x3a   :  { %3692 = vmatprep.subr.bf16.mxu1 %v4101_v9  ;;  %v4141_v9 = vld [vmem:[%s5494_s1 + $0x3f8] sm:$0xff]   ;;  %v4181_v5 = vld [vmem:[%s5494_s1 + $0x4e8] sm:$0xff]  }
  0x3c   :  { %3665 = vmatpush3.bf16.msra.mxu0 %v4102_v10  ;;  %v4142_v10 = vld [vmem:[%s5494_s1 + $0x338] sm:$0xff]  }
  0x3d   :  { %3693 = vmatpush3.bf16.msra.mxu1 %v4103_v11  ;;  %3666 = vmatprep.subr.bf16.mxu0 %v4104_v12  ;;  %v4143_v11 = vld [vmem:[%s5494_s1 + $0x3b8] sm:$0xff]   ;;  %v4144_v12 = vld [vmem:[%s5494_s1 + $0x370] sm:$0xff]  }
  0x3e   :  { %3694 = vmatprep.subr.bf16.mxu1 %v4105_v13  ;;  %v4145_v13 = vld [vmem:[%s5494_s1 + $0x3f0] sm:$0xff]  }
  0x40   :  { %3667 = vmatpush3.bf16.msra.mxu0 %v4106_v14  ;;  %v4146_v14 = vld [vmem:[%s5494_s1 + $0x330] sm:$0xff]  }
  0x41   :  { %3695 = vmatpush3.bf16.msra.mxu1 %v4107_v15  ;;  %3708 = vmatprep.subr.bf16.mxu0 %v4108_v24  ;;  %v4147_v15 = vld [vmem:[%s5494_s1 + $0x3b0] sm:$0xff]  }
  0x42   :  { %3736 = vmatprep.subr.bf16.mxu1 %v4109_v25  ;;  %v4150_v25 = vld [vmem:[%s5494_s1 + $0x328] sm:$0xff]  }
  0x43   :  { %2585 = vmatmul.mubr.bf16.vlgmr.msra.gmra.mxu0 %v3272_v20  ;;  %v4148_v20 = vld [vmem:[%s5494_s1 + $0x368] sm:$0xff]  }
  0x44   :  { %2634 = vmatmul.mubr.bf16.vlgmr.msra.gmra.mxu1 %v3274_v22  ;;  %3709 = vmatpush3.bf16.msra.mxu0 %v4110_v26  ;;  %v52_v22 = vld [vmem:[%s5495_s0 + $0x128] sm:$0xff] }
  0x45   :  { %3737 = vmatpush3.bf16.msra.mxu1 %v4111_v27  ;;  %3710 = vmatprep.subr.bf16.mxu0 %v4112_v28  ;;  %v3311_v24 = vcombine.high %v52_v22, %v68_v23  ;;  %v3310_v26 = vcombine.low %v52_v22, %v68_v23  ;;  %v4151_v27 = vld [vmem:[%s5494_s1 + $0x3a8] sm:$0xff]   ;;  %v4152_v28 = vld [vmem:[%s5494_s1 + $0x360] sm:$0xff]   ;;  %v4194_v22 = vld [vmem:[%s5494_s1 + $0x410] sm:$0xff]  }
  0x46   :  { %3738 = vmatprep.subr.bf16.mxu1 %v4113_v29  ;;  %2592 = vmatprep.mubr.bf16.mxu0 %v3305_v34  ;;  %v4153_v29 = vld [vmem:[%s5494_s1 + $0x3e0] sm:$0xff]   ;;  %v4158_v34 = vld [vmem:[%s5494_s1 + $0x318] sm:$0xff]   ;;  %v4195_v23 = vld [vmem:[%s5494_s1 + $0x490] sm:$0xff]  }
  0x47   :  { %2641 = vmatprep.mubr.bf16.mxu1 %v3307_v40  ;;  %v4164_v40 = vld [vmem:[%s5494_s1 + $0x348] sm:$0xff]  }
  0x48   :  { %3711 = vmatpush3.bf16.msra.mxu0 %v4114_v30  ;;  %v4154_v30 = vld [vmem:[%s5494_s1 + $0x320] sm:$0xff]  }
  0x49   :  { %3739 = vmatpush3.bf16.msra.mxu1 %v4115_v31  ;;  %3712 = vmatprep.subr.bf16.mxu0 %v4116_v36  ;;  %v4155_v31 = vld [vmem:[%s5494_s1 + $0x3a0] sm:$0xff]   ;;  %v4160_v36 = vld [vmem:[%s5494_s1 + $0x350] sm:$0xff]  }
  0x4a   :  { %3740 = vmatprep.subr.bf16.mxu1 %v4117_v37  ;;  %v4161_v37 = vld [vmem:[%s5494_s1 + $0x3d0] sm:$0xff]  }
  0x4b   :  { %2593 = vmatmul.mubr.bf16.gmra.mxu0 %v3304_v35  ;;  %v4159_v35 = vld [vmem:[%s5494_s1 + $0x398] sm:$0xff]  }
  0x4c   :  { %3713 = vmatpush3.bf16.msra.mxu0 %v4118_v41  ;;  %2642 = vmatmul.mubr.bf16.gmra.mxu1 %v3306_v42  ;;  %v4165_v41 = vld [vmem:[%s5494_s1 + $0x3c8] sm:$0xff]  }
  0x4d   :  { %3741 = vmatpush3.bf16.msra.mxu1 %v4119_v43  ;;  %3714 = vmatprep.subr.bf16.mxu0 %v4120_v44  ;;  %v4166_v42 = vld [vmem:[%s5494_s1 + $0x308] sm:$0xff]   ;;  %v4168_v44 = vld [vmem:[%s5494_s1 + $0x340] sm:$0xff]  }
  0x4e   :  { %3742 = vmatprep.subr.bf16.mxu1 %v4121_v45  ;;  %2682 = vmatprep.mubr.bf16.mxu0 %v3277_v3  ;;  %v4167_v43 = vld [vmem:[%s5494_s1 + $0x388] sm:$0xff]   ;;  %v4169_v45 = vld [vmem:[%s5494_s1 + $0x3c0] sm:$0xff]   ;;  %v3312_v3 = vcombine.low %v53_v0, %v69_v1 }
  0x4f   :  { %2731 = vmatprep.mubr.bf16.mxu1 %v3279_v7  ;;  %v70_v7 = vld [vmem:[%s5495_s0 + $0x1b8] sm:$0xff] }
  0x50   :  { %3715 = vmatpush3.bf16.msra.mxu0 %v4122_v46  ;;  %v4170_v46 = vld [vmem:[%s5494_s1 + $0x300] sm:$0xff]  }
  0x51   :  { %3743 = vmatpush3.bf16.msra.mxu1 %v4123_v47  ;;  %3716 = vmatprep.subr.bf16.mxu0 %v4124_v48  ;;  %v4171_v47 = vld [vmem:[%s5494_s1 + $0x380] sm:$0xff]   ;;  %v21_v48 = vld [vmem:[%s5495_s0 + $0x30] sm:$0xff] }
  0x52   :  { %3744 = vmatprep.subr.bf16.mxu1 %v4125_v49  ;;  %v37_v49 = vld [vmem:[%s5495_s0 + $0xb0] sm:$0xff] }
  0x54   :  { %3717 = vmatpush3.bf16.msra.mxu0 %v4126_v50  ;;  %v22_v50 = vld [vmem:[%s5495_s0 + $0x38] sm:$0xff] }
  0x55   :  { %3745 = vmatpush3.bf16.msra.mxu1 %v4127_v51  ;;  %3718 = vmatprep.subr.bf16.mxu0 %v4128_v52  ;;  %v3280_v51 = vcombine.low %v21_v48, %v37_v49  ;;  %v3281_v52 = vcombine.high %v21_v48, %v37_v49  ;;  %v55_v48 = vld [vmem:[%s5495_s0 + $0x140] sm:$0xff] }
  0x56   :  { %3746 = vmatprep.subr.bf16.mxu1 %v4129_v53  ;;  %v38_v53 = vld [vmem:[%s5495_s0 + $0xb8] sm:$0xff]  ;;  %v71_v49 = vld [vmem:[%s5495_s0 + $0x1c0] sm:$0xff] }
  0x58   :  { %3719 = vmatpush3.bf16.msra.mxu0 %v4130_v54  ;;  %v3282_v54 = vcombine.low %v22_v50, %v38_v53 }
  0x59   :  { %3747 = vmatpush3.bf16.msra.mxu1 %v4131_v55  ;;  %3720 = vmatprep.subr.bf16.mxu0 %v4132_v56  ;;  %v3283_v55 = vcombine.high %v22_v50, %v38_v53  ;;  %v4172_v56 = vld [vmem:[%s5494_s1 + $0x478] sm:$0xff]   ;;  %v3317_v50 = vcombine.high %v55_v48, %v71_v49  ;;  %v4213_v53 = vld [vmem:[%s5494_s1 + $0x5e8] sm:$0xff]  }
  0x5a   :  { %3748 = vmatprep.subr.bf16.mxu1 %v4133_v57  ;;  %v4173_v57 = vld [vmem:[%s5494_s1 + $0x4f8] sm:$0xff]  }
  0x5c   :  { %3721 = vmatpush3.bf16.msra.mxu0 %v4134_v58  ;;  %v4174_v58 = vld [vmem:[%s5494_s1 + $0x438] sm:$0xff]  }
  0x5d   :  { %3749 = vmatpush3.bf16.msra.mxu1 %v4135_v59  ;;  %3722 = vmatprep.subr.bf16.mxu0 %v4136_v60  ;;  %v4175_v59 = vld [vmem:[%s5494_s1 + $0x4b8] sm:$0xff]   ;;  %v4176_v60 = vld [vmem:[%s5494_s1 + $0x470] sm:$0xff]  }
  0x5e   :  { %3750 = vmatprep.subr.bf16.mxu1 %v4137_v61  ;;  %v4177_v61 = vld [vmem:[%s5494_s1 + $0x4f0] sm:$0xff]  }
  0x60   :  { %3723 = vmatpush3.bf16.msra.mxu0 %v4138_v62  ;;  %v4178_v62 = vld [vmem:[%s5494_s1 + $0x430] sm:$0xff]  }
  0x61   :  { %3751 = vmatpush3.bf16.msra.mxu1 %v4139_v63  ;;  %3764 = vmatprep.subr.bf16.mxu0 %v4140_v8  ;;  %v4179_v63 = vld [vmem:[%s5494_s1 + $0x4b0] sm:$0xff]  }
  0x62   :  { %3792 = vmatprep.subr.bf16.mxu1 %v4141_v9  ;;  %v4182_v9 = vld [vmem:[%s5494_s1 + $0x428] sm:$0xff]  }
  0x63   :  { %2683 = vmatmul.mubr.bf16.vlgmr.msra.gmra.mxu0 %v3276_v2  ;;  %v3313_v2 = vcombine.high %v53_v0, %v69_v1  ;;  %v4220_v0 = vld [vmem:[%s5494_s1 + $0x558] sm:$0xff]  }
  0x64   :  { %2732 = vmatmul.mubr.bf16.vlgmr.msra.gmra.mxu1 %v3278_v6  ;;  %3765 = vmatpush3.bf16.msra.mxu0 %v4142_v10  ;;  %v54_v6 = vld [vmem:[%s5495_s0 + $0x138] sm:$0xff] }
  0x65   :  { %3793 = vmatpush3.bf16.msra.mxu1 %v4143_v11  ;;  %3766 = vmatprep.subr.bf16.mxu0 %v4144_v12  ;;  %v3315_v8 = vcombine.high %v54_v6, %v70_v7  ;;  %v3314_v10 = vcombine.low %v54_v6, %v70_v7  ;;  %v4183_v11 = vld [vmem:[%s5494_s1 + $0x4a8] sm:$0xff]   ;;  %v4184_v12 = vld [vmem:[%s5494_s1 + $0x460] sm:$0xff]   ;;  %v4221_v1 = vld [vmem:[%s5494_s1 + $0x5d8] sm:$0xff]  }
  0x66   :  { %3794 = vmatprep.subr.bf16.mxu1 %v4145_v13  ;;  %2690 = vmatprep.mubr.bf16.mxu0 %v3309_v18  ;;  %v4185_v13 = vld [vmem:[%s5494_s1 + $0x4e0] sm:$0xff]   ;;  %v4190_v18 = vld [vmem:[%s5494_s1 + $0x418] sm:$0xff]   ;;  %v4226_v6 = vld [vmem:[%s5494_s1 + $0x510] sm:$0xff]  }
  0x67   :  { %2739 = vmatprep.mubr.bf16.mxu1 %v3311_v24  ;;  %v4196_v24 = vld [vmem:[%s5494_s1 + $0x448] sm:$0xff]   ;;  %v4227_v7 = vld [vmem:[%s5494_s1 + $0x590] sm:$0xff]  }
  0x68   :  { %3767 = vmatpush3.bf16.msra.mxu0 %v4146_v14  ;;  %v4186_v14 = vld [vmem:[%s5494_s1 + $0x420] sm:$0xff]  }
  0x69   :  { %3795 = vmatpush3.bf16.msra.mxu1 %v4147_v15  ;;  %3768 = vmatprep.subr.bf16.mxu0 %v4148_v20  ;;  %v4187_v15 = vld [vmem:[%s5494_s1 + $0x4a0] sm:$0xff]   ;;  %v4192_v20 = vld [vmem:[%s5494_s1 + $0x450] sm:$0xff]  }
  0x6a   :  { %3796 = vmatprep.subr.bf16.mxu1 %v4149_v21  ;;  %v4193_v21 = vld [vmem:[%s5494_s1 + $0x4d0] sm:$0xff]  }
  0x6b   :  { %2691 = vmatmul.mubr.bf16.gmra.mxu0 %v3308_v19  ;;  %v4191_v19 = vld [vmem:[%s5494_s1 + $0x498] sm:$0xff]  }
  0x6c   :  { %3769 = vmatpush3.bf16.msra.mxu0 %v4150_v25  ;;  %2740 = vmatmul.mubr.bf16.gmra.mxu1 %v3310_v26  ;;  %v4197_v25 = vld [vmem:[%s5494_s1 + $0x4c8] sm:$0xff]  }
  0x6d   :  { %3797 = vmatpush3.bf16.msra.mxu1 %v4151_v27  ;;  %3770 = vmatprep.subr.bf16.mxu0 %v4152_v28  ;;  %v4198_v26 = vld [vmem:[%s5494_s1 + $0x408] sm:$0xff]   ;;  %v4200_v28 = vld [vmem:[%s5494_s1 + $0x440] sm:$0xff]  }
  0x6e   :  { %3798 = vmatprep.subr.bf16.mxu1 %v4153_v29  ;;  %2780 = vmatprep.mubr.bf16.mxu0 %v3281_v52  ;;  %v4199_v27 = vld [vmem:[%s5494_s1 + $0x488] sm:$0xff]   ;;  %v4201_v29 = vld [vmem:[%s5494_s1 + $0x4c0] sm:$0xff]  }
  0x6f   :  { %2829 = vmatprep.mubr.bf16.mxu1 %v3283_v55  ;;  %v4212_v52 = vld [vmem:[%s5494_s1 + $0x568] sm:$0xff]  }
  0x70   :  { %3771 = vmatpush3.bf16.msra.mxu0 %v4154_v30  ;;  %v4202_v30 = vld [vmem:[%s5494_s1 + $0x400] sm:$0xff]   ;;  %v72_v55 = vld [vmem:[%s5495_s0 + $0x1c8] sm:$0xff] }
  0x71   :  { %3799 = vmatpush3.bf16.msra.mxu1 %v4155_v31  ;;  %3772 = vmatprep.subr.bf16.mxu0 %v4156_v32  ;;  %v4203_v31 = vld [vmem:[%s5494_s1 + $0x480] sm:$0xff]  }
  0x72   :  { %3800 = vmatprep.subr.bf16.mxu1 %v4157_v33  ;;  %v23_v32 = vld [vmem:[%s5495_s0 + $0x40] sm:$0xff] }
  0x73   :  { %v39_v33 = vld [vmem:[%s5495_s0 + $0xc0] sm:$0xff] }
  0x74   :  { %3773 = vmatpush3.bf16.msra.mxu0 %v4158_v34  ;;  %v24_v34 = vld [vmem:[%s5495_s0 + $0x48] sm:$0xff] }
  0x75   :  { %3801 = vmatpush3.bf16.msra.mxu1 %v4159_v35  ;;  %3774 = vmatprep.subr.bf16.mxu0 %v4160_v36  ;;  %v40_v35 = vld [vmem:[%s5495_s0 + $0xc8] sm:$0xff]  ;;  %v3284_v36 = vcombine.low %v23_v32, %v39_v33 }
  0x76   :  { %3802 = vmatprep.subr.bf16.mxu1 %v4161_v37  ;;  %v3285_v37 = vcombine.high %v23_v32, %v39_v33  ;;  %v57_v32 = vld [vmem:[%s5495_s0 + $0x150] sm:$0xff] }
  0x77   :  { %v73_v33 = vld [vmem:[%s5495_s0 + $0x1d0] sm:$0xff] }
  0x78   :  { %3775 = vmatpush3.bf16.msra.mxu0 %v4162_v38  ;;  %v3286_v38 = vcombine.low %v24_v34, %v40_v35 }
  0x79   :  { %3803 = vmatpush3.bf16.msra.mxu1 %v4163_v39  ;;  %3776 = vmatprep.subr.bf16.mxu0 %v4164_v40  ;;  %v3287_v39 = vcombine.high %v24_v34, %v40_v35  ;;  %v4204_v40 = vld [vmem:[%s5494_s1 + $0x578] sm:$0xff]   ;;  %v3321_v34 = vcombine.high %v57_v32, %v73_v33  ;;  %v3320_v35 = vcombine.low %v57_v32, %v73_v33  ;;  %v4275_v32 = vld [vmem:[%s5494_s1 + $0x7b0] sm:$0xff]   ;;  %v59_v33 = vld [vmem:[%s5495_s0 + $0x160] sm:$0xff] }
  0x7a   :  { %3804 = vmatprep.subr.bf16.mxu1 %v4165_v41  ;;  %v4205_v41 = vld [vmem:[%s5494_s1 + $0x5f8] sm:$0xff]  }
  0x7c   :  { %3777 = vmatpush3.bf16.msra.mxu0 %v4166_v42  ;;  %v4206_v42 = vld [vmem:[%s5494_s1 + $0x538] sm:$0xff]  }
  0x7d   :  { %3805 = vmatpush3.bf16.msra.mxu1 %v4167_v43  ;;  %3778 = vmatprep.subr.bf16.mxu0 %v4168_v44  ;;  %v4207_v43 = vld [vmem:[%s5494_s1 + $0x5b8] sm:$0xff]   ;;  %v4208_v44 = vld [vmem:[%s5494_s1 + $0x570] sm:$0xff]  }
  0x7e   :  { %3806 = vmatprep.subr.bf16.mxu1 %v4169_v45  ;;  %v4209_v45 = vld [vmem:[%s5494_s1 + $0x5f0] sm:$0xff]  }
  0x80   :  { %3779 = vmatpush3.bf16.msra.mxu0 %v4170_v46  ;;  %v4210_v46 = vld [vmem:[%s5494_s1 + $0x530] sm:$0xff]  }
  0x81   :  { %3807 = vmatpush3.bf16.msra.mxu1 %v4171_v47  ;;  %3820 = vmatprep.subr.bf16.mxu0 %v4172_v56  ;;  %v4211_v47 = vld [vmem:[%s5494_s1 + $0x5b0] sm:$0xff]  }
  0x82   :  { %3848 = vmatprep.subr.bf16.mxu1 %v4173_v57  ;;  %v4214_v57 = vld [vmem:[%s5494_s1 + $0x528] sm:$0xff]  }
  0x83   :  { %2781 = vmatmul.mubr.bf16.vlgmr.msra.gmra.mxu0 %v3280_v51  ;;  %v3316_v51 = vcombine.low %v55_v48, %v71_v49  ;;  %v4252_v48 = vld [vmem:[%s5494_s1 + $0x658] sm:$0xff]  }
  0x84   :  { %2830 = vmatmul.mubr.bf16.vlgmr.msra.gmra.mxu1 %v3282_v54  ;;  %3821 = vmatpush3.bf16.msra.mxu0 %v4174_v58  ;;  %v56_v54 = vld [vmem:[%s5495_s0 + $0x148] sm:$0xff]  ;;  %v4253_v49 = vld [vmem:[%s5494_s1 + $0x6d8] sm:$0xff]  }
  0x85   :  { %3849 = vmatpush3.bf16.msra.mxu1 %v4175_v59  ;;  %3822 = vmatprep.subr.bf16.mxu0 %v4176_v60  ;;  %v3319_v56 = vcombine.high %v56_v54, %v72_v55  ;;  %v3318_v58 = vcombine.low %v56_v54, %v72_v55  ;;  %v4215_v59 = vld [vmem:[%s5494_s1 + $0x5a8] sm:$0xff]   ;;  %v4216_v60 = vld [vmem:[%s5494_s1 + $0x560] sm:$0xff]   ;;  %v4257_v54 = vld [vmem:[%s5494_s1 + $0x6d0] sm:$0xff]  }
  0x86   :  { %3850 = vmatprep.subr.bf16.mxu1 %v4177_v61  ;;  %2788 = vmatprep.mubr.bf16.mxu0 %v3313_v2  ;;  %v4217_v61 = vld [vmem:[%s5494_s1 + $0x5e0] sm:$0xff]   ;;  %v4222_v2 = vld [vmem:[%s5494_s1 + $0x518] sm:$0xff]  }
  0x87   :  { %2837 = vmatprep.mubr.bf16.mxu1 %v3315_v8  ;;  %v4228_v8 = vld [vmem:[%s5494_s1 + $0x548] sm:$0xff]  }
  0x88   :  { %3823 = vmatpush3.bf16.msra.mxu0 %v4178_v62  ;;  %v4218_v62 = vld [vmem:[%s5494_s1 + $0x520] sm:$0xff]  }
  0x89   :  { %3851 = vmatpush3.bf16.msra.mxu1 %v4179_v63  ;;  %3824 = vmatprep.subr.bf16.mxu0 %v4180_v4  ;;  %v4219_v63 = vld [vmem:[%s5494_s1 + $0x5a0] sm:$0xff]   ;;  %v4224_v4 = vld [vmem:[%s5494_s1 + $0x550] sm:$0xff]  }
  0x8a   :  { %3852 = vmatprep.subr.bf16.mxu1 %v4181_v5  ;;  %v4225_v5 = vld [vmem:[%s5494_s1 + $0x5d0] sm:$0xff]  }
  0x8b   :  { %2789 = vmatmul.mubr.bf16.gmra.mxu0 %v3312_v3  ;;  %v4223_v3 = vld [vmem:[%s5494_s1 + $0x598] sm:$0xff]  }
  0x8c   :  { %3825 = vmatpush3.bf16.msra.mxu0 %v4182_v9  ;;  %2838 = vmatmul.mubr.bf16.gmra.mxu1 %v3314_v10  ;;  %v4229_v9 = vld [vmem:[%s5494_s1 + $0x5c8] sm:$0xff]  }
  0x8d   :  { %3853 = vmatpush3.bf16.msra.mxu1 %v4183_v11  ;;  %3826 = vmatprep.subr.bf16.mxu0 %v4184_v12  ;;  %v4230_v10 = vld [vmem:[%s5494_s1 + $0x508] sm:$0xff]   ;;  %v4232_v12 = vld [vmem:[%s5494_s1 + $0x540] sm:$0xff]  }
  0x8e   :  { %3854 = vmatprep.subr.bf16.mxu1 %v4185_v13  ;;  %2878 = vmatprep.mubr.bf16.mxu0 %v3285_v37  ;;  %v4231_v11 = vld [vmem:[%s5494_s1 + $0x588] sm:$0xff]   ;;  %v4233_v13 = vld [vmem:[%s5494_s1 + $0x5c0] sm:$0xff]  }
  0x8f   :  { %2927 = vmatprep.mubr.bf16.mxu1 %v3287_v39  ;;  %v4245_v37 = vld [vmem:[%s5494_s1 + $0x6e8] sm:$0xff]   ;;  %v74_v39 = vld [vmem:[%s5495_s0 + $0x1d8] sm:$0xff] }
  0x90   :  { %3827 = vmatpush3.bf16.msra.mxu0 %v4186_v14  ;;  %v4234_v14 = vld [vmem:[%s5494_s1 + $0x500] sm:$0xff]  }
  0x91   :  { %3855 = vmatpush3.bf16.msra.mxu1 %v4187_v15  ;;  %3828 = vmatprep.subr.bf16.mxu0 %v4188_v16  ;;  %v4235_v15 = vld [vmem:[%s5494_s1 + $0x580] sm:$0xff]   ;;  %v25_v16 = vld [vmem:[%s5495_s0 + $0x50] sm:$0xff] }
  0x92   :  { %3856 = vmatprep.subr.bf16.mxu1 %v4189_v17  ;;  %v41_v17 = vld [vmem:[%s5495_s0 + $0xd0] sm:$0xff] }
  0x94   :  { %3829 = vmatpush3.bf16.msra.mxu0 %v4190_v18  ;;  %v3288_v18 = vcombine.low %v25_v16, %v41_v17 }
  0x95   :  { %3857 = vmatpush3.bf16.msra.mxu1 %v4191_v19  ;;  %3830 = vmatprep.subr.bf16.mxu0 %v4192_v20  ;;  %v3289_v19 = vcombine.high %v25_v16, %v41_v17  ;;  %v26_v20 = vld [vmem:[%s5495_s0 + $0x58] sm:$0xff]  ;;  %v44_v17 = vld [vmem:[%s5495_s0 + $0xe8] sm:$0xff] }
  0x96   :  { %3858 = vmatprep.subr.bf16.mxu1 %v4193_v21  ;;  %v42_v21 = vld [vmem:[%s5495_s0 + $0xd8] sm:$0xff] }
  0x98   :  { %3831 = vmatpush3.bf16.msra.mxu0 %v4194_v22  ;;  %v3290_v22 = vcombine.low %v26_v20, %v42_v21 }
  0x99   :  { %3859 = vmatpush3.bf16.msra.mxu1 %v4195_v23  ;;  %3832 = vmatprep.subr.bf16.mxu0 %v4196_v24  ;;  %v3291_v23 = vcombine.high %v26_v20, %v42_v21  ;;  %v4236_v24 = vld [vmem:[%s5494_s1 + $0x678] sm:$0xff]  }
  0x9a   :  { %3860 = vmatprep.subr.bf16.mxu1 %v4197_v25  ;;  %v4237_v25 = vld [vmem:[%s5494_s1 + $0x6f8] sm:$0xff]  }
  0x9b   :  { %v4268_v20 = vld [vmem:[%s5494_s1 + $0x778] sm:$0xff]  }
  0x9c   :  { %3833 = vmatpush3.bf16.msra.mxu0 %v4198_v26  ;;  %v4238_v26 = vld [vmem:[%s5494_s1 + $0x638] sm:$0xff]  }
  0x9d   :  { %3861 = vmatpush3.bf16.msra.mxu1 %v4199_v27  ;;  %3834 = vmatprep.subr.bf16.mxu0 %v4200_v28  ;;  %v4239_v27 = vld [vmem:[%s5494_s1 + $0x6b8] sm:$0xff]   ;;  %v4240_v28 = vld [vmem:[%s5494_s1 + $0x670] sm:$0xff]  }
  0x9e   :  { %3862 = vmatprep.subr.bf16.mxu1 %v4201_v29  ;;  %v4241_v29 = vld [vmem:[%s5494_s1 + $0x6f0] sm:$0xff]   ;;  %v4269_v21 = vld [vmem:[%s5494_s1 + $0x7f8] sm:$0xff]  }
  0xa0   :  { %3835 = vmatpush3.bf16.msra.mxu0 %v4202_v30  ;;  %v4242_v30 = vld [vmem:[%s5494_s1 + $0x630] sm:$0xff]  }
  0xa1   :  { %3863 = vmatpush3.bf16.msra.mxu1 %v4203_v31  ;;  %3876 = vmatprep.subr.bf16.mxu0 %v4204_v40  ;;  %v4243_v31 = vld [vmem:[%s5494_s1 + $0x6b0] sm:$0xff]  }
  0xa2   :  { %3904 = vmatprep.subr.bf16.mxu1 %v4205_v41  ;;  %v4246_v41 = vld [vmem:[%s5494_s1 + $0x628] sm:$0xff]  }
  0xa3   :  { %2879 = vmatmul.mubr.bf16.vlgmr.msra.gmra.mxu0 %v3284_v36  ;;  %v4244_v36 = vld [vmem:[%s5494_s1 + $0x668] sm:$0xff]  }
  0xa4   :  { %2928 = vmatmul.mubr.bf16.vlgmr.msra.gmra.mxu1 %v3286_v38  ;;  %3877 = vmatpush3.bf16.msra.mxu0 %v4206_v42  ;;  %v58_v38 = vld [vmem:[%s5495_s0 + $0x158] sm:$0xff] }
  0xa5   :  { %3905 = vmatpush3.bf16.msra.mxu1 %v4207_v43  ;;  %3878 = vmatprep.subr.bf16.mxu0 %v4208_v44  ;;  %v3323_v40 = vcombine.high %v58_v38, %v74_v39  ;;  %v3322_v42 = vcombine.low %v58_v38, %v74_v39  ;;  %v4247_v43 = vld [vmem:[%s5494_s1 + $0x6a8] sm:$0xff]   ;;  %v4248_v44 = vld [vmem:[%s5494_s1 + $0x660] sm:$0xff]  }
  0xa6   :  { %3906 = vmatprep.subr.bf16.mxu1 %v4209_v45  ;;  %2886 = vmatprep.mubr.bf16.mxu0 %v3317_v50  ;;  %v4249_v45 = vld [vmem:[%s5494_s1 + $0x6e0] sm:$0xff]   ;;  %v4254_v50 = vld [vmem:[%s5494_s1 + $0x618] sm:$0xff]   ;;  %v4276_v38 = vld [vmem:[%s5494_s1 + $0x768] sm:$0xff]  }
  0xa7   :  { %2935 = vmatprep.mubr.bf16.mxu1 %v3319_v56  ;;  %v4258_v56 = vld [vmem:[%s5494_s1 + $0x610] sm:$0xff]  }
  0xa8   :  { %3879 = vmatpush3.bf16.msra.mxu0 %v4210_v46  ;;  %v4250_v46 = vld [vmem:[%s5494_s1 + $0x620] sm:$0xff]  }
  0xa9   :  { %3907 = vmatpush3.bf16.msra.mxu1 %v4211_v47  ;;  %3880 = vmatprep.subr.bf16.mxu0 %v4212_v52  ;;  %v4251_v47 = vld [vmem:[%s5494_s1 + $0x6a0] sm:$0xff]   ;;  %v4256_v52 = vld [vmem:[%s5494_s1 + $0x650] sm:$0xff]  }
  0xaa   :  { %3908 = vmatprep.subr.bf16.mxu1 %v4213_v53 }
  0xab   :  { %2887 = vmatmul.mubr.bf16.gmra.mxu0 %v3316_v51  ;;  %v4255_v51 = vld [vmem:[%s5494_s1 + $0x698] sm:$0xff]  }
  0xac   :  { %3881 = vmatpush3.bf16.msra.mxu0 %v4214_v57  ;;  %2936 = vmatmul.mubr.bf16.gmra.mxu1 %v3318_v58  ;;  %v4259_v58 = vld [vmem:[%s5494_s1 + $0x690] sm:$0xff]  }
  0xad   :  { %3909 = vmatpush3.bf16.msra.mxu1 %v4215_v59  ;;  %3882 = vmatprep.subr.bf16.mxu0 %v4216_v60 }
  0xae   :  { %3910 = vmatprep.subr.bf16.mxu1 %v4217_v61  ;;  %2976 = vmatprep.mubr.bf16.mxu0 %v3289_v19  ;;  %v4260_v61 = vld [vmem:[%s5494_s1 + $0x648] sm:$0xff]  }
  0xaf   :  { %3025 = vmatprep.mubr.bf16.mxu1 %v3291_v23  ;;  %v4271_v23 = vld [vmem:[%s5494_s1 + $0x7b8] sm:$0xff]  }
  0xb0   :  { %3883 = vmatpush3.bf16.msra.mxu0 %v4218_v62 }
  0xb1   :  { %3911 = vmatpush3.bf16.msra.mxu1 %v4219_v63  ;;  %3884 = vmatprep.subr.bf16.mxu0 %v4220_v0  ;;  %v4261_v0 = vld [vmem:[%s5494_s1 + $0x6c8] sm:$0xff]  }
  0xb2   :  { %3912 = vmatprep.subr.bf16.mxu1 %v4221_v1 }
  0xb4   :  { %3885 = vmatpush3.bf16.msra.mxu0 %v4222_v2  ;;  %v4262_v2 = vld [vmem:[%s5494_s1 + $0x608] sm:$0xff]  }
  0xb5   :  { %3913 = vmatpush3.bf16.msra.mxu1 %v4223_v3  ;;  %3886 = vmatprep.subr.bf16.mxu0 %v4224_v4  ;;  %v4263_v4 = vld [vmem:[%s5494_s1 + $0x688] sm:$0xff]  }
  0xb6   :  { %3914 = vmatprep.subr.bf16.mxu1 %v4225_v5 }
  0xb8   :  { %3887 = vmatpush3.bf16.msra.mxu0 %v4226_v6 }
  0xb9   :  { %3915 = vmatpush3.bf16.msra.mxu1 %v4227_v7  ;;  %3888 = vmatprep.subr.bf16.mxu0 %v4228_v8  ;;  %v4264_v7 = vld [vmem:[%s5494_s1 + $0x640] sm:$0xff]  }
  0xba   :  { %3916 = vmatprep.subr.bf16.mxu1 %v4229_v9  ;;  %v4265_v9 = vld [vmem:[%s5494_s1 + $0x6c0] sm:$0xff]  }
  0xbc   :  { %3889 = vmatpush3.bf16.msra.mxu0 %v4230_v10  ;;  %v4266_v10 = vld [vmem:[%s5494_s1 + $0x600] sm:$0xff]  }
  0xbd   :  { %3917 = vmatpush3.bf16.msra.mxu1 %v4231_v11  ;;  %3890 = vmatprep.subr.bf16.mxu0 %v4232_v12  ;;  %v4267_v11 = vld [vmem:[%s5494_s1 + $0x680] sm:$0xff]  }
  0xbe   :  { %3918 = vmatprep.subr.bf16.mxu1 %v4233_v13  ;;  %v27_v12 = vld [vmem:[%s5495_s0 + $0x60] sm:$0xff] }
  0xbf   :  { %v43_v13 = vld [vmem:[%s5495_s0 + $0xe0] sm:$0xff] }
  0xc0   :  { %3891 = vmatpush3.bf16.msra.mxu0 %v4234_v14  ;;  %v28_v14 = vld [vmem:[%s5495_s0 + $0x68] sm:$0xff]  ;;  %v3293_v16 = vcombine.high %v27_v12, %v43_v13 }
  0xc1   :  { %3919 = vmatpush3.bf16.msra.mxu1 %v4235_v15  ;;  %3932 = vmatprep.subr.bf16.mxu0 %v4236_v24  ;;  %v3292_v15 = vcombine.low %v27_v12, %v43_v13  ;;  %v3295_v19 = vcombine.high %v28_v14, %v44_v17  ;;  %v3267_v24 = vld [vmem:[%s5496_s2] ss:$0 sm:$0xff]  ;;  %v4291_v12 = vld [vmem:[%s5494_s1 + $0x790] sm:$0xff]  }
  0xc2   :  { %3960 = vmatprep.subr.bf16.mxu1 %v4237_v25 }
  0xc3   :  { %2977 = vmatmul.mubr.bf16.vlgmr.msra.gmra.mxu0 %v3288_v18  ;;  %v3294_v18 = vcombine.low %v28_v14, %v44_v17 }
  0xc4   :  { %3026 = vmatmul.mubr.bf16.vlgmr.msra.gmra.mxu1 %v3290_v22  ;;  %3933 = vmatpush3.bf16.msra.mxu0 %v4238_v26  ;;  %v4270_v22 = vld [vmem:[%s5494_s1 + $0x738] sm:$0xff]   ;;  %v4272_v26 = vld [vmem:[%s5494_s1 + $0x770] sm:$0xff]  }
  0xc5   :  { %3961 = vmatpush3.bf16.msra.mxu1 %v4239_v27  ;;  %3934 = vmatprep.subr.bf16.mxu0 %v4240_v28  ;;  %v4273_v28 = vld [vmem:[%s5494_s1 + $0x7f0] sm:$0xff]  }
  0xc6   :  { %3962 = vmatprep.subr.bf16.mxu1 %v4241_v29  ;;  %2984 = vmatprep.mubr.bf16.mxu0 %v3321_v34 }
  0xc7   :  { %3033 = vmatprep.mubr.bf16.mxu1 %v3323_v40 }
  0xc8   :  { %3935 = vmatpush3.bf16.msra.mxu0 %v4242_v30  ;;  %v4274_v30 = vld [vmem:[%s5494_s1 + $0x730] sm:$0xff]  }
  0xc9   :  { %3963 = vmatpush3.bf16.msra.mxu1 %v4243_v31  ;;  %3936 = vmatprep.subr.bf16.mxu0 %v4244_v36 }
  0xca   :  { %3964 = vmatprep.subr.bf16.mxu1 %v4245_v37 }
  0xcb   :  { %2985 = vmatmul.mubr.bf16.gmra.mxu0 %v3320_v35  ;;  %v75_v35 = vld [vmem:[%s5495_s0 + $0x1e0] sm:$0xff] }
  0xcc   :  { %3937 = vmatpush3.bf16.msra.mxu0 %v4246_v41  ;;  %3034 = vmatmul.mubr.bf16.gmra.mxu1 %v3322_v42  ;;  %v3325_v36 = vcombine.high %v59_v33, %v75_v35  ;;  %v3324_v37 = vcombine.low %v59_v33, %v75_v35  ;;  %v4277_v41 = vld [vmem:[%s5494_s1 + $0x7e8] sm:$0xff]   ;;  %v4299_v33 = vld [vmem:[%s5494_s1 + $0x780] sm:$0xff]  }
  0xcd   :  { %3965 = vmatpush3.bf16.msra.mxu1 %v4247_v43  ;;  %3938 = vmatprep.subr.bf16.mxu0 %v4248_v44  ;;  %v60_v42 = vld [vmem:[%s5495_s0 + $0x168] sm:$0xff] }
  0xce   :  { %3966 = vmatprep.subr.bf16.mxu1 %v4249_v45  ;;  %3074 = vmatprep.mubr.bf16.mxu0 %v3293_v16  ;;  %v76_v43 = vld [vmem:[%s5495_s0 + $0x1e8] sm:$0xff] }
  0xcf   :  { %3123 = vmatprep.mubr.bf16.mxu1 %v3295_v19  ;;  %v3327_v45 = vcombine.high %v60_v42, %v76_v43 }
  0xd0   :  { %3939 = vmatpush3.bf16.msra.mxu0 %v4250_v46  ;;  %v4278_v46 = vld [vmem:[%s5494_s1 + $0x728] sm:$0xff]  }
  0xd1   :  { %3967 = vmatpush3.bf16.msra.mxu1 %v4251_v47  ;;  %3940 = vmatprep.subr.bf16.mxu0 %v4252_v48  ;;  %v3326_v47 = vcombine.low %v60_v42, %v76_v43  ;;  %v61_v42 = vld [vmem:[%s5495_s0 + $0x170] sm:$0xff] }
  0xd2   :  { %3968 = vmatprep.subr.bf16.mxu1 %v4253_v49  ;;  %v77_v43 = vld [vmem:[%s5495_s0 + $0x1f0] sm:$0xff] }
  0xd4   :  { %3941 = vmatpush3.bf16.msra.mxu0 %v4254_v50  ;;  %v4279_v50 = vld [vmem:[%s5494_s1 + $0x7a8] sm:$0xff]  }
  0xd5   :  { %3969 = vmatpush3.bf16.msra.mxu1 %v4255_v51  ;;  %3942 = vmatprep.subr.bf16.mxu0 %v4256_v52 }
  0xd6   :  { %3970 = vmatprep.subr.bf16.mxu1 %v4257_v54 }
  0xd8   :  { %3943 = vmatpush3.bf16.msra.mxu0 %v4258_v56  ;;  %v4281_v56 = vld [vmem:[%s5494_s1 + $0x7e0] sm:$0xff]  }
  0xd9   :  { %3971 = vmatpush3.bf16.msra.mxu1 %v4259_v58  ;;  %3944 = vmatprep.subr.bf16.mxu0 %v4260_v61  ;;  %v4283_v61 = vld [vmem:[%s5494_s1 + $0x7a0] sm:$0xff]  }
  0xda   :  { %3972 = vmatprep.subr.bf16.mxu1 %v4261_v0  ;;  %v4284_v0 = vld [vmem:[%s5494_s1 + $0x758] sm:$0xff]  }
  0xdc   :  { %3945 = vmatpush3.bf16.msra.mxu0 %v4262_v2 }
  0xdd   :  { %3973 = vmatpush3.bf16.msra.mxu1 %v4263_v4  ;;  %3946 = vmatprep.subr.bf16.mxu0 %v4264_v7  ;;  %v4287_v4 = vld [vmem:[%s5494_s1 + $0x798] sm:$0xff]  }
  0xde   :  { %3974 = vmatprep.subr.bf16.mxu1 %v4265_v9  ;;  %v4290_v9 = vld [vmem:[%s5494_s1 + $0x710] sm:$0xff]  }
  0xe0   :  { %3947 = vmatpush3.bf16.msra.mxu0 %v4266_v10 }
  0xe1   :  { %3975 = vmatpush3.bf16.msra.mxu1 %v4267_v11  ;;  %3988 = vmatprep.subr.bf16.mxu0 %v4268_v20  ;;  %v4294_v20 = vld [vmem:[%s5494_s1 + $0x708] sm:$0xff]  }
  0xe2   :  { %4016 = vmatprep.subr.bf16.mxu1 %v4269_v21 }
  0xe3   :  { %v3612_v53 = vpop.f32.mrf.mxu0  ;;  %3075 = vmatmul.mubr.bf16.vlgmr.msra.gmra.mxu0 %v3292_v15  ;;  %v4292_v15 = vld [vmem:[%s5494_s1 + $0x748] sm:$0xff]  }
  0xe4   :  { %v3640_v55 = vpop.f32.mrf.mxu1  ;;  %3124 = vmatmul.mubr.bf16.vlgmr.msra.gmra.mxu1 %v3294_v18  ;;  %3989 = vmatpush3.bf16.msra.mxu0 %v4270_v22  ;;  %v4293_v18 = vld [vmem:[%s5494_s1 + $0x7c8] sm:$0xff]  }
  0xe5   :  { %v3613_v57 = vpop.f32.mrf.mxu0  ;;  %4017 = vmatpush3.bf16.msra.mxu1 %v4271_v23  ;;  %3990 = vmatprep.subr.bf16.mxu0 %v4272_v26  ;;  %v4295_v23 = vld [vmem:[%s5494_s1 + $0x788] sm:$0xff]  }
  0xe6   :  { %v3614_v59 = vadd.f32 %v3613_v57, %v3612_v53  ;;  %v3641_v60 = vpop.f32.mrf.mxu1  ;;  %4018 = vmatprep.subr.bf16.mxu1 %v4273_v28  ;;  %3082 = vmatprep.mubr.bf16.mxu0 %v3325_v36  ;;  %v4280_v53 = vld [vmem:[%s5494_s1 + $0x760] sm:$0xff]   ;;  %v29_v36 = vld [vmem:[%s5495_s0 + $0x70] sm:$0xff] }
  0xe7   :  { %v3642_v62 = vadd.f32 %v3641_v60, %v3640_v55  ;;  %v3615_v63 = vpop.f32.mrf.mxu0  ;;  %3131 = vmatprep.mubr.bf16.mxu1 %v3327_v45  ;;  %v4297_v28 = vld [vmem:[%s5494_s1 + $0x7c0] sm:$0xff]  }
  0xe8   :  { %v3643_v1 = vpop.f32.mrf.mxu1  ;;  %v2489_v25 = vadd.f32 %v3614_v59, %v3267_v24  ;;  %3991 = vmatpush3.bf16.msra.mxu0 %v4274_v30  ;;  %v4282_v59 = vld [vmem:[%s5494_s1 + $0x720] sm:$0xff]  }
  0xe9   :  { %v3616_v3 = vpop.f32.mrf.mxu0  ;;  %4019 = vmatpush3.bf16.msra.mxu1 %v4275_v32  ;;  %3992 = vmatprep.subr.bf16.mxu0 %v4276_v38  ;;  %v4298_v32 = vld [vmem:[%s5494_s1 + $0x700] sm:$0xff]  }
  0xea   :  { %v3617_v5 = vadd.f32 %v3616_v3, %v3615_v63  ;;  %v3644_v6 = vpop.f32.mrf.mxu1  ;;  %v5169_v29 = vadd.f32 %v3642_v62, %v2489_v25  ;;  %4020 = vmatprep.subr.bf16.mxu1 %v4277_v41  ;;  %v4286_v3 = vld [vmem:[%s5494_s1 + $0x718] sm:$0xff]  }
  0xeb   :  { %v3645_v8 = vadd.f32 %v3644_v6, %v3643_v1  ;;  %v3618_v34 = vpop.f32.mrf.mxu0  ;;  %3083 = vmatmul.mubr.bf16.gmra.mxu0 %v3324_v37  ;;  %v4285_v1 = vld [vmem:[%s5494_s1 + $0x7d8] sm:$0xff]  }
  0xec   :  { %v2492_v27 = vadd.f32 %v3617_v5, %v3267_v24  ;;  %v3646_v40 = vpop.f32.mrf.mxu1  ;;  %3993 = vmatpush3.bf16.msra.mxu0 %v4278_v46  ;;  %3132 = vmatmul.mubr.bf16.gmra.mxu1 %v3326_v47  ;;  %v4288_v5 = vld [vmem:[%s5494_s1 + $0x750] sm:$0xff]   ;;  %v30_v37 = vld [vmem:[%s5495_s0 + $0x78] sm:$0xff] }
  0xed   :  { %v3619_v39 = vpop.f32.mrf.mxu0  ;;  %4021 = vmatpush3.bf16.msra.mxu1 %v4279_v50  ;;  %3994 = vmatprep.subr.bf16.mxu0 %v4280_v53  ;;  %v46_v41 = vld [vmem:[%s5495_s0 + $0xf8] sm:$0xff] }
  0xee   :  { %v5174_v31 = vadd.f32 %v3645_v8, %v2492_v27  ;;  %v3620_v44 = vadd.f32 %v3619_v39, %v3618_v34  ;;  %v3647_v49 = vpop.f32.mrf.mxu1  ;;  %4022 = vmatprep.subr.bf16.mxu1 %v4281_v56  ;;  %v4289_v8 = vld [vmem:[%s5494_s1 + $0x7d0] sm:$0xff]   ;;  %v4296_v27 = vld [vmem:[%s5494_s1 + $0x740] sm:$0xff]   ;;  %v3298_v46 = vcombine.low %v30_v37, %v46_v41  ;;  %v3299_v47 = vcombine.high %v30_v37, %v46_v41  ;;  %v78_v50 = vld [vmem:[%s5495_s0 + $0x1f8] sm:$0xff] }
  0xef   :  { %v3621_v48 = vpop.f32.mrf.mxu0  ;;  %v3648_v52 = vadd.f32 %v3647_v49, %v3646_v40  ;;  %v62_v49 = vld [vmem:[%s5495_s0 + $0x178] sm:$0xff] }
  0xf0   :  { %v2497_v51 = vadd.f32 %v3620_v44, %v3267_v24  ;;  %v3649_v55 = vpop.f32.mrf.mxu1  ;;  %3995 = vmatpush3.bf16.msra.mxu0 %v4282_v59  ;;  %3221 = vmatprep.mubr.bf16.mxu1 %v3299_v47 }
  0xf1   :  { %v3622_v54 = vpop.f32.mrf.mxu0  ;;  %4023 = vmatpush3.bf16.msra.mxu1 %v4283_v61  ;;  %3996 = vmatprep.subr.bf16.mxu0 %v4284_v0  ;;  %v3330_v0 = vcombine.low %v62_v49, %v78_v50 }
  0xf2   :  { %v5209_v57 = vadd.f32 %v3648_v52, %v2497_v51  ;;  %v3623_v58 = vadd.f32 %v3622_v54, %v3621_v48  ;;  %v3650_v60 = vpop.f32.mrf.mxu1  ;;  %4024 = vmatprep.subr.bf16.mxu1 %v4285_v1  ;;  %v3329_v48 = vcombine.high %v61_v42, %v77_v43  ;;  %v3331_v51 = vcombine.high %v62_v49, %v78_v50 }
  0xf3   :  { %v3651_v63 = vadd.f32 %v3650_v60, %v3649_v55 }
  0xf4   :  { %v2500_v62 = vadd.f32 %v3623_v58, %v3267_v24  ;;  %3997 = vmatpush3.bf16.msra.mxu0 %v4286_v3 }
  0xf5   :  { %4025 = vmatpush3.bf16.msra.mxu1 %v4287_v4  ;;  %3998 = vmatprep.subr.bf16.mxu0 %v4288_v5 }
  0xf6   :  { %v5223_v2 = vadd.f32 %v3651_v63, %v2500_v62  ;;  %4026 = vmatprep.subr.bf16.mxu1 %v4289_v8  ;;  %v3328_v62 = vcombine.low %v61_v42, %v77_v43 }
  0xf8   :  { %3999 = vmatpush3.bf16.msra.mxu0 %v4290_v9 }
  0xf9   :  { %4027 = vmatpush3.bf16.msra.mxu1 %v4291_v12  ;;  %4000 = vmatprep.subr.bf16.mxu0 %v4292_v15 }
  0xfa   :  { %4028 = vmatprep.subr.bf16.mxu1 %v4293_v18 }
  0xfc   :  { %4001 = vmatpush3.bf16.msra.mxu0 %v4294_v20 }
  0xfd   :  { %4029 = vmatpush3.bf16.msra.mxu1 %v4295_v23  ;;  %4002 = vmatprep.subr.bf16.mxu0 %v4296_v27 }
  0xfe   :  { %4030 = vmatprep.subr.bf16.mxu1 %v4297_v28 }
 0x100   :  { %4003 = vmatpush3.bf16.msra.mxu0 %v4298_v32 }
 0x101   :  { %4031 = vmatpush3.bf16.msra.mxu1 %v4299_v33 }
 0x103   :  { %v3668_v6 = vpop.f32.mrf.mxu0 }
 0x104   :  { %v3696_v7 = vpop.f32.mrf.mxu1  ;;  %3222 = vmatmul.mubr.bf16.vlgmr.msra.gmra.mxu1 %v3298_v46 }
 0x105   :  { %v3669_v10 = vpop.f32.mrf.mxu0  ;;  %3229 = vmatprep.mubr.bf16.mxu1 %v3331_v51 }
 0x106   :  { %v3697_v11 = vpop.f32.mrf.mxu1  ;;  %v3670_v13 = vadd.f32 %v3669_v10, %v3668_v6 }
 0x107   :  { %v3698_v14 = vadd.f32 %v3697_v11, %v3696_v7  ;;  %v3671_v16 = vpop.f32.mrf.mxu0 }
 0x108   :  { %v3699_v17 = vpop.f32.mrf.mxu1  ;;  %v2587_v19 = vadd.f32 %v3670_v13, %v5169_v29 }
 0x109   :  { %v3672_v21 = vpop.f32.mrf.mxu0 }
 0x10a   :  { %v3700_v22 = vpop.f32.mrf.mxu1  ;;  %v5256_v24 = vadd.f32 %v3698_v14, %v2587_v19  ;;  %v3673_v25 = vadd.f32 %v3672_v21, %v3671_v16 }
 0x10b   :  { %v3701_v26 = vadd.f32 %v3700_v22, %v3699_v17  ;;  %v3674_v30 = vpop.f32.mrf.mxu0 }
 0x10c   :  { %v2590_v29 = vadd.f32 %v3673_v25, %v5174_v31  ;;  %v45_v31 = vld [vmem:[%s5495_s0 + $0xf0] sm:$0xff]  ;;  %v3702_v44 = vpop.f32.mrf.mxu1  ;;  %3230 = vmatmul.mubr.bf16.gmra.mxu1 %v3330_v0 }
 0x10d   :  { %v3675_v35 = vpop.f32.mrf.mxu0  ;;  %v3296_v39 = vcombine.low %v29_v36, %v45_v31  ;;  %v3297_v40 = vcombine.high %v29_v36, %v45_v31 }
 0x10e   :  { %v5271_v34 = vadd.f32 %v3701_v26, %v2590_v29  ;;  %v3676_v38 = vadd.f32 %v3675_v35, %v3674_v30  ;;  %v3703_v53 = vpop.f32.mrf.mxu1 }
 0x10f   :  { %v3677_v45 = vpop.f32.mrf.mxu0  ;;  %3172 = vmatprep.mubr.bf16.mxu0 %v3297_v40  ;;  %v3704_v55 = vadd.f32 %v3703_v53, %v3702_v44 }
 0x110   :  { %v2595_v52 = vadd.f32 %v3676_v38, %v5209_v57  ;;  %3173 = vmatmul.mubr.bf16.vlgmr.msra.gmra.mxu0 %v3296_v39  ;;  %v3705_v58 = vpop.f32.mrf.mxu1 }
 0x111   :  { %v3678_v54 = vpop.f32.mrf.mxu0  ;;  %3180 = vmatprep.mubr.bf16.mxu0 %v3329_v48 }
 0x112   :  { %v3679_v56 = vadd.f32 %v3678_v54, %v3677_v45  ;;  %v5298_v59 = vadd.f32 %v3704_v55, %v2595_v52  ;;  %v3706_v61 = vpop.f32.mrf.mxu1 }
 0x113   :  { %v3707_v63 = vadd.f32 %v3706_v61, %v3705_v58 }
 0x114   :  { %v2598_v60 = vadd.f32 %v3679_v56, %v5223_v2 }
 0x116   :  { %v5301_v1 = vadd.f32 %v3707_v63, %v2598_v60 }
 0x118   :  { %3181 = vmatmul.mubr.bf16.gmra.mxu0 %v3328_v62 }
 0x123   :  { %v5303_v57 = vpop.f32.mrf.mxu0 }
 0x124   :  { %v5309_v5 = vpop.f32.mrf.mxu1 }
 0x125   :  { %v5305_v3 = vpop.f32.mrf.mxu0 }
 0x126   :  { %v5313_v7 = vpop.f32.mrf.mxu1 }
 0x127   :  { %v5307_v4 = vpop.f32.mrf.mxu0 }
 0x128   :  { %v5317_v8 = vpop.f32.mrf.mxu1 }
 0x129   :  { %v5311_v6 = vpop.f32.mrf.mxu0 }
 0x12a   :  { %v5321_v10 = vpop.f32.mrf.mxu1 }
 0x12b   :  { %v5315_v2 = vpop.f32.mrf.mxu0 }
 0x12c   :  { %v5325_v12 = vpop.f32.mrf.mxu1 }
 0x12d   :  { %v5319_v9 = vpop.f32.mrf.mxu0 }
 0x12e   :  { %v5329_v14 = vpop.f32.mrf.mxu1 }
 0x12f   :  { %v5323_v11 = vpop.f32.mrf.mxu0 }
 0x130   :  { %v5331_v16 = vpop.f32.mrf.mxu1 }
 0x131   :  { %v5327_v13 = vpop.f32.mrf.mxu0 }
 0x132   :  { %v5333_v18 = vpop.f32.mrf.mxu1 }
 0x143   :  { %v3780_v15 = vpop.f32.mrf.mxu0 }
 0x144   :  { %v3808_v20 = vpop.f32.mrf.mxu1 }
 0x145   :  { %v3781_v17 = vpop.f32.mrf.mxu0 }
 0x146   :  { %v3809_v22 = vpop.f32.mrf.mxu1 }
 0x147   :  { %v3783_v19 = vpop.f32.mrf.mxu0 }
 0x148   :  { %v5337_v25 = vpop.f32.mrf.mxu1 }
 0x149   :  { %v3784_v21 = vpop.f32.mrf.mxu0 }
 0x14a   :  { %v5341_v27 = vpop.f32.mrf.mxu1 }
 0x14b   :  { %v5335_v23 = vpop.f32.mrf.mxu0 }
 0x14c   :  { %v5343_v28 = vpop.f32.mrf.mxu1 }
 0x14d   :  { %v5339_v26 = vpop.f32.mrf.mxu0 }
 0x14e   :  { %v5347_v30 = vpop.f32.mrf.mxu1 }
 0x14f   :  { %v5345_v29 = vpop.f32.mrf.mxu0 }
 0x150   :  { %v5351_v35 = vpop.f32.mrf.mxu1 }
 0x151   :  { %v5349_v32 = vpop.f32.mrf.mxu0 }
 0x152   :  { %v5353_v31 = vpop.f32.mrf.mxu1 }
 0x163   :  { %v3836_v33 = vpop.f32.mrf.mxu0 }
 0x164   :  { %v5355_v37 = vpop.f32.mrf.mxu1 }
 0x165   :  { %v3837_v36 = vpop.f32.mrf.mxu0 }
 0x166   :  { %v3865_v39 = vpop.f32.mrf.mxu1 }
 0x167   :  { %v5357_v38 = vpop.f32.mrf.mxu0 }
 0x168   :  { %v5359_v41 = vpop.f32.mrf.mxu1 }
 0x169   :  { %v3840_v40 = vpop.f32.mrf.mxu0 }
 0x16a   :  { %v5363_v43 = vpop.f32.mrf.mxu1 }
 0x16b   :  { %v5361_v42 = vpop.f32.mrf.mxu0 }
 0x16c   :  { %v5367_v45 = vpop.f32.mrf.mxu1 }
 0x16d   :  { %v5365_v44 = vpop.f32.mrf.mxu0 }
 0x16e   :  { %v5371_v47 = vpop.f32.mrf.mxu1 }
 0x16f   :  { %v5369_v46 = vpop.f32.mrf.mxu0  ;;  %5499 = vst [vmem:[#allocation3_spill] sm:$0xff] %v5371_v47 }
 0x170   :  { %5498 = vst [vmem:[#allocation2_spill] sm:$0xff] %v5369_v46  ;;  %v5375_v49 = vpop.f32.mrf.mxu1 }
 0x171   :  { %v5373_v48 = vpop.f32.mrf.mxu0  ;;  %5501 = vst [vmem:[#allocation5_spill] sm:$0xff] %v5375_v49 }
 0x172   :  { %5500 = vst [vmem:[#allocation4_spill] sm:$0xff] %v5373_v48  ;;  %v5377_v51 = vpop.f32.mrf.mxu1 }
 0x173   :  { %5502 = vst [vmem:[#allocation6_spill] sm:$0xff] %v5377_v51 }
 0x183   :  { %v3892_v50 = vpop.f32.mrf.mxu0 }
 0x184   :  { %v5379_v53 = vpop.f32.mrf.mxu1 }
 0x185   :  { %v3893_v52 = vpop.f32.mrf.mxu0 }
 0x186   :  { %v5383_v55 = vpop.f32.mrf.mxu1 }
 0x187   :  { %v5381_v54 = vpop.f32.mrf.mxu0 }
 0x188   :  { %v5387_v58 = vpop.f32.mrf.mxu1 }
 0x189   :  { %v5385_v56 = vpop.f32.mrf.mxu0  ;;  %5503 = vst [vmem:[#allocation7_spill] sm:$0xff] %v5387_v58  ;;  %v3726_v58 = vadd.f32 %v5305_v3, %v5303_v57 }
 0x18a   :  { %v5391_v61 = vpop.f32.mrf.mxu1 }
 0x18b   :  { %v5389_v60 = vpop.f32.mrf.mxu0  ;;  %5505 = vst [vmem:[#allocation9_spill] sm:$0xff] %v5391_v61 }
 0x18c   :  { %5504 = vst [vmem:[#allocation8_spill] sm:$0xff] %v5389_v60  ;;  %v5393_v62 = vpop.f32.mrf.mxu1 }
 0x18d   :  { %5506 = vst [vmem:[#allocation10_spill] sm:$0xff] %v5393_v62  ;;  %v5395_v63 = vpop.f32.mrf.mxu0  ;;  %v2685_v62 = vadd.f32 %v3726_v58, %v5256_v24  ;;  %v3757_v24 = vadd.f32 %v5321_v10, %v5317_v8 }
 0x18e   :  { %5507 = vst [vmem:[#allocation11_spill] sm:$0xff] %v5395_v63  ;;  %v5397_v0 = vpop.f32.mrf.mxu1 }
 0x18f   :  { %5508 = vst [vmem:[#allocation12_spill] sm:$0xff] %v5397_v0  ;;  %v5399_v51 = vpop.f32.mrf.mxu0  ;;  %v3754_v0 = vadd.f32 %v5313_v7, %v5309_v5  ;;  %v3785_v5 = vadd.f32 %v3784_v21, %v3783_v19 }
 0x190   :  { %5509 = vst [vmem:[#allocation13_spill] sm:$0xff] %v5399_v51  ;;  %v5401_v49 = vpop.f32.mrf.mxu1  ;;  %v3729_v51 = vadd.f32 %v5311_v6, %v5307_v4  ;;  %v3760_v6 = vadd.f32 %v5329_v14, %v5325_v12  ;;  %v3866_v14 = vadd.f32 %v3865_v39, %v5355_v37 }
 0x191   :  { %5510 = vst [vmem:[#allocation14_spill] sm:$0xff] %v5401_v49  ;;  %v5403_v48 = vpop.f32.mrf.mxu0  ;;  %v3782_v49 = vadd.f32 %v3781_v17, %v3780_v15  ;;  %v2734_v3 = vadd.f32 %v3754_v0, %v2685_v62  ;;  %v3838_v17 = vadd.f32 %v3837_v36, %v3836_v33  ;;  %v3816_v33 = vadd.f32 %v5347_v30, %v5343_v28 }
 0x192   :  { %5511 = vst [vmem:[#allocation15_spill] sm:$0xff] %v5403_v48  ;;  %v5407_v47 = vpop.f32.mrf.mxu1  ;;  %v3732_v48 = vadd.f32 %v5319_v9, %v5315_v2  ;;  %v3735_v2 = vadd.f32 %v5327_v13, %v5323_v11  ;;  %v3813_v11 = vadd.f32 %v5341_v27, %v5337_v25  ;;  %v3869_v28 = vadd.f32 %v5363_v43, %v5359_v41 }
 0x193   :  { %5512 = vst [vmem:[#allocation16_spill] sm:$0xff] %v5407_v47  ;;  %v2688_v47 = vadd.f32 %v3729_v51, %v5271_v34  ;;  %v2783_v58 = vadd.f32 %v3782_v49, %v2734_v3  ;;  %v3788_v34 = vadd.f32 %v5339_v26, %v5335_v23  ;;  %v5516_v51 = vld [vmem:[#allocation4_spill] sm:$0xff] }
 0x194   :  { %v2693_v4 = vadd.f32 %v3732_v48, %v5298_v59  ;;  %v2696_v21 = vadd.f32 %v3735_v2, %v5301_v1  ;;  %v3763_v59 = vadd.f32 %v5333_v18, %v5331_v16  ;;  %v3791_v1 = vadd.f32 %v5349_v32, %v5345_v29  ;;  %v5517_v41 = vld [vmem:[#allocation8_spill] sm:$0xff] }
 0x195   :  { %v2737_v15 = vadd.f32 %v3757_v24, %v2688_v47  ;;  %v3894_v47 = vadd.f32 %v3893_v52, %v3892_v50  ;;  %v3844_v18 = vadd.f32 %v5365_v44, %v5361_v42  ;;  %v3922_v29 = vadd.f32 %v5383_v55, %v5379_v53  ;;  %v5514_v44 = vld [vmem:[#allocation3_spill] sm:$0xff]  ;;  %v5515_v50 = vld [vmem:[#allocation2_spill] sm:$0xff] }
 0x196   :  { %v2742_v19 = vadd.f32 %v3760_v6, %v2693_v4  ;;  %v2745_v16 = vadd.f32 %v3763_v59, %v2696_v21  ;;  %v3897_v32 = vadd.f32 %v5385_v56, %v5381_v54  ;;  %v3872_v49 = vadd.f32 %v5514_v44, %v5367_v45  ;;  %v5518_v43 = vld [vmem:[#allocation11_spill] sm:$0xff]  ;;  %v5519_v54 = vld [vmem:[#allocation5_spill] sm:$0xff]  ;;  %v5520_v56 = vld [vmem:[#allocation6_spill] sm:$0xff] }
 0x197   :  { %v2786_v10 = vadd.f32 %v3785_v5, %v2737_v15  ;;  %v3847_v52 = vadd.f32 %v5516_v51, %v5515_v50  ;;  %v3900_v3 = vadd.f32 %v5518_v43, %v5517_v41  ;;  %v3875_v5 = vadd.f32 %v5520_v56, %v5519_v54  ;;  %v5521_v45 = vld [vmem:[#allocation7_spill] sm:$0xff]  ;;  %v5522_v6 = vld [vmem:[#allocation9_spill] sm:$0xff] }
 0x198   :  { %v2791_v26 = vadd.f32 %v3788_v34, %v2742_v19  ;;  %v3925_v2 = vadd.f32 %v5522_v6, %v5521_v45  ;;  %v5525_v19 = vld [vmem:[#allocation12_spill] sm:$0xff]  ;;  %v5526_v59 = vld [vmem:[#allocation13_spill] sm:$0xff] }
 0x199   :  { %v2835_v36 = vadd.f32 %v3813_v11, %v2786_v10  ;;  %v5524_v10 = vld [vmem:[#allocation10_spill] sm:$0xff]  ;;  %v5527_v11 = vld [vmem:[#allocation15_spill] sm:$0xff] }
 0x19a   :  { %v2840_v39 = vadd.f32 %v3816_v33, %v2791_v26  ;;  %v3928_v21 = vadd.f32 %v5525_v19, %v5524_v10 }
 0x19c   :  { %v2889_v42 = vadd.f32 %v3844_v18, %v2840_v39 }
 0x19e   :  { %v2938_v55 = vadd.f32 %v3872_v49, %v2889_v42 }
 0x1a3   :  { %v3948_v46 = vpop.f32.mrf.mxu0 }
 0x1a4   :  { %v5409_v60 = vpop.f32.mrf.mxu1 }
 0x1a5   :  { %5513 = vst [vmem:[#allocation17_spill] sm:$0xff] %v5409_v60  ;;  %v3949_v61 = vpop.f32.mrf.mxu0  ;;  %v3810_v60 = vadd.f32 %v3809_v22, %v3808_v20  ;;  %v3841_v22 = vadd.f32 %v3840_v40, %v5357_v38  ;;  %v2794_v38 = vadd.f32 %v3791_v1, %v2745_v16  ;;  %v3819_v40 = vadd.f32 %v5353_v31, %v5351_v35 }
 0x1a6   :  { %v5416_v63 = vpop.f32.mrf.mxu1  ;;  %v3950_v35 = vadd.f32 %v3949_v61, %v3948_v46 }
 0x1a7   :  { %v5420_v57 = vpop.f32.mrf.mxu0  ;;  %v2832_v8 = vadd.f32 %v3810_v60, %v2783_v58  ;;  %v2884_v48 = vadd.f32 %v3841_v22, %v2835_v36  ;;  %v2843_v0 = vadd.f32 %v3819_v40, %v2794_v38 }
 0x1a8   :  { %v5425_v7 = vpop.f32.mrf.mxu1 }
 0x1a9   :  { %v3952_v9 = vpop.f32.mrf.mxu0  ;;  %v2881_v13 = vadd.f32 %v3838_v17, %v2832_v8  ;;  %v2933_v62 = vadd.f32 %v3869_v28, %v2884_v48  ;;  %v2892_v58 = vadd.f32 %v3847_v52, %v2843_v0  ;;  %v2987_v8 = vadd.f32 %v3900_v3, %v2938_v55  ;;  %v5529_v48 = vld [vmem:[#allocation16_spill] sm:$0xff] }
 0x1aa   :  { %v5434_v20 = vpop.f32.mrf.mxu1  ;;  %v3953_v61 = vadd.f32 %v3952_v9, %v5420_v57  ;;  %v5528_v9 = vld [vmem:[#allocation14_spill] sm:$0xff] }
 0x1ab   :  { %v3954_v12 = vpop.f32.mrf.mxu0  ;;  %v2930_v27 = vadd.f32 %v3866_v14, %v2881_v13  ;;  %v2982_v53 = vadd.f32 %v3897_v32, %v2933_v62  ;;  %v3903_v13 = vadd.f32 %v5527_v11, %v5526_v59  ;;  %v2941_v33 = vadd.f32 %v3875_v5, %v2892_v58 }
 0x1ac   :  { %v3982_v23 = vpop.f32.mrf.mxu1  ;;  %v5523_v17 = vld [vmem:[#allocation17_spill] sm:$0xff]  ;;  %v3931_v39 = vadd.f32 %v5529_v48, %v5528_v9  ;;  %v3981_v40 = vadd.f32 %v5434_v20, %v5425_v7 }
 0x1ad   :  { %v3955_v25 = vpop.f32.mrf.mxu0  ;;  %v2979_v30 = vadd.f32 %v3894_v47, %v2930_v27  ;;  %v3978_v46 = vadd.f32 %v5416_v63, %v5523_v17  ;;  %v3031_v22 = vadd.f32 %v3925_v2, %v2982_v53  ;;  %v3036_v27 = vadd.f32 %v3928_v21, %v2987_v8 }
 0x1ae   :  { %v3983_v37 = vpop.f32.mrf.mxu1  ;;  %v3956_v1 = vadd.f32 %v3955_v25, %v3954_v12  ;;  %v2990_v57 = vadd.f32 %v3903_v13, %v2941_v33 }
 0x1af   :  { %v3957_v60 = vpop.f32.mrf.mxu0  ;;  %v3028_v24 = vadd.f32 %v3922_v29, %v2979_v30  ;;  %v3080_v16 = vadd.f32 %v3953_v61, %v3031_v22  ;;  %v3984_v42 = vadd.f32 %v3983_v37, %v3982_v23 }
 0x1b0   :  { %v3985_v31 = vpop.f32.mrf.mxu1  ;;  %v3085_v32 = vadd.f32 %v3956_v1, %v3036_v27  ;;  %v3039_v52 = vadd.f32 %v3931_v39, %v2990_v57 }
 0x1b1   :  { %v3958_v4 = vpop.f32.mrf.mxu0  ;;  %v3077_v15 = vadd.f32 %v3950_v35, %v3028_v24  ;;  %v3129_v44 = vadd.f32 %v3981_v40, %v3080_v16 }
 0x1b2   :  { %v3986_v34 = vpop.f32.mrf.mxu1  ;;  %v3959_v12 = vadd.f32 %v3958_v4, %v3957_v60  ;;  %v3134_v3 = vadd.f32 %v3984_v42, %v3085_v32 }
 0x1b3   :  { %v3126_v47 = vadd.f32 %v3978_v46, %v3077_v15  ;;  %v3987_v20 = vadd.f32 %v3986_v34, %v3985_v31 }
 0x1b4   :  { %v3088_v24 = vadd.f32 %v3959_v12, %v3039_v52 }
 0x1b6   :  { %v3137_v45 = vadd.f32 %v3987_v20, %v3088_v24 }
 0x1c4   :  { %v4032_v26 = vpop.f32.mrf.mxu1 }
 0x1c6   :  { %v4033_v63 = vpop.f32.mrf.mxu1 }
 0x1c7   :  { %v4034_v30 = vadd.f32 %v4033_v63, %v4032_v26 }
 0x1c8   :  { %v4035_v29 = vpop.f32.mrf.mxu1 }
 0x1ca   :  { %v4036_v51 = vpop.f32.mrf.mxu1 }
 0x1cb   :  { %v4037_v41 = vadd.f32 %v4036_v51, %v4035_v29 }
 0x1cc   :  { %v4038_v43 = vpop.f32.mrf.mxu1 }
 0x1ce   :  { %v4039_v37 = vpop.f32.mrf.mxu1 }
 0x1cf   :  { %v4040_v56 = vadd.f32 %v4039_v37, %v4038_v43 }
 0x1d0   :  { %v4004_v14 = vpop.f32.mrf.mxu0  ;;  %v4041_v5 = vpop.f32.mrf.mxu1 }
 0x1d2   :  { %v4005_v36 = vpop.f32.mrf.mxu0  ;;  %v4042_v31 = vpop.f32.mrf.mxu1 }
 0x1d3   :  { %v4006_v18 = vadd.f32 %v4005_v36, %v4004_v14  ;;  %v4043_v61 = vadd.f32 %v4042_v31, %v4041_v5 }
 0x1d4   :  { %v4007_v38 = vpop.f32.mrf.mxu0 }
 0x1d5   :  { %v3175_v28 = vadd.f32 %v4006_v18, %v3126_v47 }
 0x1d6   :  { %v4008_v25 = vpop.f32.mrf.mxu0 }
 0x1d7   :  { %v3224_v49 = vadd.f32 %v4034_v30, %v3175_v28  ;;  %v4009_v50 = vadd.f32 %v4008_v25, %v4007_v38 }
 0x1d8   :  { %v4010_v62 = vpop.f32.mrf.mxu0 }
 0x1d9   :  { %v3238_v35 = vmax.f32 %v3224_v49, 0.0  ;;  %v3178_v0 = vadd.f32 %v4009_v50, %v3129_v44 }
 0x1da   :  { %v4011_v7 = vpop.f32.mrf.mxu0 }
 0x1db   :  { %v3592_v53 = vpack.c.bf16 %v3238_v35, %v3238_v35  ;;  %v3227_v55 = vadd.f32 %v4037_v41, %v3178_v0  ;;  %v4012_v23 = vadd.f32 %v4011_v7, %v4010_v62 }
 0x1dc   :  { %v4013_v60 = vpop.f32.mrf.mxu0 }
 0x1dd   :  { %3259 = vst.msk [vmem:[%s5497_s3] sm:$0xf] %vm3258_vm0, %v3592_v53  ;;  %v3239_v58 = vmax.f32 %v3227_v55, 0.0  ;;  %v3183_v54 = vadd.f32 %v4012_v23, %v3134_v3 }
 0x1de   :  { %v4014_v4 = vpop.f32.mrf.mxu0 }
 0x1df   :  { %v3593_v6 = vpack.c.bf16 %v3239_v58, %v3239_v58  ;;  %v3232_v2 = vadd.f32 %v4040_v56, %v3183_v54  ;;  %v4015_v15 = vadd.f32 %v4014_v4, %v4013_v60 }
 0x1e1   :  { %3260 = vst.msk [vmem:[%s5497_s3 + $0x4] sm:$0xf] %vm3258_vm0, %v3593_v6  ;;  %v3240_v17 = vmax.f32 %v3232_v2, 0.0  ;;  %v3186_v46 = vadd.f32 %v4015_v15, %v3137_v45 }
 0x1e3   :  { %v3594_v34 = vpack.c.bf16 %v3240_v17, %v3240_v17  ;;  %v3235_v8 = vadd.f32 %v4043_v61, %v3186_v46 }
 0x1e5   :  { %3261 = vst.msk [vmem:[%s5497_s3 + $0x8] sm:$0xf] %vm3258_vm0, %v3594_v34  ;;  %v3241_v10 = vmax.f32 %v3235_v8, 0.0 }
 0x1e7   :  { %v3595_v19 = vpack.c.bf16 %v3241_v10, %v3241_v10 }
 0x1e9   :  { %3262 = vst.msk [vmem:[%s5497_s3 + $0xc] sm:$0xf] %vm3258_vm0, %v3595_v19 }

// kernel: beta_vae_forward.15
= control target key start
LH: loop header
LB: loop body
LE: loop exit
PB: predicated region body
PF: predicated region fallthrough
CT: control target
= control target key end

     0   :  { %vm1386_vm0 = vcmask 519168   ;;  %s2557_s1 = inlined_call_operand.vmem [shape: bf16[1024,64], index: 1, kind: input, shape index: {}]   ;;  %s2558_s0 = inlined_call_operand.vmem [shape: bf16[128,1024], index: 0, kind: input, shape index: {}]   ;;  %s2559_s2 = inlined_call_operand.vmem [shape: f32[1,64], index: 2, kind: input, shape index: {}]   ;;  %s2560_s3 = inlined_call_operand.vmem [shape: bf16[128,64], index: 3, kind: output, shape index: {}]  }
   0x1   :  { %v1824_v0 = vld [vmem:[%s2557_s1 + $0x78] sm:$0xff]   ;;  %v1828_v4 = vld [vmem:[%s2557_s1 + $0x70] sm:$0xff]   ;;  %v1832_v8 = vld [vmem:[%s2557_s1 + $0x68] sm:$0xff]  }
   0x2   :  { %v1825_v1 = vld [vmem:[%s2557_s1 + $0xf8] sm:$0xff]   ;;  %1568 = vmatprep.subr.bf16.mxu0 %v1824_v0  ;;  %v1829_v5 = vld [vmem:[%s2557_s1 + $0xf0] sm:$0xff]   ;;  %v1833_v9 = vld [vmem:[%s2557_s1 + $0xe8] sm:$0xff]  }
   0x3   :  { %v1826_v2 = vld [vmem:[%s2557_s1 + $0x38] sm:$0xff]   ;;  %1632 = vmatprep.subr.bf16.mxu1 %v1825_v1  ;;  %v1830_v6 = vld [vmem:[%s2557_s1 + $0x30] sm:$0xff]   ;;  %v1834_v10 = vld [vmem:[%s2557_s1 + $0x28] sm:$0xff]  }
   0x4   :  { %v1827_v3 = vld [vmem:[%s2557_s1 + $0xb8] sm:$0xff]   ;;  %1569 = vmatpush3.bf16.msra.mxu0 %v1826_v2  ;;  %v1831_v7 = vld [vmem:[%s2557_s1 + $0xb0] sm:$0xff]   ;;  %v1835_v11 = vld [vmem:[%s2557_s1 + $0xa8] sm:$0xff]  }
   0x5   :  { %1633 = vmatpush3.bf16.msra.mxu1 %v1827_v3  ;;  %1570 = vmatprep.subr.bf16.mxu0 %v1828_v4  ;;  %v1836_v12 = vld [vmem:[%s2557_s1 + $0x60] sm:$0xff]   ;;  %v1840_v16 = vld [vmem:[%s2557_s1 + $0x58] sm:$0xff]   ;;  %v1844_v20 = vld [vmem:[%s2557_s1 + $0x50] sm:$0xff]  }
   0x6   :  { %1634 = vmatprep.subr.bf16.mxu1 %v1829_v5  ;;  %v1837_v13 = vld [vmem:[%s2557_s1 + $0xe0] sm:$0xff]   ;;  %v1841_v17 = vld [vmem:[%s2557_s1 + $0xd8] sm:$0xff]   ;;  %v1845_v21 = vld [vmem:[%s2557_s1 + $0xd0] sm:$0xff]  }
   0x7   :  { %v1838_v14 = vld [vmem:[%s2557_s1 + $0x20] sm:$0xff]   ;;  %v1842_v18 = vld [vmem:[%s2557_s1 + $0x18] sm:$0xff]   ;;  %v1846_v22 = vld [vmem:[%s2557_s1 + $0x10] sm:$0xff]  }
   0x8   :  { %1571 = vmatpush3.bf16.msra.mxu0 %v1830_v6  ;;  %v1839_v15 = vld [vmem:[%s2557_s1 + $0xa0] sm:$0xff]   ;;  %v1843_v19 = vld [vmem:[%s2557_s1 + $0x98] sm:$0xff]   ;;  %v1847_v23 = vld [vmem:[%s2557_s1 + $0x90] sm:$0xff]  }
   0x9   :  { %1635 = vmatpush3.bf16.msra.mxu1 %v1831_v7  ;;  %1572 = vmatprep.subr.bf16.mxu0 %v1832_v8  ;;  %v1848_v24 = vld [vmem:[%s2557_s1 + $0x48] sm:$0xff]   ;;  %v1852_v28 = vld [vmem:[%s2557_s1 + $0x40] sm:$0xff]   ;;  %v1856_v40 = vld [vmem:[%s2557_s1 + $0x178] sm:$0xff]  }
   0xa   :  { %1636 = vmatprep.subr.bf16.mxu1 %v1833_v9  ;;  %v1849_v25 = vld [vmem:[%s2557_s1 + $0xc8] sm:$0xff]   ;;  %v1853_v29 = vld [vmem:[%s2557_s1 + $0xc0] sm:$0xff]   ;;  %v1857_v41 = vld [vmem:[%s2557_s1 + $0x138] sm:$0xff]  }
   0xb   :  { %v1850_v26 = vld [vmem:[%s2557_s1 + $0x8] sm:$0xff]   ;;  %v1854_v30 = vld [vmem:[%s2557_s1] sm:$0xff]   ;;  %v1858_v42 = vld [vmem:[%s2557_s1 + $0x1f8] sm:$0xff]  }
   0xc   :  { %1573 = vmatpush3.bf16.msra.mxu0 %v1834_v10  ;;  %v1851_v27 = vld [vmem:[%s2557_s1 + $0x88] sm:$0xff]   ;;  %v1855_v31 = vld [vmem:[%s2557_s1 + $0x80] sm:$0xff]   ;;  %v1859_v43 = vld [vmem:[%s2557_s1 + $0x1b8] sm:$0xff]  }
   0xd   :  { %1637 = vmatpush3.bf16.msra.mxu1 %v1835_v11  ;;  %1574 = vmatprep.subr.bf16.mxu0 %v1836_v12  ;;  %v15_v32 = vld [vmem:[%s2558_s0] sm:$0xff]  ;;  %v16_v34 = vld [vmem:[%s2558_s0 + $0x8] sm:$0xff]  ;;  %v1860_v50 = vld [vmem:[%s2557_s1 + $0x170] sm:$0xff]  }
   0xe   :  { %1638 = vmatprep.subr.bf16.mxu1 %v1837_v13  ;;  %v19_v33 = vld [vmem:[%s2558_s0 + $0x20] sm:$0xff]  ;;  %v20_v37 = vld [vmem:[%s2558_s0 + $0x28] sm:$0xff]  ;;  %v1861_v52 = vld [vmem:[%s2557_s1 + $0x130] sm:$0xff]  }
   0xf   :  { %v1408_v35 = vcombine.low %v15_v32, %v19_v33  ;;  %v1409_v36 = vcombine.high %v15_v32, %v19_v33  ;;  %v1410_v38 = vcombine.low %v16_v34, %v20_v37  ;;  %v1411_v39 = vcombine.high %v16_v34, %v20_v37  ;;  %v23_v44 = vld [vmem:[%s2558_s0 + $0x40] sm:$0xff]  ;;  %v24_v47 = vld [vmem:[%s2558_s0 + $0x48] sm:$0xff]  ;;  %v1862_v54 = vld [vmem:[%s2557_s1 + $0x1f0] sm:$0xff]  }
  0x10   :  { %1575 = vmatpush3.bf16.msra.mxu0 %v1838_v14  ;;  %v27_v45 = vld [vmem:[%s2558_s0 + $0x60] sm:$0xff]  ;;  %v28_v48 = vld [vmem:[%s2558_s0 + $0x68] sm:$0xff]  ;;  %v1863_v55 = vld [vmem:[%s2557_s1 + $0x1b0] sm:$0xff]  }
  0x11   :  { %1639 = vmatpush3.bf16.msra.mxu1 %v1839_v15  ;;  %1576 = vmatprep.subr.bf16.mxu0 %v1840_v16  ;;  %v1417_v46 = vcombine.high %v23_v44, %v27_v45  ;;  %v1419_v49 = vcombine.high %v24_v47, %v28_v48  ;;  %v1416_v51 = vcombine.low %v23_v44, %v27_v45  ;;  %v31_v56 = vld [vmem:[%s2558_s0 + $0x80] sm:$0xff]  ;;  %v32_v58 = vld [vmem:[%s2558_s0 + $0x88] sm:$0xff]  ;;  %v1878_v32 = vld [vmem:[%s2557_s1 + $0x1d0] sm:$0xff]  }
  0x12   :  { %1640 = vmatprep.subr.bf16.mxu1 %v1841_v17  ;;  %950 = vmatprep.mubr.bf16.mxu0 %v1409_v36  ;;  %v1418_v53 = vcombine.low %v24_v47, %v28_v48  ;;  %v35_v57 = vld [vmem:[%s2558_s0 + $0xa0] sm:$0xff]  ;;  %v36_v59 = vld [vmem:[%s2558_s0 + $0xa8] sm:$0xff]  ;;  %v1879_v33 = vld [vmem:[%s2557_s1 + $0x190] sm:$0xff]  }
  0x13   :  { %1047 = vmatprep.mubr.bf16.mxu1 %v1411_v39  ;;  %v1425_v60 = vcombine.high %v31_v56, %v35_v57  ;;  %v1427_v61 = vcombine.high %v32_v58, %v36_v59  ;;  %v1864_v62 = vld [vmem:[%s2557_s1 + $0x168] sm:$0xff]   ;;  %v1424_v2 = vcombine.low %v31_v56, %v35_v57  ;;  %v39_v3 = vld [vmem:[%s2558_s0 + $0xc0] sm:$0xff]  ;;  %v1426_v6 = vcombine.low %v32_v58, %v36_v59 }
  0x14   :  { %1577 = vmatpush3.bf16.msra.mxu0 %v1842_v18  ;;  %v1865_v63 = vld [vmem:[%s2557_s1 + $0x128] sm:$0xff]   ;;  %v43_v4 = vld [vmem:[%s2558_s0 + $0xe0] sm:$0xff]  ;;  %v1872_v18 = vld [vmem:[%s2557_s1 + $0x158] sm:$0xff]  }
  0x15   :  { %1641 = vmatpush3.bf16.msra.mxu1 %v1843_v19  ;;  %1578 = vmatprep.subr.bf16.mxu0 %v1844_v20  ;;  %v1866_v0 = vld [vmem:[%s2557_s1 + $0x1e8] sm:$0xff]   ;;  %v1433_v7 = vcombine.high %v39_v3, %v43_v4  ;;  %v1868_v10 = vld [vmem:[%s2557_s1 + $0x160] sm:$0xff]   ;;  %v1432_v19 = vcombine.low %v39_v3, %v43_v4  ;;  %v1873_v20 = vld [vmem:[%s2557_s1 + $0x118] sm:$0xff]  }
  0x16   :  { %1642 = vmatprep.subr.bf16.mxu1 %v1845_v21  ;;  %v1867_v1 = vld [vmem:[%s2557_s1 + $0x1a8] sm:$0xff]   ;;  %v1869_v11 = vld [vmem:[%s2557_s1 + $0x120] sm:$0xff]  }
  0x17   :  { %v40_v5 = vld [vmem:[%s2558_s0 + $0xc8] sm:$0xff]  ;;  %v1870_v12 = vld [vmem:[%s2557_s1 + $0x1e0] sm:$0xff]  }
  0x18   :  { %1579 = vmatpush3.bf16.msra.mxu0 %v1846_v22  ;;  %v44_v8 = vld [vmem:[%s2558_s0 + $0xe8] sm:$0xff]  ;;  %v1871_v13 = vld [vmem:[%s2557_s1 + $0x1a0] sm:$0xff]  }
  0x19   :  { %1643 = vmatpush3.bf16.msra.mxu1 %v1847_v23  ;;  %1580 = vmatprep.subr.bf16.mxu0 %v1848_v24  ;;  %v1435_v9 = vcombine.high %v40_v5, %v44_v8  ;;  %v47_v14 = vld [vmem:[%s2558_s0 + $0x100] sm:$0xff]  ;;  %v48_v16 = vld [vmem:[%s2558_s0 + $0x108] sm:$0xff]  ;;  %v1434_v21 = vcombine.low %v40_v5, %v44_v8  ;;  %v1874_v23 = vld [vmem:[%s2557_s1 + $0x1d8] sm:$0xff]  }
  0x1a   :  { %1644 = vmatprep.subr.bf16.mxu1 %v1849_v25  ;;  %v51_v15 = vld [vmem:[%s2558_s0 + $0x120] sm:$0xff]  ;;  %v52_v17 = vld [vmem:[%s2558_s0 + $0x128] sm:$0xff]  ;;  %v1875_v25 = vld [vmem:[%s2557_s1 + $0x198] sm:$0xff]  }
  0x1b   :  { %v1441_v22 = vcombine.high %v47_v14, %v51_v15  ;;  %v1443_v24 = vcombine.high %v48_v16, %v52_v17  ;;  %v1440_v34 = vcombine.low %v47_v14, %v51_v15  ;;  %v1881_v39 = vld [vmem:[%s2557_s1 + $0x108] sm:$0xff]   ;;  %v1885_v48 = vld [vmem:[%s2557_s1 + $0x100] sm:$0xff]   ;;  %v26_v8 = vld [vmem:[%s2558_s0 + $0x58] sm:$0xff] }
  0x1c   :  { %1581 = vmatpush3.bf16.msra.mxu0 %v1850_v26  ;;  %v55_v26 = vld [vmem:[%s2558_s0 + $0x140] sm:$0xff]  ;;  %v64_v44 = vld [vmem:[%s2558_s0 + $0x188] sm:$0xff]  ;;  %v33_v14 = vld [vmem:[%s2558_s0 + $0x90] sm:$0xff] }
  0x1d   :  { %1645 = vmatpush3.bf16.msra.mxu1 %v1851_v27  ;;  %1582 = vmatprep.subr.bf16.mxu0 %v1852_v28  ;;  %v59_v27 = vld [vmem:[%s2558_s0 + $0x160] sm:$0xff]  ;;  %v1876_v28 = vld [vmem:[%s2557_s1 + $0x150] sm:$0xff]   ;;  %v68_v45 = vld [vmem:[%s2558_s0 + $0x1a8] sm:$0xff] }
  0x1e   :  { %1646 = vmatprep.subr.bf16.mxu1 %v1853_v29  ;;  %v56_v29 = vld [vmem:[%s2558_s0 + $0x148] sm:$0xff]  ;;  %v1449_v36 = vcombine.high %v55_v26, %v59_v27  ;;  %v1448_v47 = vcombine.low %v55_v26, %v59_v27  ;;  %v1458_v59 = vcombine.low %v64_v44, %v68_v45  ;;  %v37_v15 = vld [vmem:[%s2558_s0 + $0xb0] sm:$0xff] }
  0x1f   :  { %v72_v56 = vld [vmem:[%s2558_s0 + $0x1c8] sm:$0xff]  ;;  %v1428_v26 = vcombine.low %v33_v14, %v37_v15 }
  0x20   :  { %1583 = vmatpush3.bf16.msra.mxu0 %v1854_v30  ;;  %v60_v30 = vld [vmem:[%s2558_s0 + $0x168] sm:$0xff] }
  0x21   :  { %1647 = vmatpush3.bf16.msra.mxu1 %v1855_v31  ;;  %1696 = vmatprep.subr.bf16.mxu0 %v1856_v40  ;;  %v1877_v31 = vld [vmem:[%s2557_s1 + $0x110] sm:$0xff]   ;;  %v1451_v37 = vcombine.high %v56_v29, %v60_v30  ;;  %v1882_v40 = vld [vmem:[%s2557_s1 + $0x1c8] sm:$0xff]  }
  0x22   :  { %1760 = vmatprep.subr.bf16.mxu1 %v1858_v42  ;;  %v67_v42 = vld [vmem:[%s2558_s0 + $0x1a0] sm:$0xff]  ;;  %v76_v57 = vld [vmem:[%s2558_s0 + $0x1e8] sm:$0xff] }
  0x23   :  { %951 = vmatmul.mubr.bf16.vlgmr.msra.gmra.mxu0 %v1408_v35  ;;  %v1442_v35 = vcombine.low %v48_v16, %v52_v17  ;;  %v1466_v3 = vcombine.low %v72_v56, %v76_v57  ;;  %v34_v16 = vld [vmem:[%s2558_s0 + $0x98] sm:$0xff] }
  0x24   :  { %1048 = vmatmul.mubr.bf16.vlgmr.msra.gmra.mxu1 %v1410_v38  ;;  %1697 = vmatpush3.bf16.msra.mxu0 %v1857_v41  ;;  %v1880_v38 = vld [vmem:[%s2557_s1 + $0x148] sm:$0xff]   ;;  %v63_v41 = vld [vmem:[%s2558_s0 + $0x180] sm:$0xff]  ;;  %v38_v17 = vld [vmem:[%s2558_s0 + $0xb8] sm:$0xff] }
  0x25   :  { %1761 = vmatpush3.bf16.msra.mxu1 %v1859_v43  ;;  %958 = vmatprep.mubr.bf16.mxu0 %v1417_v46  ;;  %v1883_v43 = vld [vmem:[%s2557_s1 + $0x188] sm:$0xff]   ;;  %v1884_v46 = vld [vmem:[%s2557_s1 + $0x140] sm:$0xff]   ;;  %v1456_v58 = vcombine.low %v63_v41, %v67_v42  ;;  %v1430_v27 = vcombine.low %v34_v16, %v38_v17 }
  0x26   :  { %1055 = vmatprep.mubr.bf16.mxu1 %v1419_v49  ;;  %1698 = vmatprep.subr.bf16.mxu0 %v1860_v50  ;;  %v1450_v49 = vcombine.low %v56_v29, %v60_v30  ;;  %v1457_v50 = vcombine.high %v63_v41, %v67_v42  ;;  %v49_v30 = vld [vmem:[%s2558_s0 + $0x110] sm:$0xff]  ;;  %v62_v41 = vld [vmem:[%s2558_s0 + $0x178] sm:$0xff] }
  0x27   :  { %1762 = vmatprep.subr.bf16.mxu1 %v1862_v54  ;;  %v71_v54 = vld [vmem:[%s2558_s0 + $0x1c0] sm:$0xff] }
  0x28   :  { %1699 = vmatpush3.bf16.msra.mxu0 %v1861_v52  ;;  %v1459_v52 = vcombine.high %v64_v44, %v68_v45 }
  0x29   :  { %1763 = vmatpush3.bf16.msra.mxu1 %v1863_v55  ;;  %1700 = vmatprep.subr.bf16.mxu0 %v1864_v62  ;;  %v75_v55 = vld [vmem:[%s2558_s0 + $0x1e0] sm:$0xff]  ;;  %v17_v62 = vld [vmem:[%s2558_s0 + $0x10] sm:$0xff] }
  0x2a   :  { %1764 = vmatprep.subr.bf16.mxu1 %v1866_v0  ;;  %v18_v0 = vld [vmem:[%s2558_s0 + $0x18] sm:$0xff] }
  0x2b   :  { %959 = vmatmul.mubr.bf16.gmra.mxu0 %v1416_v51  ;;  %v1886_v51 = vld [vmem:[%s2557_s1 + $0x1c0] sm:$0xff]  }
  0x2c   :  { %1056 = vmatmul.mubr.bf16.gmra.mxu1 %v1418_v53  ;;  %966 = vmatprep.mubr.bf16.mxu0 %v1425_v60  ;;  %v1887_v53 = vld [vmem:[%s2557_s1 + $0x180] sm:$0xff]   ;;  %v1465_v60 = vcombine.high %v71_v54, %v75_v55 }
  0x2d   :  { %1063 = vmatprep.mubr.bf16.mxu1 %v1427_v61  ;;  %1701 = vmatpush3.bf16.msra.mxu0 %v1865_v63  ;;  %v1467_v61 = vcombine.high %v72_v56, %v76_v57  ;;  %v21_v63 = vld [vmem:[%s2558_s0 + $0x30] sm:$0xff]  ;;  %v74_v56 = vld [vmem:[%s2558_s0 + $0x1d8] sm:$0xff] }
  0x2e   :  { %1765 = vmatpush3.bf16.msra.mxu1 %v1867_v1  ;;  %1702 = vmatprep.subr.bf16.mxu0 %v1868_v10  ;;  %v22_v1 = vld [vmem:[%s2558_s0 + $0x38] sm:$0xff]  ;;  %v1413_v4 = vcombine.high %v17_v62, %v21_v63  ;;  %v1412_v10 = vcombine.low %v17_v62, %v21_v63 }
  0x2f   :  { %1766 = vmatprep.subr.bf16.mxu1 %v1870_v12  ;;  %v1415_v5 = vcombine.high %v18_v0, %v22_v1  ;;  %v78_v57 = vld [vmem:[%s2558_s0 + $0x1f8] sm:$0xff] }
  0x30   :  { %v1470_v63 = vcombine.low %v74_v56, %v78_v57 }
  0x31   :  { %1703 = vmatpush3.bf16.msra.mxu0 %v1869_v11  ;;  %v1414_v11 = vcombine.low %v18_v0, %v22_v1 }
  0x32   :  { %1767 = vmatpush3.bf16.msra.mxu1 %v1871_v13  ;;  %1704 = vmatprep.subr.bf16.mxu0 %v1872_v18 }
  0x33   :  { %967 = vmatmul.mubr.bf16.gmra.mxu0 %v1424_v2  ;;  %1768 = vmatprep.subr.bf16.mxu1 %v1874_v23  ;;  %v1464_v2 = vcombine.low %v71_v54, %v75_v55  ;;  %v45_v23 = vld [vmem:[%s2558_s0 + $0xf0] sm:$0xff] }
  0x34   :  { %1064 = vmatmul.mubr.bf16.gmra.mxu1 %v1426_v6  ;;  %974 = vmatprep.mubr.bf16.mxu0 %v1433_v7  ;;  %v25_v6 = vld [vmem:[%s2558_s0 + $0x50] sm:$0xff] }
  0x35   :  { %1071 = vmatprep.mubr.bf16.mxu1 %v1435_v9  ;;  %1705 = vmatpush3.bf16.msra.mxu0 %v1873_v20  ;;  %v29_v7 = vld [vmem:[%s2558_s0 + $0x70] sm:$0xff]  ;;  %v30_v9 = vld [vmem:[%s2558_s0 + $0x78] sm:$0xff]  ;;  %v1429_v20 = vcombine.high %v33_v14, %v37_v15 }
  0x36   :  { %1769 = vmatpush3.bf16.msra.mxu1 %v1875_v25  ;;  %1706 = vmatprep.subr.bf16.mxu0 %v1876_v28  ;;  %v1421_v12 = vcombine.high %v25_v6, %v29_v7  ;;  %v1423_v13 = vcombine.high %v26_v8, %v30_v9  ;;  %v1420_v18 = vcombine.low %v25_v6, %v29_v7  ;;  %v46_v25 = vld [vmem:[%s2558_s0 + $0xf8] sm:$0xff]  ;;  %v73_v54 = vld [vmem:[%s2558_s0 + $0x1d0] sm:$0xff] }
  0x37   :  { %1770 = vmatprep.subr.bf16.mxu1 %v1878_v32  ;;  %v50_v32 = vld [vmem:[%s2558_s0 + $0x118] sm:$0xff]  ;;  %v77_v55 = vld [vmem:[%s2558_s0 + $0x1f0] sm:$0xff] }
  0x38   :  { %v1468_v62 = vcombine.low %v73_v54, %v77_v55 }
  0x39   :  { %1707 = vmatpush3.bf16.msra.mxu0 %v1877_v31  ;;  %v53_v31 = vld [vmem:[%s2558_s0 + $0x130] sm:$0xff] }
  0x3a   :  { %1771 = vmatpush3.bf16.msra.mxu1 %v1879_v33  ;;  %1708 = vmatprep.subr.bf16.mxu0 %v1880_v38  ;;  %v54_v33 = vld [vmem:[%s2558_s0 + $0x138] sm:$0xff]  ;;  %v57_v38 = vld [vmem:[%s2558_s0 + $0x150] sm:$0xff]  ;;  %v1444_v42 = vcombine.low %v49_v30, %v53_v31 }
  0x3b   :  { %975 = vmatmul.mubr.bf16.gmra.mxu0 %v1432_v19  ;;  %1772 = vmatprep.subr.bf16.mxu1 %v1882_v40  ;;  %v1422_v19 = vcombine.low %v26_v8, %v30_v9  ;;  %v58_v40 = vld [vmem:[%s2558_s0 + $0x158] sm:$0xff] }
  0x3c   :  { %1072 = vmatmul.mubr.bf16.gmra.mxu1 %v1434_v21  ;;  %982 = vmatprep.mubr.bf16.mxu0 %v1441_v22  ;;  %v1431_v21 = vcombine.high %v34_v16, %v38_v17  ;;  %v41_v22 = vld [vmem:[%s2558_s0 + $0xd0] sm:$0xff]  ;;  %v1455_v45 = vcombine.high %v58_v40, %v62_v41 }
  0x3d   :  { %1079 = vmatprep.mubr.bf16.mxu1 %v1443_v24  ;;  %1709 = vmatpush3.bf16.msra.mxu0 %v1881_v39  ;;  %v42_v24 = vld [vmem:[%s2558_s0 + $0xd8] sm:$0xff]  ;;  %v1437_v28 = vcombine.high %v41_v22, %v45_v23  ;;  %v61_v39 = vld [vmem:[%s2558_s0 + $0x170] sm:$0xff] }
  0x3e   :  { %1773 = vmatpush3.bf16.msra.mxu1 %v1883_v43  ;;  %1710 = vmatprep.subr.bf16.mxu0 %v1884_v46  ;;  %v1439_v29 = vcombine.high %v42_v24, %v46_v25  ;;  %v1446_v43 = vcombine.low %v50_v32, %v54_v33  ;;  %v1453_v44 = vcombine.high %v57_v38, %v61_v39  ;;  %v65_v46 = vld [vmem:[%s2558_s0 + $0x190] sm:$0xff] }
  0x3f   :  { %1774 = vmatprep.subr.bf16.mxu1 %v1886_v51  ;;  %v1454_v51 = vcombine.low %v58_v40, %v62_v41 }
  0x41   :  { %1711 = vmatpush3.bf16.msra.mxu0 %v1885_v48  ;;  %v66_v48 = vld [vmem:[%s2558_s0 + $0x198] sm:$0xff] }
  0x42   :  { %1775 = vmatpush3.bf16.msra.mxu1 %v1887_v53 }
  0x43   :  { %983 = vmatmul.mubr.bf16.gmra.mxu0 %v1440_v34  ;;  %v1436_v34 = vcombine.low %v41_v22, %v45_v23 }
  0x44   :  { %1080 = vmatmul.mubr.bf16.gmra.mxu1 %v1442_v35  ;;  %990 = vmatprep.mubr.bf16.mxu0 %v1449_v36  ;;  %v1438_v35 = vcombine.low %v42_v24, %v46_v25  ;;  %v1445_v36 = vcombine.high %v49_v30, %v53_v31 }
  0x45   :  { %1087 = vmatprep.mubr.bf16.mxu1 %v1451_v37  ;;  %v1447_v37 = vcombine.high %v50_v32, %v54_v33 }
  0x4b   :  { %991 = vmatmul.mubr.bf16.gmra.mxu0 %v1448_v47  ;;  %v69_v47 = vld [vmem:[%s2558_s0 + $0x1b0] sm:$0xff] }
  0x4c   :  { %1088 = vmatmul.mubr.bf16.gmra.mxu1 %v1450_v49  ;;  %998 = vmatprep.mubr.bf16.mxu0 %v1457_v50  ;;  %v70_v49 = vld [vmem:[%s2558_s0 + $0x1b8] sm:$0xff]  ;;  %v1452_v50 = vcombine.low %v57_v38, %v61_v39 }
  0x4d   :  { %1095 = vmatprep.mubr.bf16.mxu1 %v1459_v52  ;;  %v1461_v52 = vcombine.high %v65_v46, %v69_v47  ;;  %v1463_v53 = vcombine.high %v66_v48, %v70_v49 }
  0x53   :  { %999 = vmatmul.mubr.bf16.gmra.mxu0 %v1456_v58  ;;  %v1460_v58 = vcombine.low %v65_v46, %v69_v47 }
  0x54   :  { %1096 = vmatmul.mubr.bf16.gmra.mxu1 %v1458_v59  ;;  %1006 = vmatprep.mubr.bf16.mxu0 %v1465_v60  ;;  %v1462_v59 = vcombine.low %v66_v48, %v70_v49  ;;  %v1469_v60 = vcombine.high %v73_v54, %v77_v55 }
  0x55   :  { %1103 = vmatprep.mubr.bf16.mxu1 %v1467_v61  ;;  %v1471_v61 = vcombine.high %v74_v56, %v78_v57 }
  0x5b   :  { %1007 = vmatmul.mubr.bf16.gmra.mxu0 %v1464_v2 }
  0x5c   :  { %1104 = vmatmul.mubr.bf16.gmra.mxu1 %v1466_v3  ;;  %1144 = vmatprep.mubr.bf16.mxu0 %v1413_v4 }
  0x5d   :  { %1241 = vmatprep.mubr.bf16.mxu1 %v1415_v5 }
  0x63   :  { %1145 = vmatmul.mubr.bf16.vlgmr.msra.gmra.mxu0 %v1412_v10 }
  0x64   :  { %1242 = vmatmul.mubr.bf16.vlgmr.msra.gmra.mxu1 %v1414_v11  ;;  %1152 = vmatprep.mubr.bf16.mxu0 %v1421_v12 }
  0x65   :  { %1249 = vmatprep.mubr.bf16.mxu1 %v1423_v13 }
  0x6b   :  { %1153 = vmatmul.mubr.bf16.gmra.mxu0 %v1420_v18 }
  0x6c   :  { %1250 = vmatmul.mubr.bf16.gmra.mxu1 %v1422_v19  ;;  %1160 = vmatprep.mubr.bf16.mxu0 %v1429_v20 }
  0x6d   :  { %1257 = vmatprep.mubr.bf16.mxu1 %v1431_v21 }
  0x73   :  { %1161 = vmatmul.mubr.bf16.gmra.mxu0 %v1428_v26 }
  0x74   :  { %1258 = vmatmul.mubr.bf16.gmra.mxu1 %v1430_v27  ;;  %1168 = vmatprep.mubr.bf16.mxu0 %v1437_v28 }
  0x75   :  { %1265 = vmatprep.mubr.bf16.mxu1 %v1439_v29 }
  0x7b   :  { %1169 = vmatmul.mubr.bf16.gmra.mxu0 %v1436_v34 }
  0x7c   :  { %1266 = vmatmul.mubr.bf16.gmra.mxu1 %v1438_v35  ;;  %1176 = vmatprep.mubr.bf16.mxu0 %v1445_v36 }
  0x7d   :  { %1273 = vmatprep.mubr.bf16.mxu1 %v1447_v37 }
  0x83   :  { %1177 = vmatmul.mubr.bf16.gmra.mxu0 %v1444_v42 }
  0x84   :  { %1274 = vmatmul.mubr.bf16.gmra.mxu1 %v1446_v43  ;;  %1184 = vmatprep.mubr.bf16.mxu0 %v1453_v44 }
  0x85   :  { %1281 = vmatprep.mubr.bf16.mxu1 %v1455_v45 }
  0x8b   :  { %1185 = vmatmul.mubr.bf16.gmra.mxu0 %v1452_v50 }
  0x8c   :  { %1282 = vmatmul.mubr.bf16.gmra.mxu1 %v1454_v51  ;;  %1192 = vmatprep.mubr.bf16.mxu0 %v1461_v52 }
  0x8d   :  { %1289 = vmatprep.mubr.bf16.mxu1 %v1463_v53 }
  0x93   :  { %1193 = vmatmul.mubr.bf16.gmra.mxu0 %v1460_v58 }
  0x94   :  { %1290 = vmatmul.mubr.bf16.gmra.mxu1 %v1462_v59  ;;  %1200 = vmatprep.mubr.bf16.mxu0 %v1469_v60 }
  0x95   :  { %1297 = vmatprep.mubr.bf16.mxu1 %v1471_v61  ;;  %v2407_v61 = vld [vmem:[%s2559_s2] ss:$0 sm:$0xff] }
  0x9b   :  { %1201 = vmatmul.mubr.bf16.gmra.mxu0 %v1468_v62 }
  0x9c   :  { %1298 = vmatmul.mubr.bf16.gmra.mxu1 %v1470_v63 }
  0xe3   :  { %v1584_v0 = vpop.f32.mrf.mxu0 }
  0xe4   :  { %v2292_v1 = vpop.f32.mrf.mxu1 }
  0xe5   :  { %v1585_v2 = vpop.f32.mrf.mxu0 }
  0xe6   :  { %v2294_v3 = vpop.f32.mrf.mxu1  ;;  %v1586_v59 = vadd.f32 %v1585_v2, %v1584_v0 }
  0xe7   :  { %v2296_v4 = vpop.f32.mrf.mxu0  ;;  %v1650_v2 = vadd.f32 %v2294_v3, %v2292_v1 }
  0xe8   :  { %v2298_v5 = vpop.f32.mrf.mxu1 }
  0xe9   :  { %v1588_v6 = vpop.f32.mrf.mxu0 }
  0xea   :  { %v2300_v7 = vpop.f32.mrf.mxu1 }
  0xeb   :  { %v2302_v8 = vpop.f32.mrf.mxu0 }
  0xec   :  { %v2304_v9 = vpop.f32.mrf.mxu1 }
  0xed   :  { %v1591_v10 = vpop.f32.mrf.mxu0 }
  0xee   :  { %v2306_v11 = vpop.f32.mrf.mxu1 }
  0xef   :  { %v2308_v12 = vpop.f32.mrf.mxu0 }
  0xf0   :  { %v2310_v13 = vpop.f32.mrf.mxu1 }
  0xf1   :  { %v2312_v14 = vpop.f32.mrf.mxu0 }
  0xf2   :  { %v2314_v15 = vpop.f32.mrf.mxu1  ;;  %v1595_v3 = vadd.f32 %v2312_v14, %v2308_v12 }
  0xf3   :  { %v2316_v16 = vpop.f32.mrf.mxu0 }
  0xf4   :  { %v2318_v17 = vpop.f32.mrf.mxu1 }
  0xf5   :  { %v2320_v18 = vpop.f32.mrf.mxu0 }
  0xf6   :  { %v2322_v19 = vpop.f32.mrf.mxu1 }
  0xf7   :  { %v2324_v20 = vpop.f32.mrf.mxu0 }
  0xf8   :  { %v2326_v21 = vpop.f32.mrf.mxu1 }
  0xf9   :  { %v2328_v22 = vpop.f32.mrf.mxu0 }
  0xfa   :  { %v2330_v23 = vpop.f32.mrf.mxu1 }
  0xfb   :  { %v2332_v24 = vpop.f32.mrf.mxu0 }
  0xfc   :  { %v2334_v25 = vpop.f32.mrf.mxu1 }
  0xfd   :  { %v2336_v26 = vpop.f32.mrf.mxu0 }
  0xfe   :  { %v2338_v27 = vpop.f32.mrf.mxu1 }
  0xff   :  { %v2340_v28 = vpop.f32.mrf.mxu0 }
 0x100   :  { %v2342_v29 = vpop.f32.mrf.mxu1 }
 0x101   :  { %v2344_v30 = vpop.f32.mrf.mxu0 }
 0x102   :  { %v2346_v31 = vpop.f32.mrf.mxu1 }
 0x103   :  { %v2348_v32 = vpop.f32.mrf.mxu0 }
 0x104   :  { %v2350_v33 = vpop.f32.mrf.mxu1 }
 0x105   :  { %v2352_v34 = vpop.f32.mrf.mxu0 }
 0x106   :  { %v2354_v35 = vpop.f32.mrf.mxu1 }
 0x107   :  { %v2356_v36 = vpop.f32.mrf.mxu0 }
 0x108   :  { %v2358_v37 = vpop.f32.mrf.mxu1 }
 0x109   :  { %v2360_v38 = vpop.f32.mrf.mxu0 }
 0x10a   :  { %v2362_v39 = vpop.f32.mrf.mxu1 }
 0x10b   :  { %v2364_v40 = vpop.f32.mrf.mxu0 }
 0x10c   :  { %v2366_v41 = vpop.f32.mrf.mxu1 }
 0x10d   :  { %v2368_v42 = vpop.f32.mrf.mxu0 }
 0x10e   :  { %v2370_v43 = vpop.f32.mrf.mxu1 }
 0x10f   :  { %v2372_v44 = vpop.f32.mrf.mxu0 }
 0x110   :  { %v2374_v45 = vpop.f32.mrf.mxu1 }
 0x111   :  { %v2376_v46 = vpop.f32.mrf.mxu0 }
 0x112   :  { %v2378_v47 = vpop.f32.mrf.mxu1 }
 0x113   :  { %2561 = vst [vmem:[#allocation2_spill] sm:$0xff] %v2378_v47  ;;  %v2380_v48 = vpop.f32.mrf.mxu0 }
 0x114   :  { %v2382_v49 = vpop.f32.mrf.mxu1 }
 0x115   :  { %2562 = vst [vmem:[#allocation3_spill] sm:$0xff] %v2382_v49  ;;  %v2384_v50 = vpop.f32.mrf.mxu0 }
 0x116   :  { %v2386_v51 = vpop.f32.mrf.mxu1 }
 0x117   :  { %2563 = vst [vmem:[#allocation4_spill] sm:$0xff] %v2386_v51  ;;  %v2388_v52 = vpop.f32.mrf.mxu0 }
 0x118   :  { %2564 = vst [vmem:[#allocation5_spill] sm:$0xff] %v2388_v52  ;;  %v2390_v53 = vpop.f32.mrf.mxu1 }
 0x119   :  { %2565 = vst [vmem:[#allocation6_spill] sm:$0xff] %v2390_v53  ;;  %v2392_v54 = vpop.f32.mrf.mxu0 }
 0x11a   :  { %2566 = vst [vmem:[#allocation7_spill] sm:$0xff] %v2392_v54  ;;  %v2394_v55 = vpop.f32.mrf.mxu1 }
 0x11b   :  { %2567 = vst [vmem:[#allocation8_spill] sm:$0xff] %v2394_v55  ;;  %v2396_v56 = vpop.f32.mrf.mxu0  ;;  %v953_v55 = vadd.f32 %v1586_v59, %v2407_v61  ;;  %v1653_v59 = vadd.f32 %v2300_v7, %v2298_v5 }
 0x11c   :  { %2568 = vst [vmem:[#allocation9_spill] sm:$0xff] %v2396_v56  ;;  %v2398_v57 = vpop.f32.mrf.mxu1 }
 0x11d   :  { %2569 = vst [vmem:[#allocation10_spill] sm:$0xff] %v2398_v57  ;;  %v2400_v58 = vpop.f32.mrf.mxu0  ;;  %v1589_v57 = vadd.f32 %v1588_v6, %v2296_v4  ;;  %v1050_v49 = vadd.f32 %v1650_v2, %v953_v55 }
 0x11e   :  { %2570 = vst [vmem:[#allocation11_spill] sm:$0xff] %v2400_v58  ;;  %v2402_v60 = vpop.f32.mrf.mxu1  ;;  %v1592_v58 = vadd.f32 %v1591_v10, %v2302_v8 }
 0x11f   :  { %2571 = vst [vmem:[#allocation12_spill] sm:$0xff] %v2402_v60  ;;  %v2409_v62 = vpop.f32.mrf.mxu0 }
 0x120   :  { %2572 = vst [vmem:[#allocation13_spill] sm:$0xff] %v2409_v62  ;;  %v2411_v63 = vpop.f32.mrf.mxu1  ;;  %v956_v62 = vadd.f32 %v1589_v57, %v2407_v61  ;;  %v961_v52 = vadd.f32 %v1592_v58, %v2407_v61 }
 0x121   :  { %2573 = vst [vmem:[#allocation14_spill] sm:$0xff] %v2411_v63  ;;  %v2413_v53 = vpop.f32.mrf.mxu0 }
 0x122   :  { %2574 = vst [vmem:[#allocation15_spill] sm:$0xff] %v2413_v53  ;;  %v2417_v56 = vpop.f32.mrf.mxu1  ;;  %v1053_v1 = vadd.f32 %v1653_v59, %v956_v62 }
 0x123   :  { %2575 = vst [vmem:[#allocation16_spill] sm:$0xff] %v2417_v56  ;;  %v1712_v0 = vpop.f32.mrf.mxu0 }
 0x124   :  { %v1776_v60 = vpop.f32.mrf.mxu1 }
 0x125   :  { %v1713_v51 = vpop.f32.mrf.mxu0 }
 0x126   :  { %v1714_v63 = vadd.f32 %v1713_v51, %v1712_v0  ;;  %v1777_v54 = vpop.f32.mrf.mxu1  ;;  %v1656_v51 = vadd.f32 %v2306_v11, %v2304_v9  ;;  %v1659_v9 = vadd.f32 %v2314_v15, %v2310_v13  ;;  %v1662_v15 = vadd.f32 %v2322_v19, %v2318_v17 }
 0x127   :  { %v1715_v53 = vpop.f32.mrf.mxu0  ;;  %v1778_v6 = vadd.f32 %v1777_v54, %v1776_v60  ;;  %v1598_v54 = vadd.f32 %v2320_v18, %v2316_v16  ;;  %v964_v60 = vadd.f32 %v1595_v3, %v2407_v61 }
 0x128   :  { %v1147_v4 = vadd.f32 %v1714_v63, %v1050_v49  ;;  %v1779_v56 = vpop.f32.mrf.mxu1  ;;  %v1058_v49 = vadd.f32 %v1656_v51, %v961_v52  ;;  %v1601_v63 = vadd.f32 %v2328_v22, %v2324_v20 }
 0x129   :  { %v1716_v47 = vpop.f32.mrf.mxu0 }
 0x12a   :  { %v1244_v8 = vadd.f32 %v1778_v6, %v1147_v4  ;;  %v1717_v10 = vadd.f32 %v1716_v47, %v1715_v53  ;;  %v1780_v55 = vpop.f32.mrf.mxu1  ;;  %v1061_v4 = vadd.f32 %v1659_v9, %v964_v60  ;;  %v972_v22 = vadd.f32 %v1601_v63, %v2407_v61 }
 0x12b   :  { %v1718_v57 = vpop.f32.mrf.mxu0  ;;  %v1781_v5 = vadd.f32 %v1780_v55, %v1779_v56  ;;  %v969_v56 = vadd.f32 %v1598_v54, %v2407_v61  ;;  %v1610_v63 = vadd.f32 %v2352_v34, %v2348_v32 }
 0x12c   :  { %v1306_v0 = vmax.f32 %v1244_v8, 0.0  ;;  %v1150_v2 = vadd.f32 %v1717_v10, %v1053_v1  ;;  %v1782_v7 = vpop.f32.mrf.mxu1 }
 0x12d   :  { %v1719_v58 = vpop.f32.mrf.mxu0  ;;  %v1066_v20 = vadd.f32 %v1662_v15, %v969_v56  ;;  %v985_v34 = vadd.f32 %v1610_v63, %v2407_v61  ;;  %v1622_v63 = vadd.f32 %v2384_v50, %v2380_v48  ;;  %v2578_v48 = vld [vmem:[#allocation7_spill] sm:$0xff] }
 0x12e   :  { %v1552_v12 = vpack.c.bf16 %v1306_v0, %v1306_v0  ;;  %v1247_v14 = vadd.f32 %v1781_v5, %v1150_v2  ;;  %v1720_v47 = vadd.f32 %v1719_v58, %v1718_v57  ;;  %v1783_v53 = vpop.f32.mrf.mxu1  ;;  %v1604_v2 = vadd.f32 %v2336_v26, %v2332_v24 }
 0x12f   :  { %v1721_v62 = vpop.f32.mrf.mxu0  ;;  %v1784_v16 = vadd.f32 %v1783_v53, %v1782_v7  ;;  %v1607_v24 = vadd.f32 %v2344_v30, %v2340_v28 }
 0x130   :  { %1387 = vst.msk [vmem:[%s2560_s3] sm:$0xf] %vm1386_vm0, %v1552_v12  ;;  %v1307_v11 = vmax.f32 %v1247_v14, 0.0  ;;  %v1155_v52 = vadd.f32 %v1720_v47, %v1058_v49  ;;  %v1785_v18 = vpop.f32.mrf.mxu1  ;;  %v1665_v49 = vadd.f32 %v2330_v23, %v2326_v21  ;;  %v977_v53 = vadd.f32 %v1604_v2, %v2407_v61 }
 0x131   :  { %v1722_v59 = vpop.f32.mrf.mxu0  ;;  %v980_v30 = vadd.f32 %v1607_v24, %v2407_v61 }
 0x132   :  { %v1553_v6 = vpack.c.bf16 %v1307_v11, %v1307_v11  ;;  %v1252_v1 = vadd.f32 %v1784_v16, %v1155_v52  ;;  %v1723_v3 = vadd.f32 %v1722_v59, %v1721_v62  ;;  %v1786_v13 = vpop.f32.mrf.mxu1  ;;  %v1069_v47 = vadd.f32 %v1665_v49, %v972_v22 }
 0x133   :  { %v1724_v8 = vpop.f32.mrf.mxu0  ;;  %v1787_v51 = vadd.f32 %v1786_v13, %v1785_v18  ;;  %v1668_v52 = vadd.f32 %v2338_v27, %v2334_v25  ;;  %v1671_v27 = vadd.f32 %v2346_v31, %v2342_v29 }
 0x134   :  { %1388 = vst.msk [vmem:[%s2560_s3 + $0x4] sm:$0xf] %vm1386_vm0, %v1553_v6  ;;  %v1308_v10 = vmax.f32 %v1252_v1, 0.0  ;;  %v1158_v55 = vadd.f32 %v1723_v3, %v1061_v4  ;;  %v1788_v57 = vpop.f32.mrf.mxu1 }
 0x135   :  { %v1725_v0 = vpop.f32.mrf.mxu0  ;;  %v1074_v4 = vadd.f32 %v1668_v52, %v977_v53  ;;  %v1077_v32 = vadd.f32 %v1671_v27, %v980_v30  ;;  %v1619_v53 = vadd.f32 %v2376_v46, %v2372_v44 }
 0x136   :  { %v1554_v5 = vpack.c.bf16 %v1308_v10, %v1308_v10  ;;  %v1255_v7 = vadd.f32 %v1787_v51, %v1158_v55  ;;  %v1726_v17 = vadd.f32 %v1725_v0, %v1724_v8  ;;  %v1789_v19 = vpop.f32.mrf.mxu1  ;;  %v1674_v0 = vadd.f32 %v2354_v35, %v2350_v33 }
 0x137   :  { %v1727_v54 = vpop.f32.mrf.mxu0  ;;  %v1790_v12 = vadd.f32 %v1789_v19, %v1788_v57  ;;  %v1613_v57 = vadd.f32 %v2360_v38, %v2356_v36  ;;  %v1616_v36 = vadd.f32 %v2368_v42, %v2364_v40  ;;  %v996_v46 = vadd.f32 %v1619_v53, %v2407_v61 }
 0x138   :  { %1389 = vst.msk [vmem:[%s2560_s3 + $0x8] sm:$0xf] %vm1386_vm0, %v1554_v5  ;;  %v1309_v58 = vmax.f32 %v1255_v7, 0.0  ;;  %v1163_v60 = vadd.f32 %v1726_v17, %v1066_v20  ;;  %v1791_v14 = vpop.f32.mrf.mxu1  ;;  %v1082_v49 = vadd.f32 %v1674_v0, %v985_v34 }
 0x139   :  { %v1728_v26 = vpop.f32.mrf.mxu0  ;;  %v993_v42 = vadd.f32 %v1616_v36, %v2407_v61 }
 0x13a   :  { %v1555_v62 = vpack.c.bf16 %v1309_v58, %v1309_v58  ;;  %v1260_v9 = vadd.f32 %v1790_v12, %v1163_v60  ;;  %v1729_v21 = vadd.f32 %v1728_v26, %v1727_v54  ;;  %v1792_v23 = vpop.f32.mrf.mxu1  ;;  %v988_v54 = vadd.f32 %v1613_v57, %v2407_v61 }
 0x13b   :  { %v1730_v11 = vpop.f32.mrf.mxu0  ;;  %v1793_v56 = vadd.f32 %v1792_v23, %v1791_v14  ;;  %v1677_v14 = vadd.f32 %v2362_v39, %v2358_v37  ;;  %v1680_v39 = vadd.f32 %v2370_v43, %v2366_v41 }
 0x13c   :  { %1390 = vst.msk [vmem:[%s2560_s3 + $0xc] sm:$0xf] %vm1386_vm0, %v1555_v62  ;;  %v1310_v16 = vmax.f32 %v1260_v9, 0.0  ;;  %v1166_v18 = vadd.f32 %v1729_v21, %v1069_v47  ;;  %v1794_v28 = vpop.f32.mrf.mxu1 }
 0x13d   :  { %v1731_v59 = vpop.f32.mrf.mxu0  ;;  %v1085_v9 = vadd.f32 %v1677_v14, %v988_v54  ;;  %v1090_v44 = vadd.f32 %v1680_v39, %v993_v42  ;;  %v2584_v14 = vld [vmem:[#allocation8_spill] sm:$0xff] }
 0x13e   :  { %v1556_v6 = vpack.c.bf16 %v1310_v16, %v1310_v16  ;;  %v1263_v1 = vadd.f32 %v1793_v56, %v1166_v18  ;;  %v1732_v3 = vadd.f32 %v1731_v59, %v1730_v11  ;;  %v1795_v25 = vpop.f32.mrf.mxu1 }
 0x13f   :  { %v1733_v13 = vpop.f32.mrf.mxu0  ;;  %v1796_v10 = vadd.f32 %v1795_v25, %v1794_v28 }
 0x140   :  { %1391 = vst.msk [vmem:[%s2560_s3 + $0x10] sm:$0xf] %vm1386_vm0, %v1556_v6  ;;  %v1311_v15 = vmax.f32 %v1263_v1, 0.0  ;;  %v1171_v8 = vadd.f32 %v1732_v3, %v1074_v4  ;;  %v1797_v55 = vpop.f32.mrf.mxu1  ;;  %v2576_v6 = vld [vmem:[#allocation2_spill] sm:$0xff] }
 0x141   :  { %v1734_v51 = vpop.f32.mrf.mxu0  ;;  %v1683_v1 = vadd.f32 %v2576_v6, %v2374_v45 }
 0x142   :  { %v1557_v20 = vpack.c.bf16 %v1311_v15, %v1311_v15  ;;  %v1268_v22 = vadd.f32 %v1796_v10, %v1171_v8  ;;  %v1735_v29 = vadd.f32 %v1734_v51, %v1733_v13  ;;  %v1798_v31 = vpop.f32.mrf.mxu1  ;;  %v2577_v10 = vld [vmem:[#allocation5_spill] sm:$0xff] }
 0x143   :  { %v1736_v2 = vpop.f32.mrf.mxu0  ;;  %v1799_v17 = vadd.f32 %v1798_v31, %v1797_v55  ;;  %v1093_v8 = vadd.f32 %v1683_v1, %v996_v46  ;;  %v1625_v50 = vadd.f32 %v2578_v48, %v2577_v10 }
 0x144   :  { %1392 = vst.msk [vmem:[%s2560_s3 + $0x14] sm:$0xf] %vm1386_vm0, %v1557_v20  ;;  %v1312_v5 = vmax.f32 %v1268_v22, 0.0  ;;  %v1174_v7 = vadd.f32 %v1735_v29, %v1077_v32  ;;  %v1800_v19 = vpop.f32.mrf.mxu1  ;;  %v1001_v32 = vadd.f32 %v1622_v63, %v2407_v61  ;;  %v2579_v22 = vld [vmem:[#allocation3_spill] sm:$0xff]  ;;  %v2580_v29 = vld [vmem:[#allocation4_spill] sm:$0xff] }
 0x145   :  { %v1737_v38 = vpop.f32.mrf.mxu0  ;;  %v1686_v31 = vadd.f32 %v2580_v29, %v2579_v22 }
 0x146   :  { %v1558_v58 = vpack.c.bf16 %v1312_v5, %v1312_v5  ;;  %v1271_v60 = vadd.f32 %v1799_v17, %v1174_v7  ;;  %v1738_v33 = vadd.f32 %v1737_v38, %v1736_v2  ;;  %v1801_v35 = vpop.f32.mrf.mxu1  ;;  %v1004_v17 = vadd.f32 %v1625_v50, %v2407_v61 }
 0x147   :  { %v1739_v12 = vpop.f32.mrf.mxu0  ;;  %v1802_v26 = vadd.f32 %v1801_v35, %v1800_v19  ;;  %v2581_v19 = vld [vmem:[#allocation9_spill] sm:$0xff]  ;;  %v1098_v54 = vadd.f32 %v1686_v31, %v1001_v32 }
 0x148   :  { %1393 = vst.msk [vmem:[%s2560_s3 + $0x18] sm:$0xf] %vm1386_vm0, %v1558_v58  ;;  %v1313_v47 = vmax.f32 %v1271_v60, 0.0  ;;  %v1179_v24 = vadd.f32 %v1738_v33, %v1082_v49  ;;  %v1803_v40 = vpop.f32.mrf.mxu1  ;;  %v2582_v49 = vld [vmem:[#allocation11_spill] sm:$0xff] }
 0x149   :  { %v1740_v62 = vpop.f32.mrf.mxu0  ;;  %v1628_v36 = vadd.f32 %v2582_v49, %v2581_v19 }
 0x14a   :  { %v1559_v21 = vpack.c.bf16 %v1313_v47, %v1313_v47  ;;  %v1276_v23 = vadd.f32 %v1802_v26, %v1179_v24  ;;  %v1741_v11 = vadd.f32 %v1740_v62, %v1739_v12  ;;  %v1804_v37 = vpop.f32.mrf.mxu1  ;;  %v2583_v12 = vld [vmem:[#allocation6_spill] sm:$0xff] }
 0x14b   :  { %v1742_v52 = vpop.f32.mrf.mxu0  ;;  %v1805_v56 = vadd.f32 %v1804_v37, %v1803_v40  ;;  %v1689_v47 = vadd.f32 %v2584_v14, %v2583_v12 }
 0x14c   :  { %1394 = vst.msk [vmem:[%s2560_s3 + $0x1c] sm:$0xf] %vm1386_vm0, %v1559_v21  ;;  %v1314_v16 = vmax.f32 %v1276_v23, 0.0  ;;  %v1182_v18 = vadd.f32 %v1741_v11, %v1085_v9  ;;  %v1806_v28 = vpop.f32.mrf.mxu1  ;;  %v1009_v9 = vadd.f32 %v1628_v36, %v2407_v61  ;;  %v2585_v23 = vld [vmem:[#allocation13_spill] sm:$0xff]  ;;  %v2586_v11 = vld [vmem:[#allocation15_spill] sm:$0xff] }
 0x14d   :  { %v1743_v30 = vpop.f32.mrf.mxu0  ;;  %v1101_v62 = vadd.f32 %v1689_v47, %v1004_v17  ;;  %v1631_v37 = vadd.f32 %v2586_v11, %v2585_v23 }
 0x14e   :  { %v1560_v59 = vpack.c.bf16 %v1314_v16, %v1314_v16  ;;  %v1279_v4 = vadd.f32 %v1805_v56, %v1182_v18  ;;  %v1744_v41 = vadd.f32 %v1743_v30, %v1742_v52  ;;  %v1807_v43 = vpop.f32.mrf.mxu1  ;;  %v2587_v56 = vld [vmem:[#allocation10_spill] sm:$0xff] }
 0x14f   :  { %v1745_v3 = vpop.f32.mrf.mxu0  ;;  %v1808_v13 = vadd.f32 %v1807_v43, %v1806_v28  ;;  %v2588_v28 = vld [vmem:[#allocation12_spill] sm:$0xff]  ;;  %v1012_v6 = vadd.f32 %v1631_v37, %v2407_v61 }
 0x150   :  { %1395 = vst.msk [vmem:[%s2560_s3 + $0x20] sm:$0xf] %vm1386_vm0, %v1560_v59  ;;  %v1315_v25 = vmax.f32 %v1279_v4, 0.0  ;;  %v1187_v27 = vadd.f32 %v1744_v41, %v1090_v44  ;;  %v1809_v15 = vpop.f32.mrf.mxu1  ;;  %v1692_v44 = vadd.f32 %v2588_v28, %v2587_v56 }
 0x151   :  { %v1746_v55 = vpop.f32.mrf.mxu0 }
 0x152   :  { %v1561_v34 = vpack.c.bf16 %v1315_v25, %v1315_v25  ;;  %v1284_v51 = vadd.f32 %v1808_v13, %v1187_v27  ;;  %v1747_v45 = vadd.f32 %v1746_v55, %v1745_v3  ;;  %v1810_v57 = vpop.f32.mrf.mxu1  ;;  %v1106_v41 = vadd.f32 %v1692_v44, %v1009_v9 }
 0x153   :  { %v1748_v20 = vpop.f32.mrf.mxu0  ;;  %v1811_v5 = vadd.f32 %v1810_v57, %v1809_v15  ;;  %v2589_v15 = vld [vmem:[#allocation14_spill] sm:$0xff] }
 0x154   :  { %1396 = vst.msk [vmem:[%s2560_s3 + $0x24] sm:$0xf] %vm1386_vm0, %v1561_v34  ;;  %v1316_v0 = vmax.f32 %v1284_v51, 0.0  ;;  %v1190_v2 = vadd.f32 %v1747_v45, %v1093_v8  ;;  %v1812_v7 = vpop.f32.mrf.mxu1  ;;  %v2590_v8 = vld [vmem:[#allocation16_spill] sm:$0xff] }
 0x155   :  { %v1749_v38 = vpop.f32.mrf.mxu0  ;;  %v1695_v10 = vadd.f32 %v2590_v8, %v2589_v15 }
 0x156   :  { %v1562_v58 = vpack.c.bf16 %v1316_v0, %v1316_v0  ;;  %v1287_v60 = vadd.f32 %v1811_v5, %v1190_v2  ;;  %v1750_v33 = vadd.f32 %v1749_v38, %v1748_v20  ;;  %v1813_v35 = vpop.f32.mrf.mxu1 }
 0x157   :  { %v1751_v24 = vpop.f32.mrf.mxu0  ;;  %v1814_v42 = vadd.f32 %v1813_v35, %v1812_v7  ;;  %v1109_v51 = vadd.f32 %v1695_v10, %v1012_v6 }
 0x158   :  { %1397 = vst.msk [vmem:[%s2560_s3 + $0x28] sm:$0xf] %vm1386_vm0, %v1562_v58  ;;  %v1317_v26 = vmax.f32 %v1287_v60, 0.0  ;;  %v1195_v40 = vadd.f32 %v1750_v33, %v1098_v54  ;;  %v1815_v53 = vpop.f32.mrf.mxu1 }
 0x159   :  { %v1752_v21 = vpop.f32.mrf.mxu0 }
 0x15a   :  { %v1563_v39 = vpack.c.bf16 %v1317_v26, %v1317_v26  ;;  %v1292_v52 = vadd.f32 %v1814_v42, %v1195_v40  ;;  %v1753_v16 = vadd.f32 %v1752_v21, %v1751_v24  ;;  %v1816_v18 = vpop.f32.mrf.mxu1 }
 0x15b   :  { %v1754_v46 = vpop.f32.mrf.mxu0  ;;  %v1817_v59 = vadd.f32 %v1816_v18, %v1815_v53 }
 0x15c   :  { %1398 = vst.msk [vmem:[%s2560_s3 + $0x2c] sm:$0xf] %vm1386_vm0, %v1563_v39  ;;  %v1318_v30 = vmax.f32 %v1292_v52, 0.0  ;;  %v1198_v63 = vadd.f32 %v1753_v16, %v1101_v62  ;;  %v1818_v4 = vpop.f32.mrf.mxu1 }
 0x15d   :  { %v1755_v43 = vpop.f32.mrf.mxu0 }
 0x15e   :  { %v1564_v1 = vpack.c.bf16 %v1318_v30, %v1318_v30  ;;  %v1295_v3 = vadd.f32 %v1817_v59, %v1198_v63  ;;  %v1756_v25 = vadd.f32 %v1755_v43, %v1754_v46  ;;  %v1819_v27 = vpop.f32.mrf.mxu1 }
 0x15f   :  { %v1757_v13 = vpop.f32.mrf.mxu0  ;;  %v1820_v55 = vadd.f32 %v1819_v27, %v1818_v4 }
 0x160   :  { %1399 = vst.msk [vmem:[%s2560_s3 + $0x30] sm:$0xf] %vm1386_vm0, %v1564_v1  ;;  %v1319_v48 = vmax.f32 %v1295_v3, 0.0  ;;  %v1203_v50 = vadd.f32 %v1756_v25, %v1106_v41  ;;  %v1821_v32 = vpop.f32.mrf.mxu1 }
 0x161   :  { %v1758_v34 = vpop.f32.mrf.mxu0 }
 0x162   :  { %v1565_v61 = vpack.c.bf16 %v1319_v48, %v1319_v48  ;;  %v1300_v45 = vadd.f32 %v1820_v55, %v1203_v50  ;;  %v1759_v57 = vadd.f32 %v1758_v34, %v1757_v13  ;;  %v1822_v20 = vpop.f32.mrf.mxu1 }
 0x163   :  { %v1823_v31 = vadd.f32 %v1822_v20, %v1821_v32 }
 0x164   :  { %1400 = vst.msk [vmem:[%s2560_s3 + $0x34] sm:$0xf] %vm1386_vm0, %v1565_v61  ;;  %v1320_v22 = vmax.f32 %v1300_v45, 0.0  ;;  %v1206_v29 = vadd.f32 %v1759_v57, %v1109_v51 }
 0x166   :  { %v1566_v0 = vpack.c.bf16 %v1320_v22, %v1320_v22  ;;  %v1303_v2 = vadd.f32 %v1823_v31, %v1206_v29 }
 0x168   :  { %1401 = vst.msk [vmem:[%s2560_s3 + $0x38] sm:$0xf] %vm1386_vm0, %v1566_v0  ;;  %v1321_v5 = vmax.f32 %v1303_v2, 0.0 }
 0x16a   :  { %v1567_v7 = vpack.c.bf16 %v1321_v5, %v1321_v5 }
 0x16c   :  { %1402 = vst.msk [vmem:[%s2560_s3 + $0x3c] sm:$0xf] %vm1386_vm0, %v1567_v7 }

// kernel: beta_vae_forward.16
= control target key start
LH: loop header
LB: loop body
LE: loop exit
PB: predicated region body
PF: predicated region fallthrough
CT: control target
= control target key end

     0   :  { %v4130_v0 = vmov 0   ;;  %vm3546_vm0 = vcmask 257024   ;;  %s5713_s1 = inlined_call_operand.vmem [shape: bf16[1024,32], index: 1, kind: input, shape index: {}]   ;;  %s5714_s0 = inlined_call_operand.vmem [shape: bf16[512,1024], index: 0, kind: input, shape index: {}]   ;;  %s5715_s2 = inlined_call_operand.vmem [shape: f32[1,32], index: 2, kind: input, shape index: {}]   ;;  %s5716_s3 = inlined_call_operand.vmem [shape: bf16[512,32], index: 3, kind: output, shape index: {}]  }
   0x1   :  { %2070 = vmatprep.subr.bf16.mxu0 %v4130_v0  ;;  %2359 = vmatprep.subr.bf16.mxu1 %v4130_v0  ;;  %v4065_v1 = vld [vmem:[%s5713_s1 + $0x38] sm:$0xff]   ;;  %v4067_v3 = vld [vmem:[%s5713_s1 + $0x30] sm:$0xff]   ;;  %v4069_v5 = vld [vmem:[%s5713_s1 + $0x28] sm:$0xff]  }
   0x2   :  { %v4066_v2 = vld [vmem:[%s5713_s1 + $0xb8] sm:$0xff]   ;;  %2071 = vmatpush1.bf16.msra.mxu0 %v4065_v1  ;;  %v4068_v4 = vld [vmem:[%s5713_s1 + $0xb0] sm:$0xff]   ;;  %v4070_v6 = vld [vmem:[%s5713_s1 + $0xa8] sm:$0xff]  }
   0x3   :  { %2360 = vmatpush1.bf16.msra.mxu1 %v4066_v2  ;;  %2072 = vmatprep.subr.bf16.mxu0 %v4130_v0  ;;  %v4071_v7 = vld [vmem:[%s5713_s1 + $0x20] sm:$0xff]   ;;  %v4073_v9 = vld [vmem:[%s5713_s1 + $0x18] sm:$0xff]   ;;  %v4075_v11 = vld [vmem:[%s5713_s1 + $0x10] sm:$0xff]  }
   0x4   :  { %2361 = vmatprep.subr.bf16.mxu1 %v4130_v0  ;;  %v4072_v8 = vld [vmem:[%s5713_s1 + $0xa0] sm:$0xff]   ;;  %v4074_v10 = vld [vmem:[%s5713_s1 + $0x98] sm:$0xff]   ;;  %v4076_v12 = vld [vmem:[%s5713_s1 + $0x90] sm:$0xff]  }
   0x5   :  { %v4077_v13 = vld [vmem:[%s5713_s1 + $0x8] sm:$0xff]   ;;  %v4079_v15 = vld [vmem:[%s5713_s1] sm:$0xff]   ;;  %v4081_v17 = vld [vmem:[%s5713_s1 + $0x78] sm:$0xff]  }
   0x6   :  { %2073 = vmatpush1.bf16.msra.mxu0 %v4067_v3  ;;  %v4078_v14 = vld [vmem:[%s5713_s1 + $0x88] sm:$0xff]   ;;  %v4080_v16 = vld [vmem:[%s5713_s1 + $0x80] sm:$0xff]   ;;  %v4082_v18 = vld [vmem:[%s5713_s1 + $0xf8] sm:$0xff]  }
   0x7   :  { %2362 = vmatpush1.bf16.msra.mxu1 %v4068_v4  ;;  %2074 = vmatprep.subr.bf16.mxu0 %v4130_v0  ;;  %v4226_v19 = vld [vmem:[%s5714_s0] sm:$0xff]  ;;  %v4236_v21 = vld [vmem:[%s5714_s0 + $0x8] sm:$0xff]  ;;  %v4083_v24 = vld [vmem:[%s5713_s1 + $0x70] sm:$0xff]  }
   0x8   :  { %2363 = vmatprep.subr.bf16.mxu1 %v4130_v0  ;;  %v4231_v20 = vld [vmem:[%s5714_s0 + $0x20] sm:$0xff]  ;;  %v4243_v23 = vld [vmem:[%s5714_s0 + $0x28] sm:$0xff]  ;;  %v4084_v26 = vld [vmem:[%s5713_s1 + $0xf0] sm:$0xff]  }
   0x9   :  { %v3617_v22 = vcombine.high %v4226_v19, %v4231_v20  ;;  %v3619_v25 = vcombine.high %v4236_v21, %v4243_v23  ;;  %v4085_v27 = vld [vmem:[%s5713_s1 + $0x68] sm:$0xff]   ;;  %v4087_v29 = vld [vmem:[%s5713_s1 + $0x60] sm:$0xff]   ;;  %v4089_v31 = vld [vmem:[%s5713_s1 + $0x58] sm:$0xff]   ;;  %v3616_v42 = vcombine.low %v4226_v19, %v4231_v20  ;;  %v3618_v44 = vcombine.low %v4236_v21, %v4243_v23 }
   0xa   :  { %2075 = vmatpush1.bf16.msra.mxu0 %v4069_v5  ;;  %v4086_v28 = vld [vmem:[%s5713_s1 + $0xe8] sm:$0xff]   ;;  %v4088_v30 = vld [vmem:[%s5713_s1 + $0xe0] sm:$0xff]   ;;  %v4090_v32 = vld [vmem:[%s5713_s1 + $0xd8] sm:$0xff]  }
   0xb   :  { %2364 = vmatpush1.bf16.msra.mxu1 %v4070_v6  ;;  %2076 = vmatprep.subr.bf16.mxu0 %v4130_v0  ;;  %v4091_v33 = vld [vmem:[%s5713_s1 + $0x50] sm:$0xff]   ;;  %v4093_v35 = vld [vmem:[%s5713_s1 + $0x48] sm:$0xff]   ;;  %v4095_v37 = vld [vmem:[%s5713_s1 + $0x40] sm:$0xff]  }
   0xc   :  { %2365 = vmatprep.subr.bf16.mxu1 %v4130_v0  ;;  %2102 = vmatprep.mubr.bf16.mxu0 %v3617_v22  ;;  %v4092_v34 = vld [vmem:[%s5713_s1 + $0xd0] sm:$0xff]   ;;  %v4094_v36 = vld [vmem:[%s5713_s1 + $0xc8] sm:$0xff]   ;;  %v4096_v38 = vld [vmem:[%s5713_s1 + $0xc0] sm:$0xff]  }
   0xd   :  { %2391 = vmatprep.mubr.bf16.mxu1 %v3619_v25  ;;  %v23_v39 = vld [vmem:[%s5714_s0 + $0x40] sm:$0xff]  ;;  %v24_v41 = vld [vmem:[%s5714_s0 + $0x48] sm:$0xff]  ;;  %v4097_v45 = vld [vmem:[%s5713_s1 + $0x138] sm:$0xff]  }
   0xe   :  { %2077 = vmatpush1.bf16.msra.mxu0 %v4071_v7  ;;  %v27_v40 = vld [vmem:[%s5714_s0 + $0x60] sm:$0xff]  ;;  %v28_v43 = vld [vmem:[%s5714_s0 + $0x68] sm:$0xff]  ;;  %v4098_v46 = vld [vmem:[%s5713_s1 + $0x1b8] sm:$0xff]  }
   0xf   :  { %2366 = vmatpush1.bf16.msra.mxu1 %v4072_v8  ;;  %2078 = vmatprep.subr.bf16.mxu0 %v4130_v0  ;;  %v3625_v47 = vcombine.high %v23_v39, %v27_v40  ;;  %v3627_v48 = vcombine.high %v24_v41, %v28_v43  ;;  %v31_v49 = vld [vmem:[%s5714_s0 + $0x80] sm:$0xff]  ;;  %v4099_v51 = vld [vmem:[%s5713_s1 + $0x130] sm:$0xff]   ;;  %v32_v53 = vld [vmem:[%s5714_s0 + $0x88] sm:$0xff]  ;;  %v3624_v55 = vcombine.low %v23_v39, %v27_v40 }
  0x10   :  { %2367 = vmatprep.subr.bf16.mxu1 %v4130_v0  ;;  %v35_v50 = vld [vmem:[%s5714_s0 + $0xa0] sm:$0xff]  ;;  %v4100_v52 = vld [vmem:[%s5713_s1 + $0x1b0] sm:$0xff]   ;;  %v36_v54 = vld [vmem:[%s5714_s0 + $0xa8] sm:$0xff]  ;;  %v3626_v56 = vcombine.low %v24_v41, %v28_v43 }
  0x11   :  { %v3633_v57 = vcombine.high %v31_v49, %v35_v50  ;;  %v3635_v58 = vcombine.high %v32_v53, %v36_v54  ;;  %v4101_v59 = vld [vmem:[%s5713_s1 + $0x128] sm:$0xff]   ;;  %v39_v61 = vld [vmem:[%s5714_s0 + $0xc0] sm:$0xff]  ;;  %v3632_v4 = vcombine.low %v31_v49, %v35_v50  ;;  %v4105_v5 = vld [vmem:[%s5713_s1 + $0x118] sm:$0xff]   ;;  %v3634_v6 = vcombine.low %v32_v53, %v36_v54 }
  0x12   :  { %2079 = vmatpush1.bf16.msra.mxu0 %v4073_v9  ;;  %v4102_v60 = vld [vmem:[%s5713_s1 + $0x1a8] sm:$0xff]   ;;  %v43_v62 = vld [vmem:[%s5714_s0 + $0xe0] sm:$0xff]  ;;  %v4106_v8 = vld [vmem:[%s5713_s1 + $0x198] sm:$0xff]  }
  0x13   :  { %2368 = vmatpush1.bf16.msra.mxu1 %v4074_v10  ;;  %2080 = vmatprep.subr.bf16.mxu0 %v4130_v0  ;;  %v40_v63 = vld [vmem:[%s5714_s0 + $0xc8] sm:$0xff]  ;;  %v4103_v2 = vld [vmem:[%s5713_s1 + $0x120] sm:$0xff]   ;;  %v3641_v7 = vcombine.high %v39_v61, %v43_v62  ;;  %v4116_v39 = vld [vmem:[%s5713_s1 + $0x1f0] sm:$0xff]  }
  0x14   :  { %2369 = vmatprep.subr.bf16.mxu1 %v4130_v0  ;;  %v44_v1 = vld [vmem:[%s5714_s0 + $0xe8] sm:$0xff]  ;;  %v4104_v3 = vld [vmem:[%s5713_s1 + $0x1a0] sm:$0xff]  }
  0x15   :  { %v3643_v9 = vcombine.high %v40_v63, %v44_v1  ;;  %v47_v10 = vld [vmem:[%s5714_s0 + $0x100] sm:$0xff]  ;;  %v4109_v20 = vld [vmem:[%s5713_s1 + $0x108] sm:$0xff]  }
  0x16   :  { %2081 = vmatpush1.bf16.msra.mxu0 %v4075_v11  ;;  %v51_v11 = vld [vmem:[%s5714_s0 + $0x120] sm:$0xff]  ;;  %v4110_v21 = vld [vmem:[%s5713_s1 + $0x188] sm:$0xff]  }
  0x17   :  { %2370 = vmatpush1.bf16.msra.mxu1 %v4076_v12  ;;  %2082 = vmatprep.subr.bf16.mxu0 %v4130_v0  ;;  %v48_v12 = vld [vmem:[%s5714_s0 + $0x108] sm:$0xff]  ;;  %v55_v22 = vld [vmem:[%s5714_s0 + $0x140] sm:$0xff] }
  0x18   :  { %2371 = vmatprep.subr.bf16.mxu1 %v4130_v0  ;;  %v59_v23 = vld [vmem:[%s5714_s0 + $0x160] sm:$0xff]  ;;  %v56_v25 = vld [vmem:[%s5714_s0 + $0x148] sm:$0xff] }
  0x19   :  { %v3656_v40 = vcombine.low %v55_v22, %v59_v23  ;;  %v76_v49 = vld [vmem:[%s5714_s0 + $0x1e8] sm:$0xff]  ;;  %v4119_v54 = vld [vmem:[%s5713_s1 + $0x160] sm:$0xff]  }
  0x1a   :  { %2083 = vmatpush1.bf16.msra.mxu0 %v4077_v13  ;;  %v52_v13 = vld [vmem:[%s5714_s0 + $0x128] sm:$0xff] }
  0x1b   :  { %2372 = vmatpush1.bf16.msra.mxu1 %v4078_v14  ;;  %2084 = vmatprep.subr.bf16.mxu0 %v4130_v0  ;;  %v4107_v14 = vld [vmem:[%s5713_s1 + $0x110] sm:$0xff]   ;;  %v3651_v19 = vcombine.high %v48_v12, %v52_v13 }
  0x1c   :  { %2373 = vmatprep.subr.bf16.mxu1 %v4130_v0 }
  0x1e   :  { %2085 = vmatpush1.bf16.msra.mxu0 %v4079_v15  ;;  %v4108_v15 = vld [vmem:[%s5713_s1 + $0x190] sm:$0xff]  }
  0x1f   :  { %2374 = vmatpush1.bf16.msra.mxu1 %v4080_v16  ;;  %2086 = vmatprep.subr.bf16.mxu0 %v4130_v0  ;;  %v3640_v16 = vcombine.low %v39_v61, %v43_v62 }
  0x20   :  { %2375 = vmatprep.subr.bf16.mxu1 %v4130_v0 }
  0x22   :  { %2087 = vmatpush2.bf16.msra.mxu0 %v4081_v17  ;;  %v3642_v17 = vcombine.low %v40_v63, %v44_v1  ;;  %v87_v1 = vld [vmem:[%s5714_s0 + $0x240] sm:$0xff] }
  0x23   :  { %2376 = vmatpush2.bf16.msra.mxu1 %v4082_v18  ;;  %2088 = vmatprep.subr.bf16.mxu0 %v4130_v0  ;;  %v3649_v18 = vcombine.high %v47_v10, %v51_v11 }
  0x24   :  { %2377 = vmatprep.subr.bf16.mxu1 %v4130_v0 }
  0x26   :  { %2089 = vmatpush2.bf16.msra.mxu0 %v4083_v24  ;;  %v4111_v24 = vld [vmem:[%s5713_s1 + $0x100] sm:$0xff]  }
  0x27   :  { %2378 = vmatpush2.bf16.msra.mxu1 %v4084_v26  ;;  %2090 = vmatprep.subr.bf16.mxu0 %v4130_v0  ;;  %v60_v26 = vld [vmem:[%s5714_s0 + $0x168] sm:$0xff] }
  0x28   :  { %2379 = vmatprep.subr.bf16.mxu1 %v4130_v0  ;;  %v3658_v41 = vcombine.low %v56_v25, %v60_v26 }
  0x2a   :  { %2091 = vmatpush2.bf16.msra.mxu0 %v4085_v27  ;;  %v4112_v27 = vld [vmem:[%s5713_s1 + $0x180] sm:$0xff]  }
  0x2b   :  { %2380 = vmatpush2.bf16.msra.mxu1 %v4086_v28  ;;  %2092 = vmatprep.subr.bf16.mxu0 %v4130_v0  ;;  %v3648_v28 = vcombine.low %v47_v10, %v51_v11  ;;  %v99_v10 = vld [vmem:[%s5714_s0 + $0x2a0] sm:$0xff]  ;;  %v96_v11 = vld [vmem:[%s5714_s0 + $0x288] sm:$0xff] }
  0x2c   :  { %2381 = vmatprep.subr.bf16.mxu1 %v4130_v0 }
  0x2e   :  { %2093 = vmatpush2.bf16.msra.mxu0 %v4087_v29  ;;  %v3650_v29 = vcombine.low %v48_v12, %v52_v13  ;;  %v100_v12 = vld [vmem:[%s5714_s0 + $0x2a8] sm:$0xff]  ;;  %v4121_v13 = vld [vmem:[%s5713_s1 + $0x158] sm:$0xff]  }
  0x2f   :  { %2382 = vmatpush2.bf16.msra.mxu1 %v4088_v30  ;;  %2094 = vmatprep.subr.bf16.mxu0 %v4130_v0  ;;  %v3657_v30 = vcombine.high %v55_v22, %v59_v23  ;;  %v108_v22 = vld [vmem:[%s5714_s0 + $0x2e8] sm:$0xff] }
  0x30   :  { %2383 = vmatprep.subr.bf16.mxu1 %v4130_v0 }
  0x32   :  { %2095 = vmatpush2.bf16.msra.mxu0 %v4089_v31  ;;  %v3659_v31 = vcombine.high %v56_v25, %v60_v26 }
  0x33   :  { %2384 = vmatpush2.bf16.msra.mxu1 %v4090_v32  ;;  %2096 = vmatprep.subr.bf16.mxu0 %v4130_v0  ;;  %v4113_v32 = vld [vmem:[%s5713_s1 + $0x178] sm:$0xff]  }
  0x34   :  { %2385 = vmatprep.subr.bf16.mxu1 %v4130_v0 }
  0x36   :  { %2097 = vmatpush2.bf16.msra.mxu0 %v4091_v33  ;;  %v4114_v33 = vld [vmem:[%s5713_s1 + $0x1f8] sm:$0xff]  }
  0x37   :  { %2386 = vmatpush2.bf16.msra.mxu1 %v4092_v34  ;;  %2098 = vmatprep.subr.bf16.mxu0 %v4130_v0  ;;  %v63_v34 = vld [vmem:[%s5714_s0 + $0x180] sm:$0xff] }
  0x38   :  { %2387 = vmatprep.subr.bf16.mxu1 %v4130_v0 }
  0x3a   :  { %2099 = vmatpush2.bf16.msra.mxu0 %v4093_v35  ;;  %v67_v35 = vld [vmem:[%s5714_s0 + $0x1a0] sm:$0xff] }
  0x3b   :  { %2388 = vmatpush2.bf16.msra.mxu1 %v4094_v36  ;;  %2100 = vmatprep.subr.bf16.mxu0 %v4130_v0  ;;  %v4115_v36 = vld [vmem:[%s5713_s1 + $0x170] sm:$0xff]   ;;  %v3664_v50 = vcombine.low %v63_v34, %v67_v35 }
  0x3c   :  { %2389 = vmatprep.subr.bf16.mxu1 %v4130_v0 }
  0x3e   :  { %2101 = vmatpush2.bf16.msra.mxu0 %v4095_v37  ;;  %v64_v37 = vld [vmem:[%s5714_s0 + $0x188] sm:$0xff] }
  0x3f   :  { %2390 = vmatpush2.bf16.msra.mxu1 %v4096_v38  ;;  %2648 = vmatprep.subr.bf16.mxu0 %v4130_v0  ;;  %v68_v38 = vld [vmem:[%s5714_s0 + $0x1a8] sm:$0xff] }
  0x40   :  { %2937 = vmatprep.subr.bf16.mxu1 %v4130_v0  ;;  %v3667_v43 = vcombine.high %v64_v37, %v68_v38 }
  0x41   :  { %2103 = vmatmul.mubr.bf16.vlgmr.msra.gmra.mxu0 %v3616_v42  ;;  %v3665_v42 = vcombine.high %v63_v34, %v67_v35 }
  0x42   :  { %2392 = vmatmul.mubr.bf16.vlgmr.msra.gmra.mxu1 %v3618_v44  ;;  %2649 = vmatpush1.bf16.msra.mxu0 %v4097_v45  ;;  %v4117_v44 = vld [vmem:[%s5713_s1 + $0x168] sm:$0xff]  }
  0x43   :  { %2938 = vmatpush1.bf16.msra.mxu1 %v4098_v46  ;;  %2110 = vmatprep.mubr.bf16.mxu0 %v3625_v47  ;;  %v4118_v45 = vld [vmem:[%s5713_s1 + $0x1e8] sm:$0xff]   ;;  %v71_v46 = vld [vmem:[%s5714_s0 + $0x1c0] sm:$0xff] }
  0x44   :  { %2399 = vmatprep.mubr.bf16.mxu1 %v3627_v48  ;;  %2650 = vmatprep.subr.bf16.mxu0 %v4130_v0  ;;  %v75_v47 = vld [vmem:[%s5714_s0 + $0x1e0] sm:$0xff]  ;;  %v72_v48 = vld [vmem:[%s5714_s0 + $0x1c8] sm:$0xff] }
  0x45   :  { %2939 = vmatprep.subr.bf16.mxu1 %v4130_v0  ;;  %v3675_v53 = vcombine.high %v72_v48, %v76_v49  ;;  %v3674_v61 = vcombine.low %v72_v48, %v76_v49  ;;  %v132_v48 = vld [vmem:[%s5714_s0 + $0x3a8] sm:$0xff] }
  0x46   :  { %2651 = vmatpush1.bf16.msra.mxu0 %v4099_v51  ;;  %v3666_v51 = vcombine.low %v64_v37, %v68_v38  ;;  %v119_v37 = vld [vmem:[%s5714_s0 + $0x340] sm:$0xff]  ;;  %v4125_v49 = vld [vmem:[%s5713_s1 + $0x148] sm:$0xff]  }
  0x47   :  { %2940 = vmatpush1.bf16.msra.mxu1 %v4100_v52  ;;  %2652 = vmatprep.subr.bf16.mxu0 %v4130_v0  ;;  %v3673_v52 = vcombine.high %v71_v46, %v75_v47  ;;  %v123_v38 = vld [vmem:[%s5714_s0 + $0x360] sm:$0xff] }
  0x48   :  { %2941 = vmatprep.subr.bf16.mxu1 %v4130_v0 }
  0x49   :  { %2111 = vmatmul.mubr.bf16.gmra.mxu0 %v3624_v55  ;;  %v4120_v55 = vld [vmem:[%s5713_s1 + $0x1e0] sm:$0xff]  }
  0x4a   :  { %2400 = vmatmul.mubr.bf16.gmra.mxu1 %v3626_v56  ;;  %2118 = vmatprep.mubr.bf16.mxu0 %v3633_v57  ;;  %v79_v56 = vld [vmem:[%s5714_s0 + $0x200] sm:$0xff] }
  0x4b   :  { %2407 = vmatprep.mubr.bf16.mxu1 %v3635_v58  ;;  %2653 = vmatpush1.bf16.msra.mxu0 %v4101_v59  ;;  %v83_v57 = vld [vmem:[%s5714_s0 + $0x220] sm:$0xff]  ;;  %v80_v58 = vld [vmem:[%s5714_s0 + $0x208] sm:$0xff] }
  0x4c   :  { %2942 = vmatpush1.bf16.msra.mxu1 %v4102_v60  ;;  %2654 = vmatprep.subr.bf16.mxu0 %v4130_v0  ;;  %v84_v59 = vld [vmem:[%s5714_s0 + $0x228] sm:$0xff]  ;;  %v3672_v60 = vcombine.low %v71_v46, %v75_v47  ;;  %v3681_v62 = vcombine.high %v79_v56, %v83_v57  ;;  %v131_v46 = vld [vmem:[%s5714_s0 + $0x3a0] sm:$0xff] }
  0x4d   :  { %2943 = vmatprep.subr.bf16.mxu1 %v4130_v0  ;;  %v3683_v63 = vcombine.high %v80_v58, %v84_v59  ;;  %v128_v47 = vld [vmem:[%s5714_s0 + $0x388] sm:$0xff] }
  0x4f   :  { %2655 = vmatpush1.bf16.msra.mxu0 %v4103_v2  ;;  %v91_v2 = vld [vmem:[%s5714_s0 + $0x260] sm:$0xff] }
  0x50   :  { %2944 = vmatpush1.bf16.msra.mxu1 %v4104_v3  ;;  %2656 = vmatprep.subr.bf16.mxu0 %v4130_v0  ;;  %v88_v3 = vld [vmem:[%s5714_s0 + $0x248] sm:$0xff] }
  0x51   :  { %2119 = vmatmul.mubr.bf16.gmra.mxu0 %v3632_v4  ;;  %2945 = vmatprep.subr.bf16.mxu1 %v4130_v0  ;;  %v92_v4 = vld [vmem:[%s5714_s0 + $0x268] sm:$0xff] }
  0x52   :  { %2408 = vmatmul.mubr.bf16.gmra.mxu1 %v3634_v6  ;;  %2126 = vmatprep.mubr.bf16.mxu0 %v3641_v7  ;;  %v3682_v6 = vcombine.low %v80_v58, %v84_v59  ;;  %v3689_v7 = vcombine.high %v87_v1, %v91_v2  ;;  %v3730_v59 = vcombine.low %v128_v47, %v132_v48 }
  0x53   :  { %2415 = vmatprep.mubr.bf16.mxu1 %v3643_v9  ;;  %2657 = vmatpush1.bf16.msra.mxu0 %v4105_v5  ;;  %v3680_v5 = vcombine.low %v79_v56, %v83_v57  ;;  %v95_v9 = vld [vmem:[%s5714_s0 + $0x280] sm:$0xff]  ;;  %v136_v57 = vld [vmem:[%s5714_s0 + $0x3c8] sm:$0xff] }
  0x54   :  { %2946 = vmatpush1.bf16.msra.mxu1 %v4106_v8  ;;  %2658 = vmatprep.subr.bf16.mxu0 %v4130_v0  ;;  %v3691_v8 = vcombine.high %v88_v3, %v92_v4  ;;  %v3696_v23 = vcombine.low %v95_v9, %v99_v10  ;;  %v139_v56 = vld [vmem:[%s5714_s0 + $0x3e0] sm:$0xff] }
  0x55   :  { %2947 = vmatprep.subr.bf16.mxu1 %v4130_v0 }
  0x57   :  { %2659 = vmatpush1.bf16.msra.mxu0 %v4107_v14  ;;  %v4122_v14 = vld [vmem:[%s5713_s1 + $0x1d8] sm:$0xff]  }
  0x58   :  { %2948 = vmatpush1.bf16.msra.mxu1 %v4108_v15  ;;  %2660 = vmatprep.subr.bf16.mxu0 %v4130_v0  ;;  %v3688_v15 = vcombine.low %v87_v1, %v91_v2  ;;  %v144_v1 = vld [vmem:[%s5714_s0 + $0x408] sm:$0xff] }
  0x59   :  { %2127 = vmatmul.mubr.bf16.gmra.mxu0 %v3640_v16  ;;  %2949 = vmatprep.subr.bf16.mxu1 %v4130_v0  ;;  %v3690_v16 = vcombine.low %v88_v3, %v92_v4  ;;  %v148_v2 = vld [vmem:[%s5714_s0 + $0x428] sm:$0xff]  ;;  %v4127_v3 = vld [vmem:[%s5713_s1 + $0x140] sm:$0xff]  }
  0x5a   :  { %2416 = vmatmul.mubr.bf16.gmra.mxu1 %v3642_v17  ;;  %2134 = vmatprep.mubr.bf16.mxu0 %v3649_v18  ;;  %v3697_v17 = vcombine.high %v95_v9, %v99_v10  ;;  %v3699_v18 = vcombine.high %v96_v11, %v100_v12  ;;  %v4128_v4 = vld [vmem:[%s5713_s1 + $0x1c0] sm:$0xff]  }
  0x5b   :  { %2423 = vmatprep.mubr.bf16.mxu1 %v3651_v19  ;;  %2661 = vmatpush1.bf16.msra.mxu0 %v4109_v20  ;;  %v103_v19 = vld [vmem:[%s5714_s0 + $0x2c0] sm:$0xff] }
  0x5c   :  { %2950 = vmatpush1.bf16.msra.mxu1 %v4110_v21  ;;  %2662 = vmatprep.subr.bf16.mxu0 %v4130_v0  ;;  %v107_v20 = vld [vmem:[%s5714_s0 + $0x2e0] sm:$0xff]  ;;  %v104_v21 = vld [vmem:[%s5714_s0 + $0x2c8] sm:$0xff] }
  0x5d   :  { %2951 = vmatprep.subr.bf16.mxu1 %v4130_v0  ;;  %v3705_v25 = vcombine.high %v103_v19, %v107_v20  ;;  %v3707_v26 = vcombine.high %v104_v21, %v108_v22  ;;  %v3706_v34 = vcombine.low %v104_v21, %v108_v22  ;;  %v151_v9 = vld [vmem:[%s5714_s0 + $0x440] sm:$0xff] }
  0x5e   :  { %v155_v10 = vld [vmem:[%s5714_s0 + $0x460] sm:$0xff] }
  0x5f   :  { %2663 = vmatpush1.bf16.msra.mxu0 %v4111_v24  ;;  %v3698_v24 = vcombine.low %v96_v11, %v100_v12  ;;  %v152_v11 = vld [vmem:[%s5714_s0 + $0x448] sm:$0xff]  ;;  %v3752_v21 = vcombine.low %v151_v9, %v155_v10 }
  0x60   :  { %2952 = vmatpush1.bf16.msra.mxu1 %v4112_v27  ;;  %2664 = vmatprep.subr.bf16.mxu0 %v4130_v0  ;;  %v111_v27 = vld [vmem:[%s5714_s0 + $0x300] sm:$0xff]  ;;  %v156_v12 = vld [vmem:[%s5714_s0 + $0x468] sm:$0xff] }
  0x61   :  { %2135 = vmatmul.mubr.bf16.gmra.mxu0 %v3648_v28  ;;  %2953 = vmatprep.subr.bf16.mxu1 %v4130_v0  ;;  %v115_v28 = vld [vmem:[%s5714_s0 + $0x320] sm:$0xff]  ;;  %v3754_v22 = vcombine.low %v152_v11, %v156_v12 }
  0x62   :  { %2424 = vmatmul.mubr.bf16.gmra.mxu1 %v3650_v29  ;;  %2142 = vmatprep.mubr.bf16.mxu0 %v3657_v30  ;;  %v112_v29 = vld [vmem:[%s5714_s0 + $0x308] sm:$0xff]  ;;  %v3713_v35 = vcombine.high %v111_v27, %v115_v28 }
  0x63   :  { %2431 = vmatprep.mubr.bf16.mxu1 %v3659_v31  ;;  %2665 = vmatpush2.bf16.msra.mxu0 %v4113_v32  ;;  %v116_v30 = vld [vmem:[%s5714_s0 + $0x328] sm:$0xff]  ;;  %v4123_v31 = vld [vmem:[%s5713_s1 + $0x150] sm:$0xff]  }
  0x64   :  { %2954 = vmatpush2.bf16.msra.mxu1 %v4114_v33  ;;  %2666 = vmatprep.subr.bf16.mxu0 %v4130_v0  ;;  %v4124_v32 = vld [vmem:[%s5713_s1 + $0x1d0] sm:$0xff]   ;;  %v3704_v33 = vcombine.low %v103_v19, %v107_v20  ;;  %v160_v19 = vld [vmem:[%s5714_s0 + $0x488] sm:$0xff] }
  0x65   :  { %2955 = vmatprep.subr.bf16.mxu1 %v4130_v0  ;;  %v164_v20 = vld [vmem:[%s5714_s0 + $0x4a8] sm:$0xff] }
  0x67   :  { %2667 = vmatpush2.bf16.msra.mxu0 %v4115_v36  ;;  %v3715_v36 = vcombine.high %v112_v29, %v116_v30 }
  0x68   :  { %2956 = vmatpush2.bf16.msra.mxu1 %v4116_v39  ;;  %2668 = vmatprep.subr.bf16.mxu0 %v4130_v0  ;;  %v120_v39 = vld [vmem:[%s5714_s0 + $0x348] sm:$0xff] }
  0x69   :  { %2143 = vmatmul.mubr.bf16.gmra.mxu0 %v3656_v40  ;;  %2957 = vmatprep.subr.bf16.mxu1 %v4130_v0  ;;  %v124_v40 = vld [vmem:[%s5714_s0 + $0x368] sm:$0xff] }
  0x6a   :  { %2432 = vmatmul.mubr.bf16.gmra.mxu1 %v3658_v41  ;;  %2150 = vmatprep.mubr.bf16.mxu0 %v3665_v42  ;;  %v3712_v41 = vcombine.low %v111_v27, %v115_v28  ;;  %v3714_v42 = vcombine.low %v112_v29, %v116_v30  ;;  %v168_v27 = vld [vmem:[%s5714_s0 + $0x4c8] sm:$0xff]  ;;  %v3762_v30 = vcombine.low %v160_v19, %v164_v20 }
  0x6b   :  { %2439 = vmatprep.mubr.bf16.mxu1 %v3667_v43  ;;  %2669 = vmatpush2.bf16.msra.mxu0 %v4117_v44  ;;  %v3721_v43 = vcombine.high %v119_v37, %v123_v38  ;;  %v3723_v44 = vcombine.high %v120_v39, %v124_v40  ;;  %v172_v28 = vld [vmem:[%s5714_s0 + $0x4e8] sm:$0xff] }
  0x6c   :  { %2958 = vmatpush2.bf16.msra.mxu1 %v4118_v45  ;;  %2670 = vmatprep.subr.bf16.mxu0 %v4130_v0  ;;  %v127_v45 = vld [vmem:[%s5714_s0 + $0x380] sm:$0xff] }
  0x6d   :  { %2959 = vmatprep.subr.bf16.mxu1 %v4130_v0  ;;  %v3728_v58 = vcombine.low %v127_v45, %v131_v46 }
  0x6f   :  { %2671 = vmatpush2.bf16.msra.mxu0 %v4119_v54  ;;  %v3731_v54 = vcombine.high %v128_v47, %v132_v48 }
  0x70   :  { %2960 = vmatpush2.bf16.msra.mxu1 %v4120_v55  ;;  %2672 = vmatprep.subr.bf16.mxu0 %v4130_v0  ;;  %v135_v55 = vld [vmem:[%s5714_s0 + $0x3c0] sm:$0xff] }
  0x71   :  { %2151 = vmatmul.mubr.bf16.gmra.mxu0 %v3664_v50  ;;  %2961 = vmatprep.subr.bf16.mxu1 %v4130_v0  ;;  %v4126_v50 = vld [vmem:[%s5713_s1 + $0x1c8] sm:$0xff]  }
  0x72   :  { %2440 = vmatmul.mubr.bf16.gmra.mxu1 %v3666_v51  ;;  %2158 = vmatprep.mubr.bf16.mxu0 %v3673_v52  ;;  %v3720_v51 = vcombine.low %v119_v37, %v123_v38  ;;  %v3722_v52 = vcombine.low %v120_v39, %v124_v40  ;;  %v3770_v38 = vcombine.low %v168_v27, %v172_v28 }
  0x73   :  { %2447 = vmatprep.mubr.bf16.mxu1 %v3675_v53  ;;  %2673 = vmatpush2.bf16.msra.mxu0 %v4121_v13  ;;  %v3729_v53 = vcombine.high %v127_v45, %v131_v46 }
  0x74   :  { %2962 = vmatpush2.bf16.msra.mxu1 %v4122_v14  ;;  %2674 = vmatprep.subr.bf16.mxu0 %v4130_v0  ;;  %v3746_v14 = vcombine.low %v144_v1, %v148_v2 }
  0x75   :  { %2963 = vmatprep.subr.bf16.mxu1 %v4130_v0 }
  0x77   :  { %2675 = vmatpush2.bf16.msra.mxu0 %v4123_v31 }
  0x78   :  { %2964 = vmatpush2.bf16.msra.mxu1 %v4124_v32  ;;  %2676 = vmatprep.subr.bf16.mxu0 %v4130_v0  ;;  %v3771_v32 = vcombine.high %v168_v27, %v172_v28  ;;  %v228_v27 = vld [vmem:[%s5714_s0 + $0x6a8] sm:$0xff] }
  0x79   :  { %2159 = vmatmul.mubr.bf16.gmra.mxu0 %v3672_v60  ;;  %2965 = vmatprep.subr.bf16.mxu1 %v4130_v0  ;;  %v3737_v60 = vcombine.high %v135_v55, %v139_v56 }
  0x7a   :  { %2448 = vmatmul.mubr.bf16.gmra.mxu1 %v3674_v61  ;;  %2166 = vmatprep.mubr.bf16.mxu0 %v3681_v62  ;;  %v143_v62 = vld [vmem:[%s5714_s0 + $0x400] sm:$0xff] }
  0x7b   :  { %2455 = vmatprep.mubr.bf16.mxu1 %v3683_v63  ;;  %2677 = vmatpush2.bf16.msra.mxu0 %v4125_v49  ;;  %v147_v63 = vld [vmem:[%s5714_s0 + $0x420] sm:$0xff] }
  0x7c   :  { %2966 = vmatpush2.bf16.msra.mxu1 %v4126_v50  ;;  %2678 = vmatprep.subr.bf16.mxu0 %v4130_v0  ;;  %v3744_v13 = vcombine.low %v143_v62, %v147_v63  ;;  %v191_v49 = vld [vmem:[%s5714_s0 + $0x580] sm:$0xff] }
  0x7d   :  { %2967 = vmatprep.subr.bf16.mxu1 %v4130_v0  ;;  %v140_v0 = vld [vmem:[%s5714_s0 + $0x3e8] sm:$0xff]  ;;  %v195_v50 = vld [vmem:[%s5714_s0 + $0x5a0] sm:$0xff] }
  0x7e   :  { %v3739_v61 = vcombine.high %v136_v57, %v140_v0 }
  0x7f   :  { %2679 = vmatpush2.bf16.msra.mxu0 %v4127_v3  ;;  %v208_v3 = vld [vmem:[%s5714_s0 + $0x608] sm:$0xff] }
  0x80   :  { %2968 = vmatpush2.bf16.msra.mxu1 %v4128_v4  ;;  %v212_v4 = vld [vmem:[%s5714_s0 + $0x628] sm:$0xff] }
  0x81   :  { %2167 = vmatmul.mubr.bf16.gmra.mxu0 %v3680_v5  ;;  %v3736_v5 = vcombine.low %v135_v55, %v139_v56  ;;  %v3793_v55 = vcombine.high %v191_v49, %v195_v50 }
  0x82   :  { %2456 = vmatmul.mubr.bf16.gmra.mxu1 %v3682_v6  ;;  %2174 = vmatprep.mubr.bf16.mxu0 %v3689_v7  ;;  %v3738_v6 = vcombine.low %v136_v57, %v140_v0  ;;  %v3745_v7 = vcombine.high %v143_v62, %v147_v63  ;;  %v199_v57 = vld [vmem:[%s5714_s0 + $0x5c0] sm:$0xff] }
  0x83   :  { %2463 = vmatprep.mubr.bf16.mxu1 %v3691_v8  ;;  %v3747_v8 = vcombine.high %v144_v1, %v148_v2  ;;  %v203_v0 = vld [vmem:[%s5714_s0 + $0x5e0] sm:$0xff] }
  0x84   :  { %v3801_v62 = vcombine.high %v199_v57, %v203_v0  ;;  %v207_v1 = vld [vmem:[%s5714_s0 + $0x600] sm:$0xff] }
  0x85   :  { %v211_v2 = vld [vmem:[%s5714_s0 + $0x620] sm:$0xff] }
  0x89   :  { %2175 = vmatmul.mubr.bf16.gmra.mxu0 %v3688_v15  ;;  %v3753_v15 = vcombine.high %v151_v9, %v155_v10  ;;  %v215_v9 = vld [vmem:[%s5714_s0 + $0x640] sm:$0xff] }
  0x8a   :  { %2464 = vmatmul.mubr.bf16.gmra.mxu1 %v3690_v16  ;;  %2182 = vmatprep.mubr.bf16.mxu0 %v3697_v17  ;;  %v3755_v16 = vcombine.high %v152_v11, %v156_v12  ;;  %v159_v17 = vld [vmem:[%s5714_s0 + $0x480] sm:$0xff]  ;;  %v216_v11 = vld [vmem:[%s5714_s0 + $0x648] sm:$0xff] }
  0x8b   :  { %2471 = vmatprep.mubr.bf16.mxu1 %v3699_v18  ;;  %v163_v18 = vld [vmem:[%s5714_s0 + $0x4a0] sm:$0xff]  ;;  %v220_v12 = vld [vmem:[%s5714_s0 + $0x668] sm:$0xff] }
  0x8c   :  { %v3760_v29 = vcombine.low %v159_v17, %v163_v18  ;;  %v219_v10 = vld [vmem:[%s5714_s0 + $0x660] sm:$0xff] }
  0x91   :  { %2183 = vmatmul.mubr.bf16.gmra.mxu0 %v3696_v23  ;;  %v3761_v23 = vcombine.high %v159_v17, %v163_v18  ;;  %v3819_v17 = vcombine.high %v216_v11, %v220_v12 }
  0x92   :  { %2472 = vmatmul.mubr.bf16.gmra.mxu1 %v3698_v24  ;;  %2190 = vmatprep.mubr.bf16.mxu0 %v3705_v25  ;;  %v3763_v24 = vcombine.high %v160_v19, %v164_v20  ;;  %v167_v25 = vld [vmem:[%s5714_s0 + $0x4c0] sm:$0xff] }
  0x93   :  { %2479 = vmatprep.mubr.bf16.mxu1 %v3707_v26  ;;  %v171_v26 = vld [vmem:[%s5714_s0 + $0x4e0] sm:$0xff] }
  0x94   :  { %v3769_v31 = vcombine.high %v167_v25, %v171_v26  ;;  %v3768_v37 = vcombine.low %v167_v25, %v171_v26  ;;  %v224_v26 = vld [vmem:[%s5714_s0 + $0x688] sm:$0xff] }
  0x99   :  { %2191 = vmatmul.mubr.bf16.gmra.mxu0 %v3704_v33  ;;  %v175_v33 = vld [vmem:[%s5714_s0 + $0x500] sm:$0xff] }
  0x9a   :  { %2480 = vmatmul.mubr.bf16.gmra.mxu1 %v3706_v34  ;;  %2198 = vmatprep.mubr.bf16.mxu0 %v3713_v35  ;;  %v179_v34 = vld [vmem:[%s5714_s0 + $0x520] sm:$0xff]  ;;  %v176_v35 = vld [vmem:[%s5714_s0 + $0x508] sm:$0xff] }
  0x9b   :  { %2487 = vmatprep.mubr.bf16.mxu1 %v3715_v36  ;;  %v180_v36 = vld [vmem:[%s5714_s0 + $0x528] sm:$0xff]  ;;  %v3777_v39 = vcombine.high %v175_v33, %v179_v34  ;;  %v3776_v45 = vcombine.low %v175_v33, %v179_v34 }
  0x9c   :  { %v3779_v40 = vcombine.high %v176_v35, %v180_v36  ;;  %v3778_v46 = vcombine.low %v176_v35, %v180_v36  ;;  %v3827_v35 = vcombine.high %v224_v26, %v228_v27 }
  0xa1   :  { %2199 = vmatmul.mubr.bf16.gmra.mxu0 %v3712_v41  ;;  %v183_v41 = vld [vmem:[%s5714_s0 + $0x540] sm:$0xff] }
  0xa2   :  { %2488 = vmatmul.mubr.bf16.gmra.mxu1 %v3714_v42  ;;  %2206 = vmatprep.mubr.bf16.mxu0 %v3721_v43  ;;  %v187_v42 = vld [vmem:[%s5714_s0 + $0x560] sm:$0xff]  ;;  %v184_v43 = vld [vmem:[%s5714_s0 + $0x548] sm:$0xff] }
  0xa3   :  { %2495 = vmatprep.mubr.bf16.mxu1 %v3723_v44  ;;  %v188_v44 = vld [vmem:[%s5714_s0 + $0x568] sm:$0xff]  ;;  %v3785_v47 = vcombine.high %v183_v41, %v187_v42 }
  0xa4   :  { %v3787_v48 = vcombine.high %v184_v43, %v188_v44 }
  0xa9   :  { %2207 = vmatmul.mubr.bf16.gmra.mxu0 %v3720_v51  ;;  %v192_v51 = vld [vmem:[%s5714_s0 + $0x588] sm:$0xff] }
  0xaa   :  { %2496 = vmatmul.mubr.bf16.gmra.mxu1 %v3722_v52  ;;  %2214 = vmatprep.mubr.bf16.mxu0 %v3729_v53  ;;  %v196_v52 = vld [vmem:[%s5714_s0 + $0x5a8] sm:$0xff]  ;;  %v3784_v53 = vcombine.low %v183_v41, %v187_v42  ;;  %v231_v42 = vld [vmem:[%s5714_s0 + $0x6c0] sm:$0xff] }
  0xab   :  { %2503 = vmatprep.mubr.bf16.mxu1 %v3731_v54  ;;  %v3786_v54 = vcombine.low %v184_v43, %v188_v44  ;;  %v3795_v56 = vcombine.high %v192_v51, %v196_v52  ;;  %v235_v43 = vld [vmem:[%s5714_s0 + $0x6e0] sm:$0xff] }
  0xb1   :  { %2215 = vmatmul.mubr.bf16.gmra.mxu0 %v3728_v58  ;;  %v200_v58 = vld [vmem:[%s5714_s0 + $0x5c8] sm:$0xff] }
  0xb2   :  { %2504 = vmatmul.mubr.bf16.gmra.mxu1 %v3730_v59  ;;  %2222 = vmatprep.mubr.bf16.mxu0 %v3737_v60  ;;  %v204_v59 = vld [vmem:[%s5714_s0 + $0x5e8] sm:$0xff]  ;;  %v3792_v60 = vcombine.low %v191_v49, %v195_v50 }
  0xb3   :  { %2511 = vmatprep.mubr.bf16.mxu1 %v3739_v61  ;;  %v3794_v61 = vcombine.low %v192_v51, %v196_v52  ;;  %v3803_v63 = vcombine.high %v200_v58, %v204_v59  ;;  %v3826_v52 = vcombine.low %v224_v26, %v228_v27 }
  0xb9   :  { %2223 = vmatmul.mubr.bf16.gmra.mxu0 %v3736_v5  ;;  %v3800_v5 = vcombine.low %v199_v57, %v203_v0 }
  0xba   :  { %2512 = vmatmul.mubr.bf16.gmra.mxu1 %v3738_v6  ;;  %2230 = vmatprep.mubr.bf16.mxu0 %v3745_v7  ;;  %v3802_v6 = vcombine.low %v200_v58, %v204_v59  ;;  %v3809_v7 = vcombine.high %v207_v1, %v211_v2 }
  0xbb   :  { %2519 = vmatprep.mubr.bf16.mxu1 %v3747_v8  ;;  %v3811_v8 = vcombine.high %v208_v3, %v212_v4 }
  0xc1   :  { %2231 = vmatmul.mubr.bf16.gmra.mxu0 %v3744_v13  ;;  %v3808_v13 = vcombine.low %v207_v1, %v211_v2  ;;  %v240_v2 = vld [vmem:[%s5714_s0 + $0x708] sm:$0xff] }
  0xc2   :  { %2520 = vmatmul.mubr.bf16.gmra.mxu1 %v3746_v14  ;;  %2238 = vmatprep.mubr.bf16.mxu0 %v3753_v15  ;;  %v3810_v14 = vcombine.low %v208_v3, %v212_v4  ;;  %v3817_v15 = vcombine.high %v215_v9, %v219_v10  ;;  %v244_v3 = vld [vmem:[%s5714_s0 + $0x728] sm:$0xff] }
  0xc3   :  { %2527 = vmatprep.mubr.bf16.mxu1 %v3755_v16  ;;  %v4738_v16 = vld [vmem:[%s5715_s2] ss:$0 sm:$0xff] }
  0xc9   :  { %2239 = vmatmul.mubr.bf16.gmra.mxu0 %v3752_v21 }
  0xca   :  { %2528 = vmatmul.mubr.bf16.gmra.mxu1 %v3754_v22  ;;  %2246 = vmatprep.mubr.bf16.mxu0 %v3761_v23  ;;  %v223_v22 = vld [vmem:[%s5714_s0 + $0x680] sm:$0xff] }
  0xcb   :  { %2535 = vmatprep.mubr.bf16.mxu1 %v3763_v24  ;;  %v227_v23 = vld [vmem:[%s5714_s0 + $0x6a0] sm:$0xff] }
  0xcc   :  { %v3825_v33 = vcombine.high %v223_v22, %v227_v23  ;;  %v3824_v49 = vcombine.low %v223_v22, %v227_v23  ;;  %v248_v23 = vld [vmem:[%s5714_s0 + $0x748] sm:$0xff] }
  0xd1   :  { %2247 = vmatmul.mubr.bf16.gmra.mxu0 %v3760_v29  ;;  %v3816_v29 = vcombine.low %v215_v9, %v219_v10 }
  0xd2   :  { %2536 = vmatmul.mubr.bf16.gmra.mxu1 %v3762_v30  ;;  %2254 = vmatprep.mubr.bf16.mxu0 %v3769_v31 }
  0xd3   :  { %2543 = vmatprep.mubr.bf16.mxu1 %v3771_v32  ;;  %v3818_v32 = vcombine.low %v216_v11, %v220_v12  ;;  %v3843_v11 = vcombine.high %v240_v2, %v244_v3 }
  0xd9   :  { %2255 = vmatmul.mubr.bf16.gmra.mxu0 %v3768_v37 }
  0xda   :  { %2544 = vmatmul.mubr.bf16.gmra.mxu1 %v3770_v38  ;;  %2262 = vmatprep.mubr.bf16.mxu0 %v3777_v39 }
  0xdb   :  { %2551 = vmatprep.mubr.bf16.mxu1 %v3779_v40 }
  0xe1   :  { %2263 = vmatmul.mubr.bf16.gmra.mxu0 %v3776_v45 }
  0xe2   :  { %2552 = vmatmul.mubr.bf16.gmra.mxu1 %v3778_v46  ;;  %2270 = vmatprep.mubr.bf16.mxu0 %v3785_v47  ;;  %v232_v46 = vld [vmem:[%s5714_s0 + $0x6c8] sm:$0xff] }
  0xe3   :  { %2559 = vmatprep.mubr.bf16.mxu1 %v3787_v48  ;;  %v236_v47 = vld [vmem:[%s5714_s0 + $0x6e8] sm:$0xff] }
  0xe9   :  { %2271 = vmatmul.mubr.bf16.gmra.mxu0 %v3784_v53  ;;  %v3833_v53 = vcombine.high %v231_v42, %v235_v43 }
  0xea   :  { %2560 = vmatmul.mubr.bf16.gmra.mxu1 %v3786_v54  ;;  %2278 = vmatprep.mubr.bf16.mxu0 %v3793_v55  ;;  %v3835_v55 = vcombine.high %v232_v46, %v236_v47 }
  0xeb   :  { %2567 = vmatprep.mubr.bf16.mxu1 %v3795_v56 }
  0xf1   :  { %2279 = vmatmul.mubr.bf16.gmra.mxu0 %v3792_v60 }
  0xf2   :  { %2568 = vmatmul.mubr.bf16.gmra.mxu1 %v3794_v61  ;;  %2286 = vmatprep.mubr.bf16.mxu0 %v3801_v62  ;;  %v239_v61 = vld [vmem:[%s5714_s0 + $0x700] sm:$0xff] }
  0xf3   :  { %2575 = vmatprep.mubr.bf16.mxu1 %v3803_v63  ;;  %v243_v62 = vld [vmem:[%s5714_s0 + $0x720] sm:$0xff] }
  0xf4   :  { %v3841_v9 = vcombine.high %v239_v61, %v243_v62  ;;  %v3840_v27 = vcombine.low %v239_v61, %v243_v62  ;;  %v263_v62 = vld [vmem:[%s5714_s0 + $0x7c0] sm:$0xff] }
  0xf9   :  { %2287 = vmatmul.mubr.bf16.gmra.mxu0 %v3800_v5  ;;  %v3832_v5 = vcombine.low %v231_v42, %v235_v43  ;;  %v259_v42 = vld [vmem:[%s5714_s0 + $0x7a0] sm:$0xff] }
  0xfa   :  { %2576 = vmatmul.mubr.bf16.gmra.mxu1 %v3802_v6  ;;  %2294 = vmatprep.mubr.bf16.mxu0 %v3809_v7 }
  0xfb   :  { %2583 = vmatprep.mubr.bf16.mxu1 %v3811_v8  ;;  %v3834_v8 = vcombine.low %v232_v46, %v236_v47  ;;  %v256_v46 = vld [vmem:[%s5714_s0 + $0x788] sm:$0xff] }
  0xfc   :  { %v260_v47 = vld [vmem:[%s5714_s0 + $0x7a8] sm:$0xff] }
 0x101   :  { %v2104_v18 = vpop.f32.mrf.mxu0  ;;  %2295 = vmatmul.mubr.bf16.gmra.mxu0 %v3808_v13 }
 0x102   :  { %v2105_v19 = vadd.f32 %v4738_v16, %v2104_v18  ;;  %v2393_v20 = vpop.f32.mrf.mxu1  ;;  %2584 = vmatmul.mubr.bf16.gmra.mxu1 %v3810_v14  ;;  %2302 = vmatprep.mubr.bf16.mxu0 %v3817_v15 }
 0x103   :  { %v2106_v21 = vpop.f32.mrf.mxu0  ;;  %2591 = vmatprep.mubr.bf16.mxu1 %v3819_v17 }
 0x104   :  { %v4747_v24 = vadd.f32 %v2393_v20, %v2105_v19  ;;  %v2395_v25 = vpop.f32.mrf.mxu1  ;;  %v247_v19 = vld [vmem:[%s5714_s0 + $0x740] sm:$0xff] }
 0x105   :  { %v2107_v28 = vpop.f32.mrf.mxu0  ;;  %v251_v20 = vld [vmem:[%s5714_s0 + $0x760] sm:$0xff]  ;;  %v252_v25 = vld [vmem:[%s5714_s0 + $0x768] sm:$0xff] }
 0x106   :  { %v2108_v30 = vadd.f32 %v4738_v16, %v2107_v28  ;;  %v2396_v31 = vpop.f32.mrf.mxu1 }
 0x107   :  { %v2109_v34 = vpop.f32.mrf.mxu0 }
 0x108   :  { %v4756_v36 = vadd.f32 %v2396_v31, %v2108_v30  ;;  %v2398_v37 = vpop.f32.mrf.mxu1  ;;  %v3842_v30 = vcombine.low %v240_v2, %v244_v3  ;;  %v3849_v31 = vcombine.high %v247_v19, %v251_v20 }
 0x109   :  { %v2112_v38 = vpop.f32.mrf.mxu0  ;;  %2303 = vmatmul.mubr.bf16.gmra.mxu0 %v3816_v29 }
 0x10a   :  { %v2113_v39 = vadd.f32 %v4738_v16, %v2112_v38  ;;  %v2401_v40 = vpop.f32.mrf.mxu1  ;;  %2592 = vmatmul.mubr.bf16.gmra.mxu1 %v3818_v32  ;;  %2310 = vmatprep.mubr.bf16.mxu0 %v3825_v33  ;;  %v3851_v33 = vcombine.high %v248_v23, %v252_v25 }
 0x10b   :  { %v2114_v41 = vpop.f32.mrf.mxu0  ;;  %2599 = vmatprep.mubr.bf16.mxu1 %v3827_v35 }
 0x10c   :  { %v4765_v44 = vadd.f32 %v2401_v40, %v2113_v39  ;;  %v2403_v45 = vpop.f32.mrf.mxu1  ;;  %v255_v41 = vld [vmem:[%s5714_s0 + $0x780] sm:$0xff] }
 0x10d   :  { %v2115_v48 = vpop.f32.mrf.mxu0 }
 0x10e   :  { %v2116_v50 = vadd.f32 %v4738_v16, %v2115_v48  ;;  %v2404_v51 = vpop.f32.mrf.mxu1 }
 0x10f   :  { %v2117_v54 = vpop.f32.mrf.mxu0 }
 0x110   :  { %v4774_v56 = vadd.f32 %v2404_v51, %v2116_v50  ;;  %v2406_v57 = vpop.f32.mrf.mxu1 }
 0x111   :  { %v2120_v0 = vpop.f32.mrf.mxu0  ;;  %2311 = vmatmul.mubr.bf16.gmra.mxu0 %v3824_v49  ;;  %v3848_v49 = vcombine.low %v247_v19, %v251_v20 }
 0x112   :  { %v2121_v58 = vadd.f32 %v4738_v16, %v2120_v0  ;;  %v2409_v59 = vpop.f32.mrf.mxu1  ;;  %2600 = vmatmul.mubr.bf16.gmra.mxu1 %v3826_v52  ;;  %2318 = vmatprep.mubr.bf16.mxu0 %v3833_v53  ;;  %v3850_v52 = vcombine.low %v248_v23, %v252_v25  ;;  %v3857_v53 = vcombine.high %v255_v41, %v259_v42  ;;  %v17_v23 = vld [vmem:[%s5714_s0 + $0x10] sm:$0xff] }
 0x113   :  { %v2122_v60 = vpop.f32.mrf.mxu0  ;;  %2607 = vmatprep.mubr.bf16.mxu1 %v3835_v55  ;;  %v3859_v55 = vcombine.high %v256_v46, %v260_v47  ;;  %v21_v25 = vld [vmem:[%s5714_s0 + $0x30] sm:$0xff] }
 0x114   :  { %v4783_v63 = vadd.f32 %v2409_v59, %v2121_v58  ;;  %v2411_v1 = vpop.f32.mrf.mxu1 }
 0x115   :  { %v2123_v4 = vpop.f32.mrf.mxu0  ;;  %v267_v1 = vld [vmem:[%s5714_s0 + $0x7e0] sm:$0xff] }
 0x116   :  { %v2124_v6 = vadd.f32 %v4738_v16, %v2123_v4  ;;  %v2412_v7 = vpop.f32.mrf.mxu1  ;;  %v264_v4 = vld [vmem:[%s5714_s0 + $0x7c8] sm:$0xff] }
 0x117   :  { %v2125_v10 = vpop.f32.mrf.mxu0 }
 0x118   :  { %v4792_v12 = vadd.f32 %v2412_v7, %v2124_v6  ;;  %v2414_v13 = vpop.f32.mrf.mxu1  ;;  %v3856_v7 = vcombine.low %v255_v41, %v259_v42  ;;  %v3858_v10 = vcombine.low %v256_v46, %v260_v47 }
 0x119   :  { %v2128_v14 = vpop.f32.mrf.mxu0  ;;  %2319 = vmatmul.mubr.bf16.gmra.mxu0 %v3832_v5  ;;  %v268_v5 = vld [vmem:[%s5714_s0 + $0x7e8] sm:$0xff] }
 0x11a   :  { %v2129_v15 = vadd.f32 %v4738_v16, %v2128_v14  ;;  %v2417_v17 = vpop.f32.mrf.mxu1  ;;  %2608 = vmatmul.mubr.bf16.gmra.mxu1 %v3834_v8  ;;  %2326 = vmatprep.mubr.bf16.mxu0 %v3841_v9  ;;  %v3867_v14 = vcombine.high %v264_v4, %v268_v5 }
 0x11b   :  { %v2130_v18 = vpop.f32.mrf.mxu0  ;;  %2615 = vmatprep.mubr.bf16.mxu1 %v3843_v11  ;;  %v3865_v11 = vcombine.high %v263_v62, %v267_v1 }
 0x11c   :  { %v4801_v21 = vadd.f32 %v2417_v17, %v2129_v15  ;;  %v2419_v22 = vpop.f32.mrf.mxu1 }
 0x11d   :  { %v2131_v26 = vpop.f32.mrf.mxu0 }
 0x11e   :  { %v2132_v28 = vadd.f32 %v4738_v16, %v2131_v26  ;;  %v2420_v29 = vpop.f32.mrf.mxu1 }
 0x11f   :  { %v2133_v32 = vpop.f32.mrf.mxu0 }
 0x120   :  { %v4810_v34 = vadd.f32 %v2420_v29, %v2132_v28  ;;  %v2422_v35 = vpop.f32.mrf.mxu1  ;;  %v18_v28 = vld [vmem:[%s5714_s0 + $0x18] sm:$0xff] }
 0x121   :  { %v2136_v37 = vpop.f32.mrf.mxu0  ;;  %2327 = vmatmul.mubr.bf16.gmra.mxu0 %v3840_v27  ;;  %v22_v29 = vld [vmem:[%s5714_s0 + $0x38] sm:$0xff]  ;;  %v3866_v35 = vcombine.low %v264_v4, %v268_v5 }
 0x122   :  { %v2137_v38 = vadd.f32 %v4738_v16, %v2136_v37  ;;  %v2425_v39 = vpop.f32.mrf.mxu1  ;;  %2616 = vmatmul.mubr.bf16.gmra.mxu1 %v3842_v30  ;;  %2334 = vmatprep.mubr.bf16.mxu0 %v3849_v31  ;;  %v3864_v31 = vcombine.low %v263_v62, %v267_v1  ;;  %v3621_v37 = vcombine.high %v17_v23, %v21_v25 }
 0x123   :  { %v2138_v40 = vpop.f32.mrf.mxu0  ;;  %2623 = vmatprep.mubr.bf16.mxu1 %v3851_v33 }
 0x124   :  { %v4819_v43 = vadd.f32 %v2425_v39, %v2137_v38  ;;  %v2427_v45 = vpop.f32.mrf.mxu1  ;;  %v3623_v39 = vcombine.high %v18_v28, %v22_v29 }
 0x125   :  { %v2139_v48 = vpop.f32.mrf.mxu0 }
 0x126   :  { %v2140_v50 = vadd.f32 %v4738_v16, %v2139_v48  ;;  %v2428_v51 = vpop.f32.mrf.mxu1  ;;  %v25_v48 = vld [vmem:[%s5714_s0 + $0x50] sm:$0xff] }
 0x127   :  { %v2141_v54 = vpop.f32.mrf.mxu0 }
 0x128   :  { %v4828_v57 = vadd.f32 %v2428_v51, %v2140_v50  ;;  %v2430_v0 = vpop.f32.mrf.mxu1 }
 0x129   :  { %v2144_v58 = vpop.f32.mrf.mxu0  ;;  %2335 = vmatmul.mubr.bf16.gmra.mxu0 %v3848_v49  ;;  %v29_v49 = vld [vmem:[%s5714_s0 + $0x70] sm:$0xff] }
 0x12a   :  { %v2145_v59 = vadd.f32 %v4738_v16, %v2144_v58  ;;  %v2433_v60 = vpop.f32.mrf.mxu1  ;;  %2624 = vmatmul.mubr.bf16.gmra.mxu1 %v3850_v52  ;;  %2342 = vmatprep.mubr.bf16.mxu0 %v3857_v53  ;;  %v26_v52 = vld [vmem:[%s5714_s0 + $0x58] sm:$0xff] }
 0x12b   :  { %v2146_v61 = vpop.f32.mrf.mxu0  ;;  %2631 = vmatprep.mubr.bf16.mxu1 %v3859_v55  ;;  %v30_v53 = vld [vmem:[%s5714_s0 + $0x78] sm:$0xff]  ;;  %v3620_v55 = vcombine.low %v17_v23, %v21_v25 }
 0x12c   :  { %v4837_v2 = vadd.f32 %v2433_v60, %v2145_v59  ;;  %v2435_v3 = vpop.f32.mrf.mxu1  ;;  %v3622_v59 = vcombine.low %v18_v28, %v22_v29  ;;  %v3629_v60 = vcombine.high %v25_v48, %v29_v49  ;;  %v3631_v62 = vcombine.high %v26_v52, %v30_v53 }
 0x12d   :  { %v2147_v6 = vpop.f32.mrf.mxu0 }
 0x12e   :  { %v2148_v8 = vadd.f32 %v4738_v16, %v2147_v6  ;;  %v2436_v9 = vpop.f32.mrf.mxu1 }
 0x12f   :  { %v2149_v13 = vpop.f32.mrf.mxu0 }
 0x130   :  { %v4846_v15 = vadd.f32 %v2436_v9, %v2148_v8  ;;  %v2438_v17 = vpop.f32.mrf.mxu1  ;;  %v33_v8 = vld [vmem:[%s5714_s0 + $0x90] sm:$0xff]  ;;  %v34_v13 = vld [vmem:[%s5714_s0 + $0x98] sm:$0xff] }
 0x131   :  { %v2152_v18 = vpop.f32.mrf.mxu0  ;;  %2343 = vmatmul.mubr.bf16.gmra.mxu0 %v3856_v7  ;;  %v37_v9 = vld [vmem:[%s5714_s0 + $0xb0] sm:$0xff] }
 0x132   :  { %v2153_v19 = vadd.f32 %v4738_v16, %v2152_v18  ;;  %v2441_v20 = vpop.f32.mrf.mxu1  ;;  %2632 = vmatmul.mubr.bf16.gmra.mxu1 %v3858_v10  ;;  %2350 = vmatprep.mubr.bf16.mxu0 %v3865_v11  ;;  %v3628_v18 = vcombine.low %v25_v48, %v29_v49  ;;  %v3637_v23 = vcombine.high %v33_v8, %v37_v9 }
 0x133   :  { %v2154_v22 = vpop.f32.mrf.mxu0  ;;  %2639 = vmatprep.mubr.bf16.mxu1 %v3867_v14  ;;  %v38_v14 = vld [vmem:[%s5714_s0 + $0xb8] sm:$0xff] }
 0x134   :  { %v4855_v26 = vadd.f32 %v2441_v20, %v2153_v19  ;;  %v2443_v27 = vpop.f32.mrf.mxu1  ;;  %v3630_v22 = vcombine.low %v26_v52, %v30_v53  ;;  %v3638_v49 = vcombine.low %v34_v13, %v38_v14 }
 0x135   :  { %v2155_v30 = vpop.f32.mrf.mxu0  ;;  %v3639_v27 = vcombine.high %v34_v13, %v38_v14 }
 0x136   :  { %v2156_v32 = vadd.f32 %v4738_v16, %v2155_v30  ;;  %v2444_v33 = vpop.f32.mrf.mxu1 }
 0x137   :  { %v2157_v38 = vpop.f32.mrf.mxu0 }
 0x138   :  { %v4864_v40 = vadd.f32 %v2444_v33, %v2156_v32  ;;  %v2446_v41 = vpop.f32.mrf.mxu1 }
 0x139   :  { %v2160_v42 = vpop.f32.mrf.mxu0  ;;  %2351 = vmatmul.mubr.bf16.gmra.mxu0 %v3864_v31  ;;  %v42_v41 = vld [vmem:[%s5714_s0 + $0xd8] sm:$0xff] }
 0x13a   :  { %v2161_v45 = vadd.f32 %v4738_v16, %v2160_v42  ;;  %v2449_v46 = vpop.f32.mrf.mxu1  ;;  %2640 = vmatmul.mubr.bf16.gmra.mxu1 %v3866_v35  ;;  %2680 = vmatprep.mubr.bf16.mxu0 %v3621_v37  ;;  %v41_v35 = vld [vmem:[%s5714_s0 + $0xd0] sm:$0xff]  ;;  %v46_v42 = vld [vmem:[%s5714_s0 + $0xf8] sm:$0xff] }
 0x13b   :  { %v2162_v47 = vpop.f32.mrf.mxu0  ;;  %2969 = vmatprep.mubr.bf16.mxu1 %v3623_v39  ;;  %v45_v37 = vld [vmem:[%s5714_s0 + $0xf0] sm:$0xff]  ;;  %v3647_v53 = vcombine.high %v42_v41, %v46_v42  ;;  %v3646_v13 = vcombine.low %v42_v41, %v46_v42 }
 0x13c   :  { %v4873_v50 = vadd.f32 %v2449_v46, %v2161_v45  ;;  %v2451_v51 = vpop.f32.mrf.mxu1  ;;  %v3636_v46 = vcombine.low %v33_v8, %v37_v9  ;;  %v3644_v8 = vcombine.low %v41_v35, %v45_v37 }
 0x13d   :  { %v2163_v54 = vpop.f32.mrf.mxu0  ;;  %v3645_v51 = vcombine.high %v41_v35, %v45_v37  ;;  %v62_v35 = vld [vmem:[%s5714_s0 + $0x178] sm:$0xff] }
 0x13e   :  { %v2164_v0 = vadd.f32 %v4738_v16, %v2163_v54  ;;  %v2452_v58 = vpop.f32.mrf.mxu1 }
 0x13f   :  { %v2165_v61 = vpop.f32.mrf.mxu0 }
 0x140   :  { %v4882_v1 = vadd.f32 %v2452_v58, %v2164_v0  ;;  %v2454_v3 = vpop.f32.mrf.mxu1  ;;  %v49_v61 = vld [vmem:[%s5714_s0 + $0x110] sm:$0xff] }
 0x141   :  { %v2168_v4 = vpop.f32.mrf.mxu0  ;;  %2681 = vmatmul.mubr.bf16.vlgmr.msra.gmra.mxu0 %v3620_v55 }
 0x142   :  { %v2169_v5 = vadd.f32 %v4738_v16, %v2168_v4  ;;  %v2457_v6 = vpop.f32.mrf.mxu1  ;;  %2970 = vmatmul.mubr.bf16.vlgmr.msra.gmra.mxu1 %v3622_v59  ;;  %2688 = vmatprep.mubr.bf16.mxu0 %v3629_v60 }
 0x143   :  { %v2170_v7 = vpop.f32.mrf.mxu0  ;;  %2977 = vmatprep.mubr.bf16.mxu1 %v3631_v62  ;;  %v53_v62 = vld [vmem:[%s5714_s0 + $0x130] sm:$0xff] }
 0x144   :  { %v4891_v10 = vadd.f32 %v2457_v6, %v2169_v5  ;;  %v2459_v11 = vpop.f32.mrf.mxu1  ;;  %v50_v5 = vld [vmem:[%s5714_s0 + $0x118] sm:$0xff]  ;;  %v3653_v14 = vcombine.high %v49_v61, %v53_v62 }
 0x145   :  { %v2171_v17 = vpop.f32.mrf.mxu0  ;;  %v54_v6 = vld [vmem:[%s5714_s0 + $0x138] sm:$0xff] }
 0x146   :  { %v2172_v19 = vadd.f32 %v4738_v16, %v2171_v17  ;;  %v2460_v20 = vpop.f32.mrf.mxu1 }
 0x147   :  { %v2173_v25 = vpop.f32.mrf.mxu0 }
 0x148   :  { %v4900_v28 = vadd.f32 %v2460_v20, %v2172_v19  ;;  %v2462_v29 = vpop.f32.mrf.mxu1 }
 0x149   :  { %v2176_v30 = vpop.f32.mrf.mxu0  ;;  %2689 = vmatmul.mubr.bf16.gmra.mxu0 %v3628_v18  ;;  %v3655_v18 = vcombine.high %v50_v5, %v54_v6  ;;  %v57_v29 = vld [vmem:[%s5714_s0 + $0x150] sm:$0xff] }
 0x14a   :  { %v2177_v31 = vadd.f32 %v4738_v16, %v2176_v30  ;;  %v2465_v32 = vpop.f32.mrf.mxu1  ;;  %2978 = vmatmul.mubr.bf16.gmra.mxu1 %v3630_v22  ;;  %2696 = vmatprep.mubr.bf16.mxu0 %v3637_v23  ;;  %v61_v30 = vld [vmem:[%s5714_s0 + $0x170] sm:$0xff] }
 0x14b   :  { %v2178_v33 = vpop.f32.mrf.mxu0  ;;  %2985 = vmatprep.mubr.bf16.mxu1 %v3639_v27 }
 0x14c   :  { %v4909_v38 = vadd.f32 %v2465_v32, %v2177_v31  ;;  %v2467_v39 = vpop.f32.mrf.mxu1  ;;  %v58_v33 = vld [vmem:[%s5714_s0 + $0x158] sm:$0xff] }
 0x14d   :  { %v2179_v45 = vpop.f32.mrf.mxu0  ;;  %v3652_v39 = vcombine.low %v49_v61, %v53_v62  ;;  %v66_v62 = vld [vmem:[%s5714_s0 + $0x198] sm:$0xff] }
 0x14e   :  { %v2180_v47 = vadd.f32 %v4738_v16, %v2179_v45  ;;  %v2468_v48 = vpop.f32.mrf.mxu1  ;;  %v3654_v45 = vcombine.low %v50_v5, %v54_v6  ;;  %v3660_v6 = vcombine.low %v57_v29, %v61_v30 }
 0x14f   :  { %v2181_v52 = vpop.f32.mrf.mxu0 }
 0x150   :  { %v4918_v54 = vadd.f32 %v2468_v48, %v2180_v47  ;;  %v2470_v55 = vpop.f32.mrf.mxu1  ;;  %v3663_v48 = vcombine.high %v58_v33, %v62_v35 }
 0x151   :  { %v2184_v0 = vpop.f32.mrf.mxu0  ;;  %2697 = vmatmul.mubr.bf16.gmra.mxu0 %v3636_v46  ;;  %v3661_v46 = vcombine.high %v57_v29, %v61_v30  ;;  %v77_v29 = vld [vmem:[%s5714_s0 + $0x1f0] sm:$0xff] }
 0x152   :  { %v2185_v58 = vadd.f32 %v4738_v16, %v2184_v0  ;;  %v2473_v59 = vpop.f32.mrf.mxu1  ;;  %2986 = vmatmul.mubr.bf16.gmra.mxu1 %v3638_v49  ;;  %2704 = vmatprep.mubr.bf16.mxu0 %v3645_v51 }
 0x153   :  { %v2186_v60 = vpop.f32.mrf.mxu0  ;;  %2993 = vmatprep.mubr.bf16.mxu1 %v3647_v53 }
 0x154   :  { %v4927_v3 = vadd.f32 %v2473_v59, %v2185_v58  ;;  %v2475_v4 = vpop.f32.mrf.mxu1  ;;  %v65_v58 = vld [vmem:[%s5714_s0 + $0x190] sm:$0xff] }
 0x155   :  { %v2187_v7 = vpop.f32.mrf.mxu0  ;;  %v69_v59 = vld [vmem:[%s5714_s0 + $0x1b0] sm:$0xff]  ;;  %v70_v4 = vld [vmem:[%s5714_s0 + $0x1b8] sm:$0xff] }
 0x156   :  { %v2188_v9 = vadd.f32 %v4738_v16, %v2187_v7  ;;  %v2476_v11 = vpop.f32.mrf.mxu1 }
 0x157   :  { %v2189_v17 = vpop.f32.mrf.mxu0 }
 0x158   :  { %v4936_v19 = vadd.f32 %v2476_v11, %v2188_v9  ;;  %v2478_v20 = vpop.f32.mrf.mxu1  ;;  %v3662_v9 = vcombine.low %v58_v33, %v62_v35  ;;  %v3669_v11 = vcombine.high %v65_v58, %v69_v59  ;;  %v74_v33 = vld [vmem:[%s5714_s0 + $0x1d8] sm:$0xff] }
 0x159   :  { %v2192_v22 = vpop.f32.mrf.mxu0  ;;  %2705 = vmatmul.mubr.bf16.gmra.mxu0 %v3644_v8  ;;  %v78_v35 = vld [vmem:[%s5714_s0 + $0x1f8] sm:$0xff] }
 0x15a   :  { %v2193_v23 = vadd.f32 %v4738_v16, %v2192_v22  ;;  %v2481_v25 = vpop.f32.mrf.mxu1  ;;  %2994 = vmatmul.mubr.bf16.gmra.mxu1 %v3646_v13  ;;  %2712 = vmatprep.mubr.bf16.mxu0 %v3653_v14  ;;  %v3671_v14 = vcombine.high %v66_v62, %v70_v4 }
 0x15b   :  { %v2194_v27 = vpop.f32.mrf.mxu0  ;;  %3001 = vmatprep.mubr.bf16.mxu1 %v3655_v18 }
 0x15c   :  { %v4945_v31 = vadd.f32 %v2481_v25, %v2193_v23  ;;  %v2483_v32 = vpop.f32.mrf.mxu1  ;;  %v73_v27 = vld [vmem:[%s5714_s0 + $0x1d0] sm:$0xff] }
 0x15d   :  { %v2195_v37 = vpop.f32.mrf.mxu0 }
 0x15e   :  { %v2196_v41 = vadd.f32 %v4738_v16, %v2195_v37  ;;  %v2484_v42 = vpop.f32.mrf.mxu1 }
 0x15f   :  { %v2197_v47 = vpop.f32.mrf.mxu0 }
 0x160   :  { %v4954_v49 = vadd.f32 %v2484_v42, %v2196_v41  ;;  %v2486_v51 = vpop.f32.mrf.mxu1 }
 0x161   :  { %v2200_v52 = vpop.f32.mrf.mxu0  ;;  %2713 = vmatmul.mubr.bf16.gmra.mxu0 %v3652_v39  ;;  %v3668_v39 = vcombine.low %v65_v58, %v69_v59  ;;  %v81_v58 = vld [vmem:[%s5714_s0 + $0x210] sm:$0xff] }
 0x162   :  { %v2201_v53 = vadd.f32 %v4738_v16, %v2200_v52  ;;  %v2489_v55 = vpop.f32.mrf.mxu1  ;;  %3002 = vmatmul.mubr.bf16.gmra.mxu1 %v3654_v45  ;;  %2720 = vmatprep.mubr.bf16.mxu0 %v3661_v46  ;;  %v3670_v45 = vcombine.low %v66_v62, %v70_v4  ;;  %v3677_v46 = vcombine.high %v73_v27, %v77_v29  ;;  %v85_v59 = vld [vmem:[%s5714_s0 + $0x230] sm:$0xff] }
 0x163   :  { %v2202_v0 = vpop.f32.mrf.mxu0  ;;  %3009 = vmatprep.mubr.bf16.mxu1 %v3663_v48  ;;  %v3679_v48 = vcombine.high %v74_v33, %v78_v35 }
 0x164   :  { %v4963_v60 = vadd.f32 %v2489_v55, %v2201_v53  ;;  %v2491_v61 = vpop.f32.mrf.mxu1 }
 0x165   :  { %v2203_v5 = vpop.f32.mrf.mxu0 }
 0x166   :  { %v2204_v7 = vadd.f32 %v4738_v16, %v2203_v5  ;;  %v2492_v8 = vpop.f32.mrf.mxu1  ;;  %v82_v5 = vld [vmem:[%s5714_s0 + $0x218] sm:$0xff] }
 0x167   :  { %v2205_v13 = vpop.f32.mrf.mxu0 }
 0x168   :  { %v4972_v17 = vadd.f32 %v2492_v8, %v2204_v7  ;;  %v2494_v18 = vpop.f32.mrf.mxu1  ;;  %v3676_v8 = vcombine.low %v73_v27, %v77_v29  ;;  %v3678_v13 = vcombine.low %v74_v33, %v78_v35  ;;  %v89_v27 = vld [vmem:[%s5714_s0 + $0x250] sm:$0xff] }
 0x169   :  { %v2208_v20 = vpop.f32.mrf.mxu0  ;;  %2721 = vmatmul.mubr.bf16.gmra.mxu0 %v3660_v6  ;;  %v86_v6 = vld [vmem:[%s5714_s0 + $0x238] sm:$0xff]  ;;  %v93_v29 = vld [vmem:[%s5714_s0 + $0x270] sm:$0xff] }
 0x16a   :  { %v2209_v22 = vadd.f32 %v4738_v16, %v2208_v20  ;;  %v2497_v23 = vpop.f32.mrf.mxu1  ;;  %3010 = vmatmul.mubr.bf16.gmra.mxu1 %v3662_v9  ;;  %2728 = vmatprep.mubr.bf16.mxu0 %v3669_v11  ;;  %v3687_v20 = vcombine.high %v82_v5, %v86_v6 }
 0x16b   :  { %v2210_v25 = vpop.f32.mrf.mxu0  ;;  %3017 = vmatprep.mubr.bf16.mxu1 %v3671_v14  ;;  %v3685_v14 = vcombine.high %v81_v58, %v85_v59 }
 0x16c   :  { %v4981_v30 = vadd.f32 %v2497_v23, %v2209_v22  ;;  %v2499_v32 = vpop.f32.mrf.mxu1 }
 0x16d   :  { %v2211_v37 = vpop.f32.mrf.mxu0 }
 0x16e   :  { %v2212_v41 = vadd.f32 %v4738_v16, %v2211_v37  ;;  %v2500_v42 = vpop.f32.mrf.mxu1 }
 0x16f   :  { %v2213_v47 = vpop.f32.mrf.mxu0 }
 0x170   :  { %v4990_v51 = vadd.f32 %v2500_v42, %v2212_v41  ;;  %v2502_v52 = vpop.f32.mrf.mxu1  ;;  %v90_v41 = vld [vmem:[%s5714_s0 + $0x258] sm:$0xff] }
 0x171   :  { %v2216_v53 = vpop.f32.mrf.mxu0  ;;  %2729 = vmatmul.mubr.bf16.gmra.mxu0 %v3668_v39  ;;  %v94_v42 = vld [vmem:[%s5714_s0 + $0x278] sm:$0xff]  ;;  %v3686_v52 = vcombine.low %v82_v5, %v86_v6 }
 0x172   :  { %v2217_v55 = vadd.f32 %v4738_v16, %v2216_v53  ;;  %v2505_v0 = vpop.f32.mrf.mxu1  ;;  %3018 = vmatmul.mubr.bf16.gmra.mxu1 %v3670_v45  ;;  %2736 = vmatprep.mubr.bf16.mxu0 %v3677_v46  ;;  %v3684_v46 = vcombine.low %v81_v58, %v85_v59  ;;  %v3693_v53 = vcombine.high %v89_v27, %v93_v29  ;;  %v97_v58 = vld [vmem:[%s5714_s0 + $0x290] sm:$0xff] }
 0x173   :  { %v2218_v61 = vpop.f32.mrf.mxu0  ;;  %3025 = vmatprep.mubr.bf16.mxu1 %v3679_v48  ;;  %v101_v59 = vld [vmem:[%s5714_s0 + $0x2b0] sm:$0xff] }
 0x174   :  { %v4999_v62 = vadd.f32 %v2505_v0, %v2217_v55  ;;  %v2507_v4 = vpop.f32.mrf.mxu1  ;;  %v3695_v0 = vcombine.high %v90_v41, %v94_v42 }
 0x175   :  { %v2219_v7 = vpop.f32.mrf.mxu0 }
 0x176   :  { %v2220_v9 = vadd.f32 %v4738_v16, %v2219_v7  ;;  %v2508_v11 = vpop.f32.mrf.mxu1 }
 0x177   :  { %v2221_v18 = vpop.f32.mrf.mxu0 }
 0x178   :  { %v5008_v22 = vadd.f32 %v2508_v11, %v2220_v9  ;;  %v2510_v23 = vpop.f32.mrf.mxu1 }
 0x179   :  { %v2224_v25 = vpop.f32.mrf.mxu0  ;;  %2737 = vmatmul.mubr.bf16.gmra.mxu0 %v3676_v8 }
 0x17a   :  { %v2225_v32 = vadd.f32 %v4738_v16, %v2224_v25  ;;  %v2513_v37 = vpop.f32.mrf.mxu1  ;;  %3026 = vmatmul.mubr.bf16.gmra.mxu1 %v3678_v13  ;;  %2744 = vmatprep.mubr.bf16.mxu0 %v3685_v14  ;;  %v98_v13 = vld [vmem:[%s5714_s0 + $0x298] sm:$0xff] }
 0x17b   :  { %v2226_v39 = vpop.f32.mrf.mxu0  ;;  %3033 = vmatprep.mubr.bf16.mxu1 %v3687_v20  ;;  %v102_v14 = vld [vmem:[%s5714_s0 + $0x2b8] sm:$0xff]  ;;  %v3692_v20 = vcombine.low %v89_v27, %v93_v29  ;;  %v105_v27 = vld [vmem:[%s5714_s0 + $0x2d0] sm:$0xff] }
 0x17c   :  { %v5017_v33 = vadd.f32 %v2513_v37, %v2225_v32  ;;  %v2515_v35 = vpop.f32.mrf.mxu1  ;;  %v3694_v32 = vcombine.low %v90_v41, %v94_v42  ;;  %v3701_v37 = vcombine.high %v97_v58, %v101_v59  ;;  %v109_v29 = vld [vmem:[%s5714_s0 + $0x2f0] sm:$0xff] }
 0x17d   :  { %v2227_v45 = vpop.f32.mrf.mxu0  ;;  %v3703_v35 = vcombine.high %v98_v13, %v102_v14 }
 0x17e   :  { %v2228_v47 = vadd.f32 %v4738_v16, %v2227_v45  ;;  %v2516_v48 = vpop.f32.mrf.mxu1 }
 0x17f   :  { %v2229_v55 = vpop.f32.mrf.mxu0 }
 0x180   :  { %v5026_v61 = vadd.f32 %v2516_v48, %v2228_v47  ;;  %v2518_v4 = vpop.f32.mrf.mxu1  ;;  %v106_v55 = vld [vmem:[%s5714_s0 + $0x2d8] sm:$0xff] }
 0x181   :  { %v2232_v7 = vpop.f32.mrf.mxu0  ;;  %2745 = vmatmul.mubr.bf16.gmra.mxu0 %v3684_v46 }
 0x182   :  { %v2233_v8 = vadd.f32 %v4738_v16, %v2232_v7  ;;  %v2521_v9 = vpop.f32.mrf.mxu1  ;;  %3034 = vmatmul.mubr.bf16.gmra.mxu1 %v3686_v52  ;;  %2752 = vmatprep.mubr.bf16.mxu0 %v3693_v53  ;;  %v3700_v7 = vcombine.low %v97_v58, %v101_v59  ;;  %v113_v58 = vld [vmem:[%s5714_s0 + $0x310] sm:$0xff] }
 0x183   :  { %v2234_v11 = vpop.f32.mrf.mxu0  ;;  %3041 = vmatprep.mubr.bf16.mxu1 %v3695_v0  ;;  %v110_v0 = vld [vmem:[%s5714_s0 + $0x2f8] sm:$0xff]  ;;  %v117_v59 = vld [vmem:[%s5714_s0 + $0x330] sm:$0xff] }
 0x184   :  { %v5035_v5 = vadd.f32 %v2521_v9, %v2233_v8  ;;  %v2523_v6 = vpop.f32.mrf.mxu1  ;;  %v3702_v11 = vcombine.low %v98_v13, %v102_v14 }
 0x185   :  { %v2235_v18 = vpop.f32.mrf.mxu0  ;;  %v3709_v6 = vcombine.high %v105_v27, %v109_v29 }
 0x186   :  { %v2236_v23 = vadd.f32 %v4738_v16, %v2235_v18  ;;  %v2524_v25 = vpop.f32.mrf.mxu1 }
 0x187   :  { %v2237_v39 = vpop.f32.mrf.mxu0 }
 0x188   :  { %v5044_v45 = vadd.f32 %v2524_v25, %v2236_v23  ;;  %v2526_v46 = vpop.f32.mrf.mxu1 }
 0x189   :  { %v2240_v47 = vpop.f32.mrf.mxu0  ;;  %2753 = vmatmul.mubr.bf16.gmra.mxu0 %v3692_v20  ;;  %v3711_v20 = vcombine.high %v106_v55, %v110_v0  ;;  %v114_v46 = vld [vmem:[%s5714_s0 + $0x318] sm:$0xff] }
 0x18a   :  { %v2241_v48 = vadd.f32 %v4738_v16, %v2240_v47  ;;  %v2529_v52 = vpop.f32.mrf.mxu1  ;;  %3042 = vmatmul.mubr.bf16.gmra.mxu1 %v3694_v32  ;;  %2760 = vmatprep.mubr.bf16.mxu0 %v3701_v37  ;;  %v118_v47 = vld [vmem:[%s5714_s0 + $0x338] sm:$0xff] }
 0x18b   :  { %v2242_v53 = vpop.f32.mrf.mxu0  ;;  %3049 = vmatprep.mubr.bf16.mxu1 %v3703_v35 }
 0x18c   :  { %v5053_v41 = vadd.f32 %v2529_v52, %v2241_v48  ;;  %v2531_v42 = vpop.f32.mrf.mxu1  ;;  %v3708_v52 = vcombine.low %v105_v27, %v109_v29  ;;  %v121_v27 = vld [vmem:[%s5714_s0 + $0x350] sm:$0xff] }
 0x18d   :  { %v2243_v4 = vpop.f32.mrf.mxu0  ;;  %v125_v29 = vld [vmem:[%s5714_s0 + $0x370] sm:$0xff] }
 0x18e   :  { %v2244_v8 = vadd.f32 %v4738_v16, %v2243_v4  ;;  %v2532_v9 = vpop.f32.mrf.mxu1  ;;  %v3710_v4 = vcombine.low %v106_v55, %v110_v0 }
 0x18f   :  { %v2245_v18 = vpop.f32.mrf.mxu0 }
 0x190   :  { %v5062_v23 = vadd.f32 %v2532_v9, %v2244_v8  ;;  %v2534_v25 = vpop.f32.mrf.mxu1  ;;  %v3719_v9 = vcombine.high %v114_v46, %v118_v47 }
 0x191   :  { %v2248_v32 = vpop.f32.mrf.mxu0  ;;  %2761 = vmatmul.mubr.bf16.gmra.mxu0 %v3700_v7  ;;  %v3717_v7 = vcombine.high %v113_v58, %v117_v59 }
 0x192   :  { %v2249_v37 = vadd.f32 %v4738_v16, %v2248_v32  ;;  %v2537_v39 = vpop.f32.mrf.mxu1  ;;  %3050 = vmatmul.mubr.bf16.gmra.mxu1 %v3702_v11  ;;  %2768 = vmatprep.mubr.bf16.mxu0 %v3709_v6 }
 0x193   :  { %v2250_v35 = vpop.f32.mrf.mxu0  ;;  %3057 = vmatprep.mubr.bf16.mxu1 %v3711_v20 }
 0x194   :  { %v5071_v13 = vadd.f32 %v2537_v39, %v2249_v37  ;;  %v2539_v14 = vpop.f32.mrf.mxu1  ;;  %v122_v37 = vld [vmem:[%s5714_s0 + $0x358] sm:$0xff] }
 0x195   :  { %v2251_v48 = vpop.f32.mrf.mxu0  ;;  %v126_v39 = vld [vmem:[%s5714_s0 + $0x378] sm:$0xff]  ;;  %v3716_v14 = vcombine.low %v113_v58, %v117_v59  ;;  %v129_v58 = vld [vmem:[%s5714_s0 + $0x390] sm:$0xff] }
 0x196   :  { %v2252_v53 = vadd.f32 %v4738_v16, %v2251_v48  ;;  %v2540_v42 = vpop.f32.mrf.mxu1  ;;  %v133_v59 = vld [vmem:[%s5714_s0 + $0x3b0] sm:$0xff] }
 0x197   :  { %v2253_v8 = vpop.f32.mrf.mxu0 }
 0x198   :  { %v5080_v11 = vadd.f32 %v2540_v42, %v2252_v53  ;;  %v2542_v6 = vpop.f32.mrf.mxu1  ;;  %v3718_v53 = vcombine.low %v114_v46, %v118_v47  ;;  %v3725_v42 = vcombine.high %v121_v27, %v125_v29 }
 0x199   :  { %v2256_v18 = vpop.f32.mrf.mxu0  ;;  %2769 = vmatmul.mubr.bf16.gmra.mxu0 %v3708_v52 }
 0x19a   :  { %v2257_v20 = vadd.f32 %v4738_v16, %v2256_v18  ;;  %v2545_v25 = vpop.f32.mrf.mxu1  ;;  %3058 = vmatmul.mubr.bf16.gmra.mxu1 %v3710_v4  ;;  %2776 = vmatprep.mubr.bf16.mxu0 %v3717_v7  ;;  %v3727_v7 = vcombine.high %v122_v37, %v126_v39 }
 0x19b   :  { %v2258_v32 = vpop.f32.mrf.mxu0  ;;  %3065 = vmatprep.mubr.bf16.mxu1 %v3719_v9 }
 0x19c   :  { %v5089_v55 = vadd.f32 %v2545_v25, %v2257_v20  ;;  %v2547_v0 = vpop.f32.mrf.mxu1  ;;  %v130_v32 = vld [vmem:[%s5714_s0 + $0x398] sm:$0xff] }
 0x19d   :  { %v2259_v35 = vpop.f32.mrf.mxu0  ;;  %v134_v0 = vld [vmem:[%s5714_s0 + $0x3b8] sm:$0xff] }
 0x19e   :  { %v2260_v48 = vadd.f32 %v4738_v16, %v2259_v35  ;;  %v2548_v52 = vpop.f32.mrf.mxu1 }
 0x19f   :  { %v2261_v4 = vpop.f32.mrf.mxu0 }
 0x1a0   :  { %v5098_v8 = vadd.f32 %v2548_v52, %v2260_v48  ;;  %v2550_v9 = vpop.f32.mrf.mxu1 }
 0x1a1   :  { %v2264_v6 = vpop.f32.mrf.mxu0  ;;  %2777 = vmatmul.mubr.bf16.gmra.mxu0 %v3716_v14  ;;  %v3724_v14 = vcombine.low %v121_v27, %v125_v29  ;;  %v137_v27 = vld [vmem:[%s5714_s0 + $0x3d0] sm:$0xff] }
 0x1a2   :  { %v2265_v18 = vadd.f32 %v4738_v16, %v2264_v6  ;;  %v2553_v20 = vpop.f32.mrf.mxu1  ;;  %3066 = vmatmul.mubr.bf16.gmra.mxu1 %v3718_v53  ;;  %2784 = vmatprep.mubr.bf16.mxu0 %v3725_v42  ;;  %v3726_v53 = vcombine.low %v122_v37, %v126_v39  ;;  %v3733_v42 = vcombine.high %v129_v58, %v133_v59  ;;  %v141_v29 = vld [vmem:[%s5714_s0 + $0x3f0] sm:$0xff] }
 0x1a3   :  { %v2266_v25 = vpop.f32.mrf.mxu0  ;;  %3073 = vmatprep.mubr.bf16.mxu1 %v3727_v7  ;;  %v3735_v7 = vcombine.high %v130_v32, %v134_v0 }
 0x1a4   :  { %v5107_v46 = vadd.f32 %v2553_v20, %v2265_v18  ;;  %v2555_v47 = vpop.f32.mrf.mxu1 }
 0x1a5   :  { %v2267_v35 = vpop.f32.mrf.mxu0 }
 0x1a6   :  { %v2268_v48 = vadd.f32 %v4738_v16, %v2267_v35  ;;  %v2556_v52 = vpop.f32.mrf.mxu1  ;;  %v142_v35 = vld [vmem:[%s5714_s0 + $0x3f8] sm:$0xff] }
 0x1a7   :  { %v2269_v4 = vpop.f32.mrf.mxu0 }
 0x1a8   :  { %v5116_v9 = vadd.f32 %v2556_v52, %v2268_v48  ;;  %v2558_v6 = vpop.f32.mrf.mxu1  ;;  %v3732_v48 = vcombine.low %v129_v58, %v133_v59  ;;  %v5136_v52 = vld [vmem:[%s5715_s2] ss:$0 sm:$0xff]  ;;  %v3734_v4 = vcombine.low %v130_v32, %v134_v0  ;;  %v149_v32 = vld [vmem:[%s5714_s0 + $0x430] sm:$0xff] }
 0x1a9   :  { %v2272_v18 = vpop.f32.mrf.mxu0  ;;  %2785 = vmatmul.mubr.bf16.gmra.mxu0 %v3724_v14 }
 0x1aa   :  { %5717 = vst [vmem:[#allocation2_spill] sm:$0xff] %v5116_v9  ;;  %v2273_v20 = vadd.f32 %v4738_v16, %v2272_v18  ;;  %v2561_v25 = vpop.f32.mrf.mxu1  ;;  %3074 = vmatmul.mubr.bf16.gmra.mxu1 %v3726_v53  ;;  %2792 = vmatprep.mubr.bf16.mxu0 %v3733_v42  ;;  %v138_v16 = vld [vmem:[%s5714_s0 + $0x3d8] sm:$0xff] }
 0x1ab   :  { %v2274_v47 = vpop.f32.mrf.mxu0  ;;  %3081 = vmatprep.mubr.bf16.mxu1 %v3735_v7  ;;  %v3741_v7 = vcombine.high %v137_v27, %v141_v29  ;;  %v3743_v18 = vcombine.high %v138_v16, %v142_v35 }
 0x1ac   :  { %v5125_v37 = vadd.f32 %v2561_v25, %v2273_v20  ;;  %v2563_v39 = vpop.f32.mrf.mxu1 }
 0x1ad   :  { %v2275_v14 = vpop.f32.mrf.mxu0 }
 0x1ae   :  { %5718 = vst [vmem:[#allocation3_spill] sm:$0xff] %v5125_v37  ;;  %v2276_v53 = vadd.f32 %v5136_v52, %v2275_v14  ;;  %v2564_v42 = vpop.f32.mrf.mxu1  ;;  %v145_v14 = vld [vmem:[%s5714_s0 + $0x410] sm:$0xff] }
 0x1af   :  { %v2277_v6 = vpop.f32.mrf.mxu0 }
 0x1b0   :  { %v5139_v20 = vadd.f32 %v2564_v42, %v2276_v53  ;;  %v2566_v25 = vpop.f32.mrf.mxu1  ;;  %v150_v42 = vld [vmem:[%s5714_s0 + $0x438] sm:$0xff] }
 0x1b1   :  { %v2280_v47 = vpop.f32.mrf.mxu0  ;;  %2793 = vmatmul.mubr.bf16.gmra.mxu0 %v3732_v48  ;;  %v146_v48 = vld [vmem:[%s5714_s0 + $0x418] sm:$0xff]  ;;  %v3742_v25 = vcombine.low %v138_v16, %v142_v35 }
 0x1b2   :  { %5719 = vst [vmem:[#allocation4_spill] sm:$0xff] %v5139_v20  ;;  %v2281_v39 = vadd.f32 %v5136_v52, %v2280_v47  ;;  %v2569_v58 = vpop.f32.mrf.mxu1  ;;  %3082 = vmatmul.mubr.bf16.gmra.mxu1 %v3734_v4  ;;  %2800 = vmatprep.mubr.bf16.mxu0 %v3741_v7  ;;  %v3740_v7 = vcombine.low %v137_v27, %v141_v29  ;;  %v153_v27 = vld [vmem:[%s5714_s0 + $0x450] sm:$0xff] }
 0x1b3   :  { %v2282_v59 = vpop.f32.mrf.mxu0  ;;  %3089 = vmatprep.mubr.bf16.mxu1 %v3743_v18  ;;  %v3749_v47 = vcombine.high %v145_v14, %v149_v32  ;;  %v3751_v20 = vcombine.high %v146_v48, %v150_v42  ;;  %v157_v29 = vld [vmem:[%s5714_s0 + $0x470] sm:$0xff] }
 0x1b4   :  { %v5148_v0 = vadd.f32 %v2569_v58, %v2281_v39  ;;  %v2571_v53 = vpop.f32.mrf.mxu1 }
 0x1b5   :  { %v2283_v4 = vpop.f32.mrf.mxu0 }
 0x1b6   :  { %5720 = vst [vmem:[#allocation5_spill] sm:$0xff] %v5148_v0  ;;  %v2284_v6 = vadd.f32 %v5136_v52, %v2283_v4  ;;  %v2572_v18 = vpop.f32.mrf.mxu1  ;;  %v154_v4 = vld [vmem:[%s5714_s0 + $0x458] sm:$0xff] }
 0x1b7   :  { %v2285_v59 = vpop.f32.mrf.mxu0 }
 0x1b8   :  { %v5157_v39 = vadd.f32 %v2572_v18, %v2284_v6  ;;  %v2574_v58 = vpop.f32.mrf.mxu1 }
 0x1b9   :  { %v2288_v53 = vpop.f32.mrf.mxu0  ;;  %2801 = vmatmul.mubr.bf16.gmra.mxu0 %v3740_v7  ;;  %v3748_v7 = vcombine.low %v145_v14, %v149_v32  ;;  %v161_v14 = vld [vmem:[%s5714_s0 + $0x490] sm:$0xff] }
 0x1ba   :  { %5721 = vst [vmem:[#allocation6_spill] sm:$0xff] %v5157_v39  ;;  %v2289_v0 = vadd.f32 %v5136_v52, %v2288_v53  ;;  %v2577_v37 = vpop.f32.mrf.mxu1  ;;  %3090 = vmatmul.mubr.bf16.gmra.mxu1 %v3742_v25  ;;  %2808 = vmatprep.mubr.bf16.mxu0 %v3749_v47  ;;  %v3750_v25 = vcombine.low %v146_v48, %v150_v42  ;;  %v165_v32 = vld [vmem:[%s5714_s0 + $0x4b0] sm:$0xff] }
 0x1bb   :  { %v2290_v9 = vpop.f32.mrf.mxu0  ;;  %3097 = vmatprep.mubr.bf16.mxu1 %v3751_v20  ;;  %v3757_v47 = vcombine.high %v153_v27, %v157_v29 }
 0x1bc   :  { %v5166_v16 = vadd.f32 %v2577_v37, %v2289_v0  ;;  %v2579_v35 = vpop.f32.mrf.mxu1  ;;  %v158_v9 = vld [vmem:[%s5714_s0 + $0x478] sm:$0xff] }
 0x1bd   :  { %v2291_v20 = vpop.f32.mrf.mxu0  ;;  %v3759_v58 = vcombine.high %v154_v4, %v158_v9 }
 0x1be   :  { %5722 = vst [vmem:[#allocation7_spill] sm:$0xff] %v5166_v16  ;;  %v2292_v6 = vadd.f32 %v5136_v52, %v2291_v20  ;;  %v2580_v18 = vpop.f32.mrf.mxu1  ;;  %v162_v20 = vld [vmem:[%s5714_s0 + $0x498] sm:$0xff] }
 0x1bf   :  { %v2293_v59 = vpop.f32.mrf.mxu0 }
 0x1c0   :  { %v5175_v37 = vadd.f32 %v2580_v18, %v2292_v6  ;;  %v2582_v0 = vpop.f32.mrf.mxu1  ;;  %v3756_v6 = vcombine.low %v153_v27, %v157_v29  ;;  %v3765_v59 = vcombine.high %v161_v14, %v165_v32  ;;  %v169_v27 = vld [vmem:[%s5714_s0 + $0x4d0] sm:$0xff] }
 0x1c1   :  { %v2296_v53 = vpop.f32.mrf.mxu0  ;;  %2809 = vmatmul.mubr.bf16.gmra.mxu0 %v3748_v7  ;;  %v173_v29 = vld [vmem:[%s5714_s0 + $0x4f0] sm:$0xff] }
 0x1c2   :  { %5723 = vst [vmem:[#allocation8_spill] sm:$0xff] %v5175_v37  ;;  %v2297_v35 = vadd.f32 %v5136_v52, %v2296_v53  ;;  %v2585_v16 = vpop.f32.mrf.mxu1  ;;  %3098 = vmatmul.mubr.bf16.gmra.mxu1 %v3750_v25  ;;  %2816 = vmatprep.mubr.bf16.mxu0 %v3757_v47  ;;  %v3758_v47 = vcombine.low %v154_v4, %v158_v9 }
 0x1c3   :  { %v2298_v39 = vpop.f32.mrf.mxu0  ;;  %3105 = vmatprep.mubr.bf16.mxu1 %v3759_v58 }
 0x1c4   :  { %v5184_v48 = vadd.f32 %v2585_v16, %v2297_v35  ;;  %v2587_v42 = vpop.f32.mrf.mxu1  ;;  %v166_v39 = vld [vmem:[%s5714_s0 + $0x4b8] sm:$0xff] }
 0x1c5   :  { %v2299_v7 = vpop.f32.mrf.mxu0  ;;  %v3767_v0 = vcombine.high %v162_v20, %v166_v39 }
 0x1c6   :  { %5724 = vst [vmem:[#allocation9_spill] sm:$0xff] %v5184_v48  ;;  %v2300_v18 = vadd.f32 %v5136_v52, %v2299_v7  ;;  %v2588_v25 = vpop.f32.mrf.mxu1  ;;  %v170_v7 = vld [vmem:[%s5714_s0 + $0x4d8] sm:$0xff] }
 0x1c7   :  { %v2301_v58 = vpop.f32.mrf.mxu0 }
 0x1c8   :  { %v5193_v16 = vadd.f32 %v2588_v25, %v2300_v18  ;;  %v2590_v53 = vpop.f32.mrf.mxu1  ;;  %v3764_v18 = vcombine.low %v161_v14, %v165_v32  ;;  %v3773_v58 = vcombine.high %v169_v27, %v173_v29  ;;  %v177_v14 = vld [vmem:[%s5714_s0 + $0x510] sm:$0xff] }
 0x1c9   :  { %v2304_v35 = vpop.f32.mrf.mxu0  ;;  %2817 = vmatmul.mubr.bf16.gmra.mxu0 %v3756_v6  ;;  %v181_v32 = vld [vmem:[%s5714_s0 + $0x530] sm:$0xff] }
 0x1ca   :  { %5725 = vst [vmem:[#allocation10_spill] sm:$0xff] %v5193_v16  ;;  %v2305_v42 = vadd.f32 %v5136_v52, %v2304_v35  ;;  %v2593_v48 = vpop.f32.mrf.mxu1  ;;  %3106 = vmatmul.mubr.bf16.gmra.mxu1 %v3758_v47  ;;  %2824 = vmatprep.mubr.bf16.mxu0 %v3765_v59  ;;  %v3766_v59 = vcombine.low %v162_v20, %v166_v39 }
 0x1cb   :  { %v2306_v37 = vpop.f32.mrf.mxu0  ;;  %3113 = vmatprep.mubr.bf16.mxu1 %v3767_v0 }
 0x1cc   :  { %v5202_v4 = vadd.f32 %v2593_v48, %v2305_v42  ;;  %v2595_v9 = vpop.f32.mrf.mxu1  ;;  %v174_v37 = vld [vmem:[%s5714_s0 + $0x4f8] sm:$0xff] }
 0x1cd   :  { %v2307_v6 = vpop.f32.mrf.mxu0  ;;  %v3775_v53 = vcombine.high %v170_v7, %v174_v37 }
 0x1ce   :  { %5726 = vst [vmem:[#allocation11_spill] sm:$0xff] %v5202_v4  ;;  %v2308_v25 = vadd.f32 %v5136_v52, %v2307_v6  ;;  %v2596_v47 = vpop.f32.mrf.mxu1  ;;  %v178_v6 = vld [vmem:[%s5714_s0 + $0x518] sm:$0xff] }
 0x1cf   :  { %v2309_v0 = vpop.f32.mrf.mxu0 }
 0x1d0   :  { %v5211_v48 = vadd.f32 %v2596_v47, %v2308_v25  ;;  %v2598_v35 = vpop.f32.mrf.mxu1  ;;  %v3772_v25 = vcombine.low %v169_v27, %v173_v29  ;;  %v3781_v0 = vcombine.high %v177_v14, %v181_v32  ;;  %v185_v27 = vld [vmem:[%s5714_s0 + $0x550] sm:$0xff] }
 0x1d1   :  { %v2312_v42 = vpop.f32.mrf.mxu0  ;;  %2825 = vmatmul.mubr.bf16.gmra.mxu0 %v3764_v18  ;;  %v189_v29 = vld [vmem:[%s5714_s0 + $0x570] sm:$0xff] }
 0x1d2   :  { %5727 = vst [vmem:[#allocation12_spill] sm:$0xff] %v5211_v48  ;;  %v2313_v9 = vadd.f32 %v5136_v52, %v2312_v42  ;;  %v2601_v4 = vpop.f32.mrf.mxu1  ;;  %3114 = vmatmul.mubr.bf16.gmra.mxu1 %v3766_v59  ;;  %2832 = vmatprep.mubr.bf16.mxu0 %v3773_v58  ;;  %v3774_v58 = vcombine.low %v170_v7, %v174_v37 }
 0x1d3   :  { %v2314_v16 = vpop.f32.mrf.mxu0  ;;  %3121 = vmatprep.mubr.bf16.mxu1 %v3775_v53 }
 0x1d4   :  { %v5220_v20 = vadd.f32 %v2601_v4, %v2313_v9  ;;  %v2603_v39 = vpop.f32.mrf.mxu1  ;;  %v182_v16 = vld [vmem:[%s5714_s0 + $0x538] sm:$0xff] }
 0x1d5   :  { %v2315_v18 = vpop.f32.mrf.mxu0  ;;  %v3783_v35 = vcombine.high %v178_v6, %v182_v16 }
 0x1d6   :  { %5728 = vst [vmem:[#allocation13_spill] sm:$0xff] %v5220_v20  ;;  %v2316_v47 = vadd.f32 %v5136_v52, %v2315_v18  ;;  %v2604_v59 = vpop.f32.mrf.mxu1  ;;  %v186_v18 = vld [vmem:[%s5714_s0 + $0x558] sm:$0xff] }
 0x1d7   :  { %v2317_v53 = vpop.f32.mrf.mxu0 }
 0x1d8   :  { %v5229_v4 = vadd.f32 %v2604_v59, %v2316_v47  ;;  %v2606_v42 = vpop.f32.mrf.mxu1  ;;  %v3780_v47 = vcombine.low %v177_v14, %v181_v32  ;;  %v3789_v53 = vcombine.high %v185_v27, %v189_v29  ;;  %v193_v14 = vld [vmem:[%s5714_s0 + $0x590] sm:$0xff] }
 0x1d9   :  { %v2320_v9 = vpop.f32.mrf.mxu0  ;;  %2833 = vmatmul.mubr.bf16.gmra.mxu0 %v3772_v25  ;;  %v197_v32 = vld [vmem:[%s5714_s0 + $0x5b0] sm:$0xff] }
 0x1da   :  { %5729 = vst [vmem:[#allocation14_spill] sm:$0xff] %v5229_v4  ;;  %v2321_v39 = vadd.f32 %v5136_v52, %v2320_v9  ;;  %v2609_v20 = vpop.f32.mrf.mxu1  ;;  %3122 = vmatmul.mubr.bf16.gmra.mxu1 %v3774_v58  ;;  %2840 = vmatprep.mubr.bf16.mxu0 %v3781_v0  ;;  %v3782_v0 = vcombine.low %v178_v6, %v182_v16 }
 0x1db   :  { %v2322_v48 = vpop.f32.mrf.mxu0  ;;  %3129 = vmatprep.mubr.bf16.mxu1 %v3783_v35 }
 0x1dc   :  { %v5238_v7 = vadd.f32 %v2609_v20, %v2321_v39  ;;  %v2611_v37 = vpop.f32.mrf.mxu1  ;;  %v190_v48 = vld [vmem:[%s5714_s0 + $0x578] sm:$0xff] }
 0x1dd   :  { %v2323_v25 = vpop.f32.mrf.mxu0  ;;  %v3791_v42 = vcombine.high %v186_v18, %v190_v48 }
 0x1de   :  { %5730 = vst [vmem:[#allocation15_spill] sm:$0xff] %v5238_v7  ;;  %v2324_v59 = vadd.f32 %v5136_v52, %v2323_v25  ;;  %v2612_v58 = vpop.f32.mrf.mxu1  ;;  %v194_v25 = vld [vmem:[%s5714_s0 + $0x598] sm:$0xff] }
 0x1df   :  { %v2325_v35 = vpop.f32.mrf.mxu0 }
 0x1e0   :  { %v5247_v20 = vadd.f32 %v2612_v58, %v2324_v59  ;;  %v2614_v9 = vpop.f32.mrf.mxu1  ;;  %v3788_v59 = vcombine.low %v185_v27, %v189_v29  ;;  %v3797_v35 = vcombine.high %v193_v14, %v197_v32  ;;  %v201_v27 = vld [vmem:[%s5714_s0 + $0x5d0] sm:$0xff] }
 0x1e1   :  { %v2328_v39 = vpop.f32.mrf.mxu0  ;;  %2841 = vmatmul.mubr.bf16.gmra.mxu0 %v3780_v47  ;;  %v205_v29 = vld [vmem:[%s5714_s0 + $0x5f0] sm:$0xff] }
 0x1e2   :  { %5731 = vst [vmem:[#allocation16_spill] sm:$0xff] %v5247_v20  ;;  %v2329_v37 = vadd.f32 %v5136_v52, %v2328_v39  ;;  %v2617_v7 = vpop.f32.mrf.mxu1  ;;  %3130 = vmatmul.mubr.bf16.gmra.mxu1 %v3782_v0  ;;  %2848 = vmatprep.mubr.bf16.mxu0 %v3789_v53  ;;  %v3790_v53 = vcombine.low %v186_v18, %v190_v48 }
 0x1e3   :  { %v2330_v4 = vpop.f32.mrf.mxu0  ;;  %3137 = vmatprep.mubr.bf16.mxu1 %v3791_v42 }
 0x1e4   :  { %v5256_v6 = vadd.f32 %v2617_v7, %v2329_v37  ;;  %v2619_v16 = vpop.f32.mrf.mxu1  ;;  %v198_v4 = vld [vmem:[%s5714_s0 + $0x5b8] sm:$0xff] }
 0x1e5   :  { %v2331_v47 = vpop.f32.mrf.mxu0  ;;  %v3799_v9 = vcombine.high %v194_v25, %v198_v4 }
 0x1e6   :  { %5732 = vst [vmem:[#allocation17_spill] sm:$0xff] %v5256_v6  ;;  %v2332_v58 = vadd.f32 %v5136_v52, %v2331_v47  ;;  %v2620_v0 = vpop.f32.mrf.mxu1  ;;  %v202_v47 = vld [vmem:[%s5714_s0 + $0x5d8] sm:$0xff] }
 0x1e7   :  { %v2333_v42 = vpop.f32.mrf.mxu0 }
 0x1e8   :  { %v5265_v7 = vadd.f32 %v2620_v0, %v2332_v58  ;;  %v2622_v39 = vpop.f32.mrf.mxu1  ;;  %v3796_v58 = vcombine.low %v193_v14, %v197_v32  ;;  %v3805_v42 = vcombine.high %v201_v27, %v205_v29  ;;  %v209_v14 = vld [vmem:[%s5714_s0 + $0x610] sm:$0xff] }
 0x1e9   :  { %v2336_v37 = vpop.f32.mrf.mxu0  ;;  %2849 = vmatmul.mubr.bf16.gmra.mxu0 %v3788_v59  ;;  %v213_v32 = vld [vmem:[%s5714_s0 + $0x630] sm:$0xff] }
 0x1ea   :  { %5733 = vst [vmem:[#allocation18_spill] sm:$0xff] %v5265_v7  ;;  %v2337_v16 = vadd.f32 %v5136_v52, %v2336_v37  ;;  %v2625_v6 = vpop.f32.mrf.mxu1  ;;  %3138 = vmatmul.mubr.bf16.gmra.mxu1 %v3790_v53  ;;  %2856 = vmatprep.mubr.bf16.mxu0 %v3797_v35  ;;  %v3798_v35 = vcombine.low %v194_v25, %v198_v4 }
 0x1eb   :  { %v2338_v20 = vpop.f32.mrf.mxu0  ;;  %3145 = vmatprep.mubr.bf16.mxu1 %v3799_v9 }
 0x1ec   :  { %v5274_v18 = vadd.f32 %v2625_v6, %v2337_v16  ;;  %v2627_v48 = vpop.f32.mrf.mxu1  ;;  %v206_v20 = vld [vmem:[%s5714_s0 + $0x5f8] sm:$0xff] }
 0x1ed   :  { %v2339_v59 = vpop.f32.mrf.mxu0  ;;  %v3807_v39 = vcombine.high %v202_v47, %v206_v20 }
 0x1ee   :  { %5734 = vst [vmem:[#allocation19_spill] sm:$0xff] %v5274_v18  ;;  %v2340_v0 = vadd.f32 %v5136_v52, %v2339_v59  ;;  %v2628_v53 = vpop.f32.mrf.mxu1  ;;  %v210_v59 = vld [vmem:[%s5714_s0 + $0x618] sm:$0xff] }
 0x1ef   :  { %v2341_v9 = vpop.f32.mrf.mxu0 }
 0x1f0   :  { %v5283_v6 = vadd.f32 %v2628_v53, %v2340_v0  ;;  %v2630_v37 = vpop.f32.mrf.mxu1  ;;  %v3804_v0 = vcombine.low %v201_v27, %v205_v29  ;;  %v3813_v9 = vcombine.high %v209_v14, %v213_v32  ;;  %v217_v27 = vld [vmem:[%s5714_s0 + $0x650] sm:$0xff] }
 0x1f1   :  { %v2344_v16 = vpop.f32.mrf.mxu0  ;;  %2857 = vmatmul.mubr.bf16.gmra.mxu0 %v3796_v58  ;;  %v221_v29 = vld [vmem:[%s5714_s0 + $0x670] sm:$0xff] }
 0x1f2   :  { %5735 = vst [vmem:[#allocation20_spill] sm:$0xff] %v5283_v6  ;;  %v2345_v48 = vadd.f32 %v5136_v52, %v2344_v16  ;;  %v2633_v18 = vpop.f32.mrf.mxu1  ;;  %3146 = vmatmul.mubr.bf16.gmra.mxu1 %v3798_v35  ;;  %2864 = vmatprep.mubr.bf16.mxu0 %v3805_v42  ;;  %v3806_v42 = vcombine.low %v202_v47, %v206_v20 }
 0x1f3   :  { %v2346_v7 = vpop.f32.mrf.mxu0  ;;  %3153 = vmatprep.mubr.bf16.mxu1 %v3807_v39 }
 0x1f4   :  { %v5292_v25 = vadd.f32 %v2633_v18, %v2345_v48  ;;  %v2635_v4 = vpop.f32.mrf.mxu1  ;;  %v214_v7 = vld [vmem:[%s5714_s0 + $0x638] sm:$0xff] }
 0x1f5   :  { %v2347_v58 = vpop.f32.mrf.mxu0  ;;  %v3815_v37 = vcombine.high %v210_v59, %v214_v7 }
 0x1f6   :  { %5736 = vst [vmem:[#allocation21_spill] sm:$0xff] %v5292_v25  ;;  %v2348_v53 = vadd.f32 %v5136_v52, %v2347_v58  ;;  %v2636_v35 = vpop.f32.mrf.mxu1  ;;  %v218_v58 = vld [vmem:[%s5714_s0 + $0x658] sm:$0xff] }
 0x1f7   :  { %v2349_v39 = vpop.f32.mrf.mxu0 }
 0x1f8   :  { %v5301_v18 = vadd.f32 %v2636_v35, %v2348_v53  ;;  %v2638_v16 = vpop.f32.mrf.mxu1  ;;  %v3812_v53 = vcombine.low %v209_v14, %v213_v32  ;;  %v3821_v39 = vcombine.high %v217_v27, %v221_v29  ;;  %v229_v14 = vld [vmem:[%s5714_s0 + $0x6b0] sm:$0xff] }
 0x1f9   :  { %v2352_v48 = vpop.f32.mrf.mxu0  ;;  %2865 = vmatmul.mubr.bf16.gmra.mxu0 %v3804_v0 }
 0x1fa   :  { %5737 = vst [vmem:[#allocation22_spill] sm:$0xff] %v5301_v18  ;;  %v2353_v4 = vadd.f32 %v5136_v52, %v2352_v48  ;;  %v2641_v25 = vpop.f32.mrf.mxu1  ;;  %3154 = vmatmul.mubr.bf16.gmra.mxu1 %v3806_v42  ;;  %2872 = vmatprep.mubr.bf16.mxu0 %v3813_v9  ;;  %v3814_v9 = vcombine.low %v210_v59, %v214_v7  ;;  %v226_v7 = vld [vmem:[%s5714_s0 + $0x698] sm:$0xff] }
 0x1fb   :  { %v2354_v6 = vpop.f32.mrf.mxu0  ;;  %3161 = vmatprep.mubr.bf16.mxu1 %v3815_v37 }
 0x1fc   :  { %v5310_v47 = vadd.f32 %v2641_v25, %v2353_v4  ;;  %v2643_v20 = vpop.f32.mrf.mxu1  ;;  %v222_v6 = vld [vmem:[%s5714_s0 + $0x678] sm:$0xff] }
 0x1fd   :  { %v2355_v0 = vpop.f32.mrf.mxu0  ;;  %v3823_v16 = vcombine.high %v218_v58, %v222_v6 }
 0x1fe   :  { %5738 = vst [vmem:[#allocation23_spill] sm:$0xff] %v5310_v47  ;;  %v2356_v35 = vadd.f32 %v5136_v52, %v2355_v0  ;;  %v2644_v42 = vpop.f32.mrf.mxu1  ;;  %v225_v52 = vld [vmem:[%s5714_s0 + $0x690] sm:$0xff]  ;;  %v3820_v0 = vcombine.low %v217_v27, %v221_v29 }
 0x1ff   :  { %v2357_v37 = vpop.f32.mrf.mxu0 }
 0x200   :  { %v5319_v25 = vadd.f32 %v2644_v42, %v2356_v35  ;;  %v2646_v48 = vpop.f32.mrf.mxu1 }
 0x201   :  { %v2682_v4 = vpop.f32.mrf.mxu0  ;;  %2873 = vmatmul.mubr.bf16.gmra.mxu0 %v3812_v53 }
 0x202   :  { %v2683_v20 = vadd.f32 %v2682_v4, %v4747_v24  ;;  %v2971_v47 = vpop.f32.mrf.mxu1  ;;  %3162 = vmatmul.mubr.bf16.gmra.mxu1 %v3814_v9  ;;  %2880 = vmatprep.mubr.bf16.mxu0 %v3821_v39  ;;  %v230_v24 = vld [vmem:[%s5714_s0 + $0x6b8] sm:$0xff]  ;;  %v3822_v9 = vcombine.low %v218_v58, %v222_v6  ;;  %v3829_v39 = vcombine.high %v225_v52, %v229_v14  ;;  %v233_v6 = vld [vmem:[%s5714_s0 + $0x6d0] sm:$0xff] }
 0x203   :  { %v2684_v18 = vpop.f32.mrf.mxu0  ;;  %3169 = vmatprep.mubr.bf16.mxu1 %v3823_v16 }
 0x204   :  { %v2972_v32 = vadd.f32 %v2971_v47, %v2683_v20  ;;  %v2973_v59 = vpop.f32.mrf.mxu1  ;;  %v3831_v47 = vcombine.high %v226_v7, %v230_v24 }
 0x205   :  { %v2685_v18 = vpop.f32.mrf.mxu0 }
 0x206   :  { %v3226_v53 = vmax.f32 %v2972_v32, 0.0  ;;  %v2686_v35 = vadd.f32 %v2685_v18, %v4756_v36  ;;  %v2974_v42 = vpop.f32.mrf.mxu1  ;;  %v237_v32 = vld [vmem:[%s5714_s0 + $0x6f0] sm:$0xff] }
 0x207   :  { %v2687_v37 = vpop.f32.mrf.mxu0 }
 0x208   :  { %v4000_v16 = vpack.c.bf16 %v3226_v53, %v3226_v53  ;;  %v2975_v48 = vadd.f32 %v2974_v42, %v2686_v35  ;;  %v2976_v4 = vpop.f32.mrf.mxu1  ;;  %v238_v53 = vld [vmem:[%s5714_s0 + $0x6f8] sm:$0xff]  ;;  %v3828_v42 = vcombine.low %v225_v52, %v229_v14 }
 0x209   :  { %v2690_v20 = vpop.f32.mrf.mxu0  ;;  %2881 = vmatmul.mubr.bf16.gmra.mxu0 %v3820_v0 }
 0x20a   :  { %3547 = vst.msk [vmem:[%s5716_s3] sm:$0xf] %vm3546_vm0, %v4000_v16  ;;  %v3227_v27 = vmax.f32 %v2975_v48, 0.0  ;;  %v2691_v29 = vadd.f32 %v2690_v20, %v4765_v44  ;;  %v2979_v36 = vpop.f32.mrf.mxu1  ;;  %3170 = vmatmul.mubr.bf16.gmra.mxu1 %v3822_v9  ;;  %2888 = vmatprep.mubr.bf16.mxu0 %v3829_v39  ;;  %v234_v44 = vld [vmem:[%s5714_s0 + $0x6d8] sm:$0xff]  ;;  %v3837_v16 = vcombine.high %v233_v6, %v237_v32 }
 0x20b   :  { %v2692_v58 = vpop.f32.mrf.mxu0  ;;  %3177 = vmatprep.mubr.bf16.mxu1 %v3831_v47  ;;  %v3830_v47 = vcombine.low %v226_v7, %v230_v24  ;;  %v3839_v4 = vcombine.high %v234_v44, %v238_v53  ;;  %v241_v7 = vld [vmem:[%s5714_s0 + $0x710] sm:$0xff] }
 0x20c   :  { %v4001_v59 = vpack.c.bf16 %v3227_v27, %v3227_v27  ;;  %v2980_v18 = vadd.f32 %v2979_v36, %v2691_v29  ;;  %v2981_v0 = vpop.f32.mrf.mxu1  ;;  %v245_v24 = vld [vmem:[%s5714_s0 + $0x730] sm:$0xff] }
 0x20d   :  { %v2693_v35 = vpop.f32.mrf.mxu0 }
 0x20e   :  { %3548 = vst.msk [vmem:[%s5716_s3 + $0x4] sm:$0xf] %vm3546_vm0, %v4001_v59  ;;  %v3228_v9 = vmax.f32 %v2980_v18, 0.0  ;;  %v2694_v39 = vadd.f32 %v2693_v35, %v4774_v56  ;;  %v2982_v37 = vpop.f32.mrf.mxu1  ;;  %v246_v35 = vld [vmem:[%s5714_s0 + $0x738] sm:$0xff] }
 0x20f   :  { %v2695_v48 = vpop.f32.mrf.mxu0 }
 0x210   :  { %v4002_v20 = vpack.c.bf16 %v3228_v9, %v3228_v9  ;;  %v2983_v27 = vadd.f32 %v2982_v37, %v2694_v39  ;;  %v2984_v29 = vpop.f32.mrf.mxu1  ;;  %v3836_v9 = vcombine.low %v233_v6, %v237_v32  ;;  %v3845_v48 = vcombine.high %v241_v7, %v245_v24 }
 0x211   :  { %v2698_v36 = vpop.f32.mrf.mxu0  ;;  %2889 = vmatmul.mubr.bf16.gmra.mxu0 %v3828_v42 }
 0x212   :  { %3549 = vst.msk [vmem:[%s5716_s3 + $0x8] sm:$0xf] %vm3546_vm0, %v4002_v20  ;;  %v3229_v52 = vmax.f32 %v2983_v27, 0.0  ;;  %v2699_v14 = vadd.f32 %v2698_v36, %v4783_v63  ;;  %v2987_v58 = vpop.f32.mrf.mxu1  ;;  %3178 = vmatmul.mubr.bf16.gmra.mxu1 %v3830_v47  ;;  %2896 = vmatprep.mubr.bf16.mxu0 %v3837_v16  ;;  %v242_v63 = vld [vmem:[%s5714_s0 + $0x718] sm:$0xff]  ;;  %v3838_v16 = vcombine.low %v234_v44, %v238_v53  ;;  %v249_v44 = vld [vmem:[%s5714_s0 + $0x750] sm:$0xff] }
 0x213   :  { %v2700_v56 = vpop.f32.mrf.mxu0  ;;  %3185 = vmatprep.mubr.bf16.mxu1 %v3839_v4  ;;  %v3847_v20 = vcombine.high %v242_v63, %v246_v35  ;;  %v253_v53 = vld [vmem:[%s5714_s0 + $0x770] sm:$0xff] }
 0x214   :  { %v4003_v59 = vpack.c.bf16 %v3229_v52, %v3229_v52  ;;  %v2988_v18 = vadd.f32 %v2987_v58, %v2699_v14  ;;  %v2989_v0 = vpop.f32.mrf.mxu1 }
 0x215   :  { %v2701_v42 = vpop.f32.mrf.mxu0 }
 0x216   :  { %3550 = vst.msk [vmem:[%s5716_s3 + $0xc] sm:$0xf] %vm3546_vm0, %v4003_v59  ;;  %v3230_v39 = vmax.f32 %v2988_v18, 0.0  ;;  %v2702_v37 = vadd.f32 %v2701_v42, %v4792_v12  ;;  %v2990_v47 = vpop.f32.mrf.mxu1  ;;  %v254_v18 = vld [vmem:[%s5714_s0 + $0x778] sm:$0xff]  ;;  %v3844_v42 = vcombine.low %v241_v7, %v245_v24 }
 0x217   :  { %v2703_v4 = vpop.f32.mrf.mxu0 }
 0x218   :  { %v4004_v27 = vpack.c.bf16 %v3230_v39, %v3230_v39  ;;  %v2991_v29 = vadd.f32 %v2990_v47, %v2702_v37  ;;  %v2992_v36 = vpop.f32.mrf.mxu1  ;;  %v3846_v47 = vcombine.low %v242_v63, %v246_v35  ;;  %v257_v63 = vld [vmem:[%s5714_s0 + $0x790] sm:$0xff] }
 0x219   :  { %v2706_v52 = vpop.f32.mrf.mxu0  ;;  %2897 = vmatmul.mubr.bf16.gmra.mxu0 %v3836_v9  ;;  %v261_v35 = vld [vmem:[%s5714_s0 + $0x7b0] sm:$0xff] }
 0x21a   :  { %3551 = vst.msk [vmem:[%s5716_s3 + $0x10] sm:$0xf] %vm3546_vm0, %v4004_v27  ;;  %v3231_v6 = vmax.f32 %v2991_v29, 0.0  ;;  %v2707_v32 = vadd.f32 %v2706_v52, %v4801_v21  ;;  %v2995_v14 = vpop.f32.mrf.mxu1  ;;  %3186 = vmatmul.mubr.bf16.gmra.mxu1 %v3838_v16  ;;  %2904 = vmatprep.mubr.bf16.mxu0 %v3845_v48  ;;  %v250_v21 = vld [vmem:[%s5714_s0 + $0x758] sm:$0xff]  ;;  %v3853_v16 = vcombine.high %v249_v44, %v253_v53 }
 0x21b   :  { %v2708_v12 = vpop.f32.mrf.mxu0  ;;  %3193 = vmatprep.mubr.bf16.mxu1 %v3847_v20  ;;  %v3855_v4 = vcombine.high %v250_v21, %v254_v18 }
 0x21c   :  { %v4005_v58 = vpack.c.bf16 %v3231_v6, %v3231_v6  ;;  %v2996_v56 = vadd.f32 %v2995_v14, %v2707_v32  ;;  %v2997_v59 = vpop.f32.mrf.mxu1  ;;  %v262_v12 = vld [vmem:[%s5714_s0 + $0x7b8] sm:$0xff] }
 0x21d   :  { %v2709_v0 = vpop.f32.mrf.mxu0 }
 0x21e   :  { %3552 = vst.msk [vmem:[%s5716_s3 + $0x14] sm:$0xf] %vm3546_vm0, %v4005_v58  ;;  %v3232_v9 = vmax.f32 %v2996_v56, 0.0  ;;  %v2710_v39 = vadd.f32 %v2709_v0, %v4810_v34  ;;  %v2998_v37 = vpop.f32.mrf.mxu1  ;;  %v3852_v56 = vcombine.low %v249_v44, %v253_v53 }
 0x21f   :  { %v2711_v48 = vpop.f32.mrf.mxu0 }
 0x220   :  { %v4006_v20 = vpack.c.bf16 %v3232_v9, %v3232_v9  ;;  %v2999_v27 = vadd.f32 %v2998_v37, %v2710_v39  ;;  %v3000_v29 = vpop.f32.mrf.mxu1  ;;  %v3854_v9 = vcombine.low %v250_v21, %v254_v18  ;;  %v3861_v39 = vcombine.high %v257_v63, %v261_v35  ;;  %v265_v21 = vld [vmem:[%s5714_s0 + $0x7d0] sm:$0xff] }
 0x221   :  { %v2714_v36 = vpop.f32.mrf.mxu0  ;;  %2905 = vmatmul.mubr.bf16.gmra.mxu0 %v3844_v42  ;;  %v269_v18 = vld [vmem:[%s5714_s0 + $0x7f0] sm:$0xff] }
 0x222   :  { %3553 = vst.msk [vmem:[%s5716_s3 + $0x18] sm:$0xf] %vm3546_vm0, %v4006_v20  ;;  %v3233_v7 = vmax.f32 %v2999_v27, 0.0  ;;  %v2715_v24 = vadd.f32 %v2714_v36, %v4819_v43  ;;  %v3003_v52 = vpop.f32.mrf.mxu1  ;;  %3194 = vmatmul.mubr.bf16.gmra.mxu1 %v3846_v47  ;;  %2912 = vmatprep.mubr.bf16.mxu0 %v3853_v16  ;;  %v258_v43 = vld [vmem:[%s5714_s0 + $0x798] sm:$0xff] }
 0x223   :  { %v2716_v34 = vpop.f32.mrf.mxu0  ;;  %3201 = vmatprep.mubr.bf16.mxu1 %v3855_v4  ;;  %v3863_v47 = vcombine.high %v258_v43, %v262_v12 }
 0x224   :  { %v4007_v6 = vpack.c.bf16 %v3233_v7, %v3233_v7  ;;  %v3004_v32 = vadd.f32 %v3003_v52, %v2715_v24  ;;  %v3005_v14 = vpop.f32.mrf.mxu1  ;;  %v270_v24 = vld [vmem:[%s5714_s0 + $0x7f8] sm:$0xff]  ;;  %v3860_v34 = vcombine.low %v257_v63, %v261_v35 }
 0x225   :  { %v2717_v58 = vpop.f32.mrf.mxu0 }
 0x226   :  { %3554 = vst.msk [vmem:[%s5716_s3 + $0x1c] sm:$0xf] %vm3546_vm0, %v4007_v6  ;;  %v3234_v59 = vmax.f32 %v3004_v32, 0.0  ;;  %v2718_v0 = vadd.f32 %v2717_v58, %v4828_v57  ;;  %v3006_v42 = vpop.f32.mrf.mxu1  ;;  %v3862_v58 = vcombine.low %v258_v43, %v262_v12 }
 0x227   :  { %v2719_v37 = vpop.f32.mrf.mxu0 }
 0x228   :  { %v4008_v16 = vpack.c.bf16 %v3234_v59, %v3234_v59  ;;  %v3007_v48 = vadd.f32 %v3006_v42, %v2718_v0  ;;  %v3008_v4 = vpop.f32.mrf.mxu1 }
 0x229   :  { %v2722_v20 = vpop.f32.mrf.mxu0  ;;  %2913 = vmatmul.mubr.bf16.gmra.mxu0 %v3852_v56  ;;  %v3869_v56 = vcombine.high %v265_v21, %v269_v18  ;;  %v3868_v4 = vcombine.low %v265_v21, %v269_v18 }
 0x22a   :  { %3555 = vst.msk [vmem:[%s5716_s3 + $0x20] sm:$0xf] %vm3546_vm0, %v4008_v16  ;;  %v3235_v44 = vmax.f32 %v3007_v48, 0.0  ;;  %v2723_v53 = vadd.f32 %v2722_v20, %v4837_v2  ;;  %v3011_v27 = vpop.f32.mrf.mxu1  ;;  %3202 = vmatmul.mubr.bf16.gmra.mxu1 %v3854_v9  ;;  %2920 = vmatprep.mubr.bf16.mxu0 %v3861_v39  ;;  %v266_v2 = vld [vmem:[%s5714_s0 + $0x7d8] sm:$0xff] }
 0x22b   :  { %v2724_v57 = vpop.f32.mrf.mxu0  ;;  %3209 = vmatprep.mubr.bf16.mxu1 %v3863_v47  ;;  %v3871_v0 = vcombine.high %v266_v2, %v270_v24 }
 0x22c   :  { %v4009_v29 = vpack.c.bf16 %v3235_v44, %v3235_v44  ;;  %v3012_v36 = vadd.f32 %v3011_v27, %v2723_v53  ;;  %v3013_v7 = vpop.f32.mrf.mxu1 }
 0x22d   :  { %v2725_v52 = vpop.f32.mrf.mxu0 }
 0x22e   :  { %3556 = vst.msk [vmem:[%s5716_s3 + $0x24] sm:$0xf] %vm3546_vm0, %v4009_v29  ;;  %v3236_v6 = vmax.f32 %v3012_v36, 0.0  ;;  %v2726_v32 = vadd.f32 %v2725_v52, %v4846_v15  ;;  %v3014_v14 = vpop.f32.mrf.mxu1 }
 0x22f   :  { %v2727_v59 = vpop.f32.mrf.mxu0 }
 0x230   :  { %v4010_v42 = vpack.c.bf16 %v3236_v6, %v3236_v6  ;;  %v3015_v9 = vadd.f32 %v3014_v14, %v2726_v32  ;;  %v3016_v39 = vpop.f32.mrf.mxu1 }
 0x231   :  { %v2730_v37 = vpop.f32.mrf.mxu0  ;;  %2921 = vmatmul.mubr.bf16.gmra.mxu0 %v3860_v34 }
 0x232   :  { %3557 = vst.msk [vmem:[%s5716_s3 + $0x28] sm:$0xf] %vm3546_vm0, %v4010_v42  ;;  %v3237_v63 = vmax.f32 %v3015_v9, 0.0  ;;  %v2731_v35 = vadd.f32 %v2730_v37, %v4855_v26  ;;  %v3019_v47 = vpop.f32.mrf.mxu1  ;;  %3210 = vmatmul.mubr.bf16.gmra.mxu1 %v3862_v58  ;;  %2928 = vmatprep.mubr.bf16.mxu0 %v3869_v56  ;;  %v3870_v26 = vcombine.low %v266_v2, %v270_v24 }
 0x233   :  { %v2732_v15 = vpop.f32.mrf.mxu0  ;;  %3217 = vmatprep.mubr.bf16.mxu1 %v3871_v0 }
 0x234   :  { %v4011_v43 = vpack.c.bf16 %v3237_v63, %v3237_v63  ;;  %v3020_v12 = vadd.f32 %v3019_v47, %v2731_v35  ;;  %v3021_v16 = vpop.f32.mrf.mxu1 }
 0x235   :  { %v2733_v48 = vpop.f32.mrf.mxu0 }
 0x236   :  { %3558 = vst.msk [vmem:[%s5716_s3 + $0x2c] sm:$0xf] %vm3546_vm0, %v4011_v43  ;;  %v3238_v20 = vmax.f32 %v3020_v12, 0.0  ;;  %v2734_v44 = vadd.f32 %v2733_v48, %v4864_v40  ;;  %v3022_v53 = vpop.f32.mrf.mxu1 }
 0x237   :  { %v2735_v27 = vpop.f32.mrf.mxu0 }
 0x238   :  { %v4012_v57 = vpack.c.bf16 %v3238_v20, %v3238_v20  ;;  %v3023_v29 = vadd.f32 %v3022_v53, %v2734_v44  ;;  %v3024_v36 = vpop.f32.mrf.mxu1 }
 0x239   :  { %v2738_v7 = vpop.f32.mrf.mxu0  ;;  %2929 = vmatmul.mubr.bf16.gmra.mxu0 %v3868_v4 }
 0x23a   :  { %3559 = vst.msk [vmem:[%s5716_s3 + $0x30] sm:$0xf] %vm3546_vm0, %v4012_v57  ;;  %v3239_v21 = vmax.f32 %v3023_v29, 0.0  ;;  %v2739_v18 = vadd.f32 %v2738_v7, %v4873_v50  ;;  %v3027_v52 = vpop.f32.mrf.mxu1  ;;  %3218 = vmatmul.mubr.bf16.gmra.mxu1 %v3870_v26 }
 0x23b   :  { %v2740_v34 = vpop.f32.mrf.mxu0 }
 0x23c   :  { %v4013_v40 = vpack.c.bf16 %v3239_v21, %v3239_v21  ;;  %v3028_v6 = vadd.f32 %v3027_v52, %v2739_v18  ;;  %v3029_v2 = vpop.f32.mrf.mxu1 }
 0x23d   :  { %v2741_v24 = vpop.f32.mrf.mxu0 }
 0x23e   :  { %3560 = vst.msk [vmem:[%s5716_s3 + $0x34] sm:$0xf] %vm3546_vm0, %v4013_v40  ;;  %v3240_v32 = vmax.f32 %v3028_v6, 0.0  ;;  %v2742_v14 = vadd.f32 %v2741_v24, %v4882_v1  ;;  %v3030_v58 = vpop.f32.mrf.mxu1 }
 0x23f   :  { %v2743_v56 = vpop.f32.mrf.mxu0 }
 0x240   :  { %v4014_v59 = vpack.c.bf16 %v3240_v32, %v3240_v32  ;;  %v3031_v0 = vadd.f32 %v3030_v58, %v2742_v14  ;;  %v3032_v50 = vpop.f32.mrf.mxu1 }
 0x241   :  { %v2746_v42 = vpop.f32.mrf.mxu0 }
 0x242   :  { %3561 = vst.msk [vmem:[%s5716_s3 + $0x38] sm:$0xf] %vm3546_vm0, %v4014_v59  ;;  %v3241_v9 = vmax.f32 %v3031_v0, 0.0  ;;  %v2747_v39 = vadd.f32 %v2746_v42, %v4891_v10  ;;  %v3035_v37 = vpop.f32.mrf.mxu1 }
 0x243   :  { %v2748_v63 = vpop.f32.mrf.mxu0 }
 0x244   :  { %v4015_v35 = vpack.c.bf16 %v3241_v9, %v3241_v9  ;;  %v3036_v47 = vadd.f32 %v3035_v37, %v2747_v39  ;;  %v3037_v15 = vpop.f32.mrf.mxu1 }
 0x245   :  { %v2749_v1 = vpop.f32.mrf.mxu0 }
 0x246   :  { %3562 = vst.msk [vmem:[%s5716_s3 + $0x3c] sm:$0xf] %vm3546_vm0, %v4015_v35  ;;  %v3242_v43 = vmax.f32 %v3036_v47, 0.0  ;;  %v2750_v12 = vadd.f32 %v2749_v1, %v4900_v28  ;;  %v3038_v16 = vpop.f32.mrf.mxu1 }
 0x247   :  { %v2751_v48 = vpop.f32.mrf.mxu0 }
 0x248   :  { %v4016_v4 = vpack.c.bf16 %v3242_v43, %v3242_v43  ;;  %v3039_v20 = vadd.f32 %v3038_v16, %v2750_v12  ;;  %v3040_v44 = vpop.f32.mrf.mxu1 }
 0x249   :  { %v2754_v10 = vpop.f32.mrf.mxu0 }
 0x24a   :  { %3563 = vst.msk [vmem:[%s5716_s3 + $0x40] sm:$0xf] %vm3546_vm0, %v4016_v4  ;;  %v3243_v53 = vmax.f32 %v3039_v20, 0.0  ;;  %v2755_v26 = vadd.f32 %v2754_v10, %v4909_v38  ;;  %v3043_v27 = vpop.f32.mrf.mxu1 }
 0x24b   :  { %v2756_v57 = vpop.f32.mrf.mxu0 }
 0x24c   :  { %v4017_v29 = vpack.c.bf16 %v3243_v53, %v3243_v53  ;;  %v3044_v36 = vadd.f32 %v3043_v27, %v2755_v26  ;;  %v3045_v7 = vpop.f32.mrf.mxu1 }
 0x24d   :  { %v2757_v28 = vpop.f32.mrf.mxu0 }
 0x24e   :  { %3564 = vst.msk [vmem:[%s5716_s3 + $0x44] sm:$0xf] %vm3546_vm0, %v4017_v29  ;;  %v3244_v21 = vmax.f32 %v3044_v36, 0.0  ;;  %v2758_v18 = vadd.f32 %v2757_v28, %v4918_v54  ;;  %v3046_v52 = vpop.f32.mrf.mxu1 }
 0x24f   :  { %v2759_v34 = vpop.f32.mrf.mxu0 }
 0x250   :  { %v4018_v40 = vpack.c.bf16 %v3244_v21, %v3244_v21  ;;  %v3047_v6 = vadd.f32 %v3046_v52, %v2758_v18  ;;  %v3048_v2 = vpop.f32.mrf.mxu1 }
 0x251   :  { %v2762_v38 = vpop.f32.mrf.mxu0 }
 0x252   :  { %3565 = vst.msk [vmem:[%s5716_s3 + $0x48] sm:$0xf] %vm3546_vm0, %v4018_v40  ;;  %v3245_v24 = vmax.f32 %v3047_v6, 0.0  ;;  %v2763_v32 = vadd.f32 %v2762_v38, %v4927_v3  ;;  %v3051_v14 = vpop.f32.mrf.mxu1 }
 0x253   :  { %v2764_v58 = vpop.f32.mrf.mxu0 }
 0x254   :  { %v4019_v56 = vpack.c.bf16 %v3245_v24, %v3245_v24  ;;  %v3052_v59 = vadd.f32 %v3051_v14, %v2763_v32  ;;  %v3053_v0 = vpop.f32.mrf.mxu1 }
 0x255   :  { %v2765_v54 = vpop.f32.mrf.mxu0 }
 0x256   :  { %3566 = vst.msk [vmem:[%s5716_s3 + $0x4c] sm:$0xf] %vm3546_vm0, %v4019_v56  ;;  %v3246_v50 = vmax.f32 %v3052_v59, 0.0  ;;  %v2766_v42 = vadd.f32 %v2765_v54, %v4936_v19  ;;  %v3054_v9 = vpop.f32.mrf.mxu1 }
 0x257   :  { %v2767_v39 = vpop.f32.mrf.mxu0 }
 0x258   :  { %v4020_v37 = vpack.c.bf16 %v3246_v50, %v3246_v50  ;;  %v3055_v63 = vadd.f32 %v3054_v9, %v2766_v42  ;;  %v3056_v35 = vpop.f32.mrf.mxu1 }
 0x259   :  { %v2770_v3 = vpop.f32.mrf.mxu0 }
 0x25a   :  { %3567 = vst.msk [vmem:[%s5716_s3 + $0x50] sm:$0xf] %vm3546_vm0, %v4020_v37  ;;  %v3247_v47 = vmax.f32 %v3055_v63, 0.0  ;;  %v2771_v15 = vadd.f32 %v2770_v3, %v4945_v31  ;;  %v3059_v1 = vpop.f32.mrf.mxu1 }
 0x25b   :  { %v2772_v43 = vpop.f32.mrf.mxu0 }
 0x25c   :  { %v4021_v12 = vpack.c.bf16 %v3247_v47, %v3247_v47  ;;  %v3060_v16 = vadd.f32 %v3059_v1, %v2771_v15  ;;  %v3061_v48 = vpop.f32.mrf.mxu1 }
 0x25d   :  { %v2773_v19 = vpop.f32.mrf.mxu0 }
 0x25e   :  { %3568 = vst.msk [vmem:[%s5716_s3 + $0x54] sm:$0xf] %vm3546_vm0, %v4021_v12  ;;  %v3248_v4 = vmax.f32 %v3060_v16, 0.0  ;;  %v2774_v20 = vadd.f32 %v2773_v19, %v4954_v49  ;;  %v3062_v44 = vpop.f32.mrf.mxu1 }
 0x25f   :  { %v2775_v10 = vpop.f32.mrf.mxu0 }
 0x260   :  { %v4022_v53 = vpack.c.bf16 %v3248_v4, %v3248_v4  ;;  %v3063_v26 = vadd.f32 %v3062_v44, %v2774_v20  ;;  %v3064_v27 = vpop.f32.mrf.mxu1 }
 0x261   :  { %v2778_v31 = vpop.f32.mrf.mxu0 }
 0x262   :  { %3569 = vst.msk [vmem:[%s5716_s3 + $0x58] sm:$0xf] %vm3546_vm0, %v4022_v53  ;;  %v3249_v57 = vmax.f32 %v3063_v26, 0.0  ;;  %v2779_v29 = vadd.f32 %v2778_v31, %v4963_v60  ;;  %v3067_v36 = vpop.f32.mrf.mxu1 }
 0x263   :  { %v2780_v7 = vpop.f32.mrf.mxu0 }
 0x264   :  { %v4023_v28 = vpack.c.bf16 %v3249_v57, %v3249_v57  ;;  %v3068_v21 = vadd.f32 %v3067_v36, %v2779_v29  ;;  %v3069_v18 = vpop.f32.mrf.mxu1 }
 0x265   :  { %v2781_v49 = vpop.f32.mrf.mxu0 }
 0x266   :  { %3570 = vst.msk [vmem:[%s5716_s3 + $0x5c] sm:$0xf] %vm3546_vm0, %v4023_v28  ;;  %v3250_v52 = vmax.f32 %v3068_v21, 0.0  ;;  %v2782_v34 = vadd.f32 %v2781_v49, %v4972_v17  ;;  %v3070_v40 = vpop.f32.mrf.mxu1 }
 0x267   :  { %v2783_v6 = vpop.f32.mrf.mxu0 }
 0x268   :  { %v4024_v2 = vpack.c.bf16 %v3250_v52, %v3250_v52  ;;  %v3071_v38 = vadd.f32 %v3070_v40, %v2782_v34  ;;  %v3072_v24 = vpop.f32.mrf.mxu1 }
 0x269   :  { %v2786_v60 = vpop.f32.mrf.mxu0 }
 0x26a   :  { %3571 = vst.msk [vmem:[%s5716_s3 + $0x60] sm:$0xf] %vm3546_vm0, %v4024_v2  ;;  %v3251_v32 = vmax.f32 %v3071_v38, 0.0  ;;  %v2787_v14 = vadd.f32 %v2786_v60, %v4981_v30  ;;  %v3075_v58 = vpop.f32.mrf.mxu1 }
 0x26b   :  { %v2788_v56 = vpop.f32.mrf.mxu0 }
 0x26c   :  { %v4025_v59 = vpack.c.bf16 %v3251_v32, %v3251_v32  ;;  %v3076_v0 = vadd.f32 %v3075_v58, %v2787_v14  ;;  %v3077_v54 = vpop.f32.mrf.mxu1 }
 0x26d   :  { %v2789_v17 = vpop.f32.mrf.mxu0 }
 0x26e   :  { %3572 = vst.msk [vmem:[%s5716_s3 + $0x64] sm:$0xf] %vm3546_vm0, %v4025_v59  ;;  %v3252_v50 = vmax.f32 %v3076_v0, 0.0  ;;  %v2790_v42 = vadd.f32 %v2789_v17, %v4990_v51  ;;  %v3078_v9 = vpop.f32.mrf.mxu1 }
 0x26f   :  { %v2791_v39 = vpop.f32.mrf.mxu0 }
 0x270   :  { %v4026_v37 = vpack.c.bf16 %v3252_v50, %v3252_v50  ;;  %v3079_v63 = vadd.f32 %v3078_v9, %v2790_v42  ;;  %v3080_v35 = vpop.f32.mrf.mxu1 }
 0x271   :  { %v2794_v30 = vpop.f32.mrf.mxu0 }
 0x272   :  { %3573 = vst.msk [vmem:[%s5716_s3 + $0x68] sm:$0xf] %vm3546_vm0, %v4026_v37  ;;  %v3253_v3 = vmax.f32 %v3079_v63, 0.0  ;;  %v2795_v47 = vadd.f32 %v2794_v30, %v4999_v62  ;;  %v3083_v15 = vpop.f32.mrf.mxu1 }
 0x273   :  { %v2796_v1 = vpop.f32.mrf.mxu0 }
 0x274   :  { %v4027_v43 = vpack.c.bf16 %v3253_v3, %v3253_v3  ;;  %v3084_v12 = vadd.f32 %v3083_v15, %v2795_v47  ;;  %v3085_v16 = vpop.f32.mrf.mxu1 }
 0x275   :  { %v2797_v51 = vpop.f32.mrf.mxu0 }
 0x276   :  { %3574 = vst.msk [vmem:[%s5716_s3 + $0x6c] sm:$0xf] %vm3546_vm0, %v4027_v43  ;;  %v3254_v48 = vmax.f32 %v3084_v12, 0.0  ;;  %v2798_v19 = vadd.f32 %v2797_v51, %v5008_v22  ;;  %v3086_v4 = vpop.f32.mrf.mxu1 }
 0x277   :  { %v2799_v20 = vpop.f32.mrf.mxu0 }
 0x278   :  { %v4028_v44 = vpack.c.bf16 %v3254_v48, %v3254_v48  ;;  %v3087_v10 = vadd.f32 %v3086_v4, %v2798_v19  ;;  %v3088_v53 = vpop.f32.mrf.mxu1 }
 0x279   :  { %v2802_v62 = vpop.f32.mrf.mxu0 }
 0x27a   :  { %3575 = vst.msk [vmem:[%s5716_s3 + $0x70] sm:$0xf] %vm3546_vm0, %v4028_v44  ;;  %v3255_v26 = vmax.f32 %v3087_v10, 0.0  ;;  %v2803_v27 = vadd.f32 %v2802_v62, %v5017_v33  ;;  %v3091_v31 = vpop.f32.mrf.mxu1 }
 0x27b   :  { %v2804_v57 = vpop.f32.mrf.mxu0 }
 0x27c   :  { %v4029_v29 = vpack.c.bf16 %v3255_v26, %v3255_v26  ;;  %v3092_v36 = vadd.f32 %v3091_v31, %v2803_v27  ;;  %v3093_v7 = vpop.f32.mrf.mxu1 }
 0x27d   :  { %v2805_v22 = vpop.f32.mrf.mxu0 }
 0x27e   :  { %3576 = vst.msk [vmem:[%s5716_s3 + $0x74] sm:$0xf] %vm3546_vm0, %v4029_v29  ;;  %v3256_v28 = vmax.f32 %v3092_v36, 0.0  ;;  %v2806_v21 = vadd.f32 %v2805_v22, %v5026_v61  ;;  %v3094_v18 = vpop.f32.mrf.mxu1 }
 0x27f   :  { %v2807_v49 = vpop.f32.mrf.mxu0 }
 0x280   :  { %v4030_v52 = vpack.c.bf16 %v3256_v28, %v3256_v28  ;;  %v3095_v34 = vadd.f32 %v3094_v18, %v2806_v21  ;;  %v3096_v40 = vpop.f32.mrf.mxu1 }
 0x281   :  { %v2810_v33 = vpop.f32.mrf.mxu0 }
 0x282   :  { %3577 = vst.msk [vmem:[%s5716_s3 + $0x78] sm:$0xf] %vm3546_vm0, %v4030_v52  ;;  %v3257_v6 = vmax.f32 %v3095_v34, 0.0  ;;  %v2811_v2 = vadd.f32 %v2810_v33, %v5035_v5  ;;  %v3099_v38 = vpop.f32.mrf.mxu1 }
 0x283   :  { %v2812_v24 = vpop.f32.mrf.mxu0 }
 0x284   :  { %v4031_v60 = vpack.c.bf16 %v3257_v6, %v3257_v6  ;;  %v3100_v32 = vadd.f32 %v3099_v38, %v2811_v2  ;;  %v3101_v14 = vpop.f32.mrf.mxu1 }
 0x285   :  { %v2813_v61 = vpop.f32.mrf.mxu0 }
 0x286   :  { %3578 = vst.msk [vmem:[%s5716_s3 + $0x7c] sm:$0xf] %vm3546_vm0, %v4031_v60  ;;  %v3258_v58 = vmax.f32 %v3100_v32, 0.0  ;;  %v2814_v56 = vadd.f32 %v2813_v61, %v5044_v45  ;;  %v3102_v59 = vpop.f32.mrf.mxu1 }
 0x287   :  { %v2815_v0 = vpop.f32.mrf.mxu0 }
 0x288   :  { %v4032_v54 = vpack.c.bf16 %v3258_v58, %v3258_v58  ;;  %v3103_v17 = vadd.f32 %v3102_v59, %v2814_v56  ;;  %v3104_v50 = vpop.f32.mrf.mxu1  ;;  %v5739_v0 = vld [vmem:[#allocation2_spill] sm:$0xff] }
 0x289   :  { %v2818_v5 = vpop.f32.mrf.mxu0 }
 0x28a   :  { %3579 = vst.msk [vmem:[%s5716_s3 + $0x80] sm:$0xf] %vm3546_vm0, %v4032_v54  ;;  %v3259_v42 = vmax.f32 %v3103_v17, 0.0  ;;  %v2819_v9 = vadd.f32 %v2818_v5, %v5053_v41  ;;  %v3107_v39 = vpop.f32.mrf.mxu1 }
 0x28b   :  { %v2820_v37 = vpop.f32.mrf.mxu0 }
 0x28c   :  { %v4033_v63 = vpack.c.bf16 %v3259_v42, %v3259_v42  ;;  %v3108_v35 = vadd.f32 %v3107_v39, %v2819_v9  ;;  %v3109_v30 = vpop.f32.mrf.mxu1  ;;  %v5740_v37 = vld [vmem:[#allocation3_spill] sm:$0xff] }
 0x28d   :  { %v2821_v45 = vpop.f32.mrf.mxu0 }
 0x28e   :  { %3580 = vst.msk [vmem:[%s5716_s3 + $0x84] sm:$0xf] %vm3546_vm0, %v4033_v63  ;;  %v3260_v3 = vmax.f32 %v3108_v35, 0.0  ;;  %v2822_v47 = vadd.f32 %v2821_v45, %v5062_v23  ;;  %v3110_v15 = vpop.f32.mrf.mxu1 }
 0x28f   :  { %v2823_v1 = vpop.f32.mrf.mxu0 }
 0x290   :  { %v4034_v43 = vpack.c.bf16 %v3260_v3, %v3260_v3  ;;  %v3111_v12 = vadd.f32 %v3110_v15, %v2822_v47  ;;  %v3112_v16 = vpop.f32.mrf.mxu1 }
 0x291   :  { %v2826_v41 = vpop.f32.mrf.mxu0 }
 0x292   :  { %3581 = vst.msk [vmem:[%s5716_s3 + $0x88] sm:$0xf] %vm3546_vm0, %v4034_v43  ;;  %v3261_v51 = vmax.f32 %v3111_v12, 0.0  ;;  %v2827_v48 = vadd.f32 %v2826_v41, %v5071_v13  ;;  %v3115_v19 = vpop.f32.mrf.mxu1  ;;  %v5741_v43 = vld [vmem:[#allocation4_spill] sm:$0xff] }
 0x293   :  { %v2828_v4 = vpop.f32.mrf.mxu0 }
 0x294   :  { %v4035_v20 = vpack.c.bf16 %v3261_v51, %v3261_v51  ;;  %v3116_v44 = vadd.f32 %v3115_v19, %v2827_v48  ;;  %v3117_v10 = vpop.f32.mrf.mxu1 }
 0x295   :  { %v2829_v23 = vpop.f32.mrf.mxu0 }
 0x296   :  { %3582 = vst.msk [vmem:[%s5716_s3 + $0x8c] sm:$0xf] %vm3546_vm0, %v4035_v20  ;;  %v3262_v53 = vmax.f32 %v3116_v44, 0.0  ;;  %v2830_v62 = vadd.f32 %v2829_v23, %v5080_v11  ;;  %v3118_v26 = vpop.f32.mrf.mxu1  ;;  %v5742_v44 = vld [vmem:[#allocation5_spill] sm:$0xff] }
 0x297   :  { %v2831_v27 = vpop.f32.mrf.mxu0 }
 0x298   :  { %v4036_v31 = vpack.c.bf16 %v3262_v53, %v3262_v53  ;;  %v3119_v57 = vadd.f32 %v3118_v26, %v2830_v62  ;;  %v3120_v29 = vpop.f32.mrf.mxu1 }
 0x299   :  { %v2834_v13 = vpop.f32.mrf.mxu0  ;;  %v5743_v29 = vld [vmem:[#allocation6_spill] sm:$0xff] }
 0x29a   :  { %3583 = vst.msk [vmem:[%s5716_s3 + $0x90] sm:$0xf] %vm3546_vm0, %v4036_v31  ;;  %v3263_v36 = vmax.f32 %v3119_v57, 0.0  ;;  %v2835_v7 = vadd.f32 %v2834_v13, %v5089_v55  ;;  %v3123_v22 = vpop.f32.mrf.mxu1 }
 0x29b   :  { %v2836_v28 = vpop.f32.mrf.mxu0 }
 0x29c   :  { %v4037_v21 = vpack.c.bf16 %v3263_v36, %v3263_v36  ;;  %v3124_v18 = vadd.f32 %v3123_v22, %v2835_v7  ;;  %v3125_v49 = vpop.f32.mrf.mxu1 }
 0x29d   :  { %v2837_v11 = vpop.f32.mrf.mxu0 }
 0x29e   :  { %3584 = vst.msk [vmem:[%s5716_s3 + $0x94] sm:$0xf] %vm3546_vm0, %v4037_v21  ;;  %v3264_v52 = vmax.f32 %v3124_v18, 0.0  ;;  %v2838_v34 = vadd.f32 %v2837_v11, %v5098_v8  ;;  %v3126_v40 = vpop.f32.mrf.mxu1  ;;  %v5744_v11 = vld [vmem:[#allocation7_spill] sm:$0xff] }
 0x29f   :  { %v2839_v33 = vpop.f32.mrf.mxu0 }
 0x2a0   :  { %v4038_v6 = vpack.c.bf16 %v3264_v52, %v3264_v52  ;;  %v3127_v2 = vadd.f32 %v3126_v40, %v2838_v34  ;;  %v3128_v38 = vpop.f32.mrf.mxu1 }
 0x2a1   :  { %v2842_v55 = vpop.f32.mrf.mxu0 }
 0x2a2   :  { %3585 = vst.msk [vmem:[%s5716_s3 + $0x98] sm:$0xf] %vm3546_vm0, %v4038_v6  ;;  %v3265_v24 = vmax.f32 %v3127_v2, 0.0  ;;  %v2843_v60 = vadd.f32 %v2842_v55, %v5107_v46  ;;  %v3131_v32 = vpop.f32.mrf.mxu1 }
 0x2a3   :  { %v2844_v14 = vpop.f32.mrf.mxu0 }
 0x2a4   :  { %v4039_v61 = vpack.c.bf16 %v3265_v24, %v3265_v24  ;;  %v3132_v58 = vadd.f32 %v3131_v32, %v2843_v60  ;;  %v3133_v56 = vpop.f32.mrf.mxu1  ;;  %v5745_v24 = vld [vmem:[#allocation8_spill] sm:$0xff] }
 0x2a5   :  { %v2845_v8 = vpop.f32.mrf.mxu0 }
 0x2a6   :  { %3586 = vst.msk [vmem:[%s5716_s3 + $0x9c] sm:$0xf] %vm3546_vm0, %v4039_v61  ;;  %v3266_v59 = vmax.f32 %v3132_v58, 0.0  ;;  %v2846_v54 = vadd.f32 %v2845_v8, %v5739_v0  ;;  %v3134_v17 = vpop.f32.mrf.mxu1  ;;  %v5746_v0 = vld [vmem:[#allocation9_spill] sm:$0xff] }
 0x2a7   :  { %v2847_v50 = vpop.f32.mrf.mxu0 }
 0x2a8   :  { %v4040_v5 = vpack.c.bf16 %v3266_v59, %v3266_v59  ;;  %v3135_v42 = vadd.f32 %v3134_v17, %v2846_v54  ;;  %v3136_v9 = vpop.f32.mrf.mxu1 }
 0x2a9   :  { %v2850_v46 = vpop.f32.mrf.mxu0 }
 0x2aa   :  { %3587 = vst.msk [vmem:[%s5716_s3 + $0xa0] sm:$0xf] %vm3546_vm0, %v4040_v5  ;;  %v3267_v39 = vmax.f32 %v3135_v42, 0.0  ;;  %v2851_v63 = vadd.f32 %v2850_v46, %v5740_v37  ;;  %v3139_v35 = vpop.f32.mrf.mxu1  ;;  %v5747_v37 = vld [vmem:[#allocation10_spill] sm:$0xff] }
 0x2ab   :  { %v2852_v30 = vpop.f32.mrf.mxu0 }
 0x2ac   :  { %v4041_v45 = vpack.c.bf16 %v3267_v39, %v3267_v39  ;;  %v3140_v3 = vadd.f32 %v3139_v35, %v2851_v63  ;;  %v3141_v47 = vpop.f32.mrf.mxu1 }
 0x2ad   :  { %v2853_v15 = vpop.f32.mrf.mxu0 }
 0x2ae   :  { %3588 = vst.msk [vmem:[%s5716_s3 + $0xa4] sm:$0xf] %vm3546_vm0, %v4041_v45  ;;  %v3268_v1 = vmax.f32 %v3140_v3, 0.0  ;;  %v2854_v12 = vadd.f32 %v2853_v15, %v5741_v43  ;;  %v3142_v16 = vpop.f32.mrf.mxu1  ;;  %v5748_v43 = vld [vmem:[#allocation11_spill] sm:$0xff] }
 0x2af   :  { %v2855_v41 = vpop.f32.mrf.mxu0 }
 0x2b0   :  { %v4042_v51 = vpack.c.bf16 %v3268_v1, %v3268_v1  ;;  %v3143_v48 = vadd.f32 %v3142_v16, %v2854_v12  ;;  %v3144_v19 = vpop.f32.mrf.mxu1 }
 0x2b1   :  { %v2858_v4 = vpop.f32.mrf.mxu0 }
 0x2b2   :  { %3589 = vst.msk [vmem:[%s5716_s3 + $0xa8] sm:$0xf] %vm3546_vm0, %v4042_v51  ;;  %v3269_v20 = vmax.f32 %v3143_v48, 0.0  ;;  %v2859_v10 = vadd.f32 %v2858_v4, %v5742_v44  ;;  %v3147_v23 = vpop.f32.mrf.mxu1  ;;  %v5749_v44 = vld [vmem:[#allocation12_spill] sm:$0xff] }
 0x2b3   :  { %v2860_v53 = vpop.f32.mrf.mxu0 }
 0x2b4   :  { %v4043_v62 = vpack.c.bf16 %v3269_v20, %v3269_v20  ;;  %v3148_v26 = vadd.f32 %v3147_v23, %v2859_v10  ;;  %v3149_v27 = vpop.f32.mrf.mxu1 }
 0x2b5   :  { %v2861_v31 = vpop.f32.mrf.mxu0 }
 0x2b6   :  { %3590 = vst.msk [vmem:[%s5716_s3 + $0xac] sm:$0xf] %vm3546_vm0, %v4043_v62  ;;  %v3270_v57 = vmax.f32 %v3148_v26, 0.0  ;;  %v2862_v13 = vadd.f32 %v2861_v31, %v5743_v29  ;;  %v3150_v36 = vpop.f32.mrf.mxu1  ;;  %v5750_v29 = vld [vmem:[#allocation13_spill] sm:$0xff] }
 0x2b7   :  { %v2863_v7 = vpop.f32.mrf.mxu0 }
 0x2b8   :  { %v4044_v22 = vpack.c.bf16 %v3270_v57, %v3270_v57  ;;  %v3151_v28 = vadd.f32 %v3150_v36, %v2862_v13  ;;  %v3152_v21 = vpop.f32.mrf.mxu1 }
 0x2b9   :  { %v2866_v18 = vpop.f32.mrf.mxu0 }
 0x2ba   :  { %3591 = vst.msk [vmem:[%s5716_s3 + $0xb0] sm:$0xf] %vm3546_vm0, %v4044_v22  ;;  %v3271_v49 = vmax.f32 %v3151_v28, 0.0  ;;  %v2867_v52 = vadd.f32 %v2866_v18, %v5744_v11  ;;  %v3155_v34 = vpop.f32.mrf.mxu1  ;;  %v5751_v11 = vld [vmem:[#allocation14_spill] sm:$0xff] }
 0x2bb   :  { %v2868_v40 = vpop.f32.mrf.mxu0 }
 0x2bc   :  { %v4045_v33 = vpack.c.bf16 %v3271_v49, %v3271_v49  ;;  %v3156_v6 = vadd.f32 %v3155_v34, %v2867_v52  ;;  %v3157_v2 = vpop.f32.mrf.mxu1 }
 0x2bd   :  { %v2869_v38 = vpop.f32.mrf.mxu0 }
 0x2be   :  { %3592 = vst.msk [vmem:[%s5716_s3 + $0xb4] sm:$0xf] %vm3546_vm0, %v4045_v33  ;;  %v3272_v55 = vmax.f32 %v3156_v6, 0.0  ;;  %v2870_v60 = vadd.f32 %v2869_v38, %v5745_v24  ;;  %v3158_v32 = vpop.f32.mrf.mxu1  ;;  %v5752_v24 = vld [vmem:[#allocation15_spill] sm:$0xff] }
 0x2bf   :  { %v2871_v14 = vpop.f32.mrf.mxu0 }
 0x2c0   :  { %v4046_v61 = vpack.c.bf16 %v3272_v55, %v3272_v55  ;;  %v3159_v58 = vadd.f32 %v3158_v32, %v2870_v60  ;;  %v3160_v56 = vpop.f32.mrf.mxu1 }
 0x2c1   :  { %v2874_v8 = vpop.f32.mrf.mxu0 }
 0x2c2   :  { %3593 = vst.msk [vmem:[%s5716_s3 + $0xb8] sm:$0xf] %vm3546_vm0, %v4046_v61  ;;  %v3273_v59 = vmax.f32 %v3159_v58, 0.0  ;;  %v2875_v54 = vadd.f32 %v2874_v8, %v5746_v0  ;;  %v3163_v17 = vpop.f32.mrf.mxu1  ;;  %v5753_v0 = vld [vmem:[#allocation16_spill] sm:$0xff] }
 0x2c3   :  { %v2876_v50 = vpop.f32.mrf.mxu0 }
 0x2c4   :  { %v4047_v5 = vpack.c.bf16 %v3273_v59, %v3273_v59  ;;  %v3164_v42 = vadd.f32 %v3163_v17, %v2875_v54  ;;  %v3165_v9 = vpop.f32.mrf.mxu1 }
 0x2c5   :  { %v2877_v46 = vpop.f32.mrf.mxu0 }
 0x2c6   :  { %3594 = vst.msk [vmem:[%s5716_s3 + $0xbc] sm:$0xf] %vm3546_vm0, %v4047_v5  ;;  %v3274_v39 = vmax.f32 %v3164_v42, 0.0  ;;  %v2878_v63 = vadd.f32 %v2877_v46, %v5747_v37  ;;  %v3166_v35 = vpop.f32.mrf.mxu1  ;;  %v5754_v37 = vld [vmem:[#allocation17_spill] sm:$0xff] }
 0x2c7   :  { %v2879_v30 = vpop.f32.mrf.mxu0 }
 0x2c8   :  { %v4048_v45 = vpack.c.bf16 %v3274_v39, %v3274_v39  ;;  %v3167_v3 = vadd.f32 %v3166_v35, %v2878_v63  ;;  %v3168_v47 = vpop.f32.mrf.mxu1 }
 0x2c9   :  { %v2882_v15 = vpop.f32.mrf.mxu0 }
 0x2ca   :  { %3595 = vst.msk [vmem:[%s5716_s3 + $0xc0] sm:$0xf] %vm3546_vm0, %v4048_v45  ;;  %v3275_v1 = vmax.f32 %v3167_v3, 0.0  ;;  %v2883_v12 = vadd.f32 %v2882_v15, %v5748_v43  ;;  %v3171_v16 = vpop.f32.mrf.mxu1  ;;  %v5755_v43 = vld [vmem:[#allocation18_spill] sm:$0xff] }
 0x2cb   :  { %v2884_v41 = vpop.f32.mrf.mxu0 }
 0x2cc   :  { %v4049_v51 = vpack.c.bf16 %v3275_v1, %v3275_v1  ;;  %v3172_v48 = vadd.f32 %v3171_v16, %v2883_v12  ;;  %v3173_v19 = vpop.f32.mrf.mxu1 }
 0x2cd   :  { %v2885_v4 = vpop.f32.mrf.mxu0 }
 0x2ce   :  { %3596 = vst.msk [vmem:[%s5716_s3 + $0xc4] sm:$0xf] %vm3546_vm0, %v4049_v51  ;;  %v3276_v20 = vmax.f32 %v3172_v48, 0.0  ;;  %v2886_v10 = vadd.f32 %v2885_v4, %v5749_v44  ;;  %v3174_v23 = vpop.f32.mrf.mxu1  ;;  %v5756_v44 = vld [vmem:[#allocation19_spill] sm:$0xff] }
 0x2cf   :  { %v2887_v53 = vpop.f32.mrf.mxu0 }
 0x2d0   :  { %v4050_v62 = vpack.c.bf16 %v3276_v20, %v3276_v20  ;;  %v3175_v26 = vadd.f32 %v3174_v23, %v2886_v10  ;;  %v3176_v27 = vpop.f32.mrf.mxu1 }
 0x2d1   :  { %v2890_v31 = vpop.f32.mrf.mxu0 }
 0x2d2   :  { %3597 = vst.msk [vmem:[%s5716_s3 + $0xc8] sm:$0xf] %vm3546_vm0, %v4050_v62  ;;  %v3277_v57 = vmax.f32 %v3175_v26, 0.0  ;;  %v2891_v13 = vadd.f32 %v2890_v31, %v5750_v29  ;;  %v3179_v36 = vpop.f32.mrf.mxu1  ;;  %v5757_v29 = vld [vmem:[#allocation20_spill] sm:$0xff] }
 0x2d3   :  { %v2892_v7 = vpop.f32.mrf.mxu0 }
 0x2d4   :  { %v4051_v22 = vpack.c.bf16 %v3277_v57, %v3277_v57  ;;  %v3180_v28 = vadd.f32 %v3179_v36, %v2891_v13  ;;  %v3181_v21 = vpop.f32.mrf.mxu1 }
 0x2d5   :  { %v2893_v18 = vpop.f32.mrf.mxu0 }
 0x2d6   :  { %3598 = vst.msk [vmem:[%s5716_s3 + $0xcc] sm:$0xf] %vm3546_vm0, %v4051_v22  ;;  %v3278_v49 = vmax.f32 %v3180_v28, 0.0  ;;  %v2894_v52 = vadd.f32 %v2893_v18, %v5751_v11  ;;  %v3182_v34 = vpop.f32.mrf.mxu1  ;;  %v5758_v11 = vld [vmem:[#allocation21_spill] sm:$0xff] }
 0x2d7   :  { %v2895_v40 = vpop.f32.mrf.mxu0 }
 0x2d8   :  { %v4052_v33 = vpack.c.bf16 %v3278_v49, %v3278_v49  ;;  %v3183_v6 = vadd.f32 %v3182_v34, %v2894_v52  ;;  %v3184_v2 = vpop.f32.mrf.mxu1 }
 0x2d9   :  { %v2898_v38 = vpop.f32.mrf.mxu0 }
 0x2da   :  { %3599 = vst.msk [vmem:[%s5716_s3 + $0xd0] sm:$0xf] %vm3546_vm0, %v4052_v33  ;;  %v3279_v55 = vmax.f32 %v3183_v6, 0.0  ;;  %v2899_v60 = vadd.f32 %v2898_v38, %v5752_v24  ;;  %v3187_v32 = vpop.f32.mrf.mxu1  ;;  %v5759_v24 = vld [vmem:[#allocation22_spill] sm:$0xff] }
 0x2db   :  { %v2900_v14 = vpop.f32.mrf.mxu0 }
 0x2dc   :  { %v4053_v61 = vpack.c.bf16 %v3279_v55, %v3279_v55  ;;  %v3188_v58 = vadd.f32 %v3187_v32, %v2899_v60  ;;  %v3189_v56 = vpop.f32.mrf.mxu1 }
 0x2dd   :  { %v2901_v8 = vpop.f32.mrf.mxu0 }
 0x2de   :  { %3600 = vst.msk [vmem:[%s5716_s3 + $0xd4] sm:$0xf] %vm3546_vm0, %v4053_v61  ;;  %v3280_v59 = vmax.f32 %v3188_v58, 0.0  ;;  %v2902_v54 = vadd.f32 %v2901_v8, %v5753_v0  ;;  %v3190_v17 = vpop.f32.mrf.mxu1  ;;  %v5760_v0 = vld [vmem:[#allocation23_spill] sm:$0xff] }
 0x2df   :  { %v2903_v50 = vpop.f32.mrf.mxu0 }
 0x2e0   :  { %v4054_v5 = vpack.c.bf16 %v3280_v59, %v3280_v59  ;;  %v3191_v42 = vadd.f32 %v3190_v17, %v2902_v54  ;;  %v3192_v9 = vpop.f32.mrf.mxu1 }
 0x2e1   :  { %v2906_v46 = vpop.f32.mrf.mxu0 }
 0x2e2   :  { %3601 = vst.msk [vmem:[%s5716_s3 + $0xd8] sm:$0xf] %vm3546_vm0, %v4054_v5  ;;  %v3281_v39 = vmax.f32 %v3191_v42, 0.0  ;;  %v2907_v63 = vadd.f32 %v2906_v46, %v5754_v37  ;;  %v3195_v35 = vpop.f32.mrf.mxu1 }
 0x2e3   :  { %v2908_v30 = vpop.f32.mrf.mxu0 }
 0x2e4   :  { %v4055_v45 = vpack.c.bf16 %v3281_v39, %v3281_v39  ;;  %v3196_v3 = vadd.f32 %v3195_v35, %v2907_v63  ;;  %v3197_v47 = vpop.f32.mrf.mxu1 }
 0x2e5   :  { %v2909_v15 = vpop.f32.mrf.mxu0 }
 0x2e6   :  { %3602 = vst.msk [vmem:[%s5716_s3 + $0xdc] sm:$0xf] %vm3546_vm0, %v4055_v45  ;;  %v3282_v1 = vmax.f32 %v3196_v3, 0.0  ;;  %v2910_v12 = vadd.f32 %v2909_v15, %v5755_v43  ;;  %v3198_v16 = vpop.f32.mrf.mxu1 }
 0x2e7   :  { %v2911_v41 = vpop.f32.mrf.mxu0 }
 0x2e8   :  { %v4056_v51 = vpack.c.bf16 %v3282_v1, %v3282_v1  ;;  %v3199_v48 = vadd.f32 %v3198_v16, %v2910_v12  ;;  %v3200_v19 = vpop.f32.mrf.mxu1 }
 0x2e9   :  { %v2914_v4 = vpop.f32.mrf.mxu0 }
 0x2ea   :  { %3603 = vst.msk [vmem:[%s5716_s3 + $0xe0] sm:$0xf] %vm3546_vm0, %v4056_v51  ;;  %v3283_v20 = vmax.f32 %v3199_v48, 0.0  ;;  %v2915_v10 = vadd.f32 %v2914_v4, %v5756_v44  ;;  %v3203_v23 = vpop.f32.mrf.mxu1 }
 0x2eb   :  { %v2916_v53 = vpop.f32.mrf.mxu0 }
 0x2ec   :  { %v4057_v62 = vpack.c.bf16 %v3283_v20, %v3283_v20  ;;  %v3204_v26 = vadd.f32 %v3203_v23, %v2915_v10  ;;  %v3205_v27 = vpop.f32.mrf.mxu1 }
 0x2ed   :  { %v2917_v31 = vpop.f32.mrf.mxu0 }
 0x2ee   :  { %3604 = vst.msk [vmem:[%s5716_s3 + $0xe4] sm:$0xf] %vm3546_vm0, %v4057_v62  ;;  %v3284_v57 = vmax.f32 %v3204_v26, 0.0  ;;  %v2918_v13 = vadd.f32 %v2917_v31, %v5757_v29  ;;  %v3206_v36 = vpop.f32.mrf.mxu1 }
 0x2ef   :  { %v2919_v7 = vpop.f32.mrf.mxu0 }
 0x2f0   :  { %v4058_v22 = vpack.c.bf16 %v3284_v57, %v3284_v57  ;;  %v3207_v28 = vadd.f32 %v3206_v36, %v2918_v13  ;;  %v3208_v21 = vpop.f32.mrf.mxu1 }
 0x2f1   :  { %v2922_v18 = vpop.f32.mrf.mxu0 }
 0x2f2   :  { %3605 = vst.msk [vmem:[%s5716_s3 + $0xe8] sm:$0xf] %vm3546_vm0, %v4058_v22  ;;  %v3285_v49 = vmax.f32 %v3207_v28, 0.0  ;;  %v2923_v52 = vadd.f32 %v2922_v18, %v5758_v11  ;;  %v3211_v34 = vpop.f32.mrf.mxu1 }
 0x2f3   :  { %v2924_v40 = vpop.f32.mrf.mxu0 }
 0x2f4   :  { %v4059_v33 = vpack.c.bf16 %v3285_v49, %v3285_v49  ;;  %v3212_v6 = vadd.f32 %v3211_v34, %v2923_v52  ;;  %v3213_v2 = vpop.f32.mrf.mxu1 }
 0x2f5   :  { %v2925_v38 = vpop.f32.mrf.mxu0 }
 0x2f6   :  { %3606 = vst.msk [vmem:[%s5716_s3 + $0xec] sm:$0xf] %vm3546_vm0, %v4059_v33  ;;  %v3286_v55 = vmax.f32 %v3212_v6, 0.0  ;;  %v2926_v60 = vadd.f32 %v2925_v38, %v5759_v24  ;;  %v3214_v32 = vpop.f32.mrf.mxu1 }
 0x2f7   :  { %v2927_v14 = vpop.f32.mrf.mxu0 }
 0x2f8   :  { %v4060_v61 = vpack.c.bf16 %v3286_v55, %v3286_v55  ;;  %v3215_v58 = vadd.f32 %v3214_v32, %v2926_v60  ;;  %v3216_v56 = vpop.f32.mrf.mxu1 }
 0x2f9   :  { %v2930_v8 = vpop.f32.mrf.mxu0 }
 0x2fa   :  { %3607 = vst.msk [vmem:[%s5716_s3 + $0xf0] sm:$0xf] %vm3546_vm0, %v4060_v61  ;;  %v3287_v59 = vmax.f32 %v3215_v58, 0.0  ;;  %v2931_v54 = vadd.f32 %v2930_v8, %v5760_v0  ;;  %v3219_v17 = vpop.f32.mrf.mxu1 }
 0x2fb   :  { %v2932_v50 = vpop.f32.mrf.mxu0 }
 0x2fc   :  { %v4061_v5 = vpack.c.bf16 %v3287_v59, %v3287_v59  ;;  %v3220_v42 = vadd.f32 %v3219_v17, %v2931_v54  ;;  %v3221_v9 = vpop.f32.mrf.mxu1 }
 0x2fd   :  { %v2933_v46 = vpop.f32.mrf.mxu0 }
 0x2fe   :  { %3608 = vst.msk [vmem:[%s5716_s3 + $0xf4] sm:$0xf] %vm3546_vm0, %v4061_v5  ;;  %v3288_v39 = vmax.f32 %v3220_v42, 0.0  ;;  %v2934_v37 = vadd.f32 %v2933_v46, %v5319_v25  ;;  %v3222_v63 = vpop.f32.mrf.mxu1 }
 0x2ff   :  { %v2935_v35 = vpop.f32.mrf.mxu0 }
 0x300   :  { %v4062_v30 = vpack.c.bf16 %v3288_v39, %v3288_v39  ;;  %v3223_v45 = vadd.f32 %v3222_v63, %v2934_v37  ;;  %v3224_v3 = vpop.f32.mrf.mxu1 }
 0x302   :  { %3609 = vst.msk [vmem:[%s5716_s3 + $0xf8] sm:$0xf] %vm3546_vm0, %v4062_v30  ;;  %v3289_v47 = vmax.f32 %v3223_v45, 0.0 }
 0x304   :  { %v4063_v15 = vpack.c.bf16 %v3289_v47, %v3289_v47 }
 0x306   :  { %3610 = vst.msk [vmem:[%s5716_s3 + $0xfc] sm:$0xf] %vm3546_vm0, %v4063_v15 }

// kernel: beta_vae_forward.17
= control target key start
LH: loop header
LB: loop body
LE: loop exit
PB: predicated region body
PF: predicated region fallthrough
CT: control target
= control target key end

     0   :  { %vm1689_vm0 = vcmask 7168   ;;  %s3763_s1 = inlined_call_operand.vmem [shape: bf16[128,1], index: 1, kind: input, shape index: {}]   ;;  %s3764_s0 = inlined_call_operand.vmem [shape: bf16[1568,128], index: 0, kind: input, shape index: {}]   ;;  %s3765_s2 = inlined_call_operand.<no memory space> [shape: f32[1,1], index: 2, kind: input, shape index: {}]   ;;  %s3766_s3 = inlined_call_operand.vmem [shape: f32[1568,1], index: 3, kind: output, shape index: {}]  }
   0x1   :  { %v2331_v0 = vld [vmem:[%s3763_s1 + $0x38] sm:$0xff]   ;;  %v2332_v1 = vld [vmem:[%s3763_s1 + $0x30] sm:$0xff]   ;;  %v2333_v2 = vld [vmem:[%s3763_s1 + $0x28] sm:$0xff]   ;;  %v8_v42 = vstv %s3765_s2 }
   0x2   :  { %2103 = vmatprep.subr.bf16.mxu0 %v2331_v0  ;;  %2315 = vmatprep.subr.bf16.mxu1 %v2331_v0  ;;  %v2334_v3 = vld [vmem:[%s3763_s1 + $0x20] sm:$0xff]   ;;  %v2341_v5 = vld [vmem:[%s3764_s0 + $0x190] sm:$0xff]   ;;  %v2335_v6 = vld [vmem:[%s3763_s1 + $0x18] sm:$0xff]   ;;  %9 = vst [vmem:[#allocation2] sm:$0x1] %v8_v42 }
   0x3   :  { %2104 = vmatpush3.bf16.msra.mxu0 %v2331_v0  ;;  %2323 = vmatpush3.bf16.msra.mxu1 %v2331_v0  ;;  %v2339_v4 = vld [vmem:[%s3764_s0] sm:$0xff]   ;;  %v2336_v7 = vld [vmem:[%s3763_s1 + $0x10] sm:$0xff]   ;;  %v2337_v8 = vld [vmem:[%s3763_s1 + $0x8] sm:$0xff]  }
   0x4   :  { %2105 = vmatprep.subr.bf16.mxu0 %v2332_v1  ;;  %2316 = vmatprep.subr.bf16.mxu1 %v2332_v1  ;;  %v2338_v9 = vld [vmem:[%s3763_s1] sm:$0xff]   ;;  %v2340_v10 = vld [vmem:[%s3764_s0 + $0x8] sm:$0xff]   ;;  %v2342_v11 = vld [vmem:[%s3764_s0 + $0x198] sm:$0xff]  }
   0x5   :  { %2119 = vmatprep.mubr.bf16.mxu0 %v2339_v4  ;;  %2219 = vmatprep.mubr.bf16.mxu1 %v2341_v5  ;;  %v2343_v12 = vld [vmem:[%s3764_s0 + $0x10] sm:$0xff]   ;;  %v2345_v13 = vld [vmem:[%s3764_s0 + $0x1a0] sm:$0xff]   ;;  %v2344_v14 = vld [vmem:[%s3764_s0 + $0x18] sm:$0xff]  }
   0x6   :  { %v2346_v15 = vld [vmem:[%s3764_s0 + $0x1a8] sm:$0xff]   ;;  %v2347_v16 = vld [vmem:[%s3764_s0 + $0x20] sm:$0xff]   ;;  %v2349_v17 = vld [vmem:[%s3764_s0 + $0x1b0] sm:$0xff]  }
   0x7   :  { %2106 = vmatpush3.bf16.msra.mxu0 %v2332_v1  ;;  %2324 = vmatpush3.bf16.msra.mxu1 %v2332_v1  ;;  %v2348_v18 = vld [vmem:[%s3764_s0 + $0x28] sm:$0xff]   ;;  %v2350_v19 = vld [vmem:[%s3764_s0 + $0x1b8] sm:$0xff]   ;;  %v2351_v20 = vld [vmem:[%s3764_s0 + $0x30] sm:$0xff]  }
   0x8   :  { %2107 = vmatprep.subr.bf16.mxu0 %v2333_v2  ;;  %2317 = vmatprep.subr.bf16.mxu1 %v2333_v2  ;;  %v2353_v21 = vld [vmem:[%s3764_s0 + $0x1c0] sm:$0xff]   ;;  %v2352_v22 = vld [vmem:[%s3764_s0 + $0x38] sm:$0xff]   ;;  %v2354_v23 = vld [vmem:[%s3764_s0 + $0x1c8] sm:$0xff]  }
   0x9   :  { %v2355_v24 = vld [vmem:[%s3764_s0 + $0x40] sm:$0xff]   ;;  %v2357_v25 = vld [vmem:[%s3764_s0 + $0x1d0] sm:$0xff]   ;;  %v2356_v26 = vld [vmem:[%s3764_s0 + $0x48] sm:$0xff]  }
   0xa   :  { %v2358_v27 = vld [vmem:[%s3764_s0 + $0x1d8] sm:$0xff]   ;;  %v2359_v28 = vld [vmem:[%s3764_s0 + $0x50] sm:$0xff]   ;;  %v2361_v29 = vld [vmem:[%s3764_s0 + $0x1e0] sm:$0xff]  }
   0xb   :  { %2108 = vmatpush3.bf16.msra.mxu0 %v2333_v2  ;;  %2325 = vmatpush3.bf16.msra.mxu1 %v2333_v2  ;;  %v2360_v30 = vld [vmem:[%s3764_s0 + $0x58] sm:$0xff]   ;;  %v2362_v31 = vld [vmem:[%s3764_s0 + $0x1e8] sm:$0xff]   ;;  %v2363_v32 = vld [vmem:[%s3764_s0 + $0x60] sm:$0xff]  }
   0xc   :  { %2109 = vmatprep.subr.bf16.mxu0 %v2334_v3  ;;  %2318 = vmatprep.subr.bf16.mxu1 %v2334_v3  ;;  %v2365_v33 = vld [vmem:[%s3764_s0 + $0x1f0] sm:$0xff]   ;;  %v2364_v34 = vld [vmem:[%s3764_s0 + $0x68] sm:$0xff]   ;;  %v2366_v35 = vld [vmem:[%s3764_s0 + $0x1f8] sm:$0xff]  }
   0xd   :  { %v2367_v36 = vld [vmem:[%s3764_s0 + $0x70] sm:$0xff]   ;;  %v2369_v37 = vld [vmem:[%s3764_s0 + $0x200] sm:$0xff]   ;;  %v2368_v38 = vld [vmem:[%s3764_s0 + $0x78] sm:$0xff]  }
   0xe   :  { %v2370_v39 = vld [vmem:[%s3764_s0 + $0x208] sm:$0xff]   ;;  %v2371_v40 = vld [vmem:[%s3764_s0 + $0x80] sm:$0xff]   ;;  %v2373_v41 = vld [vmem:[%s3764_s0 + $0x210] sm:$0xff]  }
   0xf   :  { %2110 = vmatpush3.bf16.msra.mxu0 %v2334_v3  ;;  %2326 = vmatpush3.bf16.msra.mxu1 %v2334_v3  ;;  %v2372_v43 = vld [vmem:[%s3764_s0 + $0x88] sm:$0xff]   ;;  %v2374_v44 = vld [vmem:[%s3764_s0 + $0x218] sm:$0xff]   ;;  %v2375_v45 = vld [vmem:[%s3764_s0 + $0x90] sm:$0xff]  }
  0x10   :  { %2111 = vmatprep.subr.bf16.mxu0 %v2335_v6  ;;  %2319 = vmatprep.subr.bf16.mxu1 %v2335_v6  ;;  %v2377_v46 = vld [vmem:[%s3764_s0 + $0x220] sm:$0xff]   ;;  %v2376_v47 = vld [vmem:[%s3764_s0 + $0x98] sm:$0xff]   ;;  %v2378_v48 = vld [vmem:[%s3764_s0 + $0x228] sm:$0xff]  }
  0x11   :  { %v2379_v49 = vld [vmem:[%s3764_s0 + $0xa0] sm:$0xff]   ;;  %v2381_v50 = vld [vmem:[%s3764_s0 + $0x230] sm:$0xff]   ;;  %v2380_v51 = vld [vmem:[%s3764_s0 + $0xa8] sm:$0xff]  }
  0x12   :  { %v2382_v52 = vld [vmem:[%s3764_s0 + $0x238] sm:$0xff]   ;;  %v2383_v53 = vld [vmem:[%s3764_s0 + $0xb0] sm:$0xff]   ;;  %v2385_v54 = vld [vmem:[%s3764_s0 + $0x240] sm:$0xff]  }
  0x13   :  { %2112 = vmatpush3.bf16.msra.mxu0 %v2335_v6  ;;  %2327 = vmatpush3.bf16.msra.mxu1 %v2335_v6  ;;  %v2384_v55 = vld [vmem:[%s3764_s0 + $0xb8] sm:$0xff]   ;;  %v2386_v56 = vld [vmem:[%s3764_s0 + $0x248] sm:$0xff]   ;;  %v2387_v57 = vld [vmem:[%s3764_s0 + $0xc0] sm:$0xff]  }
  0x14   :  { %2113 = vmatprep.subr.bf16.mxu0 %v2336_v7  ;;  %2320 = vmatprep.subr.bf16.mxu1 %v2336_v7  ;;  %v2389_v58 = vld [vmem:[%s3764_s0 + $0x250] sm:$0xff]   ;;  %v2388_v59 = vld [vmem:[%s3764_s0 + $0xc8] sm:$0xff]   ;;  %v2390_v60 = vld [vmem:[%s3764_s0 + $0x258] sm:$0xff]  }
  0x15   :  { %v2391_v61 = vld [vmem:[%s3764_s0 + $0xd0] sm:$0xff]   ;;  %v2393_v62 = vld [vmem:[%s3764_s0 + $0x260] sm:$0xff]   ;;  %v2392_v63 = vld [vmem:[%s3764_s0 + $0xd8] sm:$0xff]  }
  0x16   :  { %v2394_v0 = vld [vmem:[%s3764_s0 + $0x268] sm:$0xff]   ;;  %v2395_v1 = vld [vmem:[%s3764_s0 + $0xe0] sm:$0xff]   ;;  %v2397_v2 = vld [vmem:[%s3764_s0 + $0x270] sm:$0xff]  }
  0x17   :  { %2114 = vmatpush3.bf16.msra.mxu0 %v2336_v7  ;;  %2328 = vmatpush3.bf16.msra.mxu1 %v2336_v7  ;;  %v2396_v3 = vld [vmem:[%s3764_s0 + $0xe8] sm:$0xff]   ;;  %v2398_v4 = vld [vmem:[%s3764_s0 + $0x278] sm:$0xff]   ;;  %v2399_v5 = vld [vmem:[%s3764_s0 + $0xf0] sm:$0xff]  }
  0x18   :  { %2115 = vmatprep.subr.bf16.mxu0 %v2337_v8  ;;  %2321 = vmatprep.subr.bf16.mxu1 %v2337_v8  ;;  %v2401_v6 = vld [vmem:[%s3764_s0 + $0x280] sm:$0xff]   ;;  %v2400_v7 = vld [vmem:[%s3764_s0 + $0xf8] sm:$0xff]   ;;  %v2436_v42 = vld [vmem:[%s3764_s0 + $0x188] sm:$0xff]  }
  0x1b   :  { %2116 = vmatpush3.bf16.msra.mxu0 %v2337_v8  ;;  %2329 = vmatpush3.bf16.msra.mxu1 %v2337_v8  ;;  %v2402_v8 = vld [vmem:[%s3764_s0 + $0x288] sm:$0xff]  }
  0x1c   :  { %2117 = vmatprep.subr.bf16.mxu0 %v2338_v9  ;;  %2322 = vmatprep.subr.bf16.mxu1 %v2338_v9 }
  0x1f   :  { %2118 = vmatpush3.bf16.msra.mxu0 %v2338_v9  ;;  %2330 = vmatpush3.bf16.msra.mxu1 %v2338_v9  ;;  %v2403_v9 = vld [vmem:[%s3764_s0 + $0x100] sm:$0xff]  }
  0x22   :  { %2120 = vmatmul.mubr.bf16.vlgmr.msra.gmra.mxu0 %v2340_v10  ;;  %2220 = vmatmul.mubr.bf16.vlgmr.msra.gmra.mxu1 %v2342_v11  ;;  %v2405_v10 = vld [vmem:[%s3764_s0 + $0x290] sm:$0xff]   ;;  %v2404_v11 = vld [vmem:[%s3764_s0 + $0x108] sm:$0xff]  }
  0x23   :  { %2123 = vmatprep.mubr.bf16.mxu0 %v2343_v12  ;;  %2223 = vmatprep.mubr.bf16.mxu1 %v2345_v13  ;;  %v2406_v12 = vld [vmem:[%s3764_s0 + $0x298] sm:$0xff]   ;;  %v2407_v13 = vld [vmem:[%s3764_s0 + $0x110] sm:$0xff]  }
  0x2a   :  { %2124 = vmatmul.mubr.bf16.gmra.mxu0 %v2344_v14  ;;  %2224 = vmatmul.mubr.bf16.gmra.mxu1 %v2346_v15  ;;  %v2409_v14 = vld [vmem:[%s3764_s0 + $0x2a0] sm:$0xff]   ;;  %v2408_v15 = vld [vmem:[%s3764_s0 + $0x118] sm:$0xff]  }
  0x2b   :  { %2127 = vmatprep.mubr.bf16.mxu0 %v2347_v16  ;;  %2227 = vmatprep.mubr.bf16.mxu1 %v2349_v17  ;;  %v2410_v16 = vld [vmem:[%s3764_s0 + $0x2a8] sm:$0xff]   ;;  %v2411_v17 = vld [vmem:[%s3764_s0 + $0x120] sm:$0xff]  }
  0x32   :  { %2128 = vmatmul.mubr.bf16.gmra.mxu0 %v2348_v18  ;;  %2228 = vmatmul.mubr.bf16.gmra.mxu1 %v2350_v19  ;;  %v2413_v18 = vld [vmem:[%s3764_s0 + $0x2b0] sm:$0xff]   ;;  %v2412_v19 = vld [vmem:[%s3764_s0 + $0x128] sm:$0xff]  }
  0x33   :  { %2131 = vmatprep.mubr.bf16.mxu0 %v2351_v20  ;;  %2231 = vmatprep.mubr.bf16.mxu1 %v2353_v21  ;;  %v2414_v20 = vld [vmem:[%s3764_s0 + $0x2b8] sm:$0xff]   ;;  %v2415_v21 = vld [vmem:[%s3764_s0 + $0x130] sm:$0xff]  }
  0x3a   :  { %2132 = vmatmul.mubr.bf16.gmra.mxu0 %v2352_v22  ;;  %2232 = vmatmul.mubr.bf16.gmra.mxu1 %v2354_v23  ;;  %v2417_v22 = vld [vmem:[%s3764_s0 + $0x2c0] sm:$0xff]   ;;  %v2416_v23 = vld [vmem:[%s3764_s0 + $0x138] sm:$0xff]  }
  0x3b   :  { %2135 = vmatprep.mubr.bf16.mxu0 %v2355_v24  ;;  %2235 = vmatprep.mubr.bf16.mxu1 %v2357_v25  ;;  %v2418_v24 = vld [vmem:[%s3764_s0 + $0x2c8] sm:$0xff]   ;;  %v2419_v25 = vld [vmem:[%s3764_s0 + $0x140] sm:$0xff]  }
  0x42   :  { %2136 = vmatmul.mubr.bf16.gmra.mxu0 %v2356_v26  ;;  %2236 = vmatmul.mubr.bf16.gmra.mxu1 %v2358_v27  ;;  %v2421_v26 = vld [vmem:[%s3764_s0 + $0x2d0] sm:$0xff]   ;;  %v2420_v27 = vld [vmem:[%s3764_s0 + $0x148] sm:$0xff]  }
  0x43   :  { %2139 = vmatprep.mubr.bf16.mxu0 %v2359_v28  ;;  %2239 = vmatprep.mubr.bf16.mxu1 %v2361_v29  ;;  %v2422_v28 = vld [vmem:[%s3764_s0 + $0x2d8] sm:$0xff]   ;;  %v2423_v29 = vld [vmem:[%s3764_s0 + $0x150] sm:$0xff]  }
  0x4a   :  { %2140 = vmatmul.mubr.bf16.gmra.mxu0 %v2360_v30  ;;  %2240 = vmatmul.mubr.bf16.gmra.mxu1 %v2362_v31  ;;  %v2425_v30 = vld [vmem:[%s3764_s0 + $0x2e0] sm:$0xff]   ;;  %v2424_v31 = vld [vmem:[%s3764_s0 + $0x158] sm:$0xff]  }
  0x4b   :  { %2143 = vmatprep.mubr.bf16.mxu0 %v2363_v32  ;;  %2243 = vmatprep.mubr.bf16.mxu1 %v2365_v33  ;;  %v2426_v32 = vld [vmem:[%s3764_s0 + $0x2e8] sm:$0xff]   ;;  %v2427_v33 = vld [vmem:[%s3764_s0 + $0x160] sm:$0xff]  }
  0x52   :  { %2144 = vmatmul.mubr.bf16.gmra.mxu0 %v2364_v34  ;;  %2244 = vmatmul.mubr.bf16.gmra.mxu1 %v2366_v35  ;;  %v2429_v34 = vld [vmem:[%s3764_s0 + $0x2f0] sm:$0xff]   ;;  %v2428_v35 = vld [vmem:[%s3764_s0 + $0x168] sm:$0xff]  }
  0x53   :  { %2147 = vmatprep.mubr.bf16.mxu0 %v2367_v36  ;;  %2247 = vmatprep.mubr.bf16.mxu1 %v2369_v37  ;;  %v2430_v36 = vld [vmem:[%s3764_s0 + $0x2f8] sm:$0xff]   ;;  %v2431_v37 = vld [vmem:[%s3764_s0 + $0x170] sm:$0xff]  }
  0x5a   :  { %2148 = vmatmul.mubr.bf16.gmra.mxu0 %v2368_v38  ;;  %2248 = vmatmul.mubr.bf16.gmra.mxu1 %v2370_v39  ;;  %v2433_v38 = vld [vmem:[%s3764_s0 + $0x300] sm:$0xff]   ;;  %v2432_v39 = vld [vmem:[%s3764_s0 + $0x178] sm:$0xff]  }
  0x5b   :  { %2151 = vmatprep.mubr.bf16.mxu0 %v2371_v40  ;;  %2251 = vmatprep.mubr.bf16.mxu1 %v2373_v41  ;;  %v2434_v40 = vld [vmem:[%s3764_s0 + $0x308] sm:$0xff]   ;;  %v2435_v41 = vld [vmem:[%s3764_s0 + $0x180] sm:$0xff]  }
  0x62   :  { %2152 = vmatmul.mubr.bf16.gmra.mxu0 %v2372_v43  ;;  %2252 = vmatmul.mubr.bf16.gmra.mxu1 %v2374_v44  ;;  %v2779_v43 = vld [vmem:[#allocation2] ss:$0 sm:$0xff] }
  0x63   :  { %2155 = vmatprep.mubr.bf16.mxu0 %v2375_v45  ;;  %2255 = vmatprep.mubr.bf16.mxu1 %v2377_v46 }
  0x6a   :  { %2156 = vmatmul.mubr.bf16.gmra.mxu0 %v2376_v47  ;;  %2256 = vmatmul.mubr.bf16.gmra.mxu1 %v2378_v48 }
  0x6b   :  { %2159 = vmatprep.mubr.bf16.mxu0 %v2379_v49  ;;  %2259 = vmatprep.mubr.bf16.mxu1 %v2381_v50 }
  0x72   :  { %2160 = vmatmul.mubr.bf16.gmra.mxu0 %v2380_v51  ;;  %2260 = vmatmul.mubr.bf16.gmra.mxu1 %v2382_v52 }
  0x73   :  { %2163 = vmatprep.mubr.bf16.mxu0 %v2383_v53  ;;  %2263 = vmatprep.mubr.bf16.mxu1 %v2385_v54 }
  0x7a   :  { %2164 = vmatmul.mubr.bf16.gmra.mxu0 %v2384_v55  ;;  %2264 = vmatmul.mubr.bf16.gmra.mxu1 %v2386_v56 }
  0x7b   :  { %2167 = vmatprep.mubr.bf16.mxu0 %v2387_v57  ;;  %2267 = vmatprep.mubr.bf16.mxu1 %v2389_v58 }
  0x82   :  { %2168 = vmatmul.mubr.bf16.gmra.mxu0 %v2388_v59  ;;  %2268 = vmatmul.mubr.bf16.gmra.mxu1 %v2390_v60 }
  0x83   :  { %2171 = vmatprep.mubr.bf16.mxu0 %v2391_v61  ;;  %2271 = vmatprep.mubr.bf16.mxu1 %v2393_v62 }
  0x8a   :  { %2172 = vmatmul.mubr.bf16.gmra.mxu0 %v2392_v63  ;;  %2272 = vmatmul.mubr.bf16.gmra.mxu1 %v2394_v0 }
  0x8b   :  { %2175 = vmatprep.mubr.bf16.mxu0 %v2395_v1  ;;  %2275 = vmatprep.mubr.bf16.mxu1 %v2397_v2 }
  0x92   :  { %2176 = vmatmul.mubr.bf16.gmra.mxu0 %v2396_v3  ;;  %2276 = vmatmul.mubr.bf16.gmra.mxu1 %v2398_v4 }
  0x93   :  { %2179 = vmatprep.mubr.bf16.mxu0 %v2399_v5  ;;  %2279 = vmatprep.mubr.bf16.mxu1 %v2401_v6 }
  0x9a   :  { %2180 = vmatmul.mubr.bf16.gmra.mxu0 %v2400_v7  ;;  %2280 = vmatmul.mubr.bf16.gmra.mxu1 %v2402_v8 }
  0x9b   :  { %2183 = vmatprep.mubr.bf16.mxu0 %v2403_v9  ;;  %2283 = vmatprep.mubr.bf16.mxu1 %v2405_v10 }
  0xa2   :  { %2184 = vmatmul.mubr.bf16.gmra.mxu0 %v2404_v11  ;;  %2284 = vmatmul.mubr.bf16.gmra.mxu1 %v2406_v12 }
  0xa3   :  { %2187 = vmatprep.mubr.bf16.mxu0 %v2407_v13  ;;  %2287 = vmatprep.mubr.bf16.mxu1 %v2409_v14 }
  0xaa   :  { %2188 = vmatmul.mubr.bf16.gmra.mxu0 %v2408_v15  ;;  %2288 = vmatmul.mubr.bf16.gmra.mxu1 %v2410_v16 }
  0xab   :  { %2191 = vmatprep.mubr.bf16.mxu0 %v2411_v17  ;;  %2291 = vmatprep.mubr.bf16.mxu1 %v2413_v18 }
  0xb2   :  { %2192 = vmatmul.mubr.bf16.gmra.mxu0 %v2412_v19  ;;  %2292 = vmatmul.mubr.bf16.gmra.mxu1 %v2414_v20 }
  0xb3   :  { %2195 = vmatprep.mubr.bf16.mxu0 %v2415_v21  ;;  %2295 = vmatprep.mubr.bf16.mxu1 %v2417_v22 }
  0xba   :  { %2196 = vmatmul.mubr.bf16.gmra.mxu0 %v2416_v23  ;;  %2296 = vmatmul.mubr.bf16.gmra.mxu1 %v2418_v24 }
  0xbb   :  { %2199 = vmatprep.mubr.bf16.mxu0 %v2419_v25  ;;  %2299 = vmatprep.mubr.bf16.mxu1 %v2421_v26 }
  0xc2   :  { %2200 = vmatmul.mubr.bf16.gmra.mxu0 %v2420_v27  ;;  %2300 = vmatmul.mubr.bf16.gmra.mxu1 %v2422_v28 }
  0xc3   :  { %2203 = vmatprep.mubr.bf16.mxu0 %v2423_v29  ;;  %2303 = vmatprep.mubr.bf16.mxu1 %v2425_v30 }
  0xca   :  { %2204 = vmatmul.mubr.bf16.gmra.mxu0 %v2424_v31  ;;  %2304 = vmatmul.mubr.bf16.gmra.mxu1 %v2426_v32 }
  0xcb   :  { %2207 = vmatprep.mubr.bf16.mxu0 %v2427_v33  ;;  %2307 = vmatprep.mubr.bf16.mxu1 %v2429_v34 }
  0xd2   :  { %2208 = vmatmul.mubr.bf16.gmra.mxu0 %v2428_v35  ;;  %2308 = vmatmul.mubr.bf16.gmra.mxu1 %v2430_v36 }
  0xd3   :  { %2211 = vmatprep.mubr.bf16.mxu0 %v2431_v37  ;;  %2311 = vmatprep.mubr.bf16.mxu1 %v2433_v38 }
  0xda   :  { %2212 = vmatmul.mubr.bf16.gmra.mxu0 %v2432_v39  ;;  %2312 = vmatmul.mubr.bf16.gmra.mxu1 %v2434_v40 }
  0xdb   :  { %2215 = vmatprep.mubr.bf16.mxu0 %v2435_v41 }
  0xe2   :  { %v2121_v44 = vpop.f32.mrf.mxu0  ;;  %2216 = vmatmul.mubr.bf16.gmra.mxu0 %v2436_v42  ;;  %v2221_v45 = vpop.f32.mrf.mxu1 }
  0xe3   :  { %v915_v46 = vadd.f32 %v2121_v44, %v2779_v43  ;;  %v1315_v47 = vadd.f32 %v2221_v45, %v2779_v43 }
  0xe4   :  { %v906_v48 = vpop.f32.mrf.mxu0  ;;  %v1306_v49 = vpop.f32.mrf.mxu1 }
  0xe5   :  { %1692 = vst.msk [vmem:[%s3766_s3 + $0x10] sm:$0xff] %vm1689_vm0, %v915_v46  ;;  %v907_v50 = vadd.f32 %v2779_v43, %v906_v48  ;;  %1792 = vst.msk [vmem:[%s3766_s3 + $0x330] sm:$0xff] %vm1689_vm0, %v1315_v47  ;;  %v1307_v51 = vadd.f32 %v2779_v43, %v1306_v49 }
  0xe6   :  { %v2122_v52 = vpop.f32.mrf.mxu0  ;;  %v2222_v53 = vpop.f32.mrf.mxu1 }
  0xe7   :  { %1690 = vst.msk [vmem:[%s3766_s3] sm:$0xff] %vm1689_vm0, %v907_v50  ;;  %v918_v54 = vadd.f32 %v2122_v52, %v2779_v43  ;;  %1790 = vst.msk [vmem:[%s3766_s3 + $0x320] sm:$0xff] %vm1689_vm0, %v1307_v51  ;;  %v1318_v55 = vadd.f32 %v2222_v53, %v2779_v43 }
  0xe8   :  { %v909_v56 = vpop.f32.mrf.mxu0  ;;  %v1309_v57 = vpop.f32.mrf.mxu1 }
  0xe9   :  { %1693 = vst.msk [vmem:[%s3766_s3 + $0x18] sm:$0xff] %vm1689_vm0, %v918_v54  ;;  %v910_v58 = vadd.f32 %v2779_v43, %v909_v56  ;;  %1793 = vst.msk [vmem:[%s3766_s3 + $0x338] sm:$0xff] %vm1689_vm0, %v1318_v55  ;;  %v1310_v59 = vadd.f32 %v2779_v43, %v1309_v57 }
  0xea   :  { %v2125_v60 = vpop.f32.mrf.mxu0  ;;  %v2225_v61 = vpop.f32.mrf.mxu1 }
  0xeb   :  { %1691 = vst.msk [vmem:[%s3766_s3 + $0x8] sm:$0xff] %vm1689_vm0, %v910_v58  ;;  %v931_v62 = vadd.f32 %v2125_v60, %v2779_v43  ;;  %1791 = vst.msk [vmem:[%s3766_s3 + $0x328] sm:$0xff] %vm1689_vm0, %v1310_v59  ;;  %v1331_v63 = vadd.f32 %v2225_v61, %v2779_v43 }
  0xec   :  { %v922_v0 = vpop.f32.mrf.mxu0  ;;  %v1322_v1 = vpop.f32.mrf.mxu1 }
  0xed   :  { %1696 = vst.msk [vmem:[%s3766_s3 + $0x30] sm:$0xff] %vm1689_vm0, %v931_v62  ;;  %v923_v2 = vadd.f32 %v2779_v43, %v922_v0  ;;  %1796 = vst.msk [vmem:[%s3766_s3 + $0x350] sm:$0xff] %vm1689_vm0, %v1331_v63  ;;  %v1323_v3 = vadd.f32 %v2779_v43, %v1322_v1 }
  0xee   :  { %v2126_v4 = vpop.f32.mrf.mxu0  ;;  %v2226_v5 = vpop.f32.mrf.mxu1 }
  0xef   :  { %1694 = vst.msk [vmem:[%s3766_s3 + $0x20] sm:$0xff] %vm1689_vm0, %v923_v2  ;;  %v934_v6 = vadd.f32 %v2126_v4, %v2779_v43  ;;  %1794 = vst.msk [vmem:[%s3766_s3 + $0x340] sm:$0xff] %vm1689_vm0, %v1323_v3  ;;  %v1334_v7 = vadd.f32 %v2226_v5, %v2779_v43 }
  0xf0   :  { %v925_v8 = vpop.f32.mrf.mxu0  ;;  %v1325_v9 = vpop.f32.mrf.mxu1 }
  0xf1   :  { %1697 = vst.msk [vmem:[%s3766_s3 + $0x38] sm:$0xff] %vm1689_vm0, %v934_v6  ;;  %v926_v10 = vadd.f32 %v2779_v43, %v925_v8  ;;  %1797 = vst.msk [vmem:[%s3766_s3 + $0x358] sm:$0xff] %vm1689_vm0, %v1334_v7  ;;  %v1326_v11 = vadd.f32 %v2779_v43, %v1325_v9 }
  0xf2   :  { %v2129_v12 = vpop.f32.mrf.mxu0  ;;  %v2229_v13 = vpop.f32.mrf.mxu1 }
  0xf3   :  { %1695 = vst.msk [vmem:[%s3766_s3 + $0x28] sm:$0xff] %vm1689_vm0, %v926_v10  ;;  %v947_v14 = vadd.f32 %v2129_v12, %v2779_v43  ;;  %1795 = vst.msk [vmem:[%s3766_s3 + $0x348] sm:$0xff] %vm1689_vm0, %v1326_v11  ;;  %v1347_v15 = vadd.f32 %v2229_v13, %v2779_v43 }
  0xf4   :  { %v938_v16 = vpop.f32.mrf.mxu0  ;;  %v1338_v17 = vpop.f32.mrf.mxu1 }
  0xf5   :  { %1700 = vst.msk [vmem:[%s3766_s3 + $0x50] sm:$0xff] %vm1689_vm0, %v947_v14  ;;  %v939_v18 = vadd.f32 %v2779_v43, %v938_v16  ;;  %1800 = vst.msk [vmem:[%s3766_s3 + $0x370] sm:$0xff] %vm1689_vm0, %v1347_v15  ;;  %v1339_v19 = vadd.f32 %v2779_v43, %v1338_v17 }
  0xf6   :  { %v2130_v20 = vpop.f32.mrf.mxu0  ;;  %v2230_v21 = vpop.f32.mrf.mxu1 }
  0xf7   :  { %1698 = vst.msk [vmem:[%s3766_s3 + $0x40] sm:$0xff] %vm1689_vm0, %v939_v18  ;;  %v950_v22 = vadd.f32 %v2130_v20, %v2779_v43  ;;  %1798 = vst.msk [vmem:[%s3766_s3 + $0x360] sm:$0xff] %vm1689_vm0, %v1339_v19  ;;  %v1350_v23 = vadd.f32 %v2230_v21, %v2779_v43 }
  0xf8   :  { %v941_v24 = vpop.f32.mrf.mxu0  ;;  %v1341_v25 = vpop.f32.mrf.mxu1 }
  0xf9   :  { %1701 = vst.msk [vmem:[%s3766_s3 + $0x58] sm:$0xff] %vm1689_vm0, %v950_v22  ;;  %v942_v26 = vadd.f32 %v2779_v43, %v941_v24  ;;  %1801 = vst.msk [vmem:[%s3766_s3 + $0x378] sm:$0xff] %vm1689_vm0, %v1350_v23  ;;  %v1342_v27 = vadd.f32 %v2779_v43, %v1341_v25 }
  0xfa   :  { %v2133_v28 = vpop.f32.mrf.mxu0  ;;  %v2233_v29 = vpop.f32.mrf.mxu1 }
  0xfb   :  { %1699 = vst.msk [vmem:[%s3766_s3 + $0x48] sm:$0xff] %vm1689_vm0, %v942_v26  ;;  %v963_v30 = vadd.f32 %v2133_v28, %v2779_v43  ;;  %1799 = vst.msk [vmem:[%s3766_s3 + $0x368] sm:$0xff] %vm1689_vm0, %v1342_v27  ;;  %v1363_v31 = vadd.f32 %v2233_v29, %v2779_v43 }
  0xfc   :  { %v954_v32 = vpop.f32.mrf.mxu0  ;;  %v1354_v33 = vpop.f32.mrf.mxu1 }
  0xfd   :  { %1704 = vst.msk [vmem:[%s3766_s3 + $0x70] sm:$0xff] %vm1689_vm0, %v963_v30  ;;  %v955_v34 = vadd.f32 %v2779_v43, %v954_v32  ;;  %1804 = vst.msk [vmem:[%s3766_s3 + $0x390] sm:$0xff] %vm1689_vm0, %v1363_v31  ;;  %v1355_v35 = vadd.f32 %v2779_v43, %v1354_v33 }
  0xfe   :  { %v2134_v36 = vpop.f32.mrf.mxu0  ;;  %v2234_v37 = vpop.f32.mrf.mxu1 }
  0xff   :  { %1702 = vst.msk [vmem:[%s3766_s3 + $0x60] sm:$0xff] %vm1689_vm0, %v955_v34  ;;  %v966_v38 = vadd.f32 %v2134_v36, %v2779_v43  ;;  %1802 = vst.msk [vmem:[%s3766_s3 + $0x380] sm:$0xff] %vm1689_vm0, %v1355_v35  ;;  %v1366_v39 = vadd.f32 %v2234_v37, %v2779_v43 }
 0x100   :  { %v957_v40 = vpop.f32.mrf.mxu0  ;;  %v1357_v41 = vpop.f32.mrf.mxu1 }
 0x101   :  { %1705 = vst.msk [vmem:[%s3766_s3 + $0x78] sm:$0xff] %vm1689_vm0, %v966_v38  ;;  %v958_v42 = vadd.f32 %v2779_v43, %v957_v40  ;;  %1805 = vst.msk [vmem:[%s3766_s3 + $0x398] sm:$0xff] %vm1689_vm0, %v1366_v39  ;;  %v1358_v44 = vadd.f32 %v2779_v43, %v1357_v41 }
 0x102   :  { %v2137_v45 = vpop.f32.mrf.mxu0  ;;  %v2237_v46 = vpop.f32.mrf.mxu1 }
 0x103   :  { %1703 = vst.msk [vmem:[%s3766_s3 + $0x68] sm:$0xff] %vm1689_vm0, %v958_v42  ;;  %v979_v47 = vadd.f32 %v2137_v45, %v2779_v43  ;;  %1803 = vst.msk [vmem:[%s3766_s3 + $0x388] sm:$0xff] %vm1689_vm0, %v1358_v44  ;;  %v1379_v48 = vadd.f32 %v2237_v46, %v2779_v43 }
 0x104   :  { %v970_v49 = vpop.f32.mrf.mxu0  ;;  %v1370_v50 = vpop.f32.mrf.mxu1 }
 0x105   :  { %1708 = vst.msk [vmem:[%s3766_s3 + $0x90] sm:$0xff] %vm1689_vm0, %v979_v47  ;;  %v971_v51 = vadd.f32 %v2779_v43, %v970_v49  ;;  %1808 = vst.msk [vmem:[%s3766_s3 + $0x3b0] sm:$0xff] %vm1689_vm0, %v1379_v48  ;;  %v1371_v52 = vadd.f32 %v2779_v43, %v1370_v50 }
 0x106   :  { %v2138_v53 = vpop.f32.mrf.mxu0  ;;  %v2238_v54 = vpop.f32.mrf.mxu1 }
 0x107   :  { %1706 = vst.msk [vmem:[%s3766_s3 + $0x80] sm:$0xff] %vm1689_vm0, %v971_v51  ;;  %v982_v55 = vadd.f32 %v2138_v53, %v2779_v43  ;;  %1806 = vst.msk [vmem:[%s3766_s3 + $0x3a0] sm:$0xff] %vm1689_vm0, %v1371_v52  ;;  %v1382_v56 = vadd.f32 %v2238_v54, %v2779_v43 }
 0x108   :  { %v973_v57 = vpop.f32.mrf.mxu0  ;;  %v1373_v58 = vpop.f32.mrf.mxu1 }
 0x109   :  { %1709 = vst.msk [vmem:[%s3766_s3 + $0x98] sm:$0xff] %vm1689_vm0, %v982_v55  ;;  %v974_v59 = vadd.f32 %v2779_v43, %v973_v57  ;;  %1809 = vst.msk [vmem:[%s3766_s3 + $0x3b8] sm:$0xff] %vm1689_vm0, %v1382_v56  ;;  %v1374_v60 = vadd.f32 %v2779_v43, %v1373_v58 }
 0x10a   :  { %v2141_v61 = vpop.f32.mrf.mxu0  ;;  %v2241_v62 = vpop.f32.mrf.mxu1 }
 0x10b   :  { %1707 = vst.msk [vmem:[%s3766_s3 + $0x88] sm:$0xff] %vm1689_vm0, %v974_v59  ;;  %v995_v63 = vadd.f32 %v2141_v61, %v2779_v43  ;;  %1807 = vst.msk [vmem:[%s3766_s3 + $0x3a8] sm:$0xff] %vm1689_vm0, %v1374_v60  ;;  %v1395_v0 = vadd.f32 %v2241_v62, %v2779_v43 }
 0x10c   :  { %v986_v1 = vpop.f32.mrf.mxu0  ;;  %v1386_v2 = vpop.f32.mrf.mxu1 }
 0x10d   :  { %1712 = vst.msk [vmem:[%s3766_s3 + $0xb0] sm:$0xff] %vm1689_vm0, %v995_v63  ;;  %v987_v3 = vadd.f32 %v2779_v43, %v986_v1  ;;  %1812 = vst.msk [vmem:[%s3766_s3 + $0x3d0] sm:$0xff] %vm1689_vm0, %v1395_v0  ;;  %v1387_v4 = vadd.f32 %v2779_v43, %v1386_v2 }
 0x10e   :  { %v2142_v5 = vpop.f32.mrf.mxu0  ;;  %v2242_v6 = vpop.f32.mrf.mxu1 }
 0x10f   :  { %1710 = vst.msk [vmem:[%s3766_s3 + $0xa0] sm:$0xff] %vm1689_vm0, %v987_v3  ;;  %v998_v7 = vadd.f32 %v2142_v5, %v2779_v43  ;;  %1810 = vst.msk [vmem:[%s3766_s3 + $0x3c0] sm:$0xff] %vm1689_vm0, %v1387_v4  ;;  %v1398_v8 = vadd.f32 %v2242_v6, %v2779_v43 }
 0x110   :  { %v989_v9 = vpop.f32.mrf.mxu0  ;;  %v1389_v10 = vpop.f32.mrf.mxu1 }
 0x111   :  { %1713 = vst.msk [vmem:[%s3766_s3 + $0xb8] sm:$0xff] %vm1689_vm0, %v998_v7  ;;  %v990_v11 = vadd.f32 %v2779_v43, %v989_v9  ;;  %1813 = vst.msk [vmem:[%s3766_s3 + $0x3d8] sm:$0xff] %vm1689_vm0, %v1398_v8  ;;  %v1390_v12 = vadd.f32 %v2779_v43, %v1389_v10 }
 0x112   :  { %v2145_v13 = vpop.f32.mrf.mxu0  ;;  %v2245_v14 = vpop.f32.mrf.mxu1 }
 0x113   :  { %1711 = vst.msk [vmem:[%s3766_s3 + $0xa8] sm:$0xff] %vm1689_vm0, %v990_v11  ;;  %v1011_v15 = vadd.f32 %v2145_v13, %v2779_v43  ;;  %1811 = vst.msk [vmem:[%s3766_s3 + $0x3c8] sm:$0xff] %vm1689_vm0, %v1390_v12  ;;  %v1411_v16 = vadd.f32 %v2245_v14, %v2779_v43 }
 0x114   :  { %v1002_v17 = vpop.f32.mrf.mxu0  ;;  %v1402_v18 = vpop.f32.mrf.mxu1 }
 0x115   :  { %1716 = vst.msk [vmem:[%s3766_s3 + $0xd0] sm:$0xff] %vm1689_vm0, %v1011_v15  ;;  %v1003_v19 = vadd.f32 %v2779_v43, %v1002_v17  ;;  %1816 = vst.msk [vmem:[%s3766_s3 + $0x3f0] sm:$0xff] %vm1689_vm0, %v1411_v16  ;;  %v1403_v20 = vadd.f32 %v2779_v43, %v1402_v18 }
 0x116   :  { %v2146_v21 = vpop.f32.mrf.mxu0  ;;  %v2246_v22 = vpop.f32.mrf.mxu1 }
 0x117   :  { %1714 = vst.msk [vmem:[%s3766_s3 + $0xc0] sm:$0xff] %vm1689_vm0, %v1003_v19  ;;  %v1014_v23 = vadd.f32 %v2146_v21, %v2779_v43  ;;  %1814 = vst.msk [vmem:[%s3766_s3 + $0x3e0] sm:$0xff] %vm1689_vm0, %v1403_v20  ;;  %v1414_v24 = vadd.f32 %v2246_v22, %v2779_v43 }
 0x118   :  { %v1005_v25 = vpop.f32.mrf.mxu0  ;;  %v1405_v26 = vpop.f32.mrf.mxu1 }
 0x119   :  { %1717 = vst.msk [vmem:[%s3766_s3 + $0xd8] sm:$0xff] %vm1689_vm0, %v1014_v23  ;;  %v1006_v27 = vadd.f32 %v2779_v43, %v1005_v25  ;;  %1817 = vst.msk [vmem:[%s3766_s3 + $0x3f8] sm:$0xff] %vm1689_vm0, %v1414_v24  ;;  %v1406_v28 = vadd.f32 %v2779_v43, %v1405_v26 }
 0x11a   :  { %v2149_v29 = vpop.f32.mrf.mxu0  ;;  %v2249_v30 = vpop.f32.mrf.mxu1 }
 0x11b   :  { %1715 = vst.msk [vmem:[%s3766_s3 + $0xc8] sm:$0xff] %vm1689_vm0, %v1006_v27  ;;  %v1027_v31 = vadd.f32 %v2149_v29, %v2779_v43  ;;  %1815 = vst.msk [vmem:[%s3766_s3 + $0x3e8] sm:$0xff] %vm1689_vm0, %v1406_v28  ;;  %v1427_v32 = vadd.f32 %v2249_v30, %v2779_v43 }
 0x11c   :  { %v1018_v33 = vpop.f32.mrf.mxu0  ;;  %v1418_v34 = vpop.f32.mrf.mxu1 }
 0x11d   :  { %1720 = vst.msk [vmem:[%s3766_s3 + $0xf0] sm:$0xff] %vm1689_vm0, %v1027_v31  ;;  %v1019_v35 = vadd.f32 %v2779_v43, %v1018_v33  ;;  %1820 = vst.msk [vmem:[%s3766_s3 + $0x410] sm:$0xff] %vm1689_vm0, %v1427_v32  ;;  %v1419_v36 = vadd.f32 %v2779_v43, %v1418_v34 }
 0x11e   :  { %v2150_v37 = vpop.f32.mrf.mxu0  ;;  %v2250_v38 = vpop.f32.mrf.mxu1 }
 0x11f   :  { %1718 = vst.msk [vmem:[%s3766_s3 + $0xe0] sm:$0xff] %vm1689_vm0, %v1019_v35  ;;  %v1030_v39 = vadd.f32 %v2150_v37, %v2779_v43  ;;  %1818 = vst.msk [vmem:[%s3766_s3 + $0x400] sm:$0xff] %vm1689_vm0, %v1419_v36  ;;  %v1430_v40 = vadd.f32 %v2250_v38, %v2779_v43 }
 0x120   :  { %v1021_v41 = vpop.f32.mrf.mxu0  ;;  %v1421_v42 = vpop.f32.mrf.mxu1 }
 0x121   :  { %1721 = vst.msk [vmem:[%s3766_s3 + $0xf8] sm:$0xff] %vm1689_vm0, %v1030_v39  ;;  %v1022_v44 = vadd.f32 %v2779_v43, %v1021_v41  ;;  %1821 = vst.msk [vmem:[%s3766_s3 + $0x418] sm:$0xff] %vm1689_vm0, %v1430_v40  ;;  %v1422_v45 = vadd.f32 %v2779_v43, %v1421_v42 }
 0x122   :  { %v2153_v46 = vpop.f32.mrf.mxu0  ;;  %v2253_v47 = vpop.f32.mrf.mxu1 }
 0x123   :  { %1719 = vst.msk [vmem:[%s3766_s3 + $0xe8] sm:$0xff] %vm1689_vm0, %v1022_v44  ;;  %v1043_v48 = vadd.f32 %v2153_v46, %v2779_v43  ;;  %1819 = vst.msk [vmem:[%s3766_s3 + $0x408] sm:$0xff] %vm1689_vm0, %v1422_v45  ;;  %v1443_v49 = vadd.f32 %v2253_v47, %v2779_v43 }
 0x124   :  { %v1034_v50 = vpop.f32.mrf.mxu0  ;;  %v1434_v51 = vpop.f32.mrf.mxu1 }
 0x125   :  { %1724 = vst.msk [vmem:[%s3766_s3 + $0x110] sm:$0xff] %vm1689_vm0, %v1043_v48  ;;  %v1035_v52 = vadd.f32 %v2779_v43, %v1034_v50  ;;  %1824 = vst.msk [vmem:[%s3766_s3 + $0x430] sm:$0xff] %vm1689_vm0, %v1443_v49  ;;  %v1435_v53 = vadd.f32 %v2779_v43, %v1434_v51 }
 0x126   :  { %v2154_v54 = vpop.f32.mrf.mxu0  ;;  %v2254_v55 = vpop.f32.mrf.mxu1 }
 0x127   :  { %1722 = vst.msk [vmem:[%s3766_s3 + $0x100] sm:$0xff] %vm1689_vm0, %v1035_v52  ;;  %v1046_v56 = vadd.f32 %v2154_v54, %v2779_v43  ;;  %1822 = vst.msk [vmem:[%s3766_s3 + $0x420] sm:$0xff] %vm1689_vm0, %v1435_v53  ;;  %v1446_v57 = vadd.f32 %v2254_v55, %v2779_v43 }
 0x128   :  { %v1037_v58 = vpop.f32.mrf.mxu0  ;;  %v1437_v59 = vpop.f32.mrf.mxu1 }
 0x129   :  { %1725 = vst.msk [vmem:[%s3766_s3 + $0x118] sm:$0xff] %vm1689_vm0, %v1046_v56  ;;  %v1038_v60 = vadd.f32 %v2779_v43, %v1037_v58  ;;  %1825 = vst.msk [vmem:[%s3766_s3 + $0x438] sm:$0xff] %vm1689_vm0, %v1446_v57  ;;  %v1438_v61 = vadd.f32 %v2779_v43, %v1437_v59 }
 0x12a   :  { %v2157_v62 = vpop.f32.mrf.mxu0  ;;  %v2257_v63 = vpop.f32.mrf.mxu1 }
 0x12b   :  { %1723 = vst.msk [vmem:[%s3766_s3 + $0x108] sm:$0xff] %vm1689_vm0, %v1038_v60  ;;  %v1059_v0 = vadd.f32 %v2157_v62, %v2779_v43  ;;  %1823 = vst.msk [vmem:[%s3766_s3 + $0x428] sm:$0xff] %vm1689_vm0, %v1438_v61  ;;  %v1459_v1 = vadd.f32 %v2257_v63, %v2779_v43 }
 0x12c   :  { %v1050_v2 = vpop.f32.mrf.mxu0  ;;  %v1450_v3 = vpop.f32.mrf.mxu1 }
 0x12d   :  { %1728 = vst.msk [vmem:[%s3766_s3 + $0x130] sm:$0xff] %vm1689_vm0, %v1059_v0  ;;  %v1051_v4 = vadd.f32 %v2779_v43, %v1050_v2  ;;  %1828 = vst.msk [vmem:[%s3766_s3 + $0x450] sm:$0xff] %vm1689_vm0, %v1459_v1  ;;  %v1451_v5 = vadd.f32 %v2779_v43, %v1450_v3 }
 0x12e   :  { %v2158_v6 = vpop.f32.mrf.mxu0  ;;  %v2258_v7 = vpop.f32.mrf.mxu1 }
 0x12f   :  { %1726 = vst.msk [vmem:[%s3766_s3 + $0x120] sm:$0xff] %vm1689_vm0, %v1051_v4  ;;  %v1062_v8 = vadd.f32 %v2158_v6, %v2779_v43  ;;  %1826 = vst.msk [vmem:[%s3766_s3 + $0x440] sm:$0xff] %vm1689_vm0, %v1451_v5  ;;  %v1462_v9 = vadd.f32 %v2258_v7, %v2779_v43 }
 0x130   :  { %v1053_v10 = vpop.f32.mrf.mxu0  ;;  %v1453_v11 = vpop.f32.mrf.mxu1 }
 0x131   :  { %1729 = vst.msk [vmem:[%s3766_s3 + $0x138] sm:$0xff] %vm1689_vm0, %v1062_v8  ;;  %v1054_v12 = vadd.f32 %v2779_v43, %v1053_v10  ;;  %1829 = vst.msk [vmem:[%s3766_s3 + $0x458] sm:$0xff] %vm1689_vm0, %v1462_v9  ;;  %v1454_v13 = vadd.f32 %v2779_v43, %v1453_v11 }
 0x132   :  { %v2161_v14 = vpop.f32.mrf.mxu0  ;;  %v2261_v15 = vpop.f32.mrf.mxu1 }
 0x133   :  { %1727 = vst.msk [vmem:[%s3766_s3 + $0x128] sm:$0xff] %vm1689_vm0, %v1054_v12  ;;  %v1075_v16 = vadd.f32 %v2161_v14, %v2779_v43  ;;  %1827 = vst.msk [vmem:[%s3766_s3 + $0x448] sm:$0xff] %vm1689_vm0, %v1454_v13  ;;  %v1475_v17 = vadd.f32 %v2261_v15, %v2779_v43 }
 0x134   :  { %v1066_v18 = vpop.f32.mrf.mxu0  ;;  %v1466_v19 = vpop.f32.mrf.mxu1 }
 0x135   :  { %1732 = vst.msk [vmem:[%s3766_s3 + $0x150] sm:$0xff] %vm1689_vm0, %v1075_v16  ;;  %v1067_v20 = vadd.f32 %v2779_v43, %v1066_v18  ;;  %1832 = vst.msk [vmem:[%s3766_s3 + $0x470] sm:$0xff] %vm1689_vm0, %v1475_v17  ;;  %v1467_v21 = vadd.f32 %v2779_v43, %v1466_v19 }
 0x136   :  { %v2162_v22 = vpop.f32.mrf.mxu0  ;;  %v2262_v23 = vpop.f32.mrf.mxu1 }
 0x137   :  { %1730 = vst.msk [vmem:[%s3766_s3 + $0x140] sm:$0xff] %vm1689_vm0, %v1067_v20  ;;  %v1078_v24 = vadd.f32 %v2162_v22, %v2779_v43  ;;  %1830 = vst.msk [vmem:[%s3766_s3 + $0x460] sm:$0xff] %vm1689_vm0, %v1467_v21  ;;  %v1478_v25 = vadd.f32 %v2262_v23, %v2779_v43 }
 0x138   :  { %v1069_v26 = vpop.f32.mrf.mxu0  ;;  %v1469_v27 = vpop.f32.mrf.mxu1 }
 0x139   :  { %1733 = vst.msk [vmem:[%s3766_s3 + $0x158] sm:$0xff] %vm1689_vm0, %v1078_v24  ;;  %v1070_v28 = vadd.f32 %v2779_v43, %v1069_v26  ;;  %1833 = vst.msk [vmem:[%s3766_s3 + $0x478] sm:$0xff] %vm1689_vm0, %v1478_v25  ;;  %v1470_v29 = vadd.f32 %v2779_v43, %v1469_v27 }
 0x13a   :  { %v2165_v30 = vpop.f32.mrf.mxu0  ;;  %v2265_v31 = vpop.f32.mrf.mxu1 }
 0x13b   :  { %1731 = vst.msk [vmem:[%s3766_s3 + $0x148] sm:$0xff] %vm1689_vm0, %v1070_v28  ;;  %v1091_v32 = vadd.f32 %v2165_v30, %v2779_v43  ;;  %1831 = vst.msk [vmem:[%s3766_s3 + $0x468] sm:$0xff] %vm1689_vm0, %v1470_v29  ;;  %v1491_v33 = vadd.f32 %v2265_v31, %v2779_v43 }
 0x13c   :  { %v1082_v34 = vpop.f32.mrf.mxu0  ;;  %v1482_v35 = vpop.f32.mrf.mxu1 }
 0x13d   :  { %1736 = vst.msk [vmem:[%s3766_s3 + $0x170] sm:$0xff] %vm1689_vm0, %v1091_v32  ;;  %v1083_v36 = vadd.f32 %v2779_v43, %v1082_v34  ;;  %1836 = vst.msk [vmem:[%s3766_s3 + $0x490] sm:$0xff] %vm1689_vm0, %v1491_v33  ;;  %v1483_v37 = vadd.f32 %v2779_v43, %v1482_v35 }
 0x13e   :  { %v2166_v38 = vpop.f32.mrf.mxu0  ;;  %v2266_v39 = vpop.f32.mrf.mxu1 }
 0x13f   :  { %1734 = vst.msk [vmem:[%s3766_s3 + $0x160] sm:$0xff] %vm1689_vm0, %v1083_v36  ;;  %v1094_v40 = vadd.f32 %v2166_v38, %v2779_v43  ;;  %1834 = vst.msk [vmem:[%s3766_s3 + $0x480] sm:$0xff] %vm1689_vm0, %v1483_v37  ;;  %v1494_v41 = vadd.f32 %v2266_v39, %v2779_v43 }
 0x140   :  { %v1085_v42 = vpop.f32.mrf.mxu0  ;;  %v1485_v44 = vpop.f32.mrf.mxu1 }
 0x141   :  { %1737 = vst.msk [vmem:[%s3766_s3 + $0x178] sm:$0xff] %vm1689_vm0, %v1094_v40  ;;  %v1086_v45 = vadd.f32 %v2779_v43, %v1085_v42  ;;  %1837 = vst.msk [vmem:[%s3766_s3 + $0x498] sm:$0xff] %vm1689_vm0, %v1494_v41  ;;  %v1486_v46 = vadd.f32 %v2779_v43, %v1485_v44 }
 0x142   :  { %v2169_v47 = vpop.f32.mrf.mxu0  ;;  %v2269_v48 = vpop.f32.mrf.mxu1 }
 0x143   :  { %1735 = vst.msk [vmem:[%s3766_s3 + $0x168] sm:$0xff] %vm1689_vm0, %v1086_v45  ;;  %v1107_v49 = vadd.f32 %v2169_v47, %v2779_v43  ;;  %1835 = vst.msk [vmem:[%s3766_s3 + $0x488] sm:$0xff] %vm1689_vm0, %v1486_v46  ;;  %v1507_v50 = vadd.f32 %v2269_v48, %v2779_v43 }
 0x144   :  { %v1098_v51 = vpop.f32.mrf.mxu0  ;;  %v1498_v52 = vpop.f32.mrf.mxu1 }
 0x145   :  { %1740 = vst.msk [vmem:[%s3766_s3 + $0x190] sm:$0xff] %vm1689_vm0, %v1107_v49  ;;  %v1099_v53 = vadd.f32 %v2779_v43, %v1098_v51  ;;  %1840 = vst.msk [vmem:[%s3766_s3 + $0x4b0] sm:$0xff] %vm1689_vm0, %v1507_v50  ;;  %v1499_v54 = vadd.f32 %v2779_v43, %v1498_v52 }
 0x146   :  { %v2170_v55 = vpop.f32.mrf.mxu0  ;;  %v2270_v56 = vpop.f32.mrf.mxu1 }
 0x147   :  { %1738 = vst.msk [vmem:[%s3766_s3 + $0x180] sm:$0xff] %vm1689_vm0, %v1099_v53  ;;  %v1110_v57 = vadd.f32 %v2170_v55, %v2779_v43  ;;  %1838 = vst.msk [vmem:[%s3766_s3 + $0x4a0] sm:$0xff] %vm1689_vm0, %v1499_v54  ;;  %v1510_v58 = vadd.f32 %v2270_v56, %v2779_v43 }
 0x148   :  { %v1101_v59 = vpop.f32.mrf.mxu0  ;;  %v1501_v60 = vpop.f32.mrf.mxu1 }
 0x149   :  { %1741 = vst.msk [vmem:[%s3766_s3 + $0x198] sm:$0xff] %vm1689_vm0, %v1110_v57  ;;  %v1102_v61 = vadd.f32 %v2779_v43, %v1101_v59  ;;  %1841 = vst.msk [vmem:[%s3766_s3 + $0x4b8] sm:$0xff] %vm1689_vm0, %v1510_v58  ;;  %v1502_v62 = vadd.f32 %v2779_v43, %v1501_v60 }
 0x14a   :  { %v2173_v63 = vpop.f32.mrf.mxu0  ;;  %v2273_v0 = vpop.f32.mrf.mxu1 }
 0x14b   :  { %1739 = vst.msk [vmem:[%s3766_s3 + $0x188] sm:$0xff] %vm1689_vm0, %v1102_v61  ;;  %v1123_v1 = vadd.f32 %v2173_v63, %v2779_v43  ;;  %1839 = vst.msk [vmem:[%s3766_s3 + $0x4a8] sm:$0xff] %vm1689_vm0, %v1502_v62  ;;  %v1523_v2 = vadd.f32 %v2273_v0, %v2779_v43 }
 0x14c   :  { %v1114_v3 = vpop.f32.mrf.mxu0  ;;  %v1514_v4 = vpop.f32.mrf.mxu1 }
 0x14d   :  { %1744 = vst.msk [vmem:[%s3766_s3 + $0x1b0] sm:$0xff] %vm1689_vm0, %v1123_v1  ;;  %v1115_v5 = vadd.f32 %v2779_v43, %v1114_v3  ;;  %1844 = vst.msk [vmem:[%s3766_s3 + $0x4d0] sm:$0xff] %vm1689_vm0, %v1523_v2  ;;  %v1515_v6 = vadd.f32 %v2779_v43, %v1514_v4 }
 0x14e   :  { %v2174_v7 = vpop.f32.mrf.mxu0  ;;  %v2274_v8 = vpop.f32.mrf.mxu1 }
 0x14f   :  { %1742 = vst.msk [vmem:[%s3766_s3 + $0x1a0] sm:$0xff] %vm1689_vm0, %v1115_v5  ;;  %v1126_v9 = vadd.f32 %v2174_v7, %v2779_v43  ;;  %1842 = vst.msk [vmem:[%s3766_s3 + $0x4c0] sm:$0xff] %vm1689_vm0, %v1515_v6  ;;  %v1526_v10 = vadd.f32 %v2274_v8, %v2779_v43 }
 0x150   :  { %v1117_v11 = vpop.f32.mrf.mxu0  ;;  %v1517_v12 = vpop.f32.mrf.mxu1 }
 0x151   :  { %1745 = vst.msk [vmem:[%s3766_s3 + $0x1b8] sm:$0xff] %vm1689_vm0, %v1126_v9  ;;  %v1118_v13 = vadd.f32 %v2779_v43, %v1117_v11  ;;  %1845 = vst.msk [vmem:[%s3766_s3 + $0x4d8] sm:$0xff] %vm1689_vm0, %v1526_v10  ;;  %v1518_v14 = vadd.f32 %v2779_v43, %v1517_v12 }
 0x152   :  { %v2177_v15 = vpop.f32.mrf.mxu0  ;;  %v2277_v16 = vpop.f32.mrf.mxu1 }
 0x153   :  { %1743 = vst.msk [vmem:[%s3766_s3 + $0x1a8] sm:$0xff] %vm1689_vm0, %v1118_v13  ;;  %v1139_v17 = vadd.f32 %v2177_v15, %v2779_v43  ;;  %1843 = vst.msk [vmem:[%s3766_s3 + $0x4c8] sm:$0xff] %vm1689_vm0, %v1518_v14  ;;  %v1539_v18 = vadd.f32 %v2277_v16, %v2779_v43 }
 0x154   :  { %v1130_v19 = vpop.f32.mrf.mxu0  ;;  %v1530_v20 = vpop.f32.mrf.mxu1 }
 0x155   :  { %1748 = vst.msk [vmem:[%s3766_s3 + $0x1d0] sm:$0xff] %vm1689_vm0, %v1139_v17  ;;  %v1131_v21 = vadd.f32 %v2779_v43, %v1130_v19  ;;  %1848 = vst.msk [vmem:[%s3766_s3 + $0x4f0] sm:$0xff] %vm1689_vm0, %v1539_v18  ;;  %v1531_v22 = vadd.f32 %v2779_v43, %v1530_v20 }
 0x156   :  { %v2178_v23 = vpop.f32.mrf.mxu0  ;;  %v2278_v24 = vpop.f32.mrf.mxu1 }
 0x157   :  { %1746 = vst.msk [vmem:[%s3766_s3 + $0x1c0] sm:$0xff] %vm1689_vm0, %v1131_v21  ;;  %v1142_v25 = vadd.f32 %v2178_v23, %v2779_v43  ;;  %1846 = vst.msk [vmem:[%s3766_s3 + $0x4e0] sm:$0xff] %vm1689_vm0, %v1531_v22  ;;  %v1542_v26 = vadd.f32 %v2278_v24, %v2779_v43 }
 0x158   :  { %v1133_v27 = vpop.f32.mrf.mxu0  ;;  %v1533_v28 = vpop.f32.mrf.mxu1 }
 0x159   :  { %1749 = vst.msk [vmem:[%s3766_s3 + $0x1d8] sm:$0xff] %vm1689_vm0, %v1142_v25  ;;  %v1134_v29 = vadd.f32 %v2779_v43, %v1133_v27  ;;  %1849 = vst.msk [vmem:[%s3766_s3 + $0x4f8] sm:$0xff] %vm1689_vm0, %v1542_v26  ;;  %v1534_v30 = vadd.f32 %v2779_v43, %v1533_v28 }
 0x15a   :  { %v2181_v31 = vpop.f32.mrf.mxu0  ;;  %v2281_v32 = vpop.f32.mrf.mxu1 }
 0x15b   :  { %1747 = vst.msk [vmem:[%s3766_s3 + $0x1c8] sm:$0xff] %vm1689_vm0, %v1134_v29  ;;  %v1155_v33 = vadd.f32 %v2181_v31, %v2779_v43  ;;  %1847 = vst.msk [vmem:[%s3766_s3 + $0x4e8] sm:$0xff] %vm1689_vm0, %v1534_v30  ;;  %v1555_v34 = vadd.f32 %v2281_v32, %v2779_v43 }
 0x15c   :  { %v1146_v35 = vpop.f32.mrf.mxu0  ;;  %v1546_v36 = vpop.f32.mrf.mxu1 }
 0x15d   :  { %1752 = vst.msk [vmem:[%s3766_s3 + $0x1f0] sm:$0xff] %vm1689_vm0, %v1155_v33  ;;  %v1147_v37 = vadd.f32 %v2779_v43, %v1146_v35  ;;  %1852 = vst.msk [vmem:[%s3766_s3 + $0x510] sm:$0xff] %vm1689_vm0, %v1555_v34  ;;  %v1547_v38 = vadd.f32 %v2779_v43, %v1546_v36 }
 0x15e   :  { %v2182_v39 = vpop.f32.mrf.mxu0  ;;  %v2282_v40 = vpop.f32.mrf.mxu1 }
 0x15f   :  { %1750 = vst.msk [vmem:[%s3766_s3 + $0x1e0] sm:$0xff] %vm1689_vm0, %v1147_v37  ;;  %v1158_v41 = vadd.f32 %v2182_v39, %v2779_v43  ;;  %1850 = vst.msk [vmem:[%s3766_s3 + $0x500] sm:$0xff] %vm1689_vm0, %v1547_v38  ;;  %v1558_v42 = vadd.f32 %v2282_v40, %v2779_v43 }
 0x160   :  { %v1149_v44 = vpop.f32.mrf.mxu0  ;;  %v1549_v45 = vpop.f32.mrf.mxu1 }
 0x161   :  { %1753 = vst.msk [vmem:[%s3766_s3 + $0x1f8] sm:$0xff] %vm1689_vm0, %v1158_v41  ;;  %v1150_v46 = vadd.f32 %v2779_v43, %v1149_v44  ;;  %1853 = vst.msk [vmem:[%s3766_s3 + $0x518] sm:$0xff] %vm1689_vm0, %v1558_v42  ;;  %v1550_v47 = vadd.f32 %v2779_v43, %v1549_v45 }
 0x162   :  { %v2185_v48 = vpop.f32.mrf.mxu0  ;;  %v2285_v49 = vpop.f32.mrf.mxu1 }
 0x163   :  { %1751 = vst.msk [vmem:[%s3766_s3 + $0x1e8] sm:$0xff] %vm1689_vm0, %v1150_v46  ;;  %v1171_v50 = vadd.f32 %v2185_v48, %v2779_v43  ;;  %1851 = vst.msk [vmem:[%s3766_s3 + $0x508] sm:$0xff] %vm1689_vm0, %v1550_v47  ;;  %v1571_v51 = vadd.f32 %v2285_v49, %v2779_v43 }
 0x164   :  { %v1162_v52 = vpop.f32.mrf.mxu0  ;;  %v1562_v53 = vpop.f32.mrf.mxu1 }
 0x165   :  { %1756 = vst.msk [vmem:[%s3766_s3 + $0x210] sm:$0xff] %vm1689_vm0, %v1171_v50  ;;  %v1163_v54 = vadd.f32 %v2779_v43, %v1162_v52  ;;  %1856 = vst.msk [vmem:[%s3766_s3 + $0x530] sm:$0xff] %vm1689_vm0, %v1571_v51  ;;  %v1563_v55 = vadd.f32 %v2779_v43, %v1562_v53 }
 0x166   :  { %v2186_v56 = vpop.f32.mrf.mxu0  ;;  %v2286_v57 = vpop.f32.mrf.mxu1 }
 0x167   :  { %1754 = vst.msk [vmem:[%s3766_s3 + $0x200] sm:$0xff] %vm1689_vm0, %v1163_v54  ;;  %v1174_v58 = vadd.f32 %v2186_v56, %v2779_v43  ;;  %1854 = vst.msk [vmem:[%s3766_s3 + $0x520] sm:$0xff] %vm1689_vm0, %v1563_v55  ;;  %v1574_v59 = vadd.f32 %v2286_v57, %v2779_v43 }
 0x168   :  { %v1165_v60 = vpop.f32.mrf.mxu0  ;;  %v1565_v61 = vpop.f32.mrf.mxu1 }
 0x169   :  { %1757 = vst.msk [vmem:[%s3766_s3 + $0x218] sm:$0xff] %vm1689_vm0, %v1174_v58  ;;  %v1166_v62 = vadd.f32 %v2779_v43, %v1165_v60  ;;  %1857 = vst.msk [vmem:[%s3766_s3 + $0x538] sm:$0xff] %vm1689_vm0, %v1574_v59  ;;  %v1566_v63 = vadd.f32 %v2779_v43, %v1565_v61 }
 0x16a   :  { %v2189_v0 = vpop.f32.mrf.mxu0  ;;  %v2289_v1 = vpop.f32.mrf.mxu1 }
 0x16b   :  { %1755 = vst.msk [vmem:[%s3766_s3 + $0x208] sm:$0xff] %vm1689_vm0, %v1166_v62  ;;  %v1187_v2 = vadd.f32 %v2189_v0, %v2779_v43  ;;  %1855 = vst.msk [vmem:[%s3766_s3 + $0x528] sm:$0xff] %vm1689_vm0, %v1566_v63  ;;  %v1587_v3 = vadd.f32 %v2289_v1, %v2779_v43 }
 0x16c   :  { %v1178_v4 = vpop.f32.mrf.mxu0  ;;  %v1578_v5 = vpop.f32.mrf.mxu1 }
 0x16d   :  { %1760 = vst.msk [vmem:[%s3766_s3 + $0x230] sm:$0xff] %vm1689_vm0, %v1187_v2  ;;  %v1179_v6 = vadd.f32 %v2779_v43, %v1178_v4  ;;  %1860 = vst.msk [vmem:[%s3766_s3 + $0x550] sm:$0xff] %vm1689_vm0, %v1587_v3  ;;  %v1579_v7 = vadd.f32 %v2779_v43, %v1578_v5 }
 0x16e   :  { %v2190_v8 = vpop.f32.mrf.mxu0  ;;  %v2290_v9 = vpop.f32.mrf.mxu1 }
 0x16f   :  { %1758 = vst.msk [vmem:[%s3766_s3 + $0x220] sm:$0xff] %vm1689_vm0, %v1179_v6  ;;  %v1190_v10 = vadd.f32 %v2190_v8, %v2779_v43  ;;  %1858 = vst.msk [vmem:[%s3766_s3 + $0x540] sm:$0xff] %vm1689_vm0, %v1579_v7  ;;  %v1590_v11 = vadd.f32 %v2290_v9, %v2779_v43  ;;  %v3627_v7 = vld [vmem:[#allocation2] ss:$0 sm:$0xff] }
 0x170   :  { %v1181_v12 = vpop.f32.mrf.mxu0  ;;  %v1581_v13 = vpop.f32.mrf.mxu1 }
 0x171   :  { %1761 = vst.msk [vmem:[%s3766_s3 + $0x238] sm:$0xff] %vm1689_vm0, %v1190_v10  ;;  %v1182_v14 = vadd.f32 %v2779_v43, %v1181_v12  ;;  %1861 = vst.msk [vmem:[%s3766_s3 + $0x558] sm:$0xff] %vm1689_vm0, %v1590_v11  ;;  %v1582_v15 = vadd.f32 %v2779_v43, %v1581_v13 }
 0x172   :  { %v2193_v16 = vpop.f32.mrf.mxu0  ;;  %v2293_v17 = vpop.f32.mrf.mxu1 }
 0x173   :  { %1759 = vst.msk [vmem:[%s3766_s3 + $0x228] sm:$0xff] %vm1689_vm0, %v1182_v14  ;;  %v1203_v18 = vadd.f32 %v2193_v16, %v2779_v43  ;;  %1859 = vst.msk [vmem:[%s3766_s3 + $0x548] sm:$0xff] %vm1689_vm0, %v1582_v15  ;;  %v1603_v19 = vadd.f32 %v2293_v17, %v2779_v43 }
 0x174   :  { %v1194_v20 = vpop.f32.mrf.mxu0  ;;  %v1594_v21 = vpop.f32.mrf.mxu1 }
 0x175   :  { %1764 = vst.msk [vmem:[%s3766_s3 + $0x250] sm:$0xff] %vm1689_vm0, %v1203_v18  ;;  %v1195_v22 = vadd.f32 %v2779_v43, %v1194_v20  ;;  %1864 = vst.msk [vmem:[%s3766_s3 + $0x570] sm:$0xff] %vm1689_vm0, %v1603_v19  ;;  %v1595_v23 = vadd.f32 %v2779_v43, %v1594_v21 }
 0x176   :  { %v2194_v24 = vpop.f32.mrf.mxu0  ;;  %v2294_v25 = vpop.f32.mrf.mxu1 }
 0x177   :  { %1762 = vst.msk [vmem:[%s3766_s3 + $0x240] sm:$0xff] %vm1689_vm0, %v1195_v22  ;;  %v1206_v26 = vadd.f32 %v2194_v24, %v2779_v43  ;;  %1862 = vst.msk [vmem:[%s3766_s3 + $0x560] sm:$0xff] %vm1689_vm0, %v1595_v23  ;;  %v1606_v27 = vadd.f32 %v2294_v25, %v2779_v43 }
 0x178   :  { %v1197_v28 = vpop.f32.mrf.mxu0  ;;  %v1597_v29 = vpop.f32.mrf.mxu1 }
 0x179   :  { %1765 = vst.msk [vmem:[%s3766_s3 + $0x258] sm:$0xff] %vm1689_vm0, %v1206_v26  ;;  %v1198_v30 = vadd.f32 %v2779_v43, %v1197_v28  ;;  %1865 = vst.msk [vmem:[%s3766_s3 + $0x578] sm:$0xff] %vm1689_vm0, %v1606_v27  ;;  %v1598_v31 = vadd.f32 %v2779_v43, %v1597_v29 }
 0x17a   :  { %v2197_v32 = vpop.f32.mrf.mxu0  ;;  %v2297_v33 = vpop.f32.mrf.mxu1 }
 0x17b   :  { %1763 = vst.msk [vmem:[%s3766_s3 + $0x248] sm:$0xff] %vm1689_vm0, %v1198_v30  ;;  %v1219_v34 = vadd.f32 %v2197_v32, %v2779_v43  ;;  %1863 = vst.msk [vmem:[%s3766_s3 + $0x568] sm:$0xff] %vm1689_vm0, %v1598_v31  ;;  %v1619_v35 = vadd.f32 %v2297_v33, %v2779_v43 }
 0x17c   :  { %v1210_v36 = vpop.f32.mrf.mxu0  ;;  %v1610_v37 = vpop.f32.mrf.mxu1 }
 0x17d   :  { %1768 = vst.msk [vmem:[%s3766_s3 + $0x270] sm:$0xff] %vm1689_vm0, %v1219_v34  ;;  %v1211_v38 = vadd.f32 %v2779_v43, %v1210_v36  ;;  %1868 = vst.msk [vmem:[%s3766_s3 + $0x590] sm:$0xff] %vm1689_vm0, %v1619_v35  ;;  %v1611_v39 = vadd.f32 %v2779_v43, %v1610_v37 }
 0x17e   :  { %v2198_v40 = vpop.f32.mrf.mxu0  ;;  %v2298_v41 = vpop.f32.mrf.mxu1 }
 0x17f   :  { %1766 = vst.msk [vmem:[%s3766_s3 + $0x260] sm:$0xff] %vm1689_vm0, %v1211_v38  ;;  %v1222_v42 = vadd.f32 %v2198_v40, %v2779_v43  ;;  %1866 = vst.msk [vmem:[%s3766_s3 + $0x580] sm:$0xff] %vm1689_vm0, %v1611_v39  ;;  %v1622_v44 = vadd.f32 %v2298_v41, %v2779_v43 }
 0x180   :  { %v1213_v45 = vpop.f32.mrf.mxu0  ;;  %v1613_v46 = vpop.f32.mrf.mxu1 }
 0x181   :  { %1769 = vst.msk [vmem:[%s3766_s3 + $0x278] sm:$0xff] %vm1689_vm0, %v1222_v42  ;;  %v1214_v47 = vadd.f32 %v2779_v43, %v1213_v45  ;;  %1869 = vst.msk [vmem:[%s3766_s3 + $0x598] sm:$0xff] %vm1689_vm0, %v1622_v44  ;;  %v1614_v48 = vadd.f32 %v2779_v43, %v1613_v46 }
 0x182   :  { %v2201_v49 = vpop.f32.mrf.mxu0  ;;  %v2301_v50 = vpop.f32.mrf.mxu1 }
 0x183   :  { %1767 = vst.msk [vmem:[%s3766_s3 + $0x268] sm:$0xff] %vm1689_vm0, %v1214_v47  ;;  %v1235_v51 = vadd.f32 %v2201_v49, %v2779_v43  ;;  %1867 = vst.msk [vmem:[%s3766_s3 + $0x588] sm:$0xff] %vm1689_vm0, %v1614_v48  ;;  %v1635_v52 = vadd.f32 %v2301_v50, %v2779_v43 }
 0x184   :  { %v1226_v53 = vpop.f32.mrf.mxu0  ;;  %v1626_v54 = vpop.f32.mrf.mxu1 }
 0x185   :  { %1772 = vst.msk [vmem:[%s3766_s3 + $0x290] sm:$0xff] %vm1689_vm0, %v1235_v51  ;;  %v1227_v55 = vadd.f32 %v2779_v43, %v1226_v53  ;;  %1872 = vst.msk [vmem:[%s3766_s3 + $0x5b0] sm:$0xff] %vm1689_vm0, %v1635_v52  ;;  %v1627_v56 = vadd.f32 %v2779_v43, %v1626_v54 }
 0x186   :  { %v2202_v57 = vpop.f32.mrf.mxu0  ;;  %v2302_v58 = vpop.f32.mrf.mxu1 }
 0x187   :  { %1770 = vst.msk [vmem:[%s3766_s3 + $0x280] sm:$0xff] %vm1689_vm0, %v1227_v55  ;;  %v1238_v59 = vadd.f32 %v2202_v57, %v2779_v43  ;;  %1870 = vst.msk [vmem:[%s3766_s3 + $0x5a0] sm:$0xff] %vm1689_vm0, %v1627_v56  ;;  %v1638_v60 = vadd.f32 %v2302_v58, %v2779_v43 }
 0x188   :  { %v1229_v61 = vpop.f32.mrf.mxu0  ;;  %v1629_v62 = vpop.f32.mrf.mxu1 }
 0x189   :  { %1773 = vst.msk [vmem:[%s3766_s3 + $0x298] sm:$0xff] %vm1689_vm0, %v1238_v59  ;;  %v1230_v63 = vadd.f32 %v2779_v43, %v1229_v61  ;;  %1873 = vst.msk [vmem:[%s3766_s3 + $0x5b8] sm:$0xff] %vm1689_vm0, %v1638_v60  ;;  %v1630_v0 = vadd.f32 %v2779_v43, %v1629_v62 }
 0x18a   :  { %v2205_v1 = vpop.f32.mrf.mxu0  ;;  %v2305_v2 = vpop.f32.mrf.mxu1 }
 0x18b   :  { %1771 = vst.msk [vmem:[%s3766_s3 + $0x288] sm:$0xff] %vm1689_vm0, %v1230_v63  ;;  %v1251_v3 = vadd.f32 %v2205_v1, %v2779_v43  ;;  %1871 = vst.msk [vmem:[%s3766_s3 + $0x5a8] sm:$0xff] %vm1689_vm0, %v1630_v0  ;;  %v1651_v4 = vadd.f32 %v2305_v2, %v2779_v43 }
 0x18c   :  { %v1242_v5 = vpop.f32.mrf.mxu0  ;;  %v1642_v6 = vpop.f32.mrf.mxu1 }
 0x18d   :  { %1776 = vst.msk [vmem:[%s3766_s3 + $0x2b0] sm:$0xff] %vm1689_vm0, %v1251_v3  ;;  %v1243_v8 = vadd.f32 %v3627_v7, %v1242_v5  ;;  %1876 = vst.msk [vmem:[%s3766_s3 + $0x5d0] sm:$0xff] %vm1689_vm0, %v1651_v4  ;;  %v1643_v9 = vadd.f32 %v3627_v7, %v1642_v6 }
 0x18e   :  { %v2206_v10 = vpop.f32.mrf.mxu0  ;;  %v2306_v43 = vpop.f32.mrf.mxu1 }
 0x18f   :  { %1774 = vst.msk [vmem:[%s3766_s3 + $0x2a0] sm:$0xff] %vm1689_vm0, %v1243_v8  ;;  %v1254_v11 = vadd.f32 %v3627_v7, %v2206_v10  ;;  %1874 = vst.msk [vmem:[%s3766_s3 + $0x5c0] sm:$0xff] %vm1689_vm0, %v1643_v9  ;;  %v1654_v12 = vadd.f32 %v3627_v7, %v2306_v43 }
 0x190   :  { %v1245_v13 = vpop.f32.mrf.mxu0  ;;  %v1645_v14 = vpop.f32.mrf.mxu1 }
 0x191   :  { %1777 = vst.msk [vmem:[%s3766_s3 + $0x2b8] sm:$0xff] %vm1689_vm0, %v1254_v11  ;;  %v1246_v15 = vadd.f32 %v3627_v7, %v1245_v13  ;;  %1877 = vst.msk [vmem:[%s3766_s3 + $0x5d8] sm:$0xff] %vm1689_vm0, %v1654_v12  ;;  %v1646_v16 = vadd.f32 %v3627_v7, %v1645_v14 }
 0x192   :  { %v2209_v17 = vpop.f32.mrf.mxu0  ;;  %v2309_v18 = vpop.f32.mrf.mxu1 }
 0x193   :  { %1775 = vst.msk [vmem:[%s3766_s3 + $0x2a8] sm:$0xff] %vm1689_vm0, %v1246_v15  ;;  %v1267_v19 = vadd.f32 %v3627_v7, %v2209_v17  ;;  %1875 = vst.msk [vmem:[%s3766_s3 + $0x5c8] sm:$0xff] %vm1689_vm0, %v1646_v16  ;;  %v1667_v20 = vadd.f32 %v3627_v7, %v2309_v18 }
 0x194   :  { %v1258_v21 = vpop.f32.mrf.mxu0  ;;  %v1658_v22 = vpop.f32.mrf.mxu1 }
 0x195   :  { %1780 = vst.msk [vmem:[%s3766_s3 + $0x2d0] sm:$0xff] %vm1689_vm0, %v1267_v19  ;;  %v1259_v23 = vadd.f32 %v3627_v7, %v1258_v21  ;;  %1880 = vst.msk [vmem:[%s3766_s3 + $0x5f0] sm:$0xff] %vm1689_vm0, %v1667_v20  ;;  %v1659_v24 = vadd.f32 %v3627_v7, %v1658_v22 }
 0x196   :  { %v2210_v25 = vpop.f32.mrf.mxu0  ;;  %v2310_v26 = vpop.f32.mrf.mxu1 }
 0x197   :  { %1778 = vst.msk [vmem:[%s3766_s3 + $0x2c0] sm:$0xff] %vm1689_vm0, %v1259_v23  ;;  %v1270_v27 = vadd.f32 %v3627_v7, %v2210_v25  ;;  %1878 = vst.msk [vmem:[%s3766_s3 + $0x5e0] sm:$0xff] %vm1689_vm0, %v1659_v24  ;;  %v1670_v28 = vadd.f32 %v3627_v7, %v2310_v26 }
 0x198   :  { %v1261_v29 = vpop.f32.mrf.mxu0  ;;  %v1661_v30 = vpop.f32.mrf.mxu1 }
 0x199   :  { %1781 = vst.msk [vmem:[%s3766_s3 + $0x2d8] sm:$0xff] %vm1689_vm0, %v1270_v27  ;;  %v1262_v31 = vadd.f32 %v3627_v7, %v1261_v29  ;;  %1881 = vst.msk [vmem:[%s3766_s3 + $0x5f8] sm:$0xff] %vm1689_vm0, %v1670_v28  ;;  %v1662_v32 = vadd.f32 %v3627_v7, %v1661_v30 }
 0x19a   :  { %v2213_v33 = vpop.f32.mrf.mxu0  ;;  %v2313_v34 = vpop.f32.mrf.mxu1 }
 0x19b   :  { %1779 = vst.msk [vmem:[%s3766_s3 + $0x2c8] sm:$0xff] %vm1689_vm0, %v1262_v31  ;;  %v1283_v35 = vadd.f32 %v3627_v7, %v2213_v33  ;;  %1879 = vst.msk [vmem:[%s3766_s3 + $0x5e8] sm:$0xff] %vm1689_vm0, %v1662_v32  ;;  %v1683_v36 = vadd.f32 %v3627_v7, %v2313_v34 }
 0x19c   :  { %v1274_v37 = vpop.f32.mrf.mxu0  ;;  %v1674_v38 = vpop.f32.mrf.mxu1 }
 0x19d   :  { %1784 = vst.msk [vmem:[%s3766_s3 + $0x2f0] sm:$0xff] %vm1689_vm0, %v1283_v35  ;;  %v1275_v39 = vadd.f32 %v3627_v7, %v1274_v37  ;;  %1884 = vst.msk [vmem:[%s3766_s3 + $0x610] sm:$0xff] %vm1689_vm0, %v1683_v36  ;;  %v1675_v40 = vadd.f32 %v3627_v7, %v1674_v38 }
 0x19e   :  { %v2214_v41 = vpop.f32.mrf.mxu0  ;;  %v2314_v42 = vpop.f32.mrf.mxu1 }
 0x19f   :  { %1782 = vst.msk [vmem:[%s3766_s3 + $0x2e0] sm:$0xff] %vm1689_vm0, %v1275_v39  ;;  %v1286_v44 = vadd.f32 %v3627_v7, %v2214_v41  ;;  %1882 = vst.msk [vmem:[%s3766_s3 + $0x600] sm:$0xff] %vm1689_vm0, %v1675_v40  ;;  %v1686_v45 = vadd.f32 %v3627_v7, %v2314_v42 }
 0x1a0   :  { %v1277_v46 = vpop.f32.mrf.mxu0  ;;  %v1677_v47 = vpop.f32.mrf.mxu1 }
 0x1a1   :  { %1785 = vst.msk [vmem:[%s3766_s3 + $0x2f8] sm:$0xff] %vm1689_vm0, %v1286_v44  ;;  %v1278_v48 = vadd.f32 %v3627_v7, %v1277_v46  ;;  %1885 = vst.msk [vmem:[%s3766_s3 + $0x618] sm:$0xff] %vm1689_vm0, %v1686_v45  ;;  %v1678_v49 = vadd.f32 %v3627_v7, %v1677_v47 }
 0x1a2   :  { %v2217_v50 = vpop.f32.mrf.mxu0 }
 0x1a3   :  { %1783 = vst.msk [vmem:[%s3766_s3 + $0x2e8] sm:$0xff] %vm1689_vm0, %v1278_v48  ;;  %v1299_v51 = vadd.f32 %v3627_v7, %v2217_v50  ;;  %1883 = vst.msk [vmem:[%s3766_s3 + $0x608] sm:$0xff] %vm1689_vm0, %v1678_v49 }
 0x1a4   :  { %v1290_v52 = vpop.f32.mrf.mxu0 }
 0x1a5   :  { %1788 = vst.msk [vmem:[%s3766_s3 + $0x310] sm:$0xff] %vm1689_vm0, %v1299_v51  ;;  %v1291_v53 = vadd.f32 %v3627_v7, %v1290_v52 }
 0x1a6   :  { %v2218_v54 = vpop.f32.mrf.mxu0 }
 0x1a7   :  { %1786 = vst.msk [vmem:[%s3766_s3 + $0x300] sm:$0xff] %vm1689_vm0, %v1291_v53  ;;  %v1302_v55 = vadd.f32 %v3627_v7, %v2218_v54 }
 0x1a8   :  { %v1293_v56 = vpop.f32.mrf.mxu0 }
 0x1a9   :  { %1789 = vst.msk [vmem:[%s3766_s3 + $0x318] sm:$0xff] %vm1689_vm0, %v1302_v55  ;;  %v1294_v57 = vadd.f32 %v3627_v7, %v1293_v56 }
 0x1ab   :  { %1787 = vst.msk [vmem:[%s3766_s3 + $0x308] sm:$0xff] %vm1689_vm0, %v1294_v57 }

</bundles_post_ra>
